<compile_context>
chip_gen: v7x
topology: tpu7x:2x2x1
jax: 0.10.0
libtpu: 0.0.40
codegen_flags: <defaults>
</compile_context>

<pallas_src>
import functools
import math

import jax
import jax.numpy as jnp
from jax.experimental import pallas as pl
from jax.experimental.pallas import tpu as pltpu

_OUT_PAD = 128  # lane-dense padded width for the tiny output head (out_size -> 128 lanes)


# ---------------------------------------------------------------------------
# The fused Pallas kernel (grid over batch/target shards; weights VMEM-resident)
# ---------------------------------------------------------------------------
def _transformer_kernel(
    src_ref, trg_ref, pe_dec_ref, gvec_ref,
    enc_in_w_ref, dec_in_w_ref, out_w_ref, out_b_ref,
    enc_wqkv_ref, enc_wo_ref, enc_w1_ref, enc_w2_ref, enc_b1_ref, enc_vec_ref,
    dec_sa_wqkv_ref, dec_sa_wo_ref, dec_ca_wq_ref, dec_ca_wkv_ref, dec_ca_wo_ref,
    dec_w1_ref, dec_w2_ref, dec_b1_ref, dec_vec_ref,
    o_ref, *, num_heads):
  f32 = jnp.float32
  Bb, W, _ = src_ref.shape            # encoder shard: Bb batch elements, W window
  Tb, Bfull, _ = trg_ref.shape        # decoder shard: Tb target positions, seq = Bfull
  D = enc_in_w_ref.shape[-1]
  H = num_heads
  dh = D // H
  assert Bb == Tb, "batch and target shards must align (B == T)"
  scale = 1.0 / math.sqrt(dh)
  num_enc = enc_wqkv_ref.shape[0]
  num_dec = dec_sa_wqkv_ref.shape[0]

  # Per-head lane masks, built once and reused by every attention of every layer.
  lane = jax.lax.broadcasted_iota(jnp.int32, (1, 1, D), 2)
  head_masks = [((lane >= h * dh) & (lane < (h + 1) * dh)).astype(f32) for h in range(H)]

  def layer_norm(x2, g, c, eps=1e-5):
    mu = jnp.mean(x2, axis=-1, keepdims=True)
    var = jnp.mean(jnp.square(x2 - mu), axis=-1, keepdims=True)
    return (x2 - mu) * jax.lax.rsqrt(var + eps) * g + c

  def mha(q3, k3, v3):
    # q3: (Bq, Sq, D); k3, v3: (Bq, Sk, D).  Heads are isolated with lane masks so all
    # contractions stay 3-D (one batch dim) and D-lane dense; results land in the correct
    # lanes, so summing over heads IS the concatenated multi-head output.  Unmasked.
    acc = None
    for m in head_masks:
      s = jnp.einsum('bqd,bkd->bqk', q3 * m, k3, preferred_element_type=f32) * scale
      s = s - jnp.max(s, axis=-1, keepdims=True)
      p = jnp.exp(s)
      p = p * pl.reciprocal(jnp.sum(p, axis=-1, keepdims=True), approx=True)
      o_h = jnp.einsum('bqk,bkd->bqd', p, v3 * m, preferred_element_type=f32)
      acc = o_h if acc is None else acc + o_h
    return acc                                   # (Bq, Sq, D)

  gvec = gvec_ref[...]
  enc_in_b = gvec[0:1]
  dec_in_b = gvec[1:2]
  pe_enc = gvec[2:2 + W]                         # (W, D)

  # ------------------------ encoder: all Bb batch elements at once ------------------------
  x2 = jnp.dot(src_ref[...].reshape(Bb * W, -1), enc_in_w_ref[...],
               preferred_element_type=f32) + enc_in_b
  x3 = x2.reshape(Bb, W, D) + pe_enc[None]
  for l in range(num_enc):
    vec = enc_vec_ref[l]                         # (9, D): bq bk bv bo g1 c1 b2 g2 c2
    x2 = x3.reshape(Bb * W, D)
    qkv = jnp.dot(x2, enc_wqkv_ref[l], preferred_element_type=f32)       # (M, 3D)
    q = (qkv[:, 0 * D:1 * D] + vec[0:1]).reshape(Bb, W, D)
    k = (qkv[:, 1 * D:2 * D] + vec[1:2]).reshape(Bb, W, D)
    v = (qkv[:, 2 * D:3 * D] + vec[2:3]).reshape(Bb, W, D)
    a2 = jnp.dot(mha(q, k, v).reshape(Bb * W, D), enc_wo_ref[l],
                 preferred_element_type=f32) + vec[3:4]
    x2 = layer_norm(x2 + a2, vec[4:5], vec[5:6])
    h1 = jnp.maximum(jnp.dot(x2, enc_w1_ref[l], preferred_element_type=f32)
                     + enc_b1_ref[l], 0.0)       # ReLU (PyTorch default activation)
    f2 = jnp.dot(h1, enc_w2_ref[l], preferred_element_type=f32) + vec[6:7]
    x2 = layer_norm(x2 + f2, vec[7:8], vec[8:9])
    x3 = x2.reshape(Bb, W, D)
  memory = x3                                    # (Bb, W, D); stays on-chip

  # ------------- decoder: all Tb target positions ("decoder batch") at once ---------------
  y2 = jnp.dot(trg_ref[...].reshape(Tb * Bfull, -1), dec_in_w_ref[...],
               preferred_element_type=f32) + dec_in_b
  y3 = y2.reshape(Tb, Bfull, D) + pe_dec_ref[...]        # (Tb, 1, D) broadcasts over Bfull
  for l in range(num_dec):
    vec = dec_vec_ref[l]   # (15,D): sa_bq..sa_bo g1 c1 ca_bq..ca_bo g2 c2 b2 g3 c3
    y2 = y3.reshape(Tb * Bfull, D)
    # self-attention (sequence dim = original batch, as implied by the reference permute)
    qkv = jnp.dot(y2, dec_sa_wqkv_ref[l], preferred_element_type=f32)
    q = (qkv[:, 0 * D:1 * D] + vec[0:1]).reshape(Tb, Bfull, D)
    k = (qkv[:, 1 * D:2 * D] + vec[1:2]).reshape(Tb, Bfull, D)
    v = (qkv[:, 2 * D:3 * D] + vec[2:3]).reshape(Tb, Bfull, D)
    sa = jnp.dot(mha(q, k, v).reshape(Tb * Bfull, D), dec_sa_wo_ref[l],
                 preferred_element_type=f32) + vec[3:4]
    y2 = layer_norm(y2 + sa, vec[4:5], vec[5:6])
    # cross-attention against the (index-aligned) encoder memory
    q = (jnp.dot(y2, dec_ca_wq_ref[l], preferred_element_type=f32)
         + vec[6:7]).reshape(Tb, Bfull, D)
    kv = jnp.dot(memory.reshape(Bb * W, D), dec_ca_wkv_ref[l],
                 preferred_element_type=f32)                             # (Bb*W, 2D)
    k = (kv[:, 0 * D:1 * D] + vec[7:8]).reshape(Bb, W, D)
    v = (kv[:, 1 * D:2 * D] + vec[8:9]).reshape(Bb, W, D)
    ca = jnp.dot(mha(q, k, v).reshape(Tb * Bfull, D), dec_ca_wo_ref[l],
                 preferred_element_type=f32) + vec[9:10]
    y2 = layer_norm(y2 + ca, vec[10:11], vec[11:12])
    # feed-forward
    h1 = jnp.maximum(jnp.dot(y2, dec_w1_ref[l], preferred_element_type=f32)
                     + dec_b1_ref[l], 0.0)
    f2 = jnp.dot(h1, dec_w2_ref[l], preferred_element_type=f32) + vec[12:13]
    y2 = layer_norm(y2 + f2, vec[13:14], vec[14:15])
    y3 = y2.reshape(Tb, Bfull, D)

  # lane-padded output head (out_size -> 128 lanes), one dense store per grid step
  out2 = jnp.dot(y3.reshape(Tb * Bfull, D), out_w_ref[...],
                 preferred_element_type=f32) + out_b_ref[...]
  o_ref[...] = out2.reshape(o_ref.shape)


# ---------------------------------------------------------------------------
# Wrapper
# ---------------------------------------------------------------------------
_WEIGHT_NAMES = (
    "gvec", "enc_in_w", "dec_in_w", "out_w_pad", "out_b_pad",
    "enc_wqkv", "enc_wo", "enc_w1", "enc_w2", "enc_b1", "enc_vec",
    "dec_sa_wqkv", "dec_sa_wo", "dec_ca_wq", "dec_ca_wkv", "dec_ca_wo",
    "dec_w1", "dec_w2", "dec_b1", "dec_vec")


def transformer_forward(params, src, trg, *, num_heads):
  bsz, window_len, in_size = src.shape
  _, target_len, out_size = trg.shape
  assert bsz == target_len, (
      "the reference forward permutes trg to (T, B, D) before a batch_first decoder, "
      "which only type-checks when batch == target_len")
  d_model = params["enc_in_w"].shape[-1]

  # Shard encoder-batch / decoder-target across grid steps (2 parallel steps -> both v7x TCs).
  shards = 2 if (bsz % 2 == 0 and bsz >= 2) else 1
  bb = bsz // shards

  trg_perm = jnp.transpose(trg, (1, 0, 2))        # same permute(1, 0, 2) as the PyTorch forward
  pe_dec3 = params["pe_dec"][:, None, :]          # (T, 1, D): tiled per shard, broadcast in-kernel
  weights = [params[k] for k in _WEIGHT_NAMES]

  def full_spec(arr):
    n = arr.ndim
    return pl.BlockSpec(arr.shape, lambda i, n=n: (0,) * n)

  in_specs = [
      pl.BlockSpec((bb, window_len, in_size), lambda i: (i, 0, 0)),   # src, shard over batch
      pl.BlockSpec((bb, bsz, out_size), lambda i: (i, 0, 0)),         # trg_perm, shard over T
      pl.BlockSpec((bb, 1, d_model), lambda i: (i, 0, 0)),            # pe_dec, shard over T
  ] + [full_spec(w) for w in weights]
  out_specs = pl.BlockSpec((bb, bsz, _OUT_PAD), lambda i: (i, 0, 0))

  kern = functools.partial(_transformer_kernel, num_heads=num_heads)

  out_pad = pl.pallas_call(
      kern,
      out_shape=jax.ShapeDtypeStruct((target_len, bsz, _OUT_PAD), jnp.float32),
      grid=(shards,),
      in_specs=in_specs,
      out_specs=out_specs,
      compiler_params=pltpu.CompilerParams(dimension_semantics=("parallel",)),
  )(src, trg_perm, pe_dec3, *weights)
  return out_pad[:, :, :out_size]                 # drop the lane padding of the output head


# ---------------------------------------------------------------------------
# Parameter setup (stored directly in packed kernel layout)
# ---------------------------------------------------------------------------
def sinusoidal_pe(seq_len, d_model):
  pos = jnp.arange(seq_len, dtype=jnp.float32)[:, None]
  div = jnp.exp(jnp.arange(0, d_model, 2, dtype=jnp.float32)
                * (-math.log(10000.0) / d_model))
  ang = pos * div
  pe = jnp.zeros((seq_len, d_model), jnp.float32)
  pe = pe.at[:, 0::2].set(jnp.sin(ang))
  pe = pe.at[:, 1::2].set(jnp.cos(ang))
  return pe


def init_params(key, *, input_size, output_size, d_model, feedforward, num_heads,
                num_encoder_layers, num_decoder_layers, window_len, target_len):
  del num_heads  # head split is purely a kernel-side lane partition of d_model
  initrange = 0.1
  keys = iter(jax.random.split(key, 256))
  D, FF = d_model, feedforward
  Le, Ld = num_encoder_layers, num_decoder_layers
  s_d = 1.0 / math.sqrt(D)
  s_f = 1.0 / math.sqrt(FF)

  def uni(shape, scale):
    return jax.random.uniform(next(keys), shape, jnp.float32, minval=-scale, maxval=scale)

  ones = lambda: jnp.ones((1, D), jnp.float32)
  zeros = lambda: jnp.zeros((1, D), jnp.float32)

  def enc_vec_rows():      # rows: bq bk bv bo | g1 c1 | b2 | g2 c2
    return jnp.concatenate([uni((4, D), s_d), ones(), zeros(),
                            uni((1, D), s_f), ones(), zeros()], axis=0)

  def dec_vec_rows():      # rows: sa_bq..sa_bo | g1 c1 | ca_bq..ca_bo | g2 c2 | b2 | g3 c3
    return jnp.concatenate([uni((4, D), s_d), ones(), zeros(),
                            uni((4, D), s_d), ones(), zeros(),
                            uni((1, D), s_f), ones(), zeros()], axis=0)

  out_w = uni((D, output_size), initrange)
  out_w_pad = jnp.zeros((D, _OUT_PAD), jnp.float32).at[:, :output_size].set(out_w)

  return {
      # global slab: [enc_input_bias; dec_input_bias; encoder positional encoding rows]
      "gvec": jnp.concatenate([uni((1, D), 1.0 / math.sqrt(input_size)),
                               uni((1, D), 1.0 / math.sqrt(output_size)),
                               sinusoidal_pe(window_len, D)], axis=0),
      "enc_in_w": uni((input_size, D), initrange),
      "dec_in_w": uni((output_size, D), initrange),
      "out_w_pad": out_w_pad,
      "out_b_pad": jnp.zeros((1, _OUT_PAD), jnp.float32),   # output bias zeroed (init_weights)
      "pe_dec": sinusoidal_pe(target_len, D),
      # encoder layers, stacked along a leading layer axis
      "enc_wqkv": uni((Le, D, 3 * D), s_d),
      "enc_wo": uni((Le, D, D), s_d),
      "enc_w1": uni((Le, D, FF), s_d),
      "enc_w2": uni((Le, FF, D), s_f),
      "enc_b1": uni((Le, 1, FF), s_d),
      "enc_vec": jnp.stack([enc_vec_rows() for _ in range(Le)]),
      # decoder layers, stacked along a leading layer axis
      "dec_sa_wqkv": uni((Ld, D, 3 * D), s_d),
      "dec_sa_wo": uni((Ld, D, D), s_d),
      "dec_ca_wq": uni((Ld, D, D), s_d),
      "dec_ca_wkv": uni((Ld, D, 2 * D), s_d),
      "dec_ca_wo": uni((Ld, D, D), s_d),
      "dec_w1": uni((Ld, D, FF), s_d),
      "dec_w2": uni((Ld, FF, D), s_f),
      "dec_b1": uni((Ld, 1, FF), s_d),
      "dec_vec": jnp.stack([dec_vec_rows() for _ in range(Ld)]),
  }


if __name__ == "__main__":
  # hyper-parameters implied by the module
  batch = 4              # must equal target_len (the permute(1,0,2) in the original forward)
  window_len = 8
  target_len = 4
  input_size = 4
  out_size = 2
  d_model = 32
  num_heads = 4
  feedforward = 64
  num_encoder_layers = 2
  num_decoder_layers = 2

  key = jax.random.PRNGKey(0)
  k_param, k_src, k_trg = jax.random.split(key, 3)
  params = init_params(k_param, input_size=input_size, output_size=out_size,
                       d_model=d_model, feedforward=feedforward, num_heads=num_heads,
                       num_encoder_layers=num_encoder_layers,
                       num_decoder_layers=num_decoder_layers,
                       window_len=window_len, target_len=target_len)
  src = jax.random.normal(k_src, (batch, window_len, input_size), jnp.float32)
  trg = jax.random.normal(k_trg, (batch, target_len, out_size), jnp.float32)

  fwd = jax.jit(functools.partial(transformer_forward, num_heads=num_heads))
  out = jax.block_until_ready(fwd(params, src, trg))

  assert out.shape == (target_len, batch, out_size), out.shape
  assert bool(jnp.all(jnp.isfinite(out))), "non-finite output"
  print("KERNEL_OK")
</pallas_src>

<mosaic_0001>
module attributes {stable_mosaic.version = 11 : i64} {
  func.func @_transformer_kernel(%arg0: i32, %arg1: memref<2x8x4xf32, #tpu.memory_space<vmem>>, %arg2: memref<2x4x2xf32, #tpu.memory_space<vmem>>, %arg3: memref<2x1x32xf32, #tpu.memory_space<vmem>>, %arg4: memref<10x32xf32, #tpu.memory_space<vmem>>, %arg5: memref<4x32xf32, #tpu.memory_space<vmem>>, %arg6: memref<2x32xf32, #tpu.memory_space<vmem>>, %arg7: memref<32x128xf32, #tpu.memory_space<vmem>>, %arg8: memref<1x128xf32, #tpu.memory_space<vmem>>, %arg9: memref<2x32x96xf32, #tpu.memory_space<vmem>>, %arg10: memref<2x32x32xf32, #tpu.memory_space<vmem>>, %arg11: memref<2x32x64xf32, #tpu.memory_space<vmem>>, %arg12: memref<2x64x32xf32, #tpu.memory_space<vmem>>, %arg13: memref<2x1x64xf32, #tpu.memory_space<vmem>>, %arg14: memref<2x9x32xf32, #tpu.memory_space<vmem>>, %arg15: memref<2x32x96xf32, #tpu.memory_space<vmem>>, %arg16: memref<2x32x32xf32, #tpu.memory_space<vmem>>, %arg17: memref<2x32x32xf32, #tpu.memory_space<vmem>>, %arg18: memref<2x32x64xf32, #tpu.memory_space<vmem>>, %arg19: memref<2x32x32xf32, #tpu.memory_space<vmem>>, %arg20: memref<2x32x64xf32, #tpu.memory_space<vmem>>, %arg21: memref<2x64x32xf32, #tpu.memory_space<vmem>>, %arg22: memref<2x1x64xf32, #tpu.memory_space<vmem>>, %arg23: memref<2x15x32xf32, #tpu.memory_space<vmem>>, %arg24: memref<2x4x128xf32, #tpu.memory_space<vmem>>) attributes {dimension_semantics = [#tpu.dimension_semantics<parallel>], iteration_bounds = array<i64: 2>, scalar_prefetch = 0 : i64, scratch_operands = 0 : i64, tpu.core_type = #tpu.core_type<tc>, window_params = [{transform_indices = @transform_0, window_bounds = array<i64: 2, 8, 4>}, {transform_indices = @transform_1, window_bounds = array<i64: 2, 4, 2>}, {transform_indices = @transform_2, window_bounds = array<i64: 2, 1, 32>}, {pipeline_mode = #tpu.pipeline_mode<synchronous>, transform_indices = @transform_3, window_bounds = array<i64: 10, 32>}, {pipeline_mode = #tpu.pipeline_mode<synchronous>, transform_indices = @transform_4, window_bounds = array<i64: 4, 32>}, {pipeline_mode = #tpu.pipeline_mode<synchronous>, transform_indices = @transform_5, window_bounds = array<i64: 2, 32>}, {pipeline_mode = #tpu.pipeline_mode<synchronous>, transform_indices = @transform_6, window_bounds = array<i64: 32, 128>}, {pipeline_mode = #tpu.pipeline_mode<synchronous>, transform_indices = @transform_7, window_bounds = array<i64: 1, 128>}, {pipeline_mode = #tpu.pipeline_mode<synchronous>, transform_indices = @transform_8, window_bounds = array<i64: 2, 32, 96>}, {pipeline_mode = #tpu.pipeline_mode<synchronous>, transform_indices = @transform_9, window_bounds = array<i64: 2, 32, 32>}, {pipeline_mode = #tpu.pipeline_mode<synchronous>, transform_indices = @transform_10, window_bounds = array<i64: 2, 32, 64>}, {pipeline_mode = #tpu.pipeline_mode<synchronous>, transform_indices = @transform_11, window_bounds = array<i64: 2, 64, 32>}, {pipeline_mode = #tpu.pipeline_mode<synchronous>, transform_indices = @transform_12, window_bounds = array<i64: 2, 1, 64>}, {pipeline_mode = #tpu.pipeline_mode<synchronous>, transform_indices = @transform_13, window_bounds = array<i64: 2, 9, 32>}, {pipeline_mode = #tpu.pipeline_mode<synchronous>, transform_indices = @transform_14, window_bounds = array<i64: 2, 32, 96>}, {pipeline_mode = #tpu.pipeline_mode<synchronous>, transform_indices = @transform_15, window_bounds = array<i64: 2, 32, 32>}, {pipeline_mode = #tpu.pipeline_mode<synchronous>, transform_indices = @transform_16, window_bounds = array<i64: 2, 32, 32>}, {pipeline_mode = #tpu.pipeline_mode<synchronous>, transform_indices = @transform_17, window_bounds = array<i64: 2, 32, 64>}, {pipeline_mode = #tpu.pipeline_mode<synchronous>, transform_indices = @transform_18, window_bounds = array<i64: 2, 32, 32>}, {pipeline_mode = #tpu.pipeline_mode<synchronous>, transform_indices = @transform_19, window_bounds = array<i64: 2, 32, 64>}, {pipeline_mode = #tpu.pipeline_mode<synchronous>, transform_indices = @transform_20, window_bounds = array<i64: 2, 64, 32>}, {pipeline_mode = #tpu.pipeline_mode<synchronous>, transform_indices = @transform_21, window_bounds = array<i64: 2, 1, 64>}, {pipeline_mode = #tpu.pipeline_mode<synchronous>, transform_indices = @transform_22, window_bounds = array<i64: 2, 15, 32>}, {transform_indices = @transform_23, window_bounds = array<i64: 2, 4, 128>}]} {
    %0 = tpu.iota {dimensions = array<i32: 2>} : vector<1x1x32xi32>
    %c0_i32 = arith.constant 0 : i32
    %1 = vector.broadcast %c0_i32 : i32 to vector<1x1x32xi32>
    %2 = arith.cmpi sge, %0, %1 : vector<1x1x32xi32>
    %c8_i32 = arith.constant 8 : i32
    %3 = vector.broadcast %c8_i32 : i32 to vector<1x1x32xi32>
    %4 = arith.cmpi slt, %0, %3 : vector<1x1x32xi32>
    %5 = arith.andi %2, %4 : vector<1x1x32xi1>
    %6 = arith.extui %5 : vector<1x1x32xi1> to vector<1x1x32xi32>
    %7 = arith.sitofp %6 : vector<1x1x32xi32> to vector<1x1x32xf32>
    %c8_i32_0 = arith.constant 8 : i32
    %8 = vector.broadcast %c8_i32_0 : i32 to vector<1x1x32xi32>
    %9 = arith.cmpi sge, %0, %8 : vector<1x1x32xi32>
    %c16_i32 = arith.constant 16 : i32
    %10 = vector.broadcast %c16_i32 : i32 to vector<1x1x32xi32>
    %11 = arith.cmpi slt, %0, %10 : vector<1x1x32xi32>
    %12 = arith.andi %9, %11 : vector<1x1x32xi1>
    %13 = arith.extui %12 : vector<1x1x32xi1> to vector<1x1x32xi32>
    %14 = arith.sitofp %13 : vector<1x1x32xi32> to vector<1x1x32xf32>
    %c16_i32_1 = arith.constant 16 : i32
    %15 = vector.broadcast %c16_i32_1 : i32 to vector<1x1x32xi32>
    %16 = arith.cmpi sge, %0, %15 : vector<1x1x32xi32>
    %c24_i32 = arith.constant 24 : i32
    %17 = vector.broadcast %c24_i32 : i32 to vector<1x1x32xi32>
    %18 = arith.cmpi slt, %0, %17 : vector<1x1x32xi32>
    %19 = arith.andi %16, %18 : vector<1x1x32xi1>
    %20 = arith.extui %19 : vector<1x1x32xi1> to vector<1x1x32xi32>
    %21 = arith.sitofp %20 : vector<1x1x32xi32> to vector<1x1x32xf32>
    %c24_i32_2 = arith.constant 24 : i32
    %22 = vector.broadcast %c24_i32_2 : i32 to vector<1x1x32xi32>
    %23 = arith.cmpi sge, %0, %22 : vector<1x1x32xi32>
    %c32_i32 = arith.constant 32 : i32
    %24 = vector.broadcast %c32_i32 : i32 to vector<1x1x32xi32>
    %25 = arith.cmpi slt, %0, %24 : vector<1x1x32xi32>
    %26 = arith.andi %23, %25 : vector<1x1x32xi1>
    %27 = arith.extui %26 : vector<1x1x32xi1> to vector<1x1x32xi32>
    %28 = arith.sitofp %27 : vector<1x1x32xi32> to vector<1x1x32xf32>
    %c0 = arith.constant 0 : index
    %c0_3 = arith.constant 0 : index
    %29 = vector.load %arg4[%c0, %c0_3] : memref<10x32xf32, #tpu.memory_space<vmem>>, vector<10x32xf32>
    %30 = vector.extract_strided_slice %29 {offsets = [0, 0], sizes = [1, 32], strides = [1, 1]} : vector<10x32xf32> to vector<1x32xf32>
    %31 = vector.extract_strided_slice %29 {offsets = [1, 0], sizes = [1, 32], strides = [1, 1]} : vector<10x32xf32> to vector<1x32xf32>
    %32 = vector.extract_strided_slice %29 {offsets = [2, 0], sizes = [8, 32], strides = [1, 1]} : vector<10x32xf32> to vector<8x32xf32>
    %c0_4 = arith.constant 0 : index
    %c0_5 = arith.constant 0 : index
    %c0_6 = arith.constant 0 : index
    %33 = vector.load %arg1[%c0_4, %c0_5, %c0_6] : memref<2x8x4xf32, #tpu.memory_space<vmem>>, vector<2x8x4xf32>
    %34 = vector.shape_cast %33 : vector<2x8x4xf32> to vector<16x4xf32>
    %c0_7 = arith.constant 0 : index
    %c0_8 = arith.constant 0 : index
    %35 = vector.load %arg5[%c0_7, %c0_8] : memref<4x32xf32, #tpu.memory_space<vmem>>, vector<4x32xf32>
    %cst = arith.constant dense<0.000000e+00> : vector<16x32xf32>
    %36 = tpu.matmul %34, %35, %cst {dimension_numbers = #tpu.dot_dimension_numbers<[1], [0], [0], [1], [0, 0, 1, 1], [], []>} : vector<16x4xf32>, vector<4x32xf32>, vector<16x32xf32> -> vector<16x32xf32>
    %37 = vector.broadcast %30 : vector<1x32xf32> to vector<16x32xf32>
    %38 = arith.addf %36, %37 : vector<16x32xf32>
    %39 = vector.shape_cast %38 : vector<16x32xf32> to vector<2x8x32xf32>
    %40 = vector.shape_cast %32 : vector<8x32xf32> to vector<1x8x32xf32>
    %41 = vector.broadcast %40 : vector<1x8x32xf32> to vector<2x8x32xf32>
    %42 = arith.addf %39, %41 : vector<2x8x32xf32>
    %c0_9 = arith.constant 0 : index
    %c0_10 = arith.constant 0 : index
    %c0_11 = arith.constant 0 : index
    %43 = vector.load %arg14[%c0_9, %c0_10, %c0_11] : memref<2x9x32xf32, #tpu.memory_space<vmem>>, vector<1x9x32xf32>
    %44 = vector.shape_cast %43 : vector<1x9x32xf32> to vector<9x32xf32>
    %45 = vector.shape_cast %42 : vector<2x8x32xf32> to vector<16x32xf32>
    %c0_12 = arith.constant 0 : index
    %c0_13 = arith.constant 0 : index
    %c0_14 = arith.constant 0 : index
    %46 = vector.load %arg9[%c0_12, %c0_13, %c0_14] : memref<2x32x96xf32, #tpu.memory_space<vmem>>, vector<1x32x96xf32>
    %47 = vector.shape_cast %46 : vector<1x32x96xf32> to vector<32x96xf32>
    %cst_15 = arith.constant dense<0.000000e+00> : vector<16x96xf32>
    %48 = tpu.matmul %45, %47, %cst_15 {dimension_numbers = #tpu.dot_dimension_numbers<[1], [0], [0], [1], [0, 0, 1, 1], [], []>} : vector<16x32xf32>, vector<32x96xf32>, vector<16x96xf32> -> vector<16x96xf32>
    %49 = vector.extract_strided_slice %48 {offsets = [0, 0], sizes = [16, 32], strides = [1, 1]} : vector<16x96xf32> to vector<16x32xf32>
    %50 = vector.extract_strided_slice %44 {offsets = [0, 0], sizes = [1, 32], strides = [1, 1]} : vector<9x32xf32> to vector<1x32xf32>
    %51 = vector.broadcast %50 : vector<1x32xf32> to vector<16x32xf32>
    %52 = arith.addf %49, %51 : vector<16x32xf32>
    %53 = vector.shape_cast %52 : vector<16x32xf32> to vector<2x8x32xf32>
    %54 = vector.extract_strided_slice %48 {offsets = [0, 32], sizes = [16, 32], strides = [1, 1]} : vector<16x96xf32> to vector<16x32xf32>
    %55 = vector.extract_strided_slice %44 {offsets = [1, 0], sizes = [1, 32], strides = [1, 1]} : vector<9x32xf32> to vector<1x32xf32>
    %56 = vector.broadcast %55 : vector<1x32xf32> to vector<16x32xf32>
    %57 = arith.addf %54, %56 : vector<16x32xf32>
    %58 = vector.shape_cast %57 : vector<16x32xf32> to vector<2x8x32xf32>
    %59 = vector.extract_strided_slice %48 {offsets = [0, 64], sizes = [16, 32], strides = [1, 1]} : vector<16x96xf32> to vector<16x32xf32>
    %60 = vector.extract_strided_slice %44 {offsets = [2, 0], sizes = [1, 32], strides = [1, 1]} : vector<9x32xf32> to vector<1x32xf32>
    %61 = vector.broadcast %60 : vector<1x32xf32> to vector<16x32xf32>
    %62 = arith.addf %59, %61 : vector<16x32xf32>
    %63 = vector.shape_cast %62 : vector<16x32xf32> to vector<2x8x32xf32>
    %64 = vector.broadcast %7 : vector<1x1x32xf32> to vector<2x8x32xf32>
    %65 = arith.mulf %53, %64 : vector<2x8x32xf32>
    "tpu.trace_start"() <{level = 10 : i32, message = "bqd,bkd->bqk"}> : () -> ()
    %cst_16 = arith.constant dense<0.000000e+00> : vector<2x8x8xf32>
    %66 = tpu.matmul %65, %58, %cst_16 {dimension_numbers = #tpu.dot_dimension_numbers<[2], [2], [1], [1], [0, 0, 0, 1, 1, 1], [0], [0]>} : vector<2x8x32xf32>, vector<2x8x32xf32>, vector<2x8x8xf32> -> vector<2x8x8xf32>
    "tpu.trace_stop"() : () -> ()
    %cst_17 = arith.constant 0.353553385 : f32
    %67 = vector.broadcast %cst_17 : f32 to vector<2x8x8xf32>
    %68 = arith.mulf %66, %67 : vector<2x8x8xf32>
    %cst_18 = arith.constant dense<0xFF800000> : vector<2x8xf32>
    %69 = vector.multi_reduction <maximumf>, %68, %cst_18 [2] : vector<2x8x8xf32> to vector<2x8xf32>
    %70 = vector.shape_cast %69 : vector<2x8xf32> to vector<2x8x1xf32>
    %71 = vector.broadcast %70 : vector<2x8x1xf32> to vector<2x8x8xf32>
    %72 = arith.subf %68, %71 : vector<2x8x8xf32>
    %73 = math.exp %72 : vector<2x8x8xf32>
    %cst_19 = arith.constant dense<0.000000e+00> : vector<2x8xf32>
    %74 = vector.multi_reduction <add>, %73, %cst_19 [2] : vector<2x8x8xf32> to vector<2x8xf32>
    %75 = vector.shape_cast %74 : vector<2x8xf32> to vector<2x8x1xf32>
    %76 = tpu.reciprocal %75 {approx = true} : vector<2x8x1xf32> -> vector<2x8x1xf32>
    %77 = vector.broadcast %76 : vector<2x8x1xf32> to vector<2x8x8xf32>
    %78 = arith.mulf %73, %77 : vector<2x8x8xf32>
    %79 = vector.broadcast %7 : vector<1x1x32xf32> to vector<2x8x32xf32>
    %80 = arith.mulf %63, %79 : vector<2x8x32xf32>
    "tpu.trace_start"() <{level = 10 : i32, message = "bqk,bkd->bqd"}> : () -> ()
    %cst_20 = arith.constant dense<0.000000e+00> : vector<2x8x32xf32>
    %81 = tpu.matmul %78, %80, %cst_20 {dimension_numbers = #tpu.dot_dimension_numbers<[2], [1], [1], [2], [0, 0, 0, 1, 1, 2], [0], [0]>} : vector<2x8x8xf32>, vector<2x8x32xf32>, vector<2x8x32xf32> -> vector<2x8x32xf32>
    "tpu.trace_stop"() : () -> ()
    %82 = vector.broadcast %14 : vector<1x1x32xf32> to vector<2x8x32xf32>
    %83 = arith.mulf %53, %82 : vector<2x8x32xf32>
    "tpu.trace_start"() <{level = 10 : i32, message = "bqd,bkd->bqk"}> : () -> ()
    %cst_21 = arith.constant dense<0.000000e+00> : vector<2x8x8xf32>
    %84 = tpu.matmul %83, %58, %cst_21 {dimension_numbers = #tpu.dot_dimension_numbers<[2], [2], [1], [1], [0, 0, 0, 1, 1, 1], [0], [0]>} : vector<2x8x32xf32>, vector<2x8x32xf32>, vector<2x8x8xf32> -> vector<2x8x8xf32>
    "tpu.trace_stop"() : () -> ()
    %cst_22 = arith.constant 0.353553385 : f32
    %85 = vector.broadcast %cst_22 : f32 to vector<2x8x8xf32>
    %86 = arith.mulf %84, %85 : vector<2x8x8xf32>
    %cst_23 = arith.constant dense<0xFF800000> : vector<2x8xf32>
    %87 = vector.multi_reduction <maximumf>, %86, %cst_23 [2] : vector<2x8x8xf32> to vector<2x8xf32>
    %88 = vector.shape_cast %87 : vector<2x8xf32> to vector<2x8x1xf32>
    %89 = vector.broadcast %88 : vector<2x8x1xf32> to vector<2x8x8xf32>
    %90 = arith.subf %86, %89 : vector<2x8x8xf32>
    %91 = math.exp %90 : vector<2x8x8xf32>
    %cst_24 = arith.constant dense<0.000000e+00> : vector<2x8xf32>
    %92 = vector.multi_reduction <add>, %91, %cst_24 [2] : vector<2x8x8xf32> to vector<2x8xf32>
    %93 = vector.shape_cast %92 : vector<2x8xf32> to vector<2x8x1xf32>
    %94 = tpu.reciprocal %93 {approx = true} : vector<2x8x1xf32> -> vector<2x8x1xf32>
    %95 = vector.broadcast %94 : vector<2x8x1xf32> to vector<2x8x8xf32>
    %96 = arith.mulf %91, %95 : vector<2x8x8xf32>
    %97 = vector.broadcast %14 : vector<1x1x32xf32> to vector<2x8x32xf32>
    %98 = arith.mulf %63, %97 : vector<2x8x32xf32>
    "tpu.trace_start"() <{level = 10 : i32, message = "bqk,bkd->bqd"}> : () -> ()
    %cst_25 = arith.constant dense<0.000000e+00> : vector<2x8x32xf32>
    %99 = tpu.matmul %96, %98, %cst_25 {dimension_numbers = #tpu.dot_dimension_numbers<[2], [1], [1], [2], [0, 0, 0, 1, 1, 2], [0], [0]>} : vector<2x8x8xf32>, vector<2x8x32xf32>, vector<2x8x32xf32> -> vector<2x8x32xf32>
    "tpu.trace_stop"() : () -> ()
    %100 = arith.addf %81, %99 : vector<2x8x32xf32>
    %101 = vector.broadcast %21 : vector<1x1x32xf32> to vector<2x8x32xf32>
    %102 = arith.mulf %53, %101 : vector<2x8x32xf32>
    "tpu.trace_start"() <{level = 10 : i32, message = "bqd,bkd->bqk"}> : () -> ()
    %cst_26 = arith.constant dense<0.000000e+00> : vector<2x8x8xf32>
    %103 = tpu.matmul %102, %58, %cst_26 {dimension_numbers = #tpu.dot_dimension_numbers<[2], [2], [1], [1], [0, 0, 0, 1, 1, 1], [0], [0]>} : vector<2x8x32xf32>, vector<2x8x32xf32>, vector<2x8x8xf32> -> vector<2x8x8xf32>
    "tpu.trace_stop"() : () -> ()
    %cst_27 = arith.constant 0.353553385 : f32
    %104 = vector.broadcast %cst_27 : f32 to vector<2x8x8xf32>
    %105 = arith.mulf %103, %104 : vector<2x8x8xf32>
    %cst_28 = arith.constant dense<0xFF800000> : vector<2x8xf32>
    %106 = vector.multi_reduction <maximumf>, %105, %cst_28 [2] : vector<2x8x8xf32> to vector<2x8xf32>
    %107 = vector.shape_cast %106 : vector<2x8xf32> to vector<2x8x1xf32>
    %108 = vector.broadcast %107 : vector<2x8x1xf32> to vector<2x8x8xf32>
    %109 = arith.subf %105, %108 : vector<2x8x8xf32>
    %110 = math.exp %109 : vector<2x8x8xf32>
    %cst_29 = arith.constant dense<0.000000e+00> : vector<2x8xf32>
    %111 = vector.multi_reduction <add>, %110, %cst_29 [2] : vector<2x8x8xf32> to vector<2x8xf32>
    %112 = vector.shape_cast %111 : vector<2x8xf32> to vector<2x8x1xf32>
    %113 = tpu.reciprocal %112 {approx = true} : vector<2x8x1xf32> -> vector<2x8x1xf32>
    %114 = vector.broadcast %113 : vector<2x8x1xf32> to vector<2x8x8xf32>
    %115 = arith.mulf %110, %114 : vector<2x8x8xf32>
    %116 = vector.broadcast %21 : vector<1x1x32xf32> to vector<2x8x32xf32>
    %117 = arith.mulf %63, %116 : vector<2x8x32xf32>
    "tpu.trace_start"() <{level = 10 : i32, message = "bqk,bkd->bqd"}> : () -> ()
    %cst_30 = arith.constant dense<0.000000e+00> : vector<2x8x32xf32>
    %118 = tpu.matmul %115, %117, %cst_30 {dimension_numbers = #tpu.dot_dimension_numbers<[2], [1], [1], [2], [0, 0, 0, 1, 1, 2], [0], [0]>} : vector<2x8x8xf32>, vector<2x8x32xf32>, vector<2x8x32xf32> -> vector<2x8x32xf32>
    "tpu.trace_stop"() : () -> ()
    %119 = arith.addf %100, %118 : vector<2x8x32xf32>
    %120 = vector.broadcast %28 : vector<1x1x32xf32> to vector<2x8x32xf32>
    %121 = arith.mulf %53, %120 : vector<2x8x32xf32>
    "tpu.trace_start"() <{level = 10 : i32, message = "bqd,bkd->bqk"}> : () -> ()
    %cst_31 = arith.constant dense<0.000000e+00> : vector<2x8x8xf32>
    %122 = tpu.matmul %121, %58, %cst_31 {dimension_numbers = #tpu.dot_dimension_numbers<[2], [2], [1], [1], [0, 0, 0, 1, 1, 1], [0], [0]>} : vector<2x8x32xf32>, vector<2x8x32xf32>, vector<2x8x8xf32> -> vector<2x8x8xf32>
    "tpu.trace_stop"() : () -> ()
    %cst_32 = arith.constant 0.353553385 : f32
    %123 = vector.broadcast %cst_32 : f32 to vector<2x8x8xf32>
    %124 = arith.mulf %122, %123 : vector<2x8x8xf32>
    %cst_33 = arith.constant dense<0xFF800000> : vector<2x8xf32>
    %125 = vector.multi_reduction <maximumf>, %124, %cst_33 [2] : vector<2x8x8xf32> to vector<2x8xf32>
    %126 = vector.shape_cast %125 : vector<2x8xf32> to vector<2x8x1xf32>
    %127 = vector.broadcast %126 : vector<2x8x1xf32> to vector<2x8x8xf32>
    %128 = arith.subf %124, %127 : vector<2x8x8xf32>
    %129 = math.exp %128 : vector<2x8x8xf32>
    %cst_34 = arith.constant dense<0.000000e+00> : vector<2x8xf32>
    %130 = vector.multi_reduction <add>, %129, %cst_34 [2] : vector<2x8x8xf32> to vector<2x8xf32>
    %131 = vector.shape_cast %130 : vector<2x8xf32> to vector<2x8x1xf32>
    %132 = tpu.reciprocal %131 {approx = true} : vector<2x8x1xf32> -> vector<2x8x1xf32>
    %133 = vector.broadcast %132 : vector<2x8x1xf32> to vector<2x8x8xf32>
    %134 = arith.mulf %129, %133 : vector<2x8x8xf32>
    %135 = vector.broadcast %28 : vector<1x1x32xf32> to vector<2x8x32xf32>
    %136 = arith.mulf %63, %135 : vector<2x8x32xf32>
    "tpu.trace_start"() <{level = 10 : i32, message = "bqk,bkd->bqd"}> : () -> ()
    %cst_35 = arith.constant dense<0.000000e+00> : vector<2x8x32xf32>
    %137 = tpu.matmul %134, %136, %cst_35 {dimension_numbers = #tpu.dot_dimension_numbers<[2], [1], [1], [2], [0, 0, 0, 1, 1, 2], [0], [0]>} : vector<2x8x8xf32>, vector<2x8x32xf32>, vector<2x8x32xf32> -> vector<2x8x32xf32>
    "tpu.trace_stop"() : () -> ()
    %138 = arith.addf %119, %137 : vector<2x8x32xf32>
    %139 = vector.shape_cast %138 : vector<2x8x32xf32> to vector<16x32xf32>
    %c0_36 = arith.constant 0 : index
    %c0_37 = arith.constant 0 : index
    %c0_38 = arith.constant 0 : index
    %140 = vector.load %arg10[%c0_36, %c0_37, %c0_38] : memref<2x32x32xf32, #tpu.memory_space<vmem>>, vector<1x32x32xf32>
    %141 = vector.shape_cast %140 : vector<1x32x32xf32> to vector<32x32xf32>
    %cst_39 = arith.constant dense<0.000000e+00> : vector<16x32xf32>
    %142 = tpu.matmul %139, %141, %cst_39 {dimension_numbers = #tpu.dot_dimension_numbers<[1], [0], [0], [1], [0, 0, 1, 1], [], []>} : vector<16x32xf32>, vector<32x32xf32>, vector<16x32xf32> -> vector<16x32xf32>
    %143 = vector.extract_strided_slice %44 {offsets = [3, 0], sizes = [1, 32], strides = [1, 1]} : vector<9x32xf32> to vector<1x32xf32>
    %144 = vector.broadcast %143 : vector<1x32xf32> to vector<16x32xf32>
    %145 = arith.addf %142, %144 : vector<16x32xf32>
    %146 = arith.addf %45, %145 : vector<16x32xf32>
    %147 = vector.extract_strided_slice %44 {offsets = [4, 0], sizes = [1, 32], strides = [1, 1]} : vector<9x32xf32> to vector<1x32xf32>
    %148 = vector.extract_strided_slice %44 {offsets = [5, 0], sizes = [1, 32], strides = [1, 1]} : vector<9x32xf32> to vector<1x32xf32>
    %cst_40 = arith.constant dense<0.000000e+00> : vector<16xf32>
    %149 = vector.multi_reduction <add>, %146, %cst_40 [1] : vector<16x32xf32> to vector<16xf32>
    %150 = vector.shape_cast %149 : vector<16xf32> to vector<16x1xf32>
    %cst_41 = arith.constant 3.200000e+01 : f32
    %151 = vector.broadcast %cst_41 : f32 to vector<16x1xf32>
    %152 = arith.divf %150, %151 : vector<16x1xf32>
    %153 = vector.broadcast %152 : vector<16x1xf32> to vector<16x32xf32>
    %154 = arith.subf %146, %153 : vector<16x32xf32>
    %155 = arith.mulf %154, %154 : vector<16x32xf32>
    %cst_42 = arith.constant dense<0.000000e+00> : vector<16xf32>
    %156 = vector.multi_reduction <add>, %155, %cst_42 [1] : vector<16x32xf32> to vector<16xf32>
    %157 = vector.shape_cast %156 : vector<16xf32> to vector<16x1xf32>
    %cst_43 = arith.constant 3.200000e+01 : f32
    %158 = vector.broadcast %cst_43 : f32 to vector<16x1xf32>
    %159 = arith.divf %157, %158 : vector<16x1xf32>
    %160 = vector.broadcast %152 : vector<16x1xf32> to vector<16x32xf32>
    %161 = arith.subf %146, %160 : vector<16x32xf32>
    %cst_44 = arith.constant 9.99999974E-6 : f32
    %162 = vector.broadcast %cst_44 : f32 to vector<16x1xf32>
    %163 = arith.addf %159, %162 : vector<16x1xf32>
    %164 = math.rsqrt %163 : vector<16x1xf32>
    %165 = vector.broadcast %164 : vector<16x1xf32> to vector<16x32xf32>
    %166 = arith.mulf %161, %165 : vector<16x32xf32>
    %167 = vector.broadcast %147 : vector<1x32xf32> to vector<16x32xf32>
    %168 = arith.mulf %166, %167 : vector<16x32xf32>
    %169 = vector.broadcast %148 : vector<1x32xf32> to vector<16x32xf32>
    %170 = arith.addf %168, %169 : vector<16x32xf32>
    %c0_45 = arith.constant 0 : index
    %c0_46 = arith.constant 0 : index
    %c0_47 = arith.constant 0 : index
    %171 = vector.load %arg11[%c0_45, %c0_46, %c0_47] : memref<2x32x64xf32, #tpu.memory_space<vmem>>, vector<1x32x64xf32>
    %172 = vector.shape_cast %171 : vector<1x32x64xf32> to vector<32x64xf32>
    %cst_48 = arith.constant dense<0.000000e+00> : vector<16x64xf32>
    %173 = tpu.matmul %170, %172, %cst_48 {dimension_numbers = #tpu.dot_dimension_numbers<[1], [0], [0], [1], [0, 0, 1, 1], [], []>} : vector<16x32xf32>, vector<32x64xf32>, vector<16x64xf32> -> vector<16x64xf32>
    %c0_49 = arith.constant 0 : index
    %c0_50 = arith.constant 0 : index
    %c0_51 = arith.constant 0 : index
    %174 = vector.load %arg13[%c0_49, %c0_50, %c0_51] : memref<2x1x64xf32, #tpu.memory_space<vmem>>, vector<1x1x64xf32>
    %175 = vector.shape_cast %174 : vector<1x1x64xf32> to vector<1x64xf32>
    %176 = vector.broadcast %175 : vector<1x64xf32> to vector<16x64xf32>
    %177 = arith.addf %173, %176 : vector<16x64xf32>
    %cst_52 = arith.constant 0.000000e+00 : f32
    %178 = vector.broadcast %cst_52 : f32 to vector<16x64xf32>
    %179 = arith.maximumf %177, %178 : vector<16x64xf32>
    %c0_53 = arith.constant 0 : index
    %c0_54 = arith.constant 0 : index
    %c0_55 = arith.constant 0 : index
    %180 = vector.load %arg12[%c0_53, %c0_54, %c0_55] : memref<2x64x32xf32, #tpu.memory_space<vmem>>, vector<1x64x32xf32>
    %181 = vector.shape_cast %180 : vector<1x64x32xf32> to vector<64x32xf32>
    %cst_56 = arith.constant dense<0.000000e+00> : vector<16x32xf32>
    %182 = tpu.matmul %179, %181, %cst_56 {dimension_numbers = #tpu.dot_dimension_numbers<[1], [0], [0], [1], [0, 0, 1, 1], [], []>} : vector<16x64xf32>, vector<64x32xf32>, vector<16x32xf32> -> vector<16x32xf32>
    %183 = vector.extract_strided_slice %44 {offsets = [6, 0], sizes = [1, 32], strides = [1, 1]} : vector<9x32xf32> to vector<1x32xf32>
    %184 = vector.broadcast %183 : vector<1x32xf32> to vector<16x32xf32>
    %185 = arith.addf %182, %184 : vector<16x32xf32>
    %186 = arith.addf %170, %185 : vector<16x32xf32>
    %187 = vector.extract_strided_slice %44 {offsets = [7, 0], sizes = [1, 32], strides = [1, 1]} : vector<9x32xf32> to vector<1x32xf32>
    %188 = vector.extract_strided_slice %44 {offsets = [8, 0], sizes = [1, 32], strides = [1, 1]} : vector<9x32xf32> to vector<1x32xf32>
    %cst_57 = arith.constant dense<0.000000e+00> : vector<16xf32>
    %189 = vector.multi_reduction <add>, %186, %cst_57 [1] : vector<16x32xf32> to vector<16xf32>
    %190 = vector.shape_cast %189 : vector<16xf32> to vector<16x1xf32>
    %cst_58 = arith.constant 3.200000e+01 : f32
    %191 = vector.broadcast %cst_58 : f32 to vector<16x1xf32>
    %192 = arith.divf %190, %191 : vector<16x1xf32>
    %193 = vector.broadcast %192 : vector<16x1xf32> to vector<16x32xf32>
    %194 = arith.subf %186, %193 : vector<16x32xf32>
    %195 = arith.mulf %194, %194 : vector<16x32xf32>
    %cst_59 = arith.constant dense<0.000000e+00> : vector<16xf32>
    %196 = vector.multi_reduction <add>, %195, %cst_59 [1] : vector<16x32xf32> to vector<16xf32>
    %197 = vector.shape_cast %196 : vector<16xf32> to vector<16x1xf32>
    %cst_60 = arith.constant 3.200000e+01 : f32
    %198 = vector.broadcast %cst_60 : f32 to vector<16x1xf32>
    %199 = arith.divf %197, %198 : vector<16x1xf32>
    %200 = vector.broadcast %192 : vector<16x1xf32> to vector<16x32xf32>
    %201 = arith.subf %186, %200 : vector<16x32xf32>
    %cst_61 = arith.constant 9.99999974E-6 : f32
    %202 = vector.broadcast %cst_61 : f32 to vector<16x1xf32>
    %203 = arith.addf %199, %202 : vector<16x1xf32>
    %204 = math.rsqrt %203 : vector<16x1xf32>
    %205 = vector.broadcast %204 : vector<16x1xf32> to vector<16x32xf32>
    %206 = arith.mulf %201, %205 : vector<16x32xf32>
    %207 = vector.broadcast %187 : vector<1x32xf32> to vector<16x32xf32>
    %208 = arith.mulf %206, %207 : vector<16x32xf32>
    %209 = vector.broadcast %188 : vector<1x32xf32> to vector<16x32xf32>
    %210 = arith.addf %208, %209 : vector<16x32xf32>
    %211 = vector.shape_cast %210 : vector<16x32xf32> to vector<2x8x32xf32>
    %c1 = arith.constant 1 : index
    %c0_62 = arith.constant 0 : index
    %c0_63 = arith.constant 0 : index
    %212 = vector.load %arg14[%c1, %c0_62, %c0_63] : memref<2x9x32xf32, #tpu.memory_space<vmem>>, vector<1x9x32xf32>
    %213 = vector.shape_cast %212 : vector<1x9x32xf32> to vector<9x32xf32>
    %214 = vector.shape_cast %211 : vector<2x8x32xf32> to vector<16x32xf32>
    %c1_64 = arith.constant 1 : index
    %c0_65 = arith.constant 0 : index
    %c0_66 = arith.constant 0 : index
    %215 = vector.load %arg9[%c1_64, %c0_65, %c0_66] : memref<2x32x96xf32, #tpu.memory_space<vmem>>, vector<1x32x96xf32>
    %216 = vector.shape_cast %215 : vector<1x32x96xf32> to vector<32x96xf32>
    %cst_67 = arith.constant dense<0.000000e+00> : vector<16x96xf32>
    %217 = tpu.matmul %214, %216, %cst_67 {dimension_numbers = #tpu.dot_dimension_numbers<[1], [0], [0], [1], [0, 0, 1, 1], [], []>} : vector<16x32xf32>, vector<32x96xf32>, vector<16x96xf32> -> vector<16x96xf32>
    %218 = vector.extract_strided_slice %217 {offsets = [0, 0], sizes = [16, 32], strides = [1, 1]} : vector<16x96xf32> to vector<16x32xf32>
    %219 = vector.extract_strided_slice %213 {offsets = [0, 0], sizes = [1, 32], strides = [1, 1]} : vector<9x32xf32> to vector<1x32xf32>
    %220 = vector.broadcast %219 : vector<1x32xf32> to vector<16x32xf32>
    %221 = arith.addf %218, %220 : vector<16x32xf32>
    %222 = vector.shape_cast %221 : vector<16x32xf32> to vector<2x8x32xf32>
    %223 = vector.extract_strided_slice %217 {offsets = [0, 32], sizes = [16, 32], strides = [1, 1]} : vector<16x96xf32> to vector<16x32xf32>
    %224 = vector.extract_strided_slice %213 {offsets = [1, 0], sizes = [1, 32], strides = [1, 1]} : vector<9x32xf32> to vector<1x32xf32>
    %225 = vector.broadcast %224 : vector<1x32xf32> to vector<16x32xf32>
    %226 = arith.addf %223, %225 : vector<16x32xf32>
    %227 = vector.shape_cast %226 : vector<16x32xf32> to vector<2x8x32xf32>
    %228 = vector.extract_strided_slice %217 {offsets = [0, 64], sizes = [16, 32], strides = [1, 1]} : vector<16x96xf32> to vector<16x32xf32>
    %229 = vector.extract_strided_slice %213 {offsets = [2, 0], sizes = [1, 32], strides = [1, 1]} : vector<9x32xf32> to vector<1x32xf32>
    %230 = vector.broadcast %229 : vector<1x32xf32> to vector<16x32xf32>
    %231 = arith.addf %228, %230 : vector<16x32xf32>
    %232 = vector.shape_cast %231 : vector<16x32xf32> to vector<2x8x32xf32>
    %233 = vector.broadcast %7 : vector<1x1x32xf32> to vector<2x8x32xf32>
    %234 = arith.mulf %222, %233 : vector<2x8x32xf32>
    "tpu.trace_start"() <{level = 10 : i32, message = "bqd,bkd->bqk"}> : () -> ()
    %cst_68 = arith.constant dense<0.000000e+00> : vector<2x8x8xf32>
    %235 = tpu.matmul %234, %227, %cst_68 {dimension_numbers = #tpu.dot_dimension_numbers<[2], [2], [1], [1], [0, 0, 0, 1, 1, 1], [0], [0]>} : vector<2x8x32xf32>, vector<2x8x32xf32>, vector<2x8x8xf32> -> vector<2x8x8xf32>
    "tpu.trace_stop"() : () -> ()
    %cst_69 = arith.constant 0.353553385 : f32
    %236 = vector.broadcast %cst_69 : f32 to vector<2x8x8xf32>
    %237 = arith.mulf %235, %236 : vector<2x8x8xf32>
    %cst_70 = arith.constant dense<0xFF800000> : vector<2x8xf32>
    %238 = vector.multi_reduction <maximumf>, %237, %cst_70 [2] : vector<2x8x8xf32> to vector<2x8xf32>
    %239 = vector.shape_cast %238 : vector<2x8xf32> to vector<2x8x1xf32>
    %240 = vector.broadcast %239 : vector<2x8x1xf32> to vector<2x8x8xf32>
    %241 = arith.subf %237, %240 : vector<2x8x8xf32>
    %242 = math.exp %241 : vector<2x8x8xf32>
    %cst_71 = arith.constant dense<0.000000e+00> : vector<2x8xf32>
    %243 = vector.multi_reduction <add>, %242, %cst_71 [2] : vector<2x8x8xf32> to vector<2x8xf32>
    %244 = vector.shape_cast %243 : vector<2x8xf32> to vector<2x8x1xf32>
    %245 = tpu.reciprocal %244 {approx = true} : vector<2x8x1xf32> -> vector<2x8x1xf32>
    %246 = vector.broadcast %245 : vector<2x8x1xf32> to vector<2x8x8xf32>
    %247 = arith.mulf %242, %246 : vector<2x8x8xf32>
    %248 = vector.broadcast %7 : vector<1x1x32xf32> to vector<2x8x32xf32>
    %249 = arith.mulf %232, %248 : vector<2x8x32xf32>
    "tpu.trace_start"() <{level = 10 : i32, message = "bqk,bkd->bqd"}> : () -> ()
    %cst_72 = arith.constant dense<0.000000e+00> : vector<2x8x32xf32>
    %250 = tpu.matmul %247, %249, %cst_72 {dimension_numbers = #tpu.dot_dimension_numbers<[2], [1], [1], [2], [0, 0, 0, 1, 1, 2], [0], [0]>} : vector<2x8x8xf32>, vector<2x8x32xf32>, vector<2x8x32xf32> -> vector<2x8x32xf32>
    "tpu.trace_stop"() : () -> ()
    %251 = vector.broadcast %14 : vector<1x1x32xf32> to vector<2x8x32xf32>
    %252 = arith.mulf %222, %251 : vector<2x8x32xf32>
    "tpu.trace_start"() <{level = 10 : i32, message = "bqd,bkd->bqk"}> : () -> ()
    %cst_73 = arith.constant dense<0.000000e+00> : vector<2x8x8xf32>
    %253 = tpu.matmul %252, %227, %cst_73 {dimension_numbers = #tpu.dot_dimension_numbers<[2], [2], [1], [1], [0, 0, 0, 1, 1, 1], [0], [0]>} : vector<2x8x32xf32>, vector<2x8x32xf32>, vector<2x8x8xf32> -> vector<2x8x8xf32>
    "tpu.trace_stop"() : () -> ()
    %cst_74 = arith.constant 0.353553385 : f32
    %254 = vector.broadcast %cst_74 : f32 to vector<2x8x8xf32>
    %255 = arith.mulf %253, %254 : vector<2x8x8xf32>
    %cst_75 = arith.constant dense<0xFF800000> : vector<2x8xf32>
    %256 = vector.multi_reduction <maximumf>, %255, %cst_75 [2] : vector<2x8x8xf32> to vector<2x8xf32>
    %257 = vector.shape_cast %256 : vector<2x8xf32> to vector<2x8x1xf32>
    %258 = vector.broadcast %257 : vector<2x8x1xf32> to vector<2x8x8xf32>
    %259 = arith.subf %255, %258 : vector<2x8x8xf32>
    %260 = math.exp %259 : vector<2x8x8xf32>
    %cst_76 = arith.constant dense<0.000000e+00> : vector<2x8xf32>
    %261 = vector.multi_reduction <add>, %260, %cst_76 [2] : vector<2x8x8xf32> to vector<2x8xf32>
    %262 = vector.shape_cast %261 : vector<2x8xf32> to vector<2x8x1xf32>
    %263 = tpu.reciprocal %262 {approx = true} : vector<2x8x1xf32> -> vector<2x8x1xf32>
    %264 = vector.broadcast %263 : vector<2x8x1xf32> to vector<2x8x8xf32>
    %265 = arith.mulf %260, %264 : vector<2x8x8xf32>
    %266 = vector.broadcast %14 : vector<1x1x32xf32> to vector<2x8x32xf32>
    %267 = arith.mulf %232, %266 : vector<2x8x32xf32>
    "tpu.trace_start"() <{level = 10 : i32, message = "bqk,bkd->bqd"}> : () -> ()
    %cst_77 = arith.constant dense<0.000000e+00> : vector<2x8x32xf32>
    %268 = tpu.matmul %265, %267, %cst_77 {dimension_numbers = #tpu.dot_dimension_numbers<[2], [1], [1], [2], [0, 0, 0, 1, 1, 2], [0], [0]>} : vector<2x8x8xf32>, vector<2x8x32xf32>, vector<2x8x32xf32> -> vector<2x8x32xf32>
    "tpu.trace_stop"() : () -> ()
    %269 = arith.addf %250, %268 : vector<2x8x32xf32>
    %270 = vector.broadcast %21 : vector<1x1x32xf32> to vector<2x8x32xf32>
    %271 = arith.mulf %222, %270 : vector<2x8x32xf32>
    "tpu.trace_start"() <{level = 10 : i32, message = "bqd,bkd->bqk"}> : () -> ()
    %cst_78 = arith.constant dense<0.000000e+00> : vector<2x8x8xf32>
    %272 = tpu.matmul %271, %227, %cst_78 {dimension_numbers = #tpu.dot_dimension_numbers<[2], [2], [1], [1], [0, 0, 0, 1, 1, 1], [0], [0]>} : vector<2x8x32xf32>, vector<2x8x32xf32>, vector<2x8x8xf32> -> vector<2x8x8xf32>
    "tpu.trace_stop"() : () -> ()
    %cst_79 = arith.constant 0.353553385 : f32
    %273 = vector.broadcast %cst_79 : f32 to vector<2x8x8xf32>
    %274 = arith.mulf %272, %273 : vector<2x8x8xf32>
    %cst_80 = arith.constant dense<0xFF800000> : vector<2x8xf32>
    %275 = vector.multi_reduction <maximumf>, %274, %cst_80 [2] : vector<2x8x8xf32> to vector<2x8xf32>
    %276 = vector.shape_cast %275 : vector<2x8xf32> to vector<2x8x1xf32>
    %277 = vector.broadcast %276 : vector<2x8x1xf32> to vector<2x8x8xf32>
    %278 = arith.subf %274, %277 : vector<2x8x8xf32>
    %279 = math.exp %278 : vector<2x8x8xf32>
    %cst_81 = arith.constant dense<0.000000e+00> : vector<2x8xf32>
    %280 = vector.multi_reduction <add>, %279, %cst_81 [2] : vector<2x8x8xf32> to vector<2x8xf32>
    %281 = vector.shape_cast %280 : vector<2x8xf32> to vector<2x8x1xf32>
    %282 = tpu.reciprocal %281 {approx = true} : vector<2x8x1xf32> -> vector<2x8x1xf32>
    %283 = vector.broadcast %282 : vector<2x8x1xf32> to vector<2x8x8xf32>
    %284 = arith.mulf %279, %283 : vector<2x8x8xf32>
    %285 = vector.broadcast %21 : vector<1x1x32xf32> to vector<2x8x32xf32>
    %286 = arith.mulf %232, %285 : vector<2x8x32xf32>
    "tpu.trace_start"() <{level = 10 : i32, message = "bqk,bkd->bqd"}> : () -> ()
    %cst_82 = arith.constant dense<0.000000e+00> : vector<2x8x32xf32>
    %287 = tpu.matmul %284, %286, %cst_82 {dimension_numbers = #tpu.dot_dimension_numbers<[2], [1], [1], [2], [0, 0, 0, 1, 1, 2], [0], [0]>} : vector<2x8x8xf32>, vector<2x8x32xf32>, vector<2x8x32xf32> -> vector<2x8x32xf32>
    "tpu.trace_stop"() : () -> ()
    %288 = arith.addf %269, %287 : vector<2x8x32xf32>
    %289 = vector.broadcast %28 : vector<1x1x32xf32> to vector<2x8x32xf32>
    %290 = arith.mulf %222, %289 : vector<2x8x32xf32>
    "tpu.trace_start"() <{level = 10 : i32, message = "bqd,bkd->bqk"}> : () -> ()
    %cst_83 = arith.constant dense<0.000000e+00> : vector<2x8x8xf32>
    %291 = tpu.matmul %290, %227, %cst_83 {dimension_numbers = #tpu.dot_dimension_numbers<[2], [2], [1], [1], [0, 0, 0, 1, 1, 1], [0], [0]>} : vector<2x8x32xf32>, vector<2x8x32xf32>, vector<2x8x8xf32> -> vector<2x8x8xf32>
    "tpu.trace_stop"() : () -> ()
    %cst_84 = arith.constant 0.353553385 : f32
    %292 = vector.broadcast %cst_84 : f32 to vector<2x8x8xf32>
    %293 = arith.mulf %291, %292 : vector<2x8x8xf32>
    %cst_85 = arith.constant dense<0xFF800000> : vector<2x8xf32>
    %294 = vector.multi_reduction <maximumf>, %293, %cst_85 [2] : vector<2x8x8xf32> to vector<2x8xf32>
    %295 = vector.shape_cast %294 : vector<2x8xf32> to vector<2x8x1xf32>
    %296 = vector.broadcast %295 : vector<2x8x1xf32> to vector<2x8x8xf32>
    %297 = arith.subf %293, %296 : vector<2x8x8xf32>
    %298 = math.exp %297 : vector<2x8x8xf32>
    %cst_86 = arith.constant dense<0.000000e+00> : vector<2x8xf32>
    %299 = vector.multi_reduction <add>, %298, %cst_86 [2] : vector<2x8x8xf32> to vector<2x8xf32>
    %300 = vector.shape_cast %299 : vector<2x8xf32> to vector<2x8x1xf32>
    %301 = tpu.reciprocal %300 {approx = true} : vector<2x8x1xf32> -> vector<2x8x1xf32>
    %302 = vector.broadcast %301 : vector<2x8x1xf32> to vector<2x8x8xf32>
    %303 = arith.mulf %298, %302 : vector<2x8x8xf32>
    %304 = vector.broadcast %28 : vector<1x1x32xf32> to vector<2x8x32xf32>
    %305 = arith.mulf %232, %304 : vector<2x8x32xf32>
    "tpu.trace_start"() <{level = 10 : i32, message = "bqk,bkd->bqd"}> : () -> ()
    %cst_87 = arith.constant dense<0.000000e+00> : vector<2x8x32xf32>
    %306 = tpu.matmul %303, %305, %cst_87 {dimension_numbers = #tpu.dot_dimension_numbers<[2], [1], [1], [2], [0, 0, 0, 1, 1, 2], [0], [0]>} : vector<2x8x8xf32>, vector<2x8x32xf32>, vector<2x8x32xf32> -> vector<2x8x32xf32>
    "tpu.trace_stop"() : () -> ()
    %307 = arith.addf %288, %306 : vector<2x8x32xf32>
    %308 = vector.shape_cast %307 : vector<2x8x32xf32> to vector<16x32xf32>
    %c1_88 = arith.constant 1 : index
    %c0_89 = arith.constant 0 : index
    %c0_90 = arith.constant 0 : index
    %309 = vector.load %arg10[%c1_88, %c0_89, %c0_90] : memref<2x32x32xf32, #tpu.memory_space<vmem>>, vector<1x32x32xf32>
    %310 = vector.shape_cast %309 : vector<1x32x32xf32> to vector<32x32xf32>
    %cst_91 = arith.constant dense<0.000000e+00> : vector<16x32xf32>
    %311 = tpu.matmul %308, %310, %cst_91 {dimension_numbers = #tpu.dot_dimension_numbers<[1], [0], [0], [1], [0, 0, 1, 1], [], []>} : vector<16x32xf32>, vector<32x32xf32>, vector<16x32xf32> -> vector<16x32xf32>
    %312 = vector.extract_strided_slice %213 {offsets = [3, 0], sizes = [1, 32], strides = [1, 1]} : vector<9x32xf32> to vector<1x32xf32>
    %313 = vector.broadcast %312 : vector<1x32xf32> to vector<16x32xf32>
    %314 = arith.addf %311, %313 : vector<16x32xf32>
    %315 = arith.addf %214, %314 : vector<16x32xf32>
    %316 = vector.extract_strided_slice %213 {offsets = [4, 0], sizes = [1, 32], strides = [1, 1]} : vector<9x32xf32> to vector<1x32xf32>
    %317 = vector.extract_strided_slice %213 {offsets = [5, 0], sizes = [1, 32], strides = [1, 1]} : vector<9x32xf32> to vector<1x32xf32>
    %cst_92 = arith.constant dense<0.000000e+00> : vector<16xf32>
    %318 = vector.multi_reduction <add>, %315, %cst_92 [1] : vector<16x32xf32> to vector<16xf32>
    %319 = vector.shape_cast %318 : vector<16xf32> to vector<16x1xf32>
    %cst_93 = arith.constant 3.200000e+01 : f32
    %320 = vector.broadcast %cst_93 : f32 to vector<16x1xf32>
    %321 = arith.divf %319, %320 : vector<16x1xf32>
    %322 = vector.broadcast %321 : vector<16x1xf32> to vector<16x32xf32>
    %323 = arith.subf %315, %322 : vector<16x32xf32>
    %324 = arith.mulf %323, %323 : vector<16x32xf32>
    %cst_94 = arith.constant dense<0.000000e+00> : vector<16xf32>
    %325 = vector.multi_reduction <add>, %324, %cst_94 [1] : vector<16x32xf32> to vector<16xf32>
    %326 = vector.shape_cast %325 : vector<16xf32> to vector<16x1xf32>
    %cst_95 = arith.constant 3.200000e+01 : f32
    %327 = vector.broadcast %cst_95 : f32 to vector<16x1xf32>
    %328 = arith.divf %326, %327 : vector<16x1xf32>
    %329 = vector.broadcast %321 : vector<16x1xf32> to vector<16x32xf32>
    %330 = arith.subf %315, %329 : vector<16x32xf32>
    %cst_96 = arith.constant 9.99999974E-6 : f32
    %331 = vector.broadcast %cst_96 : f32 to vector<16x1xf32>
    %332 = arith.addf %328, %331 : vector<16x1xf32>
    %333 = math.rsqrt %332 : vector<16x1xf32>
    %334 = vector.broadcast %333 : vector<16x1xf32> to vector<16x32xf32>
    %335 = arith.mulf %330, %334 : vector<16x32xf32>
    %336 = vector.broadcast %316 : vector<1x32xf32> to vector<16x32xf32>
    %337 = arith.mulf %335, %336 : vector<16x32xf32>
    %338 = vector.broadcast %317 : vector<1x32xf32> to vector<16x32xf32>
    %339 = arith.addf %337, %338 : vector<16x32xf32>
    %c1_97 = arith.constant 1 : index
    %c0_98 = arith.constant 0 : index
    %c0_99 = arith.constant 0 : index
    %340 = vector.load %arg11[%c1_97, %c0_98, %c0_99] : memref<2x32x64xf32, #tpu.memory_space<vmem>>, vector<1x32x64xf32>
    %341 = vector.shape_cast %340 : vector<1x32x64xf32> to vector<32x64xf32>
    %cst_100 = arith.constant dense<0.000000e+00> : vector<16x64xf32>
    %342 = tpu.matmul %339, %341, %cst_100 {dimension_numbers = #tpu.dot_dimension_numbers<[1], [0], [0], [1], [0, 0, 1, 1], [], []>} : vector<16x32xf32>, vector<32x64xf32>, vector<16x64xf32> -> vector<16x64xf32>
    %c1_101 = arith.constant 1 : index
    %c0_102 = arith.constant 0 : index
    %c0_103 = arith.constant 0 : index
    %343 = vector.load %arg13[%c1_101, %c0_102, %c0_103] : memref<2x1x64xf32, #tpu.memory_space<vmem>>, vector<1x1x64xf32>
    %344 = vector.shape_cast %343 : vector<1x1x64xf32> to vector<1x64xf32>
    %345 = vector.broadcast %344 : vector<1x64xf32> to vector<16x64xf32>
    %346 = arith.addf %342, %345 : vector<16x64xf32>
    %cst_104 = arith.constant 0.000000e+00 : f32
    %347 = vector.broadcast %cst_104 : f32 to vector<16x64xf32>
    %348 = arith.maximumf %346, %347 : vector<16x64xf32>
    %c1_105 = arith.constant 1 : index
    %c0_106 = arith.constant 0 : index
    %c0_107 = arith.constant 0 : index
    %349 = vector.load %arg12[%c1_105, %c0_106, %c0_107] : memref<2x64x32xf32, #tpu.memory_space<vmem>>, vector<1x64x32xf32>
    %350 = vector.shape_cast %349 : vector<1x64x32xf32> to vector<64x32xf32>
    %cst_108 = arith.constant dense<0.000000e+00> : vector<16x32xf32>
    %351 = tpu.matmul %348, %350, %cst_108 {dimension_numbers = #tpu.dot_dimension_numbers<[1], [0], [0], [1], [0, 0, 1, 1], [], []>} : vector<16x64xf32>, vector<64x32xf32>, vector<16x32xf32> -> vector<16x32xf32>
    %352 = vector.extract_strided_slice %213 {offsets = [6, 0], sizes = [1, 32], strides = [1, 1]} : vector<9x32xf32> to vector<1x32xf32>
    %353 = vector.broadcast %352 : vector<1x32xf32> to vector<16x32xf32>
    %354 = arith.addf %351, %353 : vector<16x32xf32>
    %355 = arith.addf %339, %354 : vector<16x32xf32>
    %356 = vector.extract_strided_slice %213 {offsets = [7, 0], sizes = [1, 32], strides = [1, 1]} : vector<9x32xf32> to vector<1x32xf32>
    %357 = vector.extract_strided_slice %213 {offsets = [8, 0], sizes = [1, 32], strides = [1, 1]} : vector<9x32xf32> to vector<1x32xf32>
    %cst_109 = arith.constant dense<0.000000e+00> : vector<16xf32>
    %358 = vector.multi_reduction <add>, %355, %cst_109 [1] : vector<16x32xf32> to vector<16xf32>
    %359 = vector.shape_cast %358 : vector<16xf32> to vector<16x1xf32>
    %cst_110 = arith.constant 3.200000e+01 : f32
    %360 = vector.broadcast %cst_110 : f32 to vector<16x1xf32>
    %361 = arith.divf %359, %360 : vector<16x1xf32>
    %362 = vector.broadcast %361 : vector<16x1xf32> to vector<16x32xf32>
    %363 = arith.subf %355, %362 : vector<16x32xf32>
    %364 = arith.mulf %363, %363 : vector<16x32xf32>
    %cst_111 = arith.constant dense<0.000000e+00> : vector<16xf32>
    %365 = vector.multi_reduction <add>, %364, %cst_111 [1] : vector<16x32xf32> to vector<16xf32>
    %366 = vector.shape_cast %365 : vector<16xf32> to vector<16x1xf32>
    %cst_112 = arith.constant 3.200000e+01 : f32
    %367 = vector.broadcast %cst_112 : f32 to vector<16x1xf32>
    %368 = arith.divf %366, %367 : vector<16x1xf32>
    %369 = vector.broadcast %361 : vector<16x1xf32> to vector<16x32xf32>
    %370 = arith.subf %355, %369 : vector<16x32xf32>
    %cst_113 = arith.constant 9.99999974E-6 : f32
    %371 = vector.broadcast %cst_113 : f32 to vector<16x1xf32>
    %372 = arith.addf %368, %371 : vector<16x1xf32>
    %373 = math.rsqrt %372 : vector<16x1xf32>
    %374 = vector.broadcast %373 : vector<16x1xf32> to vector<16x32xf32>
    %375 = arith.mulf %370, %374 : vector<16x32xf32>
    %376 = vector.broadcast %356 : vector<1x32xf32> to vector<16x32xf32>
    %377 = arith.mulf %375, %376 : vector<16x32xf32>
    %378 = vector.broadcast %357 : vector<1x32xf32> to vector<16x32xf32>
    %379 = arith.addf %377, %378 : vector<16x32xf32>
    %380 = vector.shape_cast %379 : vector<16x32xf32> to vector<2x8x32xf32>
    %c0_114 = arith.constant 0 : index
    %c0_115 = arith.constant 0 : index
    %c0_116 = arith.constant 0 : index
    %381 = vector.load %arg2[%c0_114, %c0_115, %c0_116] : memref<2x4x2xf32, #tpu.memory_space<vmem>>, vector<2x4x2xf32>
    %382 = vector.shape_cast %381 : vector<2x4x2xf32> to vector<8x2xf32>
    %c0_117 = arith.constant 0 : index
    %c0_118 = arith.constant 0 : index
    %383 = vector.load %arg6[%c0_117, %c0_118] : memref<2x32xf32, #tpu.memory_space<vmem>>, vector<2x32xf32>
    %cst_119 = arith.constant dense<0.000000e+00> : vector<8x32xf32>
    %384 = tpu.matmul %382, %383, %cst_119 {dimension_numbers = #tpu.dot_dimension_numbers<[1], [0], [0], [1], [0, 0, 1, 1], [], []>} : vector<8x2xf32>, vector<2x32xf32>, vector<8x32xf32> -> vector<8x32xf32>
    %385 = vector.broadcast %31 : vector<1x32xf32> to vector<8x32xf32>
    %386 = arith.addf %384, %385 : vector<8x32xf32>
    %387 = vector.shape_cast %386 : vector<8x32xf32> to vector<2x4x32xf32>
    %c0_120 = arith.constant 0 : index
    %c0_121 = arith.constant 0 : index
    %c0_122 = arith.constant 0 : index
    %388 = vector.load %arg3[%c0_120, %c0_121, %c0_122] : memref<2x1x32xf32, #tpu.memory_space<vmem>>, vector<2x1x32xf32>
    %389 = vector.broadcast %388 : vector<2x1x32xf32> to vector<2x4x32xf32>
    %390 = arith.addf %387, %389 : vector<2x4x32xf32>
    %c0_123 = arith.constant 0 : index
    %c0_124 = arith.constant 0 : index
    %c0_125 = arith.constant 0 : index
    %391 = vector.load %arg23[%c0_123, %c0_124, %c0_125] : memref<2x15x32xf32, #tpu.memory_space<vmem>>, vector<1x15x32xf32>
    %392 = vector.shape_cast %391 : vector<1x15x32xf32> to vector<15x32xf32>
    %393 = vector.shape_cast %390 : vector<2x4x32xf32> to vector<8x32xf32>
    %c0_126 = arith.constant 0 : index
    %c0_127 = arith.constant 0 : index
    %c0_128 = arith.constant 0 : index
    %394 = vector.load %arg15[%c0_126, %c0_127, %c0_128] : memref<2x32x96xf32, #tpu.memory_space<vmem>>, vector<1x32x96xf32>
    %395 = vector.shape_cast %394 : vector<1x32x96xf32> to vector<32x96xf32>
    %cst_129 = arith.constant dense<0.000000e+00> : vector<8x96xf32>
    %396 = tpu.matmul %393, %395, %cst_129 {dimension_numbers = #tpu.dot_dimension_numbers<[1], [0], [0], [1], [0, 0, 1, 1], [], []>} : vector<8x32xf32>, vector<32x96xf32>, vector<8x96xf32> -> vector<8x96xf32>
    %397 = vector.extract_strided_slice %396 {offsets = [0, 0], sizes = [8, 32], strides = [1, 1]} : vector<8x96xf32> to vector<8x32xf32>
    %398 = vector.extract_strided_slice %392 {offsets = [0, 0], sizes = [1, 32], strides = [1, 1]} : vector<15x32xf32> to vector<1x32xf32>
    %399 = vector.broadcast %398 : vector<1x32xf32> to vector<8x32xf32>
    %400 = arith.addf %397, %399 : vector<8x32xf32>
    %401 = vector.shape_cast %400 : vector<8x32xf32> to vector<2x4x32xf32>
    %402 = vector.extract_strided_slice %396 {offsets = [0, 32], sizes = [8, 32], strides = [1, 1]} : vector<8x96xf32> to vector<8x32xf32>
    %403 = vector.extract_strided_slice %392 {offsets = [1, 0], sizes = [1, 32], strides = [1, 1]} : vector<15x32xf32> to vector<1x32xf32>
    %404 = vector.broadcast %403 : vector<1x32xf32> to vector<8x32xf32>
    %405 = arith.addf %402, %404 : vector<8x32xf32>
    %406 = vector.shape_cast %405 : vector<8x32xf32> to vector<2x4x32xf32>
    %407 = vector.extract_strided_slice %396 {offsets = [0, 64], sizes = [8, 32], strides = [1, 1]} : vector<8x96xf32> to vector<8x32xf32>
    %408 = vector.extract_strided_slice %392 {offsets = [2, 0], sizes = [1, 32], strides = [1, 1]} : vector<15x32xf32> to vector<1x32xf32>
    %409 = vector.broadcast %408 : vector<1x32xf32> to vector<8x32xf32>
    %410 = arith.addf %407, %409 : vector<8x32xf32>
    %411 = vector.shape_cast %410 : vector<8x32xf32> to vector<2x4x32xf32>
    %412 = vector.broadcast %7 : vector<1x1x32xf32> to vector<2x4x32xf32>
    %413 = arith.mulf %401, %412 : vector<2x4x32xf32>
    "tpu.trace_start"() <{level = 10 : i32, message = "bqd,bkd->bqk"}> : () -> ()
    %cst_130 = arith.constant dense<0.000000e+00> : vector<2x4x4xf32>
    %414 = tpu.matmul %413, %406, %cst_130 {dimension_numbers = #tpu.dot_dimension_numbers<[2], [2], [1], [1], [0, 0, 0, 1, 1, 1], [0], [0]>} : vector<2x4x32xf32>, vector<2x4x32xf32>, vector<2x4x4xf32> -> vector<2x4x4xf32>
    "tpu.trace_stop"() : () -> ()
    %cst_131 = arith.constant 0.353553385 : f32
    %415 = vector.broadcast %cst_131 : f32 to vector<2x4x4xf32>
    %416 = arith.mulf %414, %415 : vector<2x4x4xf32>
    %cst_132 = arith.constant dense<0xFF800000> : vector<2x4xf32>
    %417 = vector.multi_reduction <maximumf>, %416, %cst_132 [2] : vector<2x4x4xf32> to vector<2x4xf32>
    %418 = vector.shape_cast %417 : vector<2x4xf32> to vector<2x4x1xf32>
    %419 = vector.broadcast %418 : vector<2x4x1xf32> to vector<2x4x4xf32>
    %420 = arith.subf %416, %419 : vector<2x4x4xf32>
    %421 = math.exp %420 : vector<2x4x4xf32>
    %cst_133 = arith.constant dense<0.000000e+00> : vector<2x4xf32>
    %422 = vector.multi_reduction <add>, %421, %cst_133 [2] : vector<2x4x4xf32> to vector<2x4xf32>
    %423 = vector.shape_cast %422 : vector<2x4xf32> to vector<2x4x1xf32>
    %424 = tpu.reciprocal %423 {approx = true} : vector<2x4x1xf32> -> vector<2x4x1xf32>
    %425 = vector.broadcast %424 : vector<2x4x1xf32> to vector<2x4x4xf32>
    %426 = arith.mulf %421, %425 : vector<2x4x4xf32>
    %427 = vector.broadcast %7 : vector<1x1x32xf32> to vector<2x4x32xf32>
    %428 = arith.mulf %411, %427 : vector<2x4x32xf32>
    "tpu.trace_start"() <{level = 10 : i32, message = "bqk,bkd->bqd"}> : () -> ()
    %cst_134 = arith.constant dense<0.000000e+00> : vector<2x4x32xf32>
    %429 = tpu.matmul %426, %428, %cst_134 {dimension_numbers = #tpu.dot_dimension_numbers<[2], [1], [1], [2], [0, 0, 0, 1, 1, 2], [0], [0]>} : vector<2x4x4xf32>, vector<2x4x32xf32>, vector<2x4x32xf32> -> vector<2x4x32xf32>
    "tpu.trace_stop"() : () -> ()
    %430 = vector.broadcast %14 : vector<1x1x32xf32> to vector<2x4x32xf32>
    %431 = arith.mulf %401, %430 : vector<2x4x32xf32>
    "tpu.trace_start"() <{level = 10 : i32, message = "bqd,bkd->bqk"}> : () -> ()
    %cst_135 = arith.constant dense<0.000000e+00> : vector<2x4x4xf32>
    %432 = tpu.matmul %431, %406, %cst_135 {dimension_numbers = #tpu.dot_dimension_numbers<[2], [2], [1], [1], [0, 0, 0, 1, 1, 1], [0], [0]>} : vector<2x4x32xf32>, vector<2x4x32xf32>, vector<2x4x4xf32> -> vector<2x4x4xf32>
    "tpu.trace_stop"() : () -> ()
    %cst_136 = arith.constant 0.353553385 : f32
    %433 = vector.broadcast %cst_136 : f32 to vector<2x4x4xf32>
    %434 = arith.mulf %432, %433 : vector<2x4x4xf32>
    %cst_137 = arith.constant dense<0xFF800000> : vector<2x4xf32>
    %435 = vector.multi_reduction <maximumf>, %434, %cst_137 [2] : vector<2x4x4xf32> to vector<2x4xf32>
    %436 = vector.shape_cast %435 : vector<2x4xf32> to vector<2x4x1xf32>
    %437 = vector.broadcast %436 : vector<2x4x1xf32> to vector<2x4x4xf32>
    %438 = arith.subf %434, %437 : vector<2x4x4xf32>
    %439 = math.exp %438 : vector<2x4x4xf32>
    %cst_138 = arith.constant dense<0.000000e+00> : vector<2x4xf32>
    %440 = vector.multi_reduction <add>, %439, %cst_138 [2] : vector<2x4x4xf32> to vector<2x4xf32>
    %441 = vector.shape_cast %440 : vector<2x4xf32> to vector<2x4x1xf32>
    %442 = tpu.reciprocal %441 {approx = true} : vector<2x4x1xf32> -> vector<2x4x1xf32>
    %443 = vector.broadcast %442 : vector<2x4x1xf32> to vector<2x4x4xf32>
    %444 = arith.mulf %439, %443 : vector<2x4x4xf32>
    %445 = vector.broadcast %14 : vector<1x1x32xf32> to vector<2x4x32xf32>
    %446 = arith.mulf %411, %445 : vector<2x4x32xf32>
    "tpu.trace_start"() <{level = 10 : i32, message = "bqk,bkd->bqd"}> : () -> ()
    %cst_139 = arith.constant dense<0.000000e+00> : vector<2x4x32xf32>
    %447 = tpu.matmul %444, %446, %cst_139 {dimension_numbers = #tpu.dot_dimension_numbers<[2], [1], [1], [2], [0, 0, 0, 1, 1, 2], [0], [0]>} : vector<2x4x4xf32>, vector<2x4x32xf32>, vector<2x4x32xf32> -> vector<2x4x32xf32>
    "tpu.trace_stop"() : () -> ()
    %448 = arith.addf %429, %447 : vector<2x4x32xf32>
    %449 = vector.broadcast %21 : vector<1x1x32xf32> to vector<2x4x32xf32>
    %450 = arith.mulf %401, %449 : vector<2x4x32xf32>
    "tpu.trace_start"() <{level = 10 : i32, message = "bqd,bkd->bqk"}> : () -> ()
    %cst_140 = arith.constant dense<0.000000e+00> : vector<2x4x4xf32>
    %451 = tpu.matmul %450, %406, %cst_140 {dimension_numbers = #tpu.dot_dimension_numbers<[2], [2], [1], [1], [0, 0, 0, 1, 1, 1], [0], [0]>} : vector<2x4x32xf32>, vector<2x4x32xf32>, vector<2x4x4xf32> -> vector<2x4x4xf32>
    "tpu.trace_stop"() : () -> ()
    %cst_141 = arith.constant 0.353553385 : f32
    %452 = vector.broadcast %cst_141 : f32 to vector<2x4x4xf32>
    %453 = arith.mulf %451, %452 : vector<2x4x4xf32>
    %cst_142 = arith.constant dense<0xFF800000> : vector<2x4xf32>
    %454 = vector.multi_reduction <maximumf>, %453, %cst_142 [2] : vector<2x4x4xf32> to vector<2x4xf32>
    %455 = vector.shape_cast %454 : vector<2x4xf32> to vector<2x4x1xf32>
    %456 = vector.broadcast %455 : vector<2x4x1xf32> to vector<2x4x4xf32>
    %457 = arith.subf %453, %456 : vector<2x4x4xf32>
    %458 = math.exp %457 : vector<2x4x4xf32>
    %cst_143 = arith.constant dense<0.000000e+00> : vector<2x4xf32>
    %459 = vector.multi_reduction <add>, %458, %cst_143 [2] : vector<2x4x4xf32> to vector<2x4xf32>
    %460 = vector.shape_cast %459 : vector<2x4xf32> to vector<2x4x1xf32>
    %461 = tpu.reciprocal %460 {approx = true} : vector<2x4x1xf32> -> vector<2x4x1xf32>
    %462 = vector.broadcast %461 : vector<2x4x1xf32> to vector<2x4x4xf32>
    %463 = arith.mulf %458, %462 : vector<2x4x4xf32>
    %464 = vector.broadcast %21 : vector<1x1x32xf32> to vector<2x4x32xf32>
    %465 = arith.mulf %411, %464 : vector<2x4x32xf32>
    "tpu.trace_start"() <{level = 10 : i32, message = "bqk,bkd->bqd"}> : () -> ()
    %cst_144 = arith.constant dense<0.000000e+00> : vector<2x4x32xf32>
    %466 = tpu.matmul %463, %465, %cst_144 {dimension_numbers = #tpu.dot_dimension_numbers<[2], [1], [1], [2], [0, 0, 0, 1, 1, 2], [0], [0]>} : vector<2x4x4xf32>, vector<2x4x32xf32>, vector<2x4x32xf32> -> vector<2x4x32xf32>
    "tpu.trace_stop"() : () -> ()
    %467 = arith.addf %448, %466 : vector<2x4x32xf32>
    %468 = vector.broadcast %28 : vector<1x1x32xf32> to vector<2x4x32xf32>
    %469 = arith.mulf %401, %468 : vector<2x4x32xf32>
    "tpu.trace_start"() <{level = 10 : i32, message = "bqd,bkd->bqk"}> : () -> ()
    %cst_145 = arith.constant dense<0.000000e+00> : vector<2x4x4xf32>
    %470 = tpu.matmul %469, %406, %cst_145 {dimension_numbers = #tpu.dot_dimension_numbers<[2], [2], [1], [1], [0, 0, 0, 1, 1, 1], [0], [0]>} : vector<2x4x32xf32>, vector<2x4x32xf32>, vector<2x4x4xf32> -> vector<2x4x4xf32>
    "tpu.trace_stop"() : () -> ()
    %cst_146 = arith.constant 0.353553385 : f32
    %471 = vector.broadcast %cst_146 : f32 to vector<2x4x4xf32>
    %472 = arith.mulf %470, %471 : vector<2x4x4xf32>
    %cst_147 = arith.constant dense<0xFF800000> : vector<2x4xf32>
    %473 = vector.multi_reduction <maximumf>, %472, %cst_147 [2] : vector<2x4x4xf32> to vector<2x4xf32>
    %474 = vector.shape_cast %473 : vector<2x4xf32> to vector<2x4x1xf32>
    %475 = vector.broadcast %474 : vector<2x4x1xf32> to vector<2x4x4xf32>
    %476 = arith.subf %472, %475 : vector<2x4x4xf32>
    %477 = math.exp %476 : vector<2x4x4xf32>
    %cst_148 = arith.constant dense<0.000000e+00> : vector<2x4xf32>
    %478 = vector.multi_reduction <add>, %477, %cst_148 [2] : vector<2x4x4xf32> to vector<2x4xf32>
    %479 = vector.shape_cast %478 : vector<2x4xf32> to vector<2x4x1xf32>
    %480 = tpu.reciprocal %479 {approx = true} : vector<2x4x1xf32> -> vector<2x4x1xf32>
    %481 = vector.broadcast %480 : vector<2x4x1xf32> to vector<2x4x4xf32>
    %482 = arith.mulf %477, %481 : vector<2x4x4xf32>
    %483 = vector.broadcast %28 : vector<1x1x32xf32> to vector<2x4x32xf32>
    %484 = arith.mulf %411, %483 : vector<2x4x32xf32>
    "tpu.trace_start"() <{level = 10 : i32, message = "bqk,bkd->bqd"}> : () -> ()
    %cst_149 = arith.constant dense<0.000000e+00> : vector<2x4x32xf32>
    %485 = tpu.matmul %482, %484, %cst_149 {dimension_numbers = #tpu.dot_dimension_numbers<[2], [1], [1], [2], [0, 0, 0, 1, 1, 2], [0], [0]>} : vector<2x4x4xf32>, vector<2x4x32xf32>, vector<2x4x32xf32> -> vector<2x4x32xf32>
    "tpu.trace_stop"() : () -> ()
    %486 = arith.addf %467, %485 : vector<2x4x32xf32>
    %487 = vector.shape_cast %486 : vector<2x4x32xf32> to vector<8x32xf32>
    %c0_150 = arith.constant 0 : index
    %c0_151 = arith.constant 0 : index
    %c0_152 = arith.constant 0 : index
    %488 = vector.load %arg16[%c0_150, %c0_151, %c0_152] : memref<2x32x32xf32, #tpu.memory_space<vmem>>, vector<1x32x32xf32>
    %489 = vector.shape_cast %488 : vector<1x32x32xf32> to vector<32x32xf32>
    %cst_153 = arith.constant dense<0.000000e+00> : vector<8x32xf32>
    %490 = tpu.matmul %487, %489, %cst_153 {dimension_numbers = #tpu.dot_dimension_numbers<[1], [0], [0], [1], [0, 0, 1, 1], [], []>} : vector<8x32xf32>, vector<32x32xf32>, vector<8x32xf32> -> vector<8x32xf32>
    %491 = vector.extract_strided_slice %392 {offsets = [3, 0], sizes = [1, 32], strides = [1, 1]} : vector<15x32xf32> to vector<1x32xf32>
    %492 = vector.broadcast %491 : vector<1x32xf32> to vector<8x32xf32>
    %493 = arith.addf %490, %492 : vector<8x32xf32>
    %494 = arith.addf %393, %493 : vector<8x32xf32>
    %495 = vector.extract_strided_slice %392 {offsets = [4, 0], sizes = [1, 32], strides = [1, 1]} : vector<15x32xf32> to vector<1x32xf32>
    %496 = vector.extract_strided_slice %392 {offsets = [5, 0], sizes = [1, 32], strides = [1, 1]} : vector<15x32xf32> to vector<1x32xf32>
    %cst_154 = arith.constant dense<0.000000e+00> : vector<8xf32>
    %497 = vector.multi_reduction <add>, %494, %cst_154 [1] : vector<8x32xf32> to vector<8xf32>
    %498 = vector.shape_cast %497 : vector<8xf32> to vector<8x1xf32>
    %cst_155 = arith.constant 3.200000e+01 : f32
    %499 = vector.broadcast %cst_155 : f32 to vector<8x1xf32>
    %500 = arith.divf %498, %499 : vector<8x1xf32>
    %501 = vector.broadcast %500 : vector<8x1xf32> to vector<8x32xf32>
    %502 = arith.subf %494, %501 : vector<8x32xf32>
    %503 = arith.mulf %502, %502 : vector<8x32xf32>
    %cst_156 = arith.constant dense<0.000000e+00> : vector<8xf32>
    %504 = vector.multi_reduction <add>, %503, %cst_156 [1] : vector<8x32xf32> to vector<8xf32>
    %505 = vector.shape_cast %504 : vector<8xf32> to vector<8x1xf32>
    %cst_157 = arith.constant 3.200000e+01 : f32
    %506 = vector.broadcast %cst_157 : f32 to vector<8x1xf32>
    %507 = arith.divf %505, %506 : vector<8x1xf32>
    %508 = vector.broadcast %500 : vector<8x1xf32> to vector<8x32xf32>
    %509 = arith.subf %494, %508 : vector<8x32xf32>
    %cst_158 = arith.constant 9.99999974E-6 : f32
    %510 = vector.broadcast %cst_158 : f32 to vector<8x1xf32>
    %511 = arith.addf %507, %510 : vector<8x1xf32>
    %512 = math.rsqrt %511 : vector<8x1xf32>
    %513 = vector.broadcast %512 : vector<8x1xf32> to vector<8x32xf32>
    %514 = arith.mulf %509, %513 : vector<8x32xf32>
    %515 = vector.broadcast %495 : vector<1x32xf32> to vector<8x32xf32>
    %516 = arith.mulf %514, %515 : vector<8x32xf32>
    %517 = vector.broadcast %496 : vector<1x32xf32> to vector<8x32xf32>
    %518 = arith.addf %516, %517 : vector<8x32xf32>
    %c0_159 = arith.constant 0 : index
    %c0_160 = arith.constant 0 : index
    %c0_161 = arith.constant 0 : index
    %519 = vector.load %arg17[%c0_159, %c0_160, %c0_161] : memref<2x32x32xf32, #tpu.memory_space<vmem>>, vector<1x32x32xf32>
    %520 = vector.shape_cast %519 : vector<1x32x32xf32> to vector<32x32xf32>
    %cst_162 = arith.constant dense<0.000000e+00> : vector<8x32xf32>
    %521 = tpu.matmul %518, %520, %cst_162 {dimension_numbers = #tpu.dot_dimension_numbers<[1], [0], [0], [1], [0, 0, 1, 1], [], []>} : vector<8x32xf32>, vector<32x32xf32>, vector<8x32xf32> -> vector<8x32xf32>
    %522 = vector.extract_strided_slice %392 {offsets = [6, 0], sizes = [1, 32], strides = [1, 1]} : vector<15x32xf32> to vector<1x32xf32>
    %523 = vector.broadcast %522 : vector<1x32xf32> to vector<8x32xf32>
    %524 = arith.addf %521, %523 : vector<8x32xf32>
    %525 = vector.shape_cast %524 : vector<8x32xf32> to vector<2x4x32xf32>
    %526 = vector.shape_cast %380 : vector<2x8x32xf32> to vector<16x32xf32>
    %c0_163 = arith.constant 0 : index
    %c0_164 = arith.constant 0 : index
    %c0_165 = arith.constant 0 : index
    %527 = vector.load %arg18[%c0_163, %c0_164, %c0_165] : memref<2x32x64xf32, #tpu.memory_space<vmem>>, vector<1x32x64xf32>
    %528 = vector.shape_cast %527 : vector<1x32x64xf32> to vector<32x64xf32>
    %cst_166 = arith.constant dense<0.000000e+00> : vector<16x64xf32>
    %529 = tpu.matmul %526, %528, %cst_166 {dimension_numbers = #tpu.dot_dimension_numbers<[1], [0], [0], [1], [0, 0, 1, 1], [], []>} : vector<16x32xf32>, vector<32x64xf32>, vector<16x64xf32> -> vector<16x64xf32>
    %530 = vector.extract_strided_slice %529 {offsets = [0, 0], sizes = [16, 32], strides = [1, 1]} : vector<16x64xf32> to vector<16x32xf32>
    %531 = vector.extract_strided_slice %392 {offsets = [7, 0], sizes = [1, 32], strides = [1, 1]} : vector<15x32xf32> to vector<1x32xf32>
    %532 = vector.broadcast %531 : vector<1x32xf32> to vector<16x32xf32>
    %533 = arith.addf %530, %532 : vector<16x32xf32>
    %534 = vector.shape_cast %533 : vector<16x32xf32> to vector<2x8x32xf32>
    %535 = vector.extract_strided_slice %529 {offsets = [0, 32], sizes = [16, 32], strides = [1, 1]} : vector<16x64xf32> to vector<16x32xf32>
    %536 = vector.extract_strided_slice %392 {offsets = [8, 0], sizes = [1, 32], strides = [1, 1]} : vector<15x32xf32> to vector<1x32xf32>
    %537 = vector.broadcast %536 : vector<1x32xf32> to vector<16x32xf32>
    %538 = arith.addf %535, %537 : vector<16x32xf32>
    %539 = vector.shape_cast %538 : vector<16x32xf32> to vector<2x8x32xf32>
    %540 = vector.broadcast %7 : vector<1x1x32xf32> to vector<2x4x32xf32>
    %541 = arith.mulf %525, %540 : vector<2x4x32xf32>
    "tpu.trace_start"() <{level = 10 : i32, message = "bqd,bkd->bqk"}> : () -> ()
    %cst_167 = arith.constant dense<0.000000e+00> : vector<2x4x8xf32>
    %542 = tpu.matmul %541, %534, %cst_167 {dimension_numbers = #tpu.dot_dimension_numbers<[2], [2], [1], [1], [0, 0, 0, 1, 1, 1], [0], [0]>} : vector<2x4x32xf32>, vector<2x8x32xf32>, vector<2x4x8xf32> -> vector<2x4x8xf32>
    "tpu.trace_stop"() : () -> ()
    %cst_168 = arith.constant 0.353553385 : f32
    %543 = vector.broadcast %cst_168 : f32 to vector<2x4x8xf32>
    %544 = arith.mulf %542, %543 : vector<2x4x8xf32>
    %cst_169 = arith.constant dense<0xFF800000> : vector<2x4xf32>
    %545 = vector.multi_reduction <maximumf>, %544, %cst_169 [2] : vector<2x4x8xf32> to vector<2x4xf32>
    %546 = vector.shape_cast %545 : vector<2x4xf32> to vector<2x4x1xf32>
    %547 = vector.broadcast %546 : vector<2x4x1xf32> to vector<2x4x8xf32>
    %548 = arith.subf %544, %547 : vector<2x4x8xf32>
    %549 = math.exp %548 : vector<2x4x8xf32>
    %cst_170 = arith.constant dense<0.000000e+00> : vector<2x4xf32>
    %550 = vector.multi_reduction <add>, %549, %cst_170 [2] : vector<2x4x8xf32> to vector<2x4xf32>
    %551 = vector.shape_cast %550 : vector<2x4xf32> to vector<2x4x1xf32>
    %552 = tpu.reciprocal %551 {approx = true} : vector<2x4x1xf32> -> vector<2x4x1xf32>
    %553 = vector.broadcast %552 : vector<2x4x1xf32> to vector<2x4x8xf32>
    %554 = arith.mulf %549, %553 : vector<2x4x8xf32>
    %555 = vector.broadcast %7 : vector<1x1x32xf32> to vector<2x8x32xf32>
    %556 = arith.mulf %539, %555 : vector<2x8x32xf32>
    "tpu.trace_start"() <{level = 10 : i32, message = "bqk,bkd->bqd"}> : () -> ()
    %cst_171 = arith.constant dense<0.000000e+00> : vector<2x4x32xf32>
    %557 = tpu.matmul %554, %556, %cst_171 {dimension_numbers = #tpu.dot_dimension_numbers<[2], [1], [1], [2], [0, 0, 0, 1, 1, 2], [0], [0]>} : vector<2x4x8xf32>, vector<2x8x32xf32>, vector<2x4x32xf32> -> vector<2x4x32xf32>
    "tpu.trace_stop"() : () -> ()
    %558 = vector.broadcast %14 : vector<1x1x32xf32> to vector<2x4x32xf32>
    %559 = arith.mulf %525, %558 : vector<2x4x32xf32>
    "tpu.trace_start"() <{level = 10 : i32, message = "bqd,bkd->bqk"}> : () -> ()
    %cst_172 = arith.constant dense<0.000000e+00> : vector<2x4x8xf32>
    %560 = tpu.matmul %559, %534, %cst_172 {dimension_numbers = #tpu.dot_dimension_numbers<[2], [2], [1], [1], [0, 0, 0, 1, 1, 1], [0], [0]>} : vector<2x4x32xf32>, vector<2x8x32xf32>, vector<2x4x8xf32> -> vector<2x4x8xf32>
    "tpu.trace_stop"() : () -> ()
    %cst_173 = arith.constant 0.353553385 : f32
    %561 = vector.broadcast %cst_173 : f32 to vector<2x4x8xf32>
    %562 = arith.mulf %560, %561 : vector<2x4x8xf32>
    %cst_174 = arith.constant dense<0xFF800000> : vector<2x4xf32>
    %563 = vector.multi_reduction <maximumf>, %562, %cst_174 [2] : vector<2x4x8xf32> to vector<2x4xf32>
    %564 = vector.shape_cast %563 : vector<2x4xf32> to vector<2x4x1xf32>
    %565 = vector.broadcast %564 : vector<2x4x1xf32> to vector<2x4x8xf32>
    %566 = arith.subf %562, %565 : vector<2x4x8xf32>
    %567 = math.exp %566 : vector<2x4x8xf32>
    %cst_175 = arith.constant dense<0.000000e+00> : vector<2x4xf32>
    %568 = vector.multi_reduction <add>, %567, %cst_175 [2] : vector<2x4x8xf32> to vector<2x4xf32>
    %569 = vector.shape_cast %568 : vector<2x4xf32> to vector<2x4x1xf32>
    %570 = tpu.reciprocal %569 {approx = true} : vector<2x4x1xf32> -> vector<2x4x1xf32>
    %571 = vector.broadcast %570 : vector<2x4x1xf32> to vector<2x4x8xf32>
    %572 = arith.mulf %567, %571 : vector<2x4x8xf32>
    %573 = vector.broadcast %14 : vector<1x1x32xf32> to vector<2x8x32xf32>
    %574 = arith.mulf %539, %573 : vector<2x8x32xf32>
    "tpu.trace_start"() <{level = 10 : i32, message = "bqk,bkd->bqd"}> : () -> ()
    %cst_176 = arith.constant dense<0.000000e+00> : vector<2x4x32xf32>
    %575 = tpu.matmul %572, %574, %cst_176 {dimension_numbers = #tpu.dot_dimension_numbers<[2], [1], [1], [2], [0, 0, 0, 1, 1, 2], [0], [0]>} : vector<2x4x8xf32>, vector<2x8x32xf32>, vector<2x4x32xf32> -> vector<2x4x32xf32>
    "tpu.trace_stop"() : () -> ()
    %576 = arith.addf %557, %575 : vector<2x4x32xf32>
    %577 = vector.broadcast %21 : vector<1x1x32xf32> to vector<2x4x32xf32>
    %578 = arith.mulf %525, %577 : vector<2x4x32xf32>
    "tpu.trace_start"() <{level = 10 : i32, message = "bqd,bkd->bqk"}> : () -> ()
    %cst_177 = arith.constant dense<0.000000e+00> : vector<2x4x8xf32>
    %579 = tpu.matmul %578, %534, %cst_177 {dimension_numbers = #tpu.dot_dimension_numbers<[2], [2], [1], [1], [0, 0, 0, 1, 1, 1], [0], [0]>} : vector<2x4x32xf32>, vector<2x8x32xf32>, vector<2x4x8xf32> -> vector<2x4x8xf32>
    "tpu.trace_stop"() : () -> ()
    %cst_178 = arith.constant 0.353553385 : f32
    %580 = vector.broadcast %cst_178 : f32 to vector<2x4x8xf32>
    %581 = arith.mulf %579, %580 : vector<2x4x8xf32>
    %cst_179 = arith.constant dense<0xFF800000> : vector<2x4xf32>
    %582 = vector.multi_reduction <maximumf>, %581, %cst_179 [2] : vector<2x4x8xf32> to vector<2x4xf32>
    %583 = vector.shape_cast %582 : vector<2x4xf32> to vector<2x4x1xf32>
    %584 = vector.broadcast %583 : vector<2x4x1xf32> to vector<2x4x8xf32>
    %585 = arith.subf %581, %584 : vector<2x4x8xf32>
    %586 = math.exp %585 : vector<2x4x8xf32>
    %cst_180 = arith.constant dense<0.000000e+00> : vector<2x4xf32>
    %587 = vector.multi_reduction <add>, %586, %cst_180 [2] : vector<2x4x8xf32> to vector<2x4xf32>
    %588 = vector.shape_cast %587 : vector<2x4xf32> to vector<2x4x1xf32>
    %589 = tpu.reciprocal %588 {approx = true} : vector<2x4x1xf32> -> vector<2x4x1xf32>
    %590 = vector.broadcast %589 : vector<2x4x1xf32> to vector<2x4x8xf32>
    %591 = arith.mulf %586, %590 : vector<2x4x8xf32>
    %592 = vector.broadcast %21 : vector<1x1x32xf32> to vector<2x8x32xf32>
    %593 = arith.mulf %539, %592 : vector<2x8x32xf32>
    "tpu.trace_start"() <{level = 10 : i32, message = "bqk,bkd->bqd"}> : () -> ()
    %cst_181 = arith.constant dense<0.000000e+00> : vector<2x4x32xf32>
    %594 = tpu.matmul %591, %593, %cst_181 {dimension_numbers = #tpu.dot_dimension_numbers<[2], [1], [1], [2], [0, 0, 0, 1, 1, 2], [0], [0]>} : vector<2x4x8xf32>, vector<2x8x32xf32>, vector<2x4x32xf32> -> vector<2x4x32xf32>
    "tpu.trace_stop"() : () -> ()
    %595 = arith.addf %576, %594 : vector<2x4x32xf32>
    %596 = vector.broadcast %28 : vector<1x1x32xf32> to vector<2x4x32xf32>
    %597 = arith.mulf %525, %596 : vector<2x4x32xf32>
    "tpu.trace_start"() <{level = 10 : i32, message = "bqd,bkd->bqk"}> : () -> ()
    %cst_182 = arith.constant dense<0.000000e+00> : vector<2x4x8xf32>
    %598 = tpu.matmul %597, %534, %cst_182 {dimension_numbers = #tpu.dot_dimension_numbers<[2], [2], [1], [1], [0, 0, 0, 1, 1, 1], [0], [0]>} : vector<2x4x32xf32>, vector<2x8x32xf32>, vector<2x4x8xf32> -> vector<2x4x8xf32>
    "tpu.trace_stop"() : () -> ()
    %cst_183 = arith.constant 0.353553385 : f32
    %599 = vector.broadcast %cst_183 : f32 to vector<2x4x8xf32>
    %600 = arith.mulf %598, %599 : vector<2x4x8xf32>
    %cst_184 = arith.constant dense<0xFF800000> : vector<2x4xf32>
    %601 = vector.multi_reduction <maximumf>, %600, %cst_184 [2] : vector<2x4x8xf32> to vector<2x4xf32>
    %602 = vector.shape_cast %601 : vector<2x4xf32> to vector<2x4x1xf32>
    %603 = vector.broadcast %602 : vector<2x4x1xf32> to vector<2x4x8xf32>
    %604 = arith.subf %600, %603 : vector<2x4x8xf32>
    %605 = math.exp %604 : vector<2x4x8xf32>
    %cst_185 = arith.constant dense<0.000000e+00> : vector<2x4xf32>
    %606 = vector.multi_reduction <add>, %605, %cst_185 [2] : vector<2x4x8xf32> to vector<2x4xf32>
    %607 = vector.shape_cast %606 : vector<2x4xf32> to vector<2x4x1xf32>
    %608 = tpu.reciprocal %607 {approx = true} : vector<2x4x1xf32> -> vector<2x4x1xf32>
    %609 = vector.broadcast %608 : vector<2x4x1xf32> to vector<2x4x8xf32>
    %610 = arith.mulf %605, %609 : vector<2x4x8xf32>
    %611 = vector.broadcast %28 : vector<1x1x32xf32> to vector<2x8x32xf32>
    %612 = arith.mulf %539, %611 : vector<2x8x32xf32>
    "tpu.trace_start"() <{level = 10 : i32, message = "bqk,bkd->bqd"}> : () -> ()
    %cst_186 = arith.constant dense<0.000000e+00> : vector<2x4x32xf32>
    %613 = tpu.matmul %610, %612, %cst_186 {dimension_numbers = #tpu.dot_dimension_numbers<[2], [1], [1], [2], [0, 0, 0, 1, 1, 2], [0], [0]>} : vector<2x4x8xf32>, vector<2x8x32xf32>, vector<2x4x32xf32> -> vector<2x4x32xf32>
    "tpu.trace_stop"() : () -> ()
    %614 = arith.addf %595, %613 : vector<2x4x32xf32>
    %615 = vector.shape_cast %614 : vector<2x4x32xf32> to vector<8x32xf32>
    %c0_187 = arith.constant 0 : index
    %c0_188 = arith.constant 0 : index
    %c0_189 = arith.constant 0 : index
    %616 = vector.load %arg19[%c0_187, %c0_188, %c0_189] : memref<2x32x32xf32, #tpu.memory_space<vmem>>, vector<1x32x32xf32>
    %617 = vector.shape_cast %616 : vector<1x32x32xf32> to vector<32x32xf32>
    %cst_190 = arith.constant dense<0.000000e+00> : vector<8x32xf32>
    %618 = tpu.matmul %615, %617, %cst_190 {dimension_numbers = #tpu.dot_dimension_numbers<[1], [0], [0], [1], [0, 0, 1, 1], [], []>} : vector<8x32xf32>, vector<32x32xf32>, vector<8x32xf32> -> vector<8x32xf32>
    %619 = vector.extract_strided_slice %392 {offsets = [9, 0], sizes = [1, 32], strides = [1, 1]} : vector<15x32xf32> to vector<1x32xf32>
    %620 = vector.broadcast %619 : vector<1x32xf32> to vector<8x32xf32>
    %621 = arith.addf %618, %620 : vector<8x32xf32>
    %622 = arith.addf %518, %621 : vector<8x32xf32>
    %623 = vector.extract_strided_slice %392 {offsets = [10, 0], sizes = [1, 32], strides = [1, 1]} : vector<15x32xf32> to vector<1x32xf32>
    %624 = vector.extract_strided_slice %392 {offsets = [11, 0], sizes = [1, 32], strides = [1, 1]} : vector<15x32xf32> to vector<1x32xf32>
    %cst_191 = arith.constant dense<0.000000e+00> : vector<8xf32>
    %625 = vector.multi_reduction <add>, %622, %cst_191 [1] : vector<8x32xf32> to vector<8xf32>
    %626 = vector.shape_cast %625 : vector<8xf32> to vector<8x1xf32>
    %cst_192 = arith.constant 3.200000e+01 : f32
    %627 = vector.broadcast %cst_192 : f32 to vector<8x1xf32>
    %628 = arith.divf %626, %627 : vector<8x1xf32>
    %629 = vector.broadcast %628 : vector<8x1xf32> to vector<8x32xf32>
    %630 = arith.subf %622, %629 : vector<8x32xf32>
    %631 = arith.mulf %630, %630 : vector<8x32xf32>
    %cst_193 = arith.constant dense<0.000000e+00> : vector<8xf32>
    %632 = vector.multi_reduction <add>, %631, %cst_193 [1] : vector<8x32xf32> to vector<8xf32>
    %633 = vector.shape_cast %632 : vector<8xf32> to vector<8x1xf32>
    %cst_194 = arith.constant 3.200000e+01 : f32
    %634 = vector.broadcast %cst_194 : f32 to vector<8x1xf32>
    %635 = arith.divf %633, %634 : vector<8x1xf32>
    %636 = vector.broadcast %628 : vector<8x1xf32> to vector<8x32xf32>
    %637 = arith.subf %622, %636 : vector<8x32xf32>
    %cst_195 = arith.constant 9.99999974E-6 : f32
    %638 = vector.broadcast %cst_195 : f32 to vector<8x1xf32>
    %639 = arith.addf %635, %638 : vector<8x1xf32>
    %640 = math.rsqrt %639 : vector<8x1xf32>
    %641 = vector.broadcast %640 : vector<8x1xf32> to vector<8x32xf32>
    %642 = arith.mulf %637, %641 : vector<8x32xf32>
    %643 = vector.broadcast %623 : vector<1x32xf32> to vector<8x32xf32>
    %644 = arith.mulf %642, %643 : vector<8x32xf32>
    %645 = vector.broadcast %624 : vector<1x32xf32> to vector<8x32xf32>
    %646 = arith.addf %644, %645 : vector<8x32xf32>
    %c0_196 = arith.constant 0 : index
    %c0_197 = arith.constant 0 : index
    %c0_198 = arith.constant 0 : index
    %647 = vector.load %arg20[%c0_196, %c0_197, %c0_198] : memref<2x32x64xf32, #tpu.memory_space<vmem>>, vector<1x32x64xf32>
    %648 = vector.shape_cast %647 : vector<1x32x64xf32> to vector<32x64xf32>
    %cst_199 = arith.constant dense<0.000000e+00> : vector<8x64xf32>
    %649 = tpu.matmul %646, %648, %cst_199 {dimension_numbers = #tpu.dot_dimension_numbers<[1], [0], [0], [1], [0, 0, 1, 1], [], []>} : vector<8x32xf32>, vector<32x64xf32>, vector<8x64xf32> -> vector<8x64xf32>
    %c0_200 = arith.constant 0 : index
    %c0_201 = arith.constant 0 : index
    %c0_202 = arith.constant 0 : index
    %650 = vector.load %arg22[%c0_200, %c0_201, %c0_202] : memref<2x1x64xf32, #tpu.memory_space<vmem>>, vector<1x1x64xf32>
    %651 = vector.shape_cast %650 : vector<1x1x64xf32> to vector<1x64xf32>
    %652 = vector.broadcast %651 : vector<1x64xf32> to vector<8x64xf32>
    %653 = arith.addf %649, %652 : vector<8x64xf32>
    %cst_203 = arith.constant 0.000000e+00 : f32
    %654 = vector.broadcast %cst_203 : f32 to vector<8x64xf32>
    %655 = arith.maximumf %653, %654 : vector<8x64xf32>
    %c0_204 = arith.constant 0 : index
    %c0_205 = arith.constant 0 : index
    %c0_206 = arith.constant 0 : index
    %656 = vector.load %arg21[%c0_204, %c0_205, %c0_206] : memref<2x64x32xf32, #tpu.memory_space<vmem>>, vector<1x64x32xf32>
    %657 = vector.shape_cast %656 : vector<1x64x32xf32> to vector<64x32xf32>
    %cst_207 = arith.constant dense<0.000000e+00> : vector<8x32xf32>
    %658 = tpu.matmul %655, %657, %cst_207 {dimension_numbers = #tpu.dot_dimension_numbers<[1], [0], [0], [1], [0, 0, 1, 1], [], []>} : vector<8x64xf32>, vector<64x32xf32>, vector<8x32xf32> -> vector<8x32xf32>
    %659 = vector.extract_strided_slice %392 {offsets = [12, 0], sizes = [1, 32], strides = [1, 1]} : vector<15x32xf32> to vector<1x32xf32>
    %660 = vector.broadcast %659 : vector<1x32xf32> to vector<8x32xf32>
    %661 = arith.addf %658, %660 : vector<8x32xf32>
    %662 = arith.addf %646, %661 : vector<8x32xf32>
    %663 = vector.extract_strided_slice %392 {offsets = [13, 0], sizes = [1, 32], strides = [1, 1]} : vector<15x32xf32> to vector<1x32xf32>
    %664 = vector.extract_strided_slice %392 {offsets = [14, 0], sizes = [1, 32], strides = [1, 1]} : vector<15x32xf32> to vector<1x32xf32>
    %cst_208 = arith.constant dense<0.000000e+00> : vector<8xf32>
    %665 = vector.multi_reduction <add>, %662, %cst_208 [1] : vector<8x32xf32> to vector<8xf32>
    %666 = vector.shape_cast %665 : vector<8xf32> to vector<8x1xf32>
    %cst_209 = arith.constant 3.200000e+01 : f32
    %667 = vector.broadcast %cst_209 : f32 to vector<8x1xf32>
    %668 = arith.divf %666, %667 : vector<8x1xf32>
    %669 = vector.broadcast %668 : vector<8x1xf32> to vector<8x32xf32>
    %670 = arith.subf %662, %669 : vector<8x32xf32>
    %671 = arith.mulf %670, %670 : vector<8x32xf32>
    %cst_210 = arith.constant dense<0.000000e+00> : vector<8xf32>
    %672 = vector.multi_reduction <add>, %671, %cst_210 [1] : vector<8x32xf32> to vector<8xf32>
    %673 = vector.shape_cast %672 : vector<8xf32> to vector<8x1xf32>
    %cst_211 = arith.constant 3.200000e+01 : f32
    %674 = vector.broadcast %cst_211 : f32 to vector<8x1xf32>
    %675 = arith.divf %673, %674 : vector<8x1xf32>
    %676 = vector.broadcast %668 : vector<8x1xf32> to vector<8x32xf32>
    %677 = arith.subf %662, %676 : vector<8x32xf32>
    %cst_212 = arith.constant 9.99999974E-6 : f32
    %678 = vector.broadcast %cst_212 : f32 to vector<8x1xf32>
    %679 = arith.addf %675, %678 : vector<8x1xf32>
    %680 = math.rsqrt %679 : vector<8x1xf32>
    %681 = vector.broadcast %680 : vector<8x1xf32> to vector<8x32xf32>
    %682 = arith.mulf %677, %681 : vector<8x32xf32>
    %683 = vector.broadcast %663 : vector<1x32xf32> to vector<8x32xf32>
    %684 = arith.mulf %682, %683 : vector<8x32xf32>
    %685 = vector.broadcast %664 : vector<1x32xf32> to vector<8x32xf32>
    %686 = arith.addf %684, %685 : vector<8x32xf32>
    %687 = vector.shape_cast %686 : vector<8x32xf32> to vector<2x4x32xf32>
    %c1_213 = arith.constant 1 : index
    %c0_214 = arith.constant 0 : index
    %c0_215 = arith.constant 0 : index
    %688 = vector.load %arg23[%c1_213, %c0_214, %c0_215] : memref<2x15x32xf32, #tpu.memory_space<vmem>>, vector<1x15x32xf32>
    %689 = vector.shape_cast %688 : vector<1x15x32xf32> to vector<15x32xf32>
    %690 = vector.shape_cast %687 : vector<2x4x32xf32> to vector<8x32xf32>
    %c1_216 = arith.constant 1 : index
    %c0_217 = arith.constant 0 : index
    %c0_218 = arith.constant 0 : index
    %691 = vector.load %arg15[%c1_216, %c0_217, %c0_218] : memref<2x32x96xf32, #tpu.memory_space<vmem>>, vector<1x32x96xf32>
    %692 = vector.shape_cast %691 : vector<1x32x96xf32> to vector<32x96xf32>
    %cst_219 = arith.constant dense<0.000000e+00> : vector<8x96xf32>
    %693 = tpu.matmul %690, %692, %cst_219 {dimension_numbers = #tpu.dot_dimension_numbers<[1], [0], [0], [1], [0, 0, 1, 1], [], []>} : vector<8x32xf32>, vector<32x96xf32>, vector<8x96xf32> -> vector<8x96xf32>
    %694 = vector.extract_strided_slice %693 {offsets = [0, 0], sizes = [8, 32], strides = [1, 1]} : vector<8x96xf32> to vector<8x32xf32>
    %695 = vector.extract_strided_slice %689 {offsets = [0, 0], sizes = [1, 32], strides = [1, 1]} : vector<15x32xf32> to vector<1x32xf32>
    %696 = vector.broadcast %695 : vector<1x32xf32> to vector<8x32xf32>
    %697 = arith.addf %694, %696 : vector<8x32xf32>
    %698 = vector.shape_cast %697 : vector<8x32xf32> to vector<2x4x32xf32>
    %699 = vector.extract_strided_slice %693 {offsets = [0, 32], sizes = [8, 32], strides = [1, 1]} : vector<8x96xf32> to vector<8x32xf32>
    %700 = vector.extract_strided_slice %689 {offsets = [1, 0], sizes = [1, 32], strides = [1, 1]} : vector<15x32xf32> to vector<1x32xf32>
    %701 = vector.broadcast %700 : vector<1x32xf32> to vector<8x32xf32>
    %702 = arith.addf %699, %701 : vector<8x32xf32>
    %703 = vector.shape_cast %702 : vector<8x32xf32> to vector<2x4x32xf32>
    %704 = vector.extract_strided_slice %693 {offsets = [0, 64], sizes = [8, 32], strides = [1, 1]} : vector<8x96xf32> to vector<8x32xf32>
    %705 = vector.extract_strided_slice %689 {offsets = [2, 0], sizes = [1, 32], strides = [1, 1]} : vector<15x32xf32> to vector<1x32xf32>
    %706 = vector.broadcast %705 : vector<1x32xf32> to vector<8x32xf32>
    %707 = arith.addf %704, %706 : vector<8x32xf32>
    %708 = vector.shape_cast %707 : vector<8x32xf32> to vector<2x4x32xf32>
    %709 = vector.broadcast %7 : vector<1x1x32xf32> to vector<2x4x32xf32>
    %710 = arith.mulf %698, %709 : vector<2x4x32xf32>
    "tpu.trace_start"() <{level = 10 : i32, message = "bqd,bkd->bqk"}> : () -> ()
    %cst_220 = arith.constant dense<0.000000e+00> : vector<2x4x4xf32>
    %711 = tpu.matmul %710, %703, %cst_220 {dimension_numbers = #tpu.dot_dimension_numbers<[2], [2], [1], [1], [0, 0, 0, 1, 1, 1], [0], [0]>} : vector<2x4x32xf32>, vector<2x4x32xf32>, vector<2x4x4xf32> -> vector<2x4x4xf32>
    "tpu.trace_stop"() : () -> ()
    %cst_221 = arith.constant 0.353553385 : f32
    %712 = vector.broadcast %cst_221 : f32 to vector<2x4x4xf32>
    %713 = arith.mulf %711, %712 : vector<2x4x4xf32>
    %cst_222 = arith.constant dense<0xFF800000> : vector<2x4xf32>
    %714 = vector.multi_reduction <maximumf>, %713, %cst_222 [2] : vector<2x4x4xf32> to vector<2x4xf32>
    %715 = vector.shape_cast %714 : vector<2x4xf32> to vector<2x4x1xf32>
    %716 = vector.broadcast %715 : vector<2x4x1xf32> to vector<2x4x4xf32>
    %717 = arith.subf %713, %716 : vector<2x4x4xf32>
    %718 = math.exp %717 : vector<2x4x4xf32>
    %cst_223 = arith.constant dense<0.000000e+00> : vector<2x4xf32>
    %719 = vector.multi_reduction <add>, %718, %cst_223 [2] : vector<2x4x4xf32> to vector<2x4xf32>
    %720 = vector.shape_cast %719 : vector<2x4xf32> to vector<2x4x1xf32>
    %721 = tpu.reciprocal %720 {approx = true} : vector<2x4x1xf32> -> vector<2x4x1xf32>
    %722 = vector.broadcast %721 : vector<2x4x1xf32> to vector<2x4x4xf32>
    %723 = arith.mulf %718, %722 : vector<2x4x4xf32>
    %724 = vector.broadcast %7 : vector<1x1x32xf32> to vector<2x4x32xf32>
    %725 = arith.mulf %708, %724 : vector<2x4x32xf32>
    "tpu.trace_start"() <{level = 10 : i32, message = "bqk,bkd->bqd"}> : () -> ()
    %cst_224 = arith.constant dense<0.000000e+00> : vector<2x4x32xf32>
    %726 = tpu.matmul %723, %725, %cst_224 {dimension_numbers = #tpu.dot_dimension_numbers<[2], [1], [1], [2], [0, 0, 0, 1, 1, 2], [0], [0]>} : vector<2x4x4xf32>, vector<2x4x32xf32>, vector<2x4x32xf32> -> vector<2x4x32xf32>
    "tpu.trace_stop"() : () -> ()
    %727 = vector.broadcast %14 : vector<1x1x32xf32> to vector<2x4x32xf32>
    %728 = arith.mulf %698, %727 : vector<2x4x32xf32>
    "tpu.trace_start"() <{level = 10 : i32, message = "bqd,bkd->bqk"}> : () -> ()
    %cst_225 = arith.constant dense<0.000000e+00> : vector<2x4x4xf32>
    %729 = tpu.matmul %728, %703, %cst_225 {dimension_numbers = #tpu.dot_dimension_numbers<[2], [2], [1], [1], [0, 0, 0, 1, 1, 1], [0], [0]>} : vector<2x4x32xf32>, vector<2x4x32xf32>, vector<2x4x4xf32> -> vector<2x4x4xf32>
    "tpu.trace_stop"() : () -> ()
    %cst_226 = arith.constant 0.353553385 : f32
    %730 = vector.broadcast %cst_226 : f32 to vector<2x4x4xf32>
    %731 = arith.mulf %729, %730 : vector<2x4x4xf32>
    %cst_227 = arith.constant dense<0xFF800000> : vector<2x4xf32>
    %732 = vector.multi_reduction <maximumf>, %731, %cst_227 [2] : vector<2x4x4xf32> to vector<2x4xf32>
    %733 = vector.shape_cast %732 : vector<2x4xf32> to vector<2x4x1xf32>
    %734 = vector.broadcast %733 : vector<2x4x1xf32> to vector<2x4x4xf32>
    %735 = arith.subf %731, %734 : vector<2x4x4xf32>
    %736 = math.exp %735 : vector<2x4x4xf32>
    %cst_228 = arith.constant dense<0.000000e+00> : vector<2x4xf32>
    %737 = vector.multi_reduction <add>, %736, %cst_228 [2] : vector<2x4x4xf32> to vector<2x4xf32>
    %738 = vector.shape_cast %737 : vector<2x4xf32> to vector<2x4x1xf32>
    %739 = tpu.reciprocal %738 {approx = true} : vector<2x4x1xf32> -> vector<2x4x1xf32>
    %740 = vector.broadcast %739 : vector<2x4x1xf32> to vector<2x4x4xf32>
    %741 = arith.mulf %736, %740 : vector<2x4x4xf32>
    %742 = vector.broadcast %14 : vector<1x1x32xf32> to vector<2x4x32xf32>
    %743 = arith.mulf %708, %742 : vector<2x4x32xf32>
    "tpu.trace_start"() <{level = 10 : i32, message = "bqk,bkd->bqd"}> : () -> ()
    %cst_229 = arith.constant dense<0.000000e+00> : vector<2x4x32xf32>
    %744 = tpu.matmul %741, %743, %cst_229 {dimension_numbers = #tpu.dot_dimension_numbers<[2], [1], [1], [2], [0, 0, 0, 1, 1, 2], [0], [0]>} : vector<2x4x4xf32>, vector<2x4x32xf32>, vector<2x4x32xf32> -> vector<2x4x32xf32>
    "tpu.trace_stop"() : () -> ()
    %745 = arith.addf %726, %744 : vector<2x4x32xf32>
    %746 = vector.broadcast %21 : vector<1x1x32xf32> to vector<2x4x32xf32>
    %747 = arith.mulf %698, %746 : vector<2x4x32xf32>
    "tpu.trace_start"() <{level = 10 : i32, message = "bqd,bkd->bqk"}> : () -> ()
    %cst_230 = arith.constant dense<0.000000e+00> : vector<2x4x4xf32>
    %748 = tpu.matmul %747, %703, %cst_230 {dimension_numbers = #tpu.dot_dimension_numbers<[2], [2], [1], [1], [0, 0, 0, 1, 1, 1], [0], [0]>} : vector<2x4x32xf32>, vector<2x4x32xf32>, vector<2x4x4xf32> -> vector<2x4x4xf32>
    "tpu.trace_stop"() : () -> ()
    %cst_231 = arith.constant 0.353553385 : f32
    %749 = vector.broadcast %cst_231 : f32 to vector<2x4x4xf32>
    %750 = arith.mulf %748, %749 : vector<2x4x4xf32>
    %cst_232 = arith.constant dense<0xFF800000> : vector<2x4xf32>
    %751 = vector.multi_reduction <maximumf>, %750, %cst_232 [2] : vector<2x4x4xf32> to vector<2x4xf32>
    %752 = vector.shape_cast %751 : vector<2x4xf32> to vector<2x4x1xf32>
    %753 = vector.broadcast %752 : vector<2x4x1xf32> to vector<2x4x4xf32>
    %754 = arith.subf %750, %753 : vector<2x4x4xf32>
    %755 = math.exp %754 : vector<2x4x4xf32>
    %cst_233 = arith.constant dense<0.000000e+00> : vector<2x4xf32>
    %756 = vector.multi_reduction <add>, %755, %cst_233 [2] : vector<2x4x4xf32> to vector<2x4xf32>
    %757 = vector.shape_cast %756 : vector<2x4xf32> to vector<2x4x1xf32>
    %758 = tpu.reciprocal %757 {approx = true} : vector<2x4x1xf32> -> vector<2x4x1xf32>
    %759 = vector.broadcast %758 : vector<2x4x1xf32> to vector<2x4x4xf32>
    %760 = arith.mulf %755, %759 : vector<2x4x4xf32>
    %761 = vector.broadcast %21 : vector<1x1x32xf32> to vector<2x4x32xf32>
    %762 = arith.mulf %708, %761 : vector<2x4x32xf32>
    "tpu.trace_start"() <{level = 10 : i32, message = "bqk,bkd->bqd"}> : () -> ()
    %cst_234 = arith.constant dense<0.000000e+00> : vector<2x4x32xf32>
    %763 = tpu.matmul %760, %762, %cst_234 {dimension_numbers = #tpu.dot_dimension_numbers<[2], [1], [1], [2], [0, 0, 0, 1, 1, 2], [0], [0]>} : vector<2x4x4xf32>, vector<2x4x32xf32>, vector<2x4x32xf32> -> vector<2x4x32xf32>
    "tpu.trace_stop"() : () -> ()
    %764 = arith.addf %745, %763 : vector<2x4x32xf32>
    %765 = vector.broadcast %28 : vector<1x1x32xf32> to vector<2x4x32xf32>
    %766 = arith.mulf %698, %765 : vector<2x4x32xf32>
    "tpu.trace_start"() <{level = 10 : i32, message = "bqd,bkd->bqk"}> : () -> ()
    %cst_235 = arith.constant dense<0.000000e+00> : vector<2x4x4xf32>
    %767 = tpu.matmul %766, %703, %cst_235 {dimension_numbers = #tpu.dot_dimension_numbers<[2], [2], [1], [1], [0, 0, 0, 1, 1, 1], [0], [0]>} : vector<2x4x32xf32>, vector<2x4x32xf32>, vector<2x4x4xf32> -> vector<2x4x4xf32>
    "tpu.trace_stop"() : () -> ()
    %cst_236 = arith.constant 0.353553385 : f32
    %768 = vector.broadcast %cst_236 : f32 to vector<2x4x4xf32>
    %769 = arith.mulf %767, %768 : vector<2x4x4xf32>
    %cst_237 = arith.constant dense<0xFF800000> : vector<2x4xf32>
    %770 = vector.multi_reduction <maximumf>, %769, %cst_237 [2] : vector<2x4x4xf32> to vector<2x4xf32>
    %771 = vector.shape_cast %770 : vector<2x4xf32> to vector<2x4x1xf32>
    %772 = vector.broadcast %771 : vector<2x4x1xf32> to vector<2x4x4xf32>
    %773 = arith.subf %769, %772 : vector<2x4x4xf32>
    %774 = math.exp %773 : vector<2x4x4xf32>
    %cst_238 = arith.constant dense<0.000000e+00> : vector<2x4xf32>
    %775 = vector.multi_reduction <add>, %774, %cst_238 [2] : vector<2x4x4xf32> to vector<2x4xf32>
    %776 = vector.shape_cast %775 : vector<2x4xf32> to vector<2x4x1xf32>
    %777 = tpu.reciprocal %776 {approx = true} : vector<2x4x1xf32> -> vector<2x4x1xf32>
    %778 = vector.broadcast %777 : vector<2x4x1xf32> to vector<2x4x4xf32>
    %779 = arith.mulf %774, %778 : vector<2x4x4xf32>
    %780 = vector.broadcast %28 : vector<1x1x32xf32> to vector<2x4x32xf32>
    %781 = arith.mulf %708, %780 : vector<2x4x32xf32>
    "tpu.trace_start"() <{level = 10 : i32, message = "bqk,bkd->bqd"}> : () -> ()
    %cst_239 = arith.constant dense<0.000000e+00> : vector<2x4x32xf32>
    %782 = tpu.matmul %779, %781, %cst_239 {dimension_numbers = #tpu.dot_dimension_numbers<[2], [1], [1], [2], [0, 0, 0, 1, 1, 2], [0], [0]>} : vector<2x4x4xf32>, vector<2x4x32xf32>, vector<2x4x32xf32> -> vector<2x4x32xf32>
    "tpu.trace_stop"() : () -> ()
    %783 = arith.addf %764, %782 : vector<2x4x32xf32>
    %784 = vector.shape_cast %783 : vector<2x4x32xf32> to vector<8x32xf32>
    %c1_240 = arith.constant 1 : index
    %c0_241 = arith.constant 0 : index
    %c0_242 = arith.constant 0 : index
    %785 = vector.load %arg16[%c1_240, %c0_241, %c0_242] : memref<2x32x32xf32, #tpu.memory_space<vmem>>, vector<1x32x32xf32>
    %786 = vector.shape_cast %785 : vector<1x32x32xf32> to vector<32x32xf32>
    %cst_243 = arith.constant dense<0.000000e+00> : vector<8x32xf32>
    %787 = tpu.matmul %784, %786, %cst_243 {dimension_numbers = #tpu.dot_dimension_numbers<[1], [0], [0], [1], [0, 0, 1, 1], [], []>} : vector<8x32xf32>, vector<32x32xf32>, vector<8x32xf32> -> vector<8x32xf32>
    %788 = vector.extract_strided_slice %689 {offsets = [3, 0], sizes = [1, 32], strides = [1, 1]} : vector<15x32xf32> to vector<1x32xf32>
    %789 = vector.broadcast %788 : vector<1x32xf32> to vector<8x32xf32>
    %790 = arith.addf %787, %789 : vector<8x32xf32>
    %791 = arith.addf %690, %790 : vector<8x32xf32>
    %792 = vector.extract_strided_slice %689 {offsets = [4, 0], sizes = [1, 32], strides = [1, 1]} : vector<15x32xf32> to vector<1x32xf32>
    %793 = vector.extract_strided_slice %689 {offsets = [5, 0], sizes = [1, 32], strides = [1, 1]} : vector<15x32xf32> to vector<1x32xf32>
    %cst_244 = arith.constant dense<0.000000e+00> : vector<8xf32>
    %794 = vector.multi_reduction <add>, %791, %cst_244 [1] : vector<8x32xf32> to vector<8xf32>
    %795 = vector.shape_cast %794 : vector<8xf32> to vector<8x1xf32>
    %cst_245 = arith.constant 3.200000e+01 : f32
    %796 = vector.broadcast %cst_245 : f32 to vector<8x1xf32>
    %797 = arith.divf %795, %796 : vector<8x1xf32>
    %798 = vector.broadcast %797 : vector<8x1xf32> to vector<8x32xf32>
    %799 = arith.subf %791, %798 : vector<8x32xf32>
    %800 = arith.mulf %799, %799 : vector<8x32xf32>
    %cst_246 = arith.constant dense<0.000000e+00> : vector<8xf32>
    %801 = vector.multi_reduction <add>, %800, %cst_246 [1] : vector<8x32xf32> to vector<8xf32>
    %802 = vector.shape_cast %801 : vector<8xf32> to vector<8x1xf32>
    %cst_247 = arith.constant 3.200000e+01 : f32
    %803 = vector.broadcast %cst_247 : f32 to vector<8x1xf32>
    %804 = arith.divf %802, %803 : vector<8x1xf32>
    %805 = vector.broadcast %797 : vector<8x1xf32> to vector<8x32xf32>
    %806 = arith.subf %791, %805 : vector<8x32xf32>
    %cst_248 = arith.constant 9.99999974E-6 : f32
    %807 = vector.broadcast %cst_248 : f32 to vector<8x1xf32>
    %808 = arith.addf %804, %807 : vector<8x1xf32>
    %809 = math.rsqrt %808 : vector<8x1xf32>
    %810 = vector.broadcast %809 : vector<8x1xf32> to vector<8x32xf32>
    %811 = arith.mulf %806, %810 : vector<8x32xf32>
    %812 = vector.broadcast %792 : vector<1x32xf32> to vector<8x32xf32>
    %813 = arith.mulf %811, %812 : vector<8x32xf32>
    %814 = vector.broadcast %793 : vector<1x32xf32> to vector<8x32xf32>
    %815 = arith.addf %813, %814 : vector<8x32xf32>
    %c1_249 = arith.constant 1 : index
    %c0_250 = arith.constant 0 : index
    %c0_251 = arith.constant 0 : index
    %816 = vector.load %arg17[%c1_249, %c0_250, %c0_251] : memref<2x32x32xf32, #tpu.memory_space<vmem>>, vector<1x32x32xf32>
    %817 = vector.shape_cast %816 : vector<1x32x32xf32> to vector<32x32xf32>
    %cst_252 = arith.constant dense<0.000000e+00> : vector<8x32xf32>
    %818 = tpu.matmul %815, %817, %cst_252 {dimension_numbers = #tpu.dot_dimension_numbers<[1], [0], [0], [1], [0, 0, 1, 1], [], []>} : vector<8x32xf32>, vector<32x32xf32>, vector<8x32xf32> -> vector<8x32xf32>
    %819 = vector.extract_strided_slice %689 {offsets = [6, 0], sizes = [1, 32], strides = [1, 1]} : vector<15x32xf32> to vector<1x32xf32>
    %820 = vector.broadcast %819 : vector<1x32xf32> to vector<8x32xf32>
    %821 = arith.addf %818, %820 : vector<8x32xf32>
    %822 = vector.shape_cast %821 : vector<8x32xf32> to vector<2x4x32xf32>
    %823 = vector.shape_cast %380 : vector<2x8x32xf32> to vector<16x32xf32>
    %c1_253 = arith.constant 1 : index
    %c0_254 = arith.constant 0 : index
    %c0_255 = arith.constant 0 : index
    %824 = vector.load %arg18[%c1_253, %c0_254, %c0_255] : memref<2x32x64xf32, #tpu.memory_space<vmem>>, vector<1x32x64xf32>
    %825 = vector.shape_cast %824 : vector<1x32x64xf32> to vector<32x64xf32>
    %cst_256 = arith.constant dense<0.000000e+00> : vector<16x64xf32>
    %826 = tpu.matmul %823, %825, %cst_256 {dimension_numbers = #tpu.dot_dimension_numbers<[1], [0], [0], [1], [0, 0, 1, 1], [], []>} : vector<16x32xf32>, vector<32x64xf32>, vector<16x64xf32> -> vector<16x64xf32>
    %827 = vector.extract_strided_slice %826 {offsets = [0, 0], sizes = [16, 32], strides = [1, 1]} : vector<16x64xf32> to vector<16x32xf32>
    %828 = vector.extract_strided_slice %689 {offsets = [7, 0], sizes = [1, 32], strides = [1, 1]} : vector<15x32xf32> to vector<1x32xf32>
    %829 = vector.broadcast %828 : vector<1x32xf32> to vector<16x32xf32>
    %830 = arith.addf %827, %829 : vector<16x32xf32>
    %831 = vector.shape_cast %830 : vector<16x32xf32> to vector<2x8x32xf32>
    %832 = vector.extract_strided_slice %826 {offsets = [0, 32], sizes = [16, 32], strides = [1, 1]} : vector<16x64xf32> to vector<16x32xf32>
    %833 = vector.extract_strided_slice %689 {offsets = [8, 0], sizes = [1, 32], strides = [1, 1]} : vector<15x32xf32> to vector<1x32xf32>
    %834 = vector.broadcast %833 : vector<1x32xf32> to vector<16x32xf32>
    %835 = arith.addf %832, %834 : vector<16x32xf32>
    %836 = vector.shape_cast %835 : vector<16x32xf32> to vector<2x8x32xf32>
    %837 = vector.broadcast %7 : vector<1x1x32xf32> to vector<2x4x32xf32>
    %838 = arith.mulf %822, %837 : vector<2x4x32xf32>
    "tpu.trace_start"() <{level = 10 : i32, message = "bqd,bkd->bqk"}> : () -> ()
    %cst_257 = arith.constant dense<0.000000e+00> : vector<2x4x8xf32>
    %839 = tpu.matmul %838, %831, %cst_257 {dimension_numbers = #tpu.dot_dimension_numbers<[2], [2], [1], [1], [0, 0, 0, 1, 1, 1], [0], [0]>} : vector<2x4x32xf32>, vector<2x8x32xf32>, vector<2x4x8xf32> -> vector<2x4x8xf32>
    "tpu.trace_stop"() : () -> ()
    %cst_258 = arith.constant 0.353553385 : f32
    %840 = vector.broadcast %cst_258 : f32 to vector<2x4x8xf32>
    %841 = arith.mulf %839, %840 : vector<2x4x8xf32>
    %cst_259 = arith.constant dense<0xFF800000> : vector<2x4xf32>
    %842 = vector.multi_reduction <maximumf>, %841, %cst_259 [2] : vector<2x4x8xf32> to vector<2x4xf32>
    %843 = vector.shape_cast %842 : vector<2x4xf32> to vector<2x4x1xf32>
    %844 = vector.broadcast %843 : vector<2x4x1xf32> to vector<2x4x8xf32>
    %845 = arith.subf %841, %844 : vector<2x4x8xf32>
    %846 = math.exp %845 : vector<2x4x8xf32>
    %cst_260 = arith.constant dense<0.000000e+00> : vector<2x4xf32>
    %847 = vector.multi_reduction <add>, %846, %cst_260 [2] : vector<2x4x8xf32> to vector<2x4xf32>
    %848 = vector.shape_cast %847 : vector<2x4xf32> to vector<2x4x1xf32>
    %849 = tpu.reciprocal %848 {approx = true} : vector<2x4x1xf32> -> vector<2x4x1xf32>
    %850 = vector.broadcast %849 : vector<2x4x1xf32> to vector<2x4x8xf32>
    %851 = arith.mulf %846, %850 : vector<2x4x8xf32>
    %852 = vector.broadcast %7 : vector<1x1x32xf32> to vector<2x8x32xf32>
    %853 = arith.mulf %836, %852 : vector<2x8x32xf32>
    "tpu.trace_start"() <{level = 10 : i32, message = "bqk,bkd->bqd"}> : () -> ()
    %cst_261 = arith.constant dense<0.000000e+00> : vector<2x4x32xf32>
    %854 = tpu.matmul %851, %853, %cst_261 {dimension_numbers = #tpu.dot_dimension_numbers<[2], [1], [1], [2], [0, 0, 0, 1, 1, 2], [0], [0]>} : vector<2x4x8xf32>, vector<2x8x32xf32>, vector<2x4x32xf32> -> vector<2x4x32xf32>
    "tpu.trace_stop"() : () -> ()
    %855 = vector.broadcast %14 : vector<1x1x32xf32> to vector<2x4x32xf32>
    %856 = arith.mulf %822, %855 : vector<2x4x32xf32>
    "tpu.trace_start"() <{level = 10 : i32, message = "bqd,bkd->bqk"}> : () -> ()
    %cst_262 = arith.constant dense<0.000000e+00> : vector<2x4x8xf32>
    %857 = tpu.matmul %856, %831, %cst_262 {dimension_numbers = #tpu.dot_dimension_numbers<[2], [2], [1], [1], [0, 0, 0, 1, 1, 1], [0], [0]>} : vector<2x4x32xf32>, vector<2x8x32xf32>, vector<2x4x8xf32> -> vector<2x4x8xf32>
    "tpu.trace_stop"() : () -> ()
    %cst_263 = arith.constant 0.353553385 : f32
    %858 = vector.broadcast %cst_263 : f32 to vector<2x4x8xf32>
    %859 = arith.mulf %857, %858 : vector<2x4x8xf32>
    %cst_264 = arith.constant dense<0xFF800000> : vector<2x4xf32>
    %860 = vector.multi_reduction <maximumf>, %859, %cst_264 [2] : vector<2x4x8xf32> to vector<2x4xf32>
    %861 = vector.shape_cast %860 : vector<2x4xf32> to vector<2x4x1xf32>
    %862 = vector.broadcast %861 : vector<2x4x1xf32> to vector<2x4x8xf32>
    %863 = arith.subf %859, %862 : vector<2x4x8xf32>
    %864 = math.exp %863 : vector<2x4x8xf32>
    %cst_265 = arith.constant dense<0.000000e+00> : vector<2x4xf32>
    %865 = vector.multi_reduction <add>, %864, %cst_265 [2] : vector<2x4x8xf32> to vector<2x4xf32>
    %866 = vector.shape_cast %865 : vector<2x4xf32> to vector<2x4x1xf32>
    %867 = tpu.reciprocal %866 {approx = true} : vector<2x4x1xf32> -> vector<2x4x1xf32>
    %868 = vector.broadcast %867 : vector<2x4x1xf32> to vector<2x4x8xf32>
    %869 = arith.mulf %864, %868 : vector<2x4x8xf32>
    %870 = vector.broadcast %14 : vector<1x1x32xf32> to vector<2x8x32xf32>
    %871 = arith.mulf %836, %870 : vector<2x8x32xf32>
    "tpu.trace_start"() <{level = 10 : i32, message = "bqk,bkd->bqd"}> : () -> ()
    %cst_266 = arith.constant dense<0.000000e+00> : vector<2x4x32xf32>
    %872 = tpu.matmul %869, %871, %cst_266 {dimension_numbers = #tpu.dot_dimension_numbers<[2], [1], [1], [2], [0, 0, 0, 1, 1, 2], [0], [0]>} : vector<2x4x8xf32>, vector<2x8x32xf32>, vector<2x4x32xf32> -> vector<2x4x32xf32>
    "tpu.trace_stop"() : () -> ()
    %873 = arith.addf %854, %872 : vector<2x4x32xf32>
    %874 = vector.broadcast %21 : vector<1x1x32xf32> to vector<2x4x32xf32>
    %875 = arith.mulf %822, %874 : vector<2x4x32xf32>
    "tpu.trace_start"() <{level = 10 : i32, message = "bqd,bkd->bqk"}> : () -> ()
    %cst_267 = arith.constant dense<0.000000e+00> : vector<2x4x8xf32>
    %876 = tpu.matmul %875, %831, %cst_267 {dimension_numbers = #tpu.dot_dimension_numbers<[2], [2], [1], [1], [0, 0, 0, 1, 1, 1], [0], [0]>} : vector<2x4x32xf32>, vector<2x8x32xf32>, vector<2x4x8xf32> -> vector<2x4x8xf32>
    "tpu.trace_stop"() : () -> ()
    %cst_268 = arith.constant 0.353553385 : f32
    %877 = vector.broadcast %cst_268 : f32 to vector<2x4x8xf32>
    %878 = arith.mulf %876, %877 : vector<2x4x8xf32>
    %cst_269 = arith.constant dense<0xFF800000> : vector<2x4xf32>
    %879 = vector.multi_reduction <maximumf>, %878, %cst_269 [2] : vector<2x4x8xf32> to vector<2x4xf32>
    %880 = vector.shape_cast %879 : vector<2x4xf32> to vector<2x4x1xf32>
    %881 = vector.broadcast %880 : vector<2x4x1xf32> to vector<2x4x8xf32>
    %882 = arith.subf %878, %881 : vector<2x4x8xf32>
    %883 = math.exp %882 : vector<2x4x8xf32>
    %cst_270 = arith.constant dense<0.000000e+00> : vector<2x4xf32>
    %884 = vector.multi_reduction <add>, %883, %cst_270 [2] : vector<2x4x8xf32> to vector<2x4xf32>
    %885 = vector.shape_cast %884 : vector<2x4xf32> to vector<2x4x1xf32>
    %886 = tpu.reciprocal %885 {approx = true} : vector<2x4x1xf32> -> vector<2x4x1xf32>
    %887 = vector.broadcast %886 : vector<2x4x1xf32> to vector<2x4x8xf32>
    %888 = arith.mulf %883, %887 : vector<2x4x8xf32>
    %889 = vector.broadcast %21 : vector<1x1x32xf32> to vector<2x8x32xf32>
    %890 = arith.mulf %836, %889 : vector<2x8x32xf32>
    "tpu.trace_start"() <{level = 10 : i32, message = "bqk,bkd->bqd"}> : () -> ()
    %cst_271 = arith.constant dense<0.000000e+00> : vector<2x4x32xf32>
    %891 = tpu.matmul %888, %890, %cst_271 {dimension_numbers = #tpu.dot_dimension_numbers<[2], [1], [1], [2], [0, 0, 0, 1, 1, 2], [0], [0]>} : vector<2x4x8xf32>, vector<2x8x32xf32>, vector<2x4x32xf32> -> vector<2x4x32xf32>
    "tpu.trace_stop"() : () -> ()
    %892 = arith.addf %873, %891 : vector<2x4x32xf32>
    %893 = vector.broadcast %28 : vector<1x1x32xf32> to vector<2x4x32xf32>
    %894 = arith.mulf %822, %893 : vector<2x4x32xf32>
    "tpu.trace_start"() <{level = 10 : i32, message = "bqd,bkd->bqk"}> : () -> ()
    %cst_272 = arith.constant dense<0.000000e+00> : vector<2x4x8xf32>
    %895 = tpu.matmul %894, %831, %cst_272 {dimension_numbers = #tpu.dot_dimension_numbers<[2], [2], [1], [1], [0, 0, 0, 1, 1, 1], [0], [0]>} : vector<2x4x32xf32>, vector<2x8x32xf32>, vector<2x4x8xf32> -> vector<2x4x8xf32>
    "tpu.trace_stop"() : () -> ()
    %cst_273 = arith.constant 0.353553385 : f32
    %896 = vector.broadcast %cst_273 : f32 to vector<2x4x8xf32>
    %897 = arith.mulf %895, %896 : vector<2x4x8xf32>
    %cst_274 = arith.constant dense<0xFF800000> : vector<2x4xf32>
    %898 = vector.multi_reduction <maximumf>, %897, %cst_274 [2] : vector<2x4x8xf32> to vector<2x4xf32>
    %899 = vector.shape_cast %898 : vector<2x4xf32> to vector<2x4x1xf32>
    %900 = vector.broadcast %899 : vector<2x4x1xf32> to vector<2x4x8xf32>
    %901 = arith.subf %897, %900 : vector<2x4x8xf32>
    %902 = math.exp %901 : vector<2x4x8xf32>
    %cst_275 = arith.constant dense<0.000000e+00> : vector<2x4xf32>
    %903 = vector.multi_reduction <add>, %902, %cst_275 [2] : vector<2x4x8xf32> to vector<2x4xf32>
    %904 = vector.shape_cast %903 : vector<2x4xf32> to vector<2x4x1xf32>
    %905 = tpu.reciprocal %904 {approx = true} : vector<2x4x1xf32> -> vector<2x4x1xf32>
    %906 = vector.broadcast %905 : vector<2x4x1xf32> to vector<2x4x8xf32>
    %907 = arith.mulf %902, %906 : vector<2x4x8xf32>
    %908 = vector.broadcast %28 : vector<1x1x32xf32> to vector<2x8x32xf32>
    %909 = arith.mulf %836, %908 : vector<2x8x32xf32>
    "tpu.trace_start"() <{level = 10 : i32, message = "bqk,bkd->bqd"}> : () -> ()
    %cst_276 = arith.constant dense<0.000000e+00> : vector<2x4x32xf32>
    %910 = tpu.matmul %907, %909, %cst_276 {dimension_numbers = #tpu.dot_dimension_numbers<[2], [1], [1], [2], [0, 0, 0, 1, 1, 2], [0], [0]>} : vector<2x4x8xf32>, vector<2x8x32xf32>, vector<2x4x32xf32> -> vector<2x4x32xf32>
    "tpu.trace_stop"() : () -> ()
    %911 = arith.addf %892, %910 : vector<2x4x32xf32>
    %912 = vector.shape_cast %911 : vector<2x4x32xf32> to vector<8x32xf32>
    %c1_277 = arith.constant 1 : index
    %c0_278 = arith.constant 0 : index
    %c0_279 = arith.constant 0 : index
    %913 = vector.load %arg19[%c1_277, %c0_278, %c0_279] : memref<2x32x32xf32, #tpu.memory_space<vmem>>, vector<1x32x32xf32>
    %914 = vector.shape_cast %913 : vector<1x32x32xf32> to vector<32x32xf32>
    %cst_280 = arith.constant dense<0.000000e+00> : vector<8x32xf32>
    %915 = tpu.matmul %912, %914, %cst_280 {dimension_numbers = #tpu.dot_dimension_numbers<[1], [0], [0], [1], [0, 0, 1, 1], [], []>} : vector<8x32xf32>, vector<32x32xf32>, vector<8x32xf32> -> vector<8x32xf32>
    %916 = vector.extract_strided_slice %689 {offsets = [9, 0], sizes = [1, 32], strides = [1, 1]} : vector<15x32xf32> to vector<1x32xf32>
    %917 = vector.broadcast %916 : vector<1x32xf32> to vector<8x32xf32>
    %918 = arith.addf %915, %917 : vector<8x32xf32>
    %919 = arith.addf %815, %918 : vector<8x32xf32>
    %920 = vector.extract_strided_slice %689 {offsets = [10, 0], sizes = [1, 32], strides = [1, 1]} : vector<15x32xf32> to vector<1x32xf32>
    %921 = vector.extract_strided_slice %689 {offsets = [11, 0], sizes = [1, 32], strides = [1, 1]} : vector<15x32xf32> to vector<1x32xf32>
    %cst_281 = arith.constant dense<0.000000e+00> : vector<8xf32>
    %922 = vector.multi_reduction <add>, %919, %cst_281 [1] : vector<8x32xf32> to vector<8xf32>
    %923 = vector.shape_cast %922 : vector<8xf32> to vector<8x1xf32>
    %cst_282 = arith.constant 3.200000e+01 : f32
    %924 = vector.broadcast %cst_282 : f32 to vector<8x1xf32>
    %925 = arith.divf %923, %924 : vector<8x1xf32>
    %926 = vector.broadcast %925 : vector<8x1xf32> to vector<8x32xf32>
    %927 = arith.subf %919, %926 : vector<8x32xf32>
    %928 = arith.mulf %927, %927 : vector<8x32xf32>
    %cst_283 = arith.constant dense<0.000000e+00> : vector<8xf32>
    %929 = vector.multi_reduction <add>, %928, %cst_283 [1] : vector<8x32xf32> to vector<8xf32>
    %930 = vector.shape_cast %929 : vector<8xf32> to vector<8x1xf32>
    %cst_284 = arith.constant 3.200000e+01 : f32
    %931 = vector.broadcast %cst_284 : f32 to vector<8x1xf32>
    %932 = arith.divf %930, %931 : vector<8x1xf32>
    %933 = vector.broadcast %925 : vector<8x1xf32> to vector<8x32xf32>
    %934 = arith.subf %919, %933 : vector<8x32xf32>
    %cst_285 = arith.constant 9.99999974E-6 : f32
    %935 = vector.broadcast %cst_285 : f32 to vector<8x1xf32>
    %936 = arith.addf %932, %935 : vector<8x1xf32>
    %937 = math.rsqrt %936 : vector<8x1xf32>
    %938 = vector.broadcast %937 : vector<8x1xf32> to vector<8x32xf32>
    %939 = arith.mulf %934, %938 : vector<8x32xf32>
    %940 = vector.broadcast %920 : vector<1x32xf32> to vector<8x32xf32>
    %941 = arith.mulf %939, %940 : vector<8x32xf32>
    %942 = vector.broadcast %921 : vector<1x32xf32> to vector<8x32xf32>
    %943 = arith.addf %941, %942 : vector<8x32xf32>
    %c1_286 = arith.constant 1 : index
    %c0_287 = arith.constant 0 : index
    %c0_288 = arith.constant 0 : index
    %944 = vector.load %arg20[%c1_286, %c0_287, %c0_288] : memref<2x32x64xf32, #tpu.memory_space<vmem>>, vector<1x32x64xf32>
    %945 = vector.shape_cast %944 : vector<1x32x64xf32> to vector<32x64xf32>
    %cst_289 = arith.constant dense<0.000000e+00> : vector<8x64xf32>
    %946 = tpu.matmul %943, %945, %cst_289 {dimension_numbers = #tpu.dot_dimension_numbers<[1], [0], [0], [1], [0, 0, 1, 1], [], []>} : vector<8x32xf32>, vector<32x64xf32>, vector<8x64xf32> -> vector<8x64xf32>
    %c1_290 = arith.constant 1 : index
    %c0_291 = arith.constant 0 : index
    %c0_292 = arith.constant 0 : index
    %947 = vector.load %arg22[%c1_290, %c0_291, %c0_292] : memref<2x1x64xf32, #tpu.memory_space<vmem>>, vector<1x1x64xf32>
    %948 = vector.shape_cast %947 : vector<1x1x64xf32> to vector<1x64xf32>
    %949 = vector.broadcast %948 : vector<1x64xf32> to vector<8x64xf32>
    %950 = arith.addf %946, %949 : vector<8x64xf32>
    %cst_293 = arith.constant 0.000000e+00 : f32
    %951 = vector.broadcast %cst_293 : f32 to vector<8x64xf32>
    %952 = arith.maximumf %950, %951 : vector<8x64xf32>
    %c1_294 = arith.constant 1 : index
    %c0_295 = arith.constant 0 : index
    %c0_296 = arith.constant 0 : index
    %953 = vector.load %arg21[%c1_294, %c0_295, %c0_296] : memref<2x64x32xf32, #tpu.memory_space<vmem>>, vector<1x64x32xf32>
    %954 = vector.shape_cast %953 : vector<1x64x32xf32> to vector<64x32xf32>
    %cst_297 = arith.constant dense<0.000000e+00> : vector<8x32xf32>
    %955 = tpu.matmul %952, %954, %cst_297 {dimension_numbers = #tpu.dot_dimension_numbers<[1], [0], [0], [1], [0, 0, 1, 1], [], []>} : vector<8x64xf32>, vector<64x32xf32>, vector<8x32xf32> -> vector<8x32xf32>
    %956 = vector.extract_strided_slice %689 {offsets = [12, 0], sizes = [1, 32], strides = [1, 1]} : vector<15x32xf32> to vector<1x32xf32>
    %957 = vector.broadcast %956 : vector<1x32xf32> to vector<8x32xf32>
    %958 = arith.addf %955, %957 : vector<8x32xf32>
    %959 = arith.addf %943, %958 : vector<8x32xf32>
    %960 = vector.extract_strided_slice %689 {offsets = [13, 0], sizes = [1, 32], strides = [1, 1]} : vector<15x32xf32> to vector<1x32xf32>
    %961 = vector.extract_strided_slice %689 {offsets = [14, 0], sizes = [1, 32], strides = [1, 1]} : vector<15x32xf32> to vector<1x32xf32>
    %cst_298 = arith.constant dense<0.000000e+00> : vector<8xf32>
    %962 = vector.multi_reduction <add>, %959, %cst_298 [1] : vector<8x32xf32> to vector<8xf32>
    %963 = vector.shape_cast %962 : vector<8xf32> to vector<8x1xf32>
    %cst_299 = arith.constant 3.200000e+01 : f32
    %964 = vector.broadcast %cst_299 : f32 to vector<8x1xf32>
    %965 = arith.divf %963, %964 : vector<8x1xf32>
    %966 = vector.broadcast %965 : vector<8x1xf32> to vector<8x32xf32>
    %967 = arith.subf %959, %966 : vector<8x32xf32>
    %968 = arith.mulf %967, %967 : vector<8x32xf32>
    %cst_300 = arith.constant dense<0.000000e+00> : vector<8xf32>
    %969 = vector.multi_reduction <add>, %968, %cst_300 [1] : vector<8x32xf32> to vector<8xf32>
    %970 = vector.shape_cast %969 : vector<8xf32> to vector<8x1xf32>
    %cst_301 = arith.constant 3.200000e+01 : f32
    %971 = vector.broadcast %cst_301 : f32 to vector<8x1xf32>
    %972 = arith.divf %970, %971 : vector<8x1xf32>
    %973 = vector.broadcast %965 : vector<8x1xf32> to vector<8x32xf32>
    %974 = arith.subf %959, %973 : vector<8x32xf32>
    %cst_302 = arith.constant 9.99999974E-6 : f32
    %975 = vector.broadcast %cst_302 : f32 to vector<8x1xf32>
    %976 = arith.addf %972, %975 : vector<8x1xf32>
    %977 = math.rsqrt %976 : vector<8x1xf32>
    %978 = vector.broadcast %977 : vector<8x1xf32> to vector<8x32xf32>
    %979 = arith.mulf %974, %978 : vector<8x32xf32>
    %980 = vector.broadcast %960 : vector<1x32xf32> to vector<8x32xf32>
    %981 = arith.mulf %979, %980 : vector<8x32xf32>
    %982 = vector.broadcast %961 : vector<1x32xf32> to vector<8x32xf32>
    %983 = arith.addf %981, %982 : vector<8x32xf32>
    %984 = vector.shape_cast %983 : vector<8x32xf32> to vector<2x4x32xf32>
    %985 = vector.shape_cast %984 : vector<2x4x32xf32> to vector<8x32xf32>
    %c0_303 = arith.constant 0 : index
    %c0_304 = arith.constant 0 : index
    %986 = vector.load %arg7[%c0_303, %c0_304] : memref<32x128xf32, #tpu.memory_space<vmem>>, vector<32x128xf32>
    %cst_305 = arith.constant dense<0.000000e+00> : vector<8x128xf32>
    %987 = tpu.matmul %985, %986, %cst_305 {dimension_numbers = #tpu.dot_dimension_numbers<[1], [0], [0], [1], [0, 0, 1, 1], [], []>} : vector<8x32xf32>, vector<32x128xf32>, vector<8x128xf32> -> vector<8x128xf32>
    %c0_306 = arith.constant 0 : index
    %c0_307 = arith.constant 0 : index
    %988 = vector.load %arg8[%c0_306, %c0_307] : memref<1x128xf32, #tpu.memory_space<vmem>>, vector<1x128xf32>
    %989 = vector.broadcast %988 : vector<1x128xf32> to vector<8x128xf32>
    %990 = arith.addf %987, %989 : vector<8x128xf32>
    %991 = vector.shape_cast %990 : vector<8x128xf32> to vector<2x4x128xf32>
    %c0_308 = arith.constant 0 : index
    %c0_309 = arith.constant 0 : index
    %c0_310 = arith.constant 0 : index
    %992 = vector.load %arg24[%c0_308, %c0_309, %c0_310] : memref<2x4x128xf32, #tpu.memory_space<vmem>>, vector<2x4x128xf32>
    tpu.vector_store %arg24[%c0_308, %c0_309, %c0_310], %991 {strides = array<i32>} : memref<2x4x128xf32, #tpu.memory_space<vmem>>, vector<2x4x128xf32>,
    return
  }
  func.func @transform_0(%arg0: i32) -> (i32, i32, i32) {
    %c0_i32 = arith.constant 0 : i32
    %c0_i32_0 = arith.constant 0 : i32
    %c0_i32_1 = arith.constant 0 : i32
    return %arg0, %c0_i32, %c0_i32_0 : i32, i32, i32
  }
  func.func @transform_1(%arg0: i32) -> (i32, i32, i32) {
    %c0_i32 = arith.constant 0 : i32
    %c0_i32_0 = arith.constant 0 : i32
    %c0_i32_1 = arith.constant 0 : i32
    return %arg0, %c0_i32, %c0_i32_0 : i32, i32, i32
  }
  func.func @transform_2(%arg0: i32) -> (i32, i32, i32) {
    %c0_i32 = arith.constant 0 : i32
    %c0_i32_0 = arith.constant 0 : i32
    %c0_i32_1 = arith.constant 0 : i32
    return %arg0, %c0_i32, %c0_i32_0 : i32, i32, i32
  }
  func.func @transform_3(%arg0: i32) -> (i32, i32) {
    %c0_i32 = arith.constant 0 : i32
    %c0_i32_0 = arith.constant 0 : i32
    %c0_i32_1 = arith.constant 0 : i32
    return %c0_i32, %c0_i32_0 : i32, i32
  }
  func.func @transform_4(%arg0: i32) -> (i32, i32) {
    %c0_i32 = arith.constant 0 : i32
    %c0_i32_0 = arith.constant 0 : i32
    %c0_i32_1 = arith.constant 0 : i32
    return %c0_i32, %c0_i32_0 : i32, i32
  }
  func.func @transform_5(%arg0: i32) -> (i32, i32) {
    %c0_i32 = arith.constant 0 : i32
    %c0_i32_0 = arith.constant 0 : i32
    %c0_i32_1 = arith.constant 0 : i32
    return %c0_i32, %c0_i32_0 : i32, i32
  }
  func.func @transform_6(%arg0: i32) -> (i32, i32) {
    %c0_i32 = arith.constant 0 : i32
    %c0_i32_0 = arith.constant 0 : i32
    %c0_i32_1 = arith.constant 0 : i32
    return %c0_i32, %c0_i32_0 : i32, i32
  }
  func.func @transform_7(%arg0: i32) -> (i32, i32) {
    %c0_i32 = arith.constant 0 : i32
    %c0_i32_0 = arith.constant 0 : i32
    %c0_i32_1 = arith.constant 0 : i32
    return %c0_i32, %c0_i32_0 : i32, i32
  }
  func.func @transform_8(%arg0: i32) -> (i32, i32, i32) {
    %c0_i32 = arith.constant 0 : i32
    %c0_i32_0 = arith.constant 0 : i32
    %c0_i32_1 = arith.constant 0 : i32
    %c0_i32_2 = arith.constant 0 : i32
    return %c0_i32, %c0_i32_0, %c0_i32_1 : i32, i32, i32
  }
  func.func @transform_9(%arg0: i32) -> (i32, i32, i32) {
    %c0_i32 = arith.constant 0 : i32
    %c0_i32_0 = arith.constant 0 : i32
    %c0_i32_1 = arith.constant 0 : i32
    %c0_i32_2 = arith.constant 0 : i32
    return %c0_i32, %c0_i32_0, %c0_i32_1 : i32, i32, i32
  }
  func.func @transform_10(%arg0: i32) -> (i32, i32, i32) {
    %c0_i32 = arith.constant 0 : i32
    %c0_i32_0 = arith.constant 0 : i32
    %c0_i32_1 = arith.constant 0 : i32
    %c0_i32_2 = arith.constant 0 : i32
    return %c0_i32, %c0_i32_0, %c0_i32_1 : i32, i32, i32
  }
  func.func @transform_11(%arg0: i32) -> (i32, i32, i32) {
    %c0_i32 = arith.constant 0 : i32
    %c0_i32_0 = arith.constant 0 : i32
    %c0_i32_1 = arith.constant 0 : i32
    %c0_i32_2 = arith.constant 0 : i32
    return %c0_i32, %c0_i32_0, %c0_i32_1 : i32, i32, i32
  }
  func.func @transform_12(%arg0: i32) -> (i32, i32, i32) {
    %c0_i32 = arith.constant 0 : i32
    %c0_i32_0 = arith.constant 0 : i32
    %c0_i32_1 = arith.constant 0 : i32
    %c0_i32_2 = arith.constant 0 : i32
    return %c0_i32, %c0_i32_0, %c0_i32_1 : i32, i32, i32
  }
  func.func @transform_13(%arg0: i32) -> (i32, i32, i32) {
    %c0_i32 = arith.constant 0 : i32
    %c0_i32_0 = arith.constant 0 : i32
    %c0_i32_1 = arith.constant 0 : i32
    %c0_i32_2 = arith.constant 0 : i32
    return %c0_i32, %c0_i32_0, %c0_i32_1 : i32, i32, i32
  }
  func.func @transform_14(%arg0: i32) -> (i32, i32, i32) {
    %c0_i32 = arith.constant 0 : i32
    %c0_i32_0 = arith.constant 0 : i32
    %c0_i32_1 = arith.constant 0 : i32
    %c0_i32_2 = arith.constant 0 : i32
    return %c0_i32, %c0_i32_0, %c0_i32_1 : i32, i32, i32
  }
  func.func @transform_15(%arg0: i32) -> (i32, i32, i32) {
    %c0_i32 = arith.constant 0 : i32
    %c0_i32_0 = arith.constant 0 : i32
    %c0_i32_1 = arith.constant 0 : i32
    %c0_i32_2 = arith.constant 0 : i32
    return %c0_i32, %c0_i32_0, %c0_i32_1 : i32, i32, i32
  }
  func.func @transform_16(%arg0: i32) -> (i32, i32, i32) {
    %c0_i32 = arith.constant 0 : i32
    %c0_i32_0 = arith.constant 0 : i32
    %c0_i32_1 = arith.constant 0 : i32
    %c0_i32_2 = arith.constant 0 : i32
    return %c0_i32, %c0_i32_0, %c0_i32_1 : i32, i32, i32
  }
  func.func @transform_17(%arg0: i32) -> (i32, i32, i32) {
    %c0_i32 = arith.constant 0 : i32
    %c0_i32_0 = arith.constant 0 : i32
    %c0_i32_1 = arith.constant 0 : i32
    %c0_i32_2 = arith.constant 0 : i32
    return %c0_i32, %c0_i32_0, %c0_i32_1 : i32, i32, i32
  }
  func.func @transform_18(%arg0: i32) -> (i32, i32, i32) {
    %c0_i32 = arith.constant 0 : i32
    %c0_i32_0 = arith.constant 0 : i32
    %c0_i32_1 = arith.constant 0 : i32
    %c0_i32_2 = arith.constant 0 : i32
    return %c0_i32, %c0_i32_0, %c0_i32_1 : i32, i32, i32
  }
  func.func @transform_19(%arg0: i32) -> (i32, i32, i32) {
    %c0_i32 = arith.constant 0 : i32
    %c0_i32_0 = arith.constant 0 : i32
    %c0_i32_1 = arith.constant 0 : i32
    %c0_i32_2 = arith.constant 0 : i32
    return %c0_i32, %c0_i32_0, %c0_i32_1 : i32, i32, i32
  }
  func.func @transform_20(%arg0: i32) -> (i32, i32, i32) {
    %c0_i32 = arith.constant 0 : i32
    %c0_i32_0 = arith.constant 0 : i32
    %c0_i32_1 = arith.constant 0 : i32
    %c0_i32_2 = arith.constant 0 : i32
    return %c0_i32, %c0_i32_0, %c0_i32_1 : i32, i32, i32
  }
  func.func @transform_21(%arg0: i32) -> (i32, i32, i32) {
    %c0_i32 = arith.constant 0 : i32
    %c0_i32_0 = arith.constant 0 : i32
    %c0_i32_1 = arith.constant 0 : i32
    %c0_i32_2 = arith.constant 0 : i32
    return %c0_i32, %c0_i32_0, %c0_i32_1 : i32, i32, i32
  }
  func.func @transform_22(%arg0: i32) -> (i32, i32, i32) {
    %c0_i32 = arith.constant 0 : i32
    %c0_i32_0 = arith.constant 0 : i32
    %c0_i32_1 = arith.constant 0 : i32
    %c0_i32_2 = arith.constant 0 : i32
    return %c0_i32, %c0_i32_0, %c0_i32_1 : i32, i32, i32
  }
  func.func @transform_23(%arg0: i32) -> (i32, i32, i32) {
    %c0_i32 = arith.constant 0 : i32
    %c0_i32_0 = arith.constant 0 : i32
    %c0_i32_1 = arith.constant 0 : i32
    return %arg0, %c0_i32, %c0_i32_0 : i32, i32, i32
  }
}

</mosaic_0001>

<bundles_post_ra>
// kernel: transformer_forward.1
= control target key start
LH: loop header
LB: loop body
LE: loop exit
PB: predicated region body
PF: predicated region fallthrough
CT: control target
= control target key end

     0   :  { %s16414_s0 = inlined_call_operand.vmem [shape: f32[4,8,4], index: 0, kind: input, shape index: {}]   ;;  %s16415_s1 = inlined_call_operand.vmem [shape: f32[4,4,2], index: 1, kind: input, shape index: {}]   ;;  %s16416_s2 = inlined_call_operand.hbm [shape: f32[4,1,32], index: 2, kind: input, shape index: {}]   ;;  %s16417_s3 = inlined_call_operand.vmem [shape: f32[10,32], index: 3, kind: input, shape index: {}]   ;;  %s16418_s4 = inlined_call_operand.hbm [shape: f32[4,32], index: 4, kind: input, shape index: {}]   ;;  %s16419_s5 = inlined_call_operand.hbm [shape: f32[2,32], index: 5, kind: input, shape index: {}]   ;;  %s16420_s6 = inlined_call_operand.vmem [shape: f32[32,128], index: 6, kind: input, shape index: {}]   ;;  %s16421_s7 = inlined_call_operand.vmem [shape: f32[1,128], index: 7, kind: input, shape index: {}]   ;;  %s16422_s8 = inlined_call_operand.vmem [shape: f32[2,32,96], index: 8, kind: input, shape index: {}]   ;;  %s16423_s9 = inlined_call_operand.vmem [shape: f32[2,32,32], index: 9, kind: input, shape index: {}]   ;;  %s16424_s10 = inlined_call_operand.vmem [shape: f32[2,32,64], index: 10, kind: input, shape index: {}]   ;;  %s16425_s11 = inlined_call_operand.vmem [shape: f32[2,64,32], index: 11, kind: input, shape index: {}]   ;;  %s16426_s12 = inlined_call_operand.hbm [shape: f32[2,1,64], index: 12, kind: input, shape index: {}]   ;;  %s16427_s13 = inlined_call_operand.vmem [shape: f32[2,9,32], index: 13, kind: input, shape index: {}]   ;;  %s16428_s14 = inlined_call_operand.vmem [shape: f32[2,32,96], index: 14, kind: input, shape index: {}]   ;;  %s16429_s15 = inlined_call_operand.vmem [shape: f32[2,32,32], index: 15, kind: input, shape index: {}]   ;;  %s16430_s16 = inlined_call_operand.vmem [shape: f32[2,32,32], index: 16, kind: input, shape index: {}]   ;;  %s16431_s17 = inlined_call_operand.vmem [shape: f32[2,32,64], index: 17, kind: input, shape index: {}]   ;;  %s16432_s18 = inlined_call_operand.hbm [shape: f32[2,32,32], index: 18, kind: input, shape index: {}]   ;;  %s16433_s19 = inlined_call_operand.hbm [shape: f32[2,32,64], index: 19, kind: input, shape index: {}]   ;;  %s16434_s20 = inlined_call_operand.vmem [shape: f32[2,64,32], index: 20, kind: input, shape index: {}]   ;;  %s16435_s21 = inlined_call_operand.hbm [shape: f32[2,1,64], index: 21, kind: input, shape index: {}]   ;;  %s16436_s22 = inlined_call_operand.vmem [shape: f32[2,15,32], index: 22, kind: input, shape index: {}]   ;;  %s16437_s23 = inlined_call_operand.vmem [shape: f32[4,4,128], index: 23, kind: output, shape index: {}]  }
   0x1   :  { %16468 = sst [smem:[#allocation17_spill]] %s16414_s0 }
   0x2   :  { %16469 = sst [smem:[#allocation18_spill]] %s16415_s1 }
   0x3   :  { %16470 = sst [smem:[#allocation19_spill]] %s16416_s2 }
   0x4   :  { %16471 = sst [smem:[#allocation20_spill]] %s16417_s3 }
   0x5   :  { %16472 = sst [smem:[#allocation21_spill]] %s16418_s4 }
   0x6   :  { %16473 = sst [smem:[#allocation22_spill]] %s16419_s5 }
   0x7   :  { %16474 = sst [smem:[#allocation23_spill]] %s16420_s6 }
   0x8   :  { %16475 = sst [smem:[#allocation24_spill]] %s16421_s7 }
   0x9   :  { %16476 = sst [smem:[#allocation25_spill]] %s16422_s8 }
   0xa   :  { %16477 = sst [smem:[#allocation26_spill]] %s16424_s10 }
   0xb   :  { %16478 = sst [smem:[#allocation27_spill]] %s16425_s11 }
   0xc   :  { %16479 = sst [smem:[#allocation28_spill]] %s16426_s12 }
   0xd   :  { %16480 = sst [smem:[#allocation29_spill]] %s16428_s14 }
   0xe   :  { %16481 = sst [smem:[#allocation30_spill]] %s16429_s15 }
   0xf   :  { %16482 = sst [smem:[#allocation31_spill]] %s16430_s16 }
  0x10   :  { %16483 = sst [smem:[#allocation32_spill]] %s16431_s17 }
  0x11   :  { %16484 = sst [smem:[#allocation33_spill]] %s16434_s20 }
  0x12   :  { %16485 = sst [smem:[#allocation34_spill]] %s16436_s22 }
  0x13   :  { %16486 = sst [smem:[#allocation35_spill]] %s16437_s23 }
  0x14   :  { %28 = vsyncpa [#allocation3], 0 }
  0x15   :  { %30 = vsyncpa [#allocation3 + $0x1], 0 }
  0x16   :  { %31 = vsyncpa [#allocation5], 0 }
  0x17   :  { %32 = vsyncpa [#allocation8], 0 }
  0x18   :  { %33 = vsyncpa [#allocation11], 0  ;;  %s14412_s4 = smov 0   ;;  %s14414_s30 = smov 0  }
  0x19   :  { %s14416_s24 = smov 0   ;;  %s14418_s25 = smov 0  }
  0x1a LB: > { %s14273_s5 = smov [#allocation4]   ;;  %s16443_s26 = sadd.s32 4294967295, %s14271_s25   ;;  %s14271_s25 = sphi %s14418_s25, %s16532_s25   ;;  %s14267_s24 = sphi %s14416_s24, %s16531_s24   ;;  %s14263_s30 = sphi %s14414_s30, %s16530_s30   ;;  %s14259_s4 = sphi %s14412_s4, %s16529_s4  }
  0x1b   : > { %s584_s1 = sshll.u32 %s14273_s5, 4  ;;  %p12034_p0 = scmp.ge.s32.totalorder %s14271_s25, 1  ;;  %s585_s1 = int_to_ptr.vmem [resolvable:$true] %s584_s1 }
  0x1c   : > { %p14436_p1 = scmp.eq.s32.totalorder %s16443_s26, 0  ;;  %p568_p2 = scmp.lt.s32.totalorder %s14271_s25, 3 }
  0x1d   : > { %s14274_s27 = smov [#allocation7]   ;;  %s14275_s29 = smov [#allocation10]  }
  0x1e   : > { %s16487_s2 = scalar_select %p14436_p1, 1, 0 }
  0x1f   : > { %p14441_p3 = pnand %p12034_p0, %p568_p2  ;;  %s623_s7 = sshll.u32 %s14274_s27, 4  ;;  %s14447_s7 = int_to_ptr.vmem [resolvable:$true] %s623_s7 }
  0x20   : > { %s14455_s3 = sshll.u32 %s14275_s29, 4  ;;  %s16490_s26 = sld [smem:[#allocation21_spill]]  ;;  %s665_s3 = int_to_ptr.vmem [resolvable:$true] %s14455_s3 }
  0x21   : > { %s16488_s6 = scalar_select %p14441_p3, 1, 0 }
  0x22   : > { %p13718_p4 = pneg %p14441_p3 }
  0x24   : > { %p14451_p5 = pnand %p13718_p4, %p14436_p1 }
  0x26   : > { %s14027_s23 = scalar_lea.hbm %s16490_s26, 64  ;;  %p14465_p7 = pneg %p14451_p5 }
  0x27   : > { %p14028_p6 = scmp.ne.s32.totalorder %s16490_s26, %s14027_s23  ;;  %p14034_p10 = scmp.lt.u32.totalorder %s14027_s23, %s16490_s26 }
  0x29   : > { %p14030_p8 = pnand %p14465_p7, %p14028_p6 }
  0x2b   : > { %p14031_p9 = pneg %p14030_p8 }
  0x2d   : > { %p14036_p11 = pnand %p14034_p10, %p14031_p9 }
  0x2f   : > { %14039 = shalt.err (!%p14036_p11)
}
  0x30   : > { %s14040_s0 = scalar_lea.vmem %s585_s1, 64  ;;  %p14048_p2 = scmp.lt.s32.totalorder %s585_s1, %s585_s1 }
  0x31   : > { %p14041_p12 = scmp.ne.s32.totalorder %s585_s1, %s14040_s0  ;;  %p14049_p4 = scmp.lt.s32.totalorder %s14040_s0, %s14040_s0 }
  0x33   : > { %p14043_p13 = pnand %p14041_p12, %p14465_p7  ;;  %p14050_p3 = por %p14049_p4, %p14048_p2 }
  0x35   : > { %p14044_p0 = pneg %p14043_p13 }
  0x37   : > { %p14051_p1 = pnand %p14050_p3, %p14044_p0 }
  0x39   : > { %14054 = shalt.err (!%p14051_p1)
}
  0x3a   : > { %13721 = dma.hbm_to_vmem [thread:$0]  (!%p14451_p5), %s16490_s26, 64, %s585_s1, [#allocation5]  }
  0x3b   : > { %s16492_s12 = sld [smem:[#allocation28_spill]] }
  0x41   : > { %s14055_s5 = scalar_lea.hbm %s16492_s12, 32 }
  0x42   : > { %p14056_p6 = scmp.ne.s32.totalorder %s16492_s12, %s14055_s5  ;;  %p14062_p1 = scmp.lt.u32.totalorder %s14055_s5, %s16492_s12 }
  0x44   : > { %p14058_p8 = pnand %p14056_p6, %p14465_p7 }
  0x46   : > { %p14059_p9 = pneg %p14058_p8 }
  0x48   : > { %p14064_p3 = pnand %p14062_p1, %p14059_p9 }
  0x4a   : > { %14067 = shalt.err (!%p14064_p3)
}
  0x4b   : > { %s14068_s1 = scalar_lea.vmem %s14447_s7, 32  ;;  %p14076_p13 = scmp.lt.s32.totalorder %s14447_s7, %s14447_s7 }
  0x4c   : > { %p14069_p10 = scmp.ne.s32.totalorder %s14447_s7, %s14068_s1  ;;  %p14077_p0 = scmp.lt.s32.totalorder %s14068_s1, %s14068_s1 }
  0x4e   : > { %p14071_p11 = pnand %p14069_p10, %p14465_p7  ;;  %p14078_p2 = por %p14077_p0, %p14076_p13 }
  0x50   : > { %p14072_p12 = pneg %p14071_p11 }
  0x52   : > { %p14079_p4 = pnand %p14078_p2, %p14072_p12 }
  0x54   : > { %14082 = shalt.err (!%p14079_p4)
}
  0x55   : > { %s16453_s15 = smov 16   ;;  %s16455_s22 = smov 1  }
  0x56   : > { %13727 = dma.hbm_to_vmem [thread:$0]  (!%p14451_p5), %s16492_s12, 32, %s14447_s7, [#allocation8], %s16453_s15, %s16453_s15, %s16455_s22  }
  0x57   : > { %s14083_s5 = scalar_lea.hbm %s16433_s19, 1024 }
  0x58   : > { %p14084_p6 = scmp.ne.s32.totalorder %s16433_s19, %s14083_s5  ;;  %p14090_p1 = scmp.lt.u32.totalorder %s14083_s5, %s16433_s19 }
  0x5a   : > { %p14086_p8 = pnand %p14084_p6, %p14465_p7 }
  0x5c   : > { %p14087_p9 = pneg %p14086_p8 }
  0x5e   : > { %p14092_p3 = pnand %p14090_p1, %p14087_p9 }
  0x60   : > { %14095 = shalt.err (!%p14092_p3)
}
  0x61   : > { %s14096_s16 = scalar_lea.vmem %s665_s3, 1024  ;;  %p14104_p13 = scmp.lt.s32.totalorder %s665_s3, %s665_s3 }
  0x62   : > { %p14097_p10 = scmp.ne.s32.totalorder %s665_s3, %s14096_s16  ;;  %p14105_p0 = scmp.lt.s32.totalorder %s14096_s16, %s14096_s16 }
  0x64   : > { %p14099_p11 = pnand %p14097_p10, %p14465_p7  ;;  %p14106_p2 = por %p14105_p0, %p14104_p13 }
  0x66   : > { %p14100_p12 = pneg %p14099_p11 }
  0x68   : > { %p14107_p4 = pnand %p14106_p2, %p14100_p12 }
  0x6a   : > { %14110 = shalt.err (!%p14107_p4)
}
  0x6b   : > { %s14278_s7 = smov 128   ;;  %s14279_s20 = smov 8  }
  0x6c   : > { %13733 = dma.hbm_to_vmem [thread:$0]  (!%p14451_p5), %s16433_s19, 1024, %s665_s3, [#allocation11], %s14278_s7, %s14278_s7, %s14279_s20  }
  0x6d   : > { %s14280_s23 = smov [#allocation6]   ;;  %s14281_s29 = smov [#allocation9]  }
  0x6e   : > { %s595_s5 = sshll.u32 %s14280_s23, 4  ;;  %s651_s0 = sshll.u32 %s14281_s29, 4  ;;  %s596_s5 = int_to_ptr.vmem [resolvable:$true] %s595_s5  ;;  %s652_s0 = int_to_ptr.vmem [resolvable:$true] %s651_s0 }
  0x6f   : > { %s16493_s15 = sld [smem:[#allocation22_spill]] }
  0x75   : > { %s14111_s22 = scalar_lea.hbm %s16493_s15, 32 }
  0x76   : > { %p14112_p6 = scmp.ne.s32.totalorder %s16493_s15, %s14111_s22  ;;  %p14118_p1 = scmp.lt.u32.totalorder %s14111_s22, %s16493_s15 }
  0x78   : > { %p14114_p8 = pnand %p14112_p6, %p14465_p7 }
  0x7a   : > { %p14115_p9 = pneg %p14114_p8 }
  0x7c   : > { %p14120_p3 = pnand %p14118_p1, %p14115_p9 }
  0x7e   : > { %14123 = shalt.err (!%p14120_p3)
}
  0x7f   : > { %s14124_s3 = scalar_lea.vmem %s596_s5, 32  ;;  %p14132_p13 = scmp.lt.s32.totalorder %s596_s5, %s596_s5 }
  0x80   : > { %p14125_p10 = scmp.ne.s32.totalorder %s596_s5, %s14124_s3  ;;  %p14133_p0 = scmp.lt.s32.totalorder %s14124_s3, %s14124_s3 }
  0x82   : > { %p14127_p11 = pnand %p14125_p10, %p14465_p7  ;;  %p14134_p2 = por %p14133_p0, %p14132_p13 }
  0x84   : > { %p14128_p12 = pneg %p14127_p11 }
  0x86   : > { %p14135_p4 = pnand %p14134_p2, %p14128_p12 }
  0x88   : > { %14138 = shalt.err (!%p14135_p4)
}
  0x89   : > { %13724 = dma.hbm_to_vmem [thread:$0]  (!%p14451_p5), %s16493_s15, 32, %s596_s5, [#allocation5]  }
  0x8a   : > { %s14139_s22 = scalar_lea.hbm %s16432_s18, 1024 }
  0x8b   : > { %p14140_p6 = scmp.ne.s32.totalorder %s16432_s18, %s14139_s22  ;;  %p14146_p1 = scmp.lt.u32.totalorder %s14139_s22, %s16432_s18 }
  0x8d   : > { %p14142_p8 = pnand %p14140_p6, %p14465_p7 }
  0x8f   : > { %p14143_p9 = pneg %p14142_p8 }
  0x91   : > { %p14148_p3 = pnand %p14146_p1, %p14143_p9 }
  0x93   : > { %14151 = shalt.err (!%p14148_p3)
}
  0x94   : > { %s14152_s1 = scalar_lea.vmem %s652_s0, 1024  ;;  %p14160_p13 = scmp.lt.s32.totalorder %s652_s0, %s652_s0 }
  0x95   : > { %p14153_p10 = scmp.ne.s32.totalorder %s652_s0, %s14152_s1  ;;  %p14161_p0 = scmp.lt.s32.totalorder %s14152_s1, %s14152_s1 }
  0x97   : > { %p14155_p11 = pnand %p14153_p10, %p14465_p7  ;;  %p14162_p2 = por %p14161_p0, %p14160_p13 }
  0x99   : > { %p14156_p12 = pneg %p14155_p11 }
  0x9b   : > { %p14163_p4 = pnand %p14162_p2, %p14156_p12 }
  0x9d   : > { %14166 = shalt.err (!%p14163_p4)
}
  0x9e   : > { %13730 = dma.hbm_to_vmem [thread:$0]  (!%p14451_p5), %s16432_s18, 1024, %s652_s0, [#allocation8], %s14278_s7, %s14278_s7, %s14279_s20  }
  0x9f   : > { %s14282_s3 = smov [#allocation12]   ;;  %s14167_s11 = scalar_lea.hbm %s16435_s21, 32 }
  0xa0   : > { %s680_s12 = sshll.u32 %s14282_s3, 4  ;;  %p14168_p6 = scmp.ne.s32.totalorder %s16435_s21, %s14167_s11  ;;  %s681_s12 = int_to_ptr.vmem [resolvable:$true] %s680_s12 }
  0xa1   : > { %p14174_p1 = scmp.lt.u32.totalorder %s14167_s11, %s16435_s21 }
  0xa2   : > { %p14170_p8 = pnand %p14168_p6, %p14465_p7 }
  0xa4   : > { %p14171_p9 = pneg %p14170_p8 }
  0xa6   : > { %p14176_p3 = pnand %p14174_p1, %p14171_p9 }
  0xa8   : > { %14179 = shalt.err (!%p14176_p3)
}
  0xa9   : > { %s14180_s7 = scalar_lea.vmem %s681_s12, 32  ;;  %p14188_p13 = scmp.lt.s32.totalorder %s681_s12, %s681_s12 }
  0xaa   : > { %p14181_p10 = scmp.ne.s32.totalorder %s681_s12, %s14180_s7  ;;  %p14189_p0 = scmp.lt.s32.totalorder %s14180_s7, %s14180_s7 }
  0xac   : > { %p14183_p11 = pnand %p14181_p10, %p14465_p7  ;;  %p14190_p2 = por %p14189_p0, %p14188_p13 }
  0xae   : > { %p14184_p12 = pneg %p14183_p11 }
  0xb0   : > { %p14191_p4 = pnand %p14190_p2, %p14184_p12 }
  0xb2   : > { %14194 = shalt.err (!%p14191_p4)
}
  0xb3   : > { %s16494_s20 = smov 1   ;;  %s16495_s0 = smov 16  }
  0xb4   : > { %13736 = dma.hbm_to_vmem [thread:$0]  (!%p14451_p5), %s16435_s21, 32, %s681_s12, [#allocation11], %s16495_s0, %s16495_s0, %s16494_s20  }
  0xb5   : > { %s14590_s28 = sadd.s32 1, %s14271_s25   ;;  %s98_s27 = sadd.s32 1, %s14267_s24 }
  0xb6   : > { %s95_s5 = ssub.s32 %s14271_s25, %s14590_s28  ;;  %p105_p7 = scmp.ne.s32.totalorder %s14267_s24, %s14263_s30 }
  0xb7   : > { %p96_p6 = scmp.eq.s32.totalorder %s95_s5, 0  ;;  %p106_p8 = scmp.eq.s32.totalorder %s14271_s25, 0 }
  0xb8   : > { %p111_p9 = scmp.ne.s32.totalorder %s14263_s30, %s14259_s4  ;;  %p13747_p1 = scmp.lt.s32.totalorder %s14271_s25, 2 }
  0xb9   : > { %s14602_s16 = scalar_select %p96_p6, %s14267_s24, %s98_s27  }
  0xba   : > { %p107_p3 = por %p106_p8, %p105_p7  ;;  %p16496_p10 = scmp.ne.s32.totalorder %s16487_s2, 0 }
  0xbb   : > { %s715_s14 = sand.u32 1, %s14267_s24   ;;  %s12320_s12 = sshll.u32 %s14271_s25, 5 }
  0xbc   : > { %p14606_p11 = por %p16496_p10, %p111_p9  ;;  %s12042_s10 = sshll.u32 %s715_s14, 1 }
  0xbd   : > { %s16498_s26 = sld [smem:[#allocation19_spill]]  ;;  %s719_s4 = scalar_lea.vmem [#allocation2], %s12042_s10 }
  0xbe   : > { %s726_s23 = sshll.u32 %s719_s4, 4  ;;  %p14617_p5 = pnand %p13747_p1, %p107_p3  ;;  %s14621_s23 = int_to_ptr.vmem [resolvable:$true] %s726_s23 }
  0xbf   : > { %s14623_s29 = scalar_lea.sflag [#allocation3], %s715_s14 }
  0xc0   : > { %p14197_p13 = pneg %p14617_p5 }
  0xc3   : > { %s14615_s17 = scalar_lea.hbm %s16498_s26, %s12320_s12  ;;  %s14200_s12 = scalar_lea.hbm %s16498_s26, 64 }
  0xc4   : > { %s14195_s1 = scalar_lea.hbm %s14615_s17, 32  ;;  %p14201_p4 = scmp.lt.u32.totalorder %s14615_s17, %s16498_s26 }
  0xc5   : > { %p14196_p12 = scmp.ne.s32.totalorder %s14615_s17, %s14195_s1  ;;  %p14202_p7 = scmp.lt.u32.totalorder %s14200_s12, %s14195_s1 }
  0xc6   : > { %p14204_p8 = scmp.lt.u32.totalorder %s14195_s1, %s14615_s17 }
  0xc7   : > { %p14198_p0 = pnand %p14197_p13, %p14196_p12  ;;  %p14203_p6 = por %p14202_p7, %p14201_p4 }
  0xc9   : > { %p14199_p2 = pneg %p14198_p0  ;;  %p14205_p9 = por %p14204_p8, %p14203_p6 }
  0xcb   : > { %p14206_p1 = pnand %p14205_p9, %p14199_p2 }
  0xcd   : > { %14209 = shalt.err (!%p14206_p1)
}
  0xce   : > { %s14210_s14 = scalar_lea.vmem %s14621_s23, 32  ;;  %s14283_s22 = smov [#allocation2]  }
  0xcf   : > { %p14211_p3 = scmp.ne.s32.totalorder %s14621_s23, %s14210_s14  ;;  %s14215_s4 = sshll.u32 %s14283_s22, 4  ;;  %s14216_s4 = int_to_ptr.vmem [resolvable:$false] %s14215_s4 }
  0xd0   : > { %s14217_s27 = scalar_lea.vmem %s14216_s4, 64  ;;  %p14218_p0 = scmp.lt.s32.totalorder %s14621_s23, %s14216_s4 }
  0xd1   : > { %p14213_p10 = pnand %p14211_p3, %p14197_p13  ;;  %p14219_p4 = scmp.lt.s32.totalorder %s14217_s27, %s14210_s14 }
  0xd3   : > { %p14214_p12 = pneg %p14213_p10  ;;  %p14220_p7 = por %p14219_p4, %p14218_p0 }
  0xd5   : > { %p14221_p6 = pnand %p14220_p7, %p14214_p12 }
  0xd7   : > { %14224 = shalt.err (!%p14221_p6)
}
  0xd8   : > { %13740 = dma.hbm_to_vmem [thread:$0]  (!%p14617_p5), %s14615_s17, 32, %s14621_s23, %s14623_s29, %s16495_s0, %s16495_s0, %s16494_s20  }
  0xd9   : > { %p16500_p13 = scmp.ne.s32.totalorder %s16488_s6, 0 }
  0xda   : > { %s740_s1 = sand.u32 (!%p16500_p13), 1, %s14263_s30  }
  0xdb   : > { %738 = sbr.rel (%p16500_p13) target bundleno = 19199 (0x4aff), region = 112  ;;  %s14657_s5 = sshll.u32 (!%p16500_p13), %s740_s1, 1 }
  0xdc   : > { %s741_s12 = scalar_lea.sflag (!%p16500_p13), [#allocation3], %s740_s1 }
  0xe2   : > { %14242 = dma.done.wait (%p14606_p11), %s741_s12, 32  }
  0xe3   : > { %14244 = vsyncadd (%p14606_p11), %s741_s12, 4294967264  ;;  %p16501_p2 = scmp.ne.s32.totalorder %s16487_s2, 0 }
  0xe5   : > { %14246 = dma.done.wait (%p16501_p2), [#allocation5], 96  }
  0xe6   : > { %14248 = vsyncadd (%p16501_p2), [#allocation5], 4294967200 }
  0xe7   : > { %14250 = dma.done.wait (%p16501_p2), [#allocation8], 1056  }
  0xe8   : > { %14252 = vsyncadd (%p16501_p2), [#allocation8], 4294966240 }
  0xe9   : > { %14254 = dma.done.wait (%p16501_p2), [#allocation11], 1056  }
  0xea   : > { %14256 = vsyncadd (%p16501_p2), [#allocation11], 4294966240  ;;  %s16502_s6 = sadd.s32 4294967295, %s14271_s25   ;;  %vm898_vm0 = vcmask 1043456   ;;  %vm891_vm1 = vcmask 31744   ;;  %s16503_s7 = sld [smem:[#allocation17_spill]]  ;;  %v860_v8 = vlaneseq }
  0xeb   : > { %s12053_s20 = sshll.u32 %s16502_s6, 1  ;;  %v886_v0 = vld [vmem:[#allocation4] sm:$0xf]  ;;  %s16504_s25 = sld [smem:[#allocation18_spill]]  ;;  %v14284_v13 = vmov 0.0   ;;  %vm979_vm2 = vcmask 1045504  }
  0xec   : > { %p842_p11 = scmp.lt.s32.totalorder %s12053_s20, 3  ;;  %12659 = vmatprep.subr.msk.mxu1 %vm898_vm0, %v886_v0  ;;  %s16505_s8 = sld [smem:[#allocation25_spill]]  ;;  %v14708_v10 = vshrl.u32 %v860_v8, 7  ;;  %v14713_v11 = vld [vmem:[%s16427_s13] sm:$0xff]  ;;  %12675 = vmatprep.subr.mxu0 %v14284_v13  ;;  %vm992_vm3 = vcmask 261120   ;;  %vm14286_vm4 = vmmov 0  }
  0xed   : > { %12660 = vmatpush3.msk.msra.mxu1 %vm898_vm0, %v886_v0  ;;  %12677 = vmatprep.mubr.msk.f32.mxu0 %vm14286_vm4, %v14284_v13  ;;  %s16463_s1 = smov 96   ;;  %v14753_v33 = vand.u32 127, %v860_v8  ;;  %vm1260_vm9 = vcmask 64512   ;;  %s16461_s12 = smov 64  }
  0xee   : > { %s16534_s20 = smov (!%p842_p11, %s12053_s20), 3  ;;  %v14716_v12 = vsub.s32 1, %v14708_v10  ;;  %v14724_v15 = vsub.s32 0, %v14708_v10  ;;  %v14817_v61 = vsub.s32 2, %v14708_v10  ;;  %s16508_s6 = sld [smem:[#allocation26_spill]] }
  0xef   : > { %s12054_s0 = sshll.u32 %s16534_s20, 3  ;;  %s16460_s3 = sshll.u32 %s16534_s20, 2  ;;  %vm867_vm5 = vcmp.ge.s32.totalorder %v14753_v33, 8  ;;  %vm868_vm6 = vcmp.lt.s32.totalorder %v14753_v33, 16  ;;  %vm863_vm7 = vcmp.lt.s32.totalorder %v14753_v33, 8  ;;  %vm872_vm10 = vcmp.ge.s32.totalorder %v14753_v33, 16 }
  0xf0   : > { %s845_s29 = scalar_lea.vmem %s16503_s7, %s12054_s0  ;;  %v1083_v14 = vrot.slane %v14713_v11, %v14716_v12  ;;  %v1077_v34 = vrot.slane %v14713_v11, %v14724_v15  ;;  %vm869_vm8 = vmand %vm867_vm5, %vm868_vm6  ;;  %v14764_v36 = vsel %vm863_vm7, 1.0, %v14284_v13  ;;  %v1093_v62 = vrot.slane %v14713_v11, %v14817_v61  ;;  %s16509_s27 = sld [smem:[#allocation27_spill]] }
  0xf1   : > { %s14690_s14 = scalar_lea.vmem %s16504_s25, %s16460_s3  ;;  %v884_v1 = vld [vmem:[%s845_s29] sm:$0xff]  ;;  %v885_v2 = vld [vmem:[%s845_s29 + $0x8] sm:$0xff]  ;;  %s16465_s29 = smov 32   ;;  %v14767_v37 = vsel %vm869_vm8, 1.0, %v14284_v13  ;;  %vm873_vm11 = vcmp.lt.s32.totalorder %v14753_v33, 24  ;;  %vm877_vm13 = vcmp.ge.s32.totalorder %v14753_v33, 24 }
  0xf2   : > { %12661 = vmatprep.mubr.msk.f32.mxu1 %vm891_vm1, %v884_v1  ;;  %v988_v3 = vld [vmem:[%s16505_s8] sm:$0xff]  ;;  %v989_v4 = vld [vmem:[%s16505_s8 + $0x8] sm:$0xff]  ;;  %v990_v6 = vld [vmem:[%s16505_s8 + $0x10] sm:$0xff]  ;;  %1085 = vrot.lane.b32.xlu0 %v1083_v14, %s16465_s29  ;;  %s16506_s25 = sld [smem:[#allocation20_spill]]  ;;  %vm878_vm14 = vcmp.lt.s32.totalorder %v14753_v33, 32  ;;  %vm4615_vm5 = vcmask 1041408  }
  0xf3   : > { %12662 = vmatmul.mubr.msk.f32.vlgmr.msra.gmra.mrb[0].mxu1 %vm891_vm1, %v885_v2  ;;  %v13434_v5 = vpack.c.bf16 %v989_v4, %v988_v3  ;;  %v991_v7 = vld [vmem:[%s16505_s8 + $0x18] sm:$0xff]  ;;  %vm874_vm12 = vmand %vm872_vm10, %vm873_vm11  ;;  %vm4612_vm6 = vcmask 15360   ;;  %s16510_s4 = sld [smem:[#allocation29_spill]]  ;;  %s16514_s17 = scalar_lea.vmem [#allocation2], %s14657_s5  ;;  %vm4978_vm7 = vcmask 27648   ;;  %vm6660_vm8 = vcmask 60416  }
  0xf4   : > { %v13438_v9 = vpack.c.bf16 %v991_v7, %v990_v6  ;;  %vm879_vm15 = vmand %vm877_vm13, %vm878_vm14  ;;  %s16515_s23 = smov %s16514_s17  ;;  %s16516_s2 = sld [smem:[#allocation30_spill]] }
  0xf5   : > { %13435 = vmatprep.subr.bf16.mxu1 %v13434_v5  ;;  %s16520_s5 = smov 32   ;;  %s16521_s7 = smov 96  }
  0xf6   : > { %13437 = vmatpush3.bf16.msra.mxu1 %v13434_v5  ;;  %s16524_s11 = smov 64  }
  0xf7   : > { %13439 = vmatprep.subr.bf16.mxu1 %v13438_v9 }
  0xf8   : > { %s16507_s22 = smov %s16506_s25  ;;  %v882_v16 = vld [vmem:[%s16506_s25] sm:$0xff]  ;;  %s16512_s25 = sld [smem:[#allocation34_spill]] }
  0xf9   : > { %v883_v17 = vld [vmem:[%s16507_s22 + $0x8] sm:$0x3]  ;;  %v890_v18 = vrot.slane %v882_v16, %v14724_v15  ;;  %v980_v19 = vrot.slane %v882_v16, 2  ;;  %s16511_s10 = smov %s16510_s4 }
  0xfa   : > { %13441 = vmatpush3.bf16.msra.mxu1 %v13438_v9  ;;  %v981_v20 = vrot.slane %v883_v17, 2 }
  0xfb   : > { %12685 = vmatprep.subr.mxu1 %v14284_v13 }
  0xfc   : > { %v982_v23 = vsel %vm979_vm2, %v980_v19, %v981_v20  ;;  %vm2679_vm2 = vcmask 523264  }
  0xfe   : > { %s16513_s3 = smov %s16512_s25 }
 0x164   : > { %v1086_v28 = vpop.permute.xlu0 %1085 }
 0x1c6   : > { %v12663_v21 = vpop.f32.mrb[0].mxu1 }
 0x1c7   : > { %v974_v22 = vadd.f32 %v12663_v21, %v890_v18  ;;  %v968_v24 = vpop.f32.mrb[1].mxu1 }
 0x1c8   : > { %v969_v25 = vadd.f32 %v968_v24, %v890_v18 }
 0x1c9   : > { %v14735_v27 = vadd.f32 %v982_v23, %v974_v22 }
 0x1ca   : > { %v14733_v26 = vadd.f32 %v982_v23, %v969_v25 }
 0x1cc   : > { %12672 = vmatprep.mubr.msk.f32.mxu1 %vm992_vm3, %v14733_v26 }
 0x1cd   : > { %12673 = vmatmul.mubr.msk.f32.vlgmr.msra.gmra.mrb[2].mxu1 %vm992_vm3, %v14735_v27 }
 0x1ce   : > { %12687 = vmatprep.mubr.msk.f32.mxu1 %vm14286_vm4, %v14284_v13 }
 0x2a0   : > { %v14745_v29 = vpop.f32.mrb[2].mxu1 }
 0x2a1   : > { %v14747_v30 = vpop.f32.mrb[3].mxu1  ;;  %v1089_v31 = vadd.f32 %v14745_v29, %v1086_v28  ;;  %v14776_v39 = vadd.f32 %v14745_v29, %v1077_v34 }
 0x2a2   : > { %v1088_v32 = vadd.f32 %v1086_v28, %v14747_v30  ;;  %v14761_v35 = vadd.f32 %v1077_v34, %v14747_v30 }
 0x2a3   : > { %1181 = vrot.lane.b32.xlu1 %v1089_v31, %s16463_s1  ;;  %v1101_v43 = vmul.f32 %v14764_v36, %v14776_v39  ;;  %v1290_v44 = vmul.f32 %v14767_v37, %v14776_v39 }
 0x2a4   : > { %1103 = vrot.lane.b32.xlu0 %v1088_v32, %s16463_s1  ;;  %v1289_v40 = vmul.f32 %v14767_v37, %v14761_v35  ;;  %v1100_v41 = vmul.f32 %v14764_v36, %v14761_v35 }
 0x315   : > { %v14784_v42 = vpop.permute.xlu1 %1181 }
 0x316   : > { %v14769_v38 = vpop.permute.xlu0 %1103 }
 0x317   : > { %12676 = vmatpush3.xpose.msk.msra.mxu0 %vm992_vm3, %v14769_v38  ;;  %12686 = vmatpush3.xpose.msk.msra.mxu1 %vm992_vm3, %v14769_v38 }
 0x318   : > { %12680 = vmatprep.subr.mxu0 %v14284_v13  ;;  %12695 = vmatprep.subr.mxu1 %v14284_v13 }
 0x31a   : > { %12678 = vmatmul.mubr.msk.f32.vlgmr.msra.gmra.mrb[0].mxu0 %vm992_vm3, %v1100_v41  ;;  %12688 = vmatmul.mubr.msk.f32.vlgmr.msra.gmra.mrb[4].mxu1 %vm992_vm3, %v1289_v40 }
 0x31b   : > { %12681 = vmatpush3.xpose.msk.msra.mxu0 %vm992_vm3, %v14784_v42  ;;  %12682 = vmatprep.mubr.msk.f32.mxu0 %vm14286_vm4, %v14284_v13 }
 0x31c   : > { %12690 = vmatprep.subr.mxu0 %v14284_v13  ;;  %12697 = vmatprep.mubr.msk.f32.mxu1 %vm14286_vm4, %v14284_v13 }
 0x31e   : > { %12683 = vmatmul.mubr.msk.f32.vlgmr.msra.gmra.mrb[2].mxu0 %vm992_vm3, %v1101_v43 }
 0x31f   : > { %12691 = vmatpush3.xpose.msk.msra.mxu0 %vm992_vm3, %v14784_v42  ;;  %12692 = vmatprep.mubr.msk.f32.mxu0 %vm14286_vm4, %v14284_v13 }
 0x320   : > { %12700 = vmatprep.subr.mxu0 %v14284_v13 }
 0x322   : > { %12693 = vmatmul.mubr.msk.f32.vlgmr.msra.gmra.mrb[4].mxu0 %vm992_vm3, %v1290_v44 }
 0x323   : > { %12702 = vmatprep.mubr.msk.f32.mxu0 %vm14286_vm4, %v14284_v13 }
 0x3ed   : > { %v1176_v45 = vpop.f32.mrb[0].mxu0  ;;  %v1360_v46 = vpop.f32.mrb[4].mxu1 }
 0x3ee   : > { %v1437_v47 = vmul.f32 0.35355338, %v1360_v46  ;;  %v12679_v48 = vpop.f32.mrb[1].mxu0  ;;  %v12689_v49 = vpop.f32.mrb[5].mxu1  ;;  %v1258_v58 = vmul.f32 0.35355338, %v1176_v45 }
 0x3f0   : > { %v1439_v50 = vsel %vm1260_vm9, %v1437_v47, -inf  ;;  %v1261_v60 = vsel %vm1260_vm9, %v1258_v58, -inf }
 0x3f1   : > { %1440 = vmax.xlane.f32.xlu1 %v1439_v50  ;;  %v1254_v51 = vpop.f32.mrb[2].mxu0 }
 0x3f2   : > { %v1259_v52 = vmul.f32 0.35355338, %v1254_v51  ;;  %v12684_v53 = vpop.f32.mrb[3].mxu0 }
 0x3f4   : > { %v1264_v54 = vsel %vm1260_vm9, %v1259_v52, -inf }
 0x3f5   : > { %1265 = vmax.xlane.f32.xlu1 %v1264_v54  ;;  %v1433_v55 = vpop.f32.mrb[4].mxu0 }
 0x3f6   : > { %v1438_v56 = vmul.f32 0.35355338, %v1433_v55  ;;  %v12694_v57 = vpop.f32.mrb[5].mxu0 }
 0x3f8   : > { %v1442_v59 = vsel %vm1260_vm9, %v1438_v56, -inf }
 0x3f9   : > { %1443 = vmax.xlane.f32.xlu0 %v1442_v59 }
 0x3fd   : > { %1262 = vmax.xlane.f32.xlu0 %v1261_v60 }
 0x406   : > { %1462 = vrot.lane.b32.xlu1 %v14767_v37, %s16461_s12 }
 0x40a   : > { %1284 = vrot.lane.b32.xlu1 %v14764_v36, %s16461_s12 }
 0x413   : > { %1095 = vrot.lane.b32.xlu0 %v1093_v62, %s16461_s12 }
 0x47e   : > { %v1441_v63 = vpop.xlane.xlu1 %1440 }
 0x47f   : > { %v1445_v0 = vsub.f32 %v1437_v47, %v1441_v63 }
 0x481   : > { %v1447_v1 = vmul.f32 1.442695, %v1445_v0 }
 0x482   : > { %v1266_v2 = vpop.xlane.xlu1 %1265 }
 0x483   : > { %13805 = vpow2.f32 %v1447_v1  ;;  %v1268_v4 = vsub.f32 %v1259_v52, %v1266_v2  ;;  %v14857_v52 = vsel %vm874_vm12, 1.0, %v14284_v13 }
 0x484   : > { %v1775_v53 = vmul.f32 %v14857_v52, %v14761_v35  ;;  %v1776_v60 = vmul.f32 %v14857_v52, %v14776_v39 }
 0x485   : > { %v1271_v9 = vmul.f32 1.442695, %v1268_v4 }
 0x486   : > { %v1444_v3 = vpop.xlane.xlu0 %1443  ;;  %v14822_v7 = vpop.permute.xlu1 %1462 }
 0x487   : > { %v1446_v28 = vsub.f32 %v1438_v56, %v1444_v3 }
 0x48a   : > { %v1263_v5 = vpop.xlane.xlu0 %1262  ;;  %v14830_v20 = vpop.permute.xlu1 %1284 }
 0x48b   : > { %v1267_v6 = vsub.f32 %v1258_v58, %v1263_v5 }
 0x48d   : > { %v13806_v8 = vpop.eup %13805  ;;  %v1269_v14 = vmul.f32 1.442695, %v1267_v6 }
 0x48e   : > { %v1096_v16 = vpop.permute.xlu0 %1095  ;;  %v1451_v17 = vsel %vm1260_vm9, %v13806_v8, 0.0 }
 0x48f   : > { %13807 = vpow2.f32 %v1269_v14  ;;  %v14826_v18 = vadd.f32 %v1096_v16, %v14747_v30  ;;  %1452 = vadd.xlane.f32.xlu0 %v1451_v17  ;;  %v1449_v30 = vmul.f32 1.442695, %v1446_v28  ;;  %v14839_v31 = vadd.f32 %v14745_v29, %v1096_v16 }
 0x490   : > { %13809 = vpow2.f32 %v1271_v9 }
 0x491   : > { %v1465_v19 = vmul.f32 %v14822_v7, %v14826_v18  ;;  %v1287_v21 = vmul.f32 %v14830_v20, %v14826_v18  ;;  %13811 = vpow2.f32 %v1449_v30  ;;  %v1466_v32 = vmul.f32 %v14822_v7, %v14839_v31 }
 0x492   : > { %v1288_v41 = vmul.f32 %v14830_v20, %v14839_v31 }
 0x493   : > { %1468 = vrot.lane.b32.xlu1 %v1465_v19, %s16461_s12 }
 0x497   : > { %1622 = vrot.lane.b32.xlu1 %v1287_v21, %s16461_s12 }
 0x499   : > { %v13808_v22 = vpop.eup %13807 }
 0x49a   : > { %v1273_v23 = vsel %vm1260_vm9, %v13808_v22, 0.0  ;;  %v13810_v24 = vpop.eup %13809 }
 0x49b   : > { %1274 = vadd.xlane.f32.xlu0 %v1273_v23  ;;  %v1276_v25 = vsel %vm1260_vm9, %v13810_v24, 0.0  ;;  %v13812_v34 = vpop.eup %13811 }
 0x49c   : > { %v1454_v40 = vsel %vm1260_vm9, %v13812_v34, 0.0 }
 0x49f   : > { %1277 = vadd.xlane.f32.xlu0 %v1276_v25 }
 0x4b5   : > { %1545 = vrot.lane.b32.xlu0 %v1466_v32, %s16461_s12 }
 0x4bb   : > { %1455 = vadd.xlane.f32.xlu1 %v1454_v40 }
 0x4cc   : > { %1699 = vrot.lane.b32.xlu1 %v1288_v41, %s16461_s12 }
 0x505   : > { %v1469_v43 = vpop.permute.xlu1 %1468 }
 0x506   : > { %12696 = vmatpush3.msra.mxu1 %v1469_v43 }
 0x507   : > { %12705 = vmatprep.subr.mxu1 %v14284_v13 }
 0x509   : > { %v1623_v47 = vpop.permute.xlu1 %1622 }
 0x51c   : > { %v1453_v29 = vpop.xlane.xlu0 %1452 }
 0x51d   : > { %13813 = vrcp.f32 %v1453_v29  ;;  %v14907_v29 = vsel %vm879_vm15, 1.0, %v14284_v13 }
 0x51e   : > { %v2109_v33 = vmul.f32 %v14907_v29, %v14761_v35 }
 0x527   : > { %v13814_v44 = vpop.eup %13813 }
 0x528   : > { %v1275_v45 = vpop.xlane.xlu0 %1274  ;;  %v1459_v46 = vmul.f32 %v13814_v44, %v13806_v8 }
 0x529   : > { %13815 = vrcp.f32 %v1275_v45 }
 0x52a   : > { %12698 = vmatmul.mubr.msk.f32.vlgmr.msra.gmra.mrb[6].mxu1 %vm1260_vm9, %v1459_v46  ;;  %v2110_v46 = vmul.f32 %v14907_v29, %v14776_v39 }
 0x52b   : > { %12706 = vmatpush3.msra.mxu1 %v1623_v47  ;;  %12707 = vmatprep.mubr.msk.f32.mxu1 %vm14286_vm4, %v14284_v13 }
 0x52c   : > { %v1278_v48 = vpop.xlane.xlu0 %1277  ;;  %12715 = vmatprep.subr.mxu1 %v14284_v13 }
 0x530   : > { %v1546_v49 = vpop.permute.xlu0 %1545 }
 0x531   : > { %12701 = vmatpush3.msra.mxu0 %v1546_v49 }
 0x532   : > { %12710 = vmatprep.subr.mxu0 %v14284_v13 }
 0x533   : > { %v13816_v50 = vpop.eup %13815 }
 0x534   : > { %v1281_v51 = vmul.f32 %v13816_v50, %v13808_v22 }
 0x536   : > { %12708 = vmatmul.mubr.msk.f32.vlgmr.msra.gmra.mrb[6].mxu1 %vm1260_vm9, %v1281_v51 }
 0x537   : > { %12716 = vmatpush3.xpose.msk.msra.mxu1 %vm992_vm3, %v14769_v38  ;;  %12717 = vmatprep.mubr.msk.f32.mxu1 %vm14286_vm4, %v14284_v13 }
 0x538   : > { %12725 = vmatprep.subr.mxu1 %v14284_v13 }
 0x53a   : > { %12718 = vmatmul.mubr.msk.f32.vlgmr.msra.gmra.mrb[8].mxu1 %vm992_vm3, %v1775_v53 }
 0x53b   : > { %12727 = vmatprep.mubr.msk.f32.mxu1 %vm14286_vm4, %v14284_v13 }
 0x548   : > { %v1456_v54 = vpop.xlane.xlu1 %1455 }
 0x549   : > { %13817 = vrcp.f32 %v1456_v54 }
 0x54a   : > { %13819 = vrcp.f32 %v1278_v48 }
 0x54c   : > { %v1700_v57 = vpop.permute.xlu1 %1699 }
 0x553   : > { %v13818_v55 = vpop.eup %13817 }
 0x554   : > { %v1460_v56 = vmul.f32 %v13818_v55, %v13812_v34  ;;  %v13820_v58 = vpop.eup %13819 }
 0x555   : > { %v1282_v59 = vmul.f32 %v13820_v58, %v13810_v24 }
 0x556   : > { %12703 = vmatmul.mubr.msk.f32.vlgmr.msra.gmra.mrb[6].mxu0 %vm1260_vm9, %v1460_v56 }
 0x557   : > { %12711 = vmatpush3.msra.mxu0 %v1700_v57  ;;  %12712 = vmatprep.mubr.msk.f32.mxu0 %vm14286_vm4, %v14284_v13 }
 0x558   : > { %12720 = vmatprep.subr.mxu0 %v14284_v13 }
 0x55e   : > { %12713 = vmatmul.mubr.msk.f32.vlgmr.msra.gmra.mrb[6].mxu0 %vm1260_vm9, %v1282_v59 }
 0x55f   : > { %12721 = vmatpush3.xpose.msk.msra.mxu0 %vm992_vm3, %v14784_v42  ;;  %12722 = vmatprep.mubr.msk.f32.mxu0 %vm14286_vm4, %v14284_v13 }
 0x560   : > { %12730 = vmatprep.subr.mxu0 %v14284_v13 }
 0x562   : > { %12723 = vmatmul.mubr.msk.f32.vlgmr.msra.gmra.mrb[8].mxu0 %vm992_vm3, %v1776_v60 }
 0x563   : > { %12732 = vmatprep.mubr.msk.f32.mxu0 %vm14286_vm4, %v14284_v13 }
 0x60d   : > { %v1846_v62 = vpop.f32.mrb[8].mxu1 }
 0x60e   : > { %v1923_v63 = vmul.f32 0.35355338, %v1846_v62  ;;  %v12719_v0 = vpop.f32.mrb[9].mxu1 }
 0x610   : > { %v1925_v1 = vsel %vm1260_vm9, %v1923_v63, -inf }
 0x611   : > { %1926 = vmax.xlane.f32.xlu0 %v1925_v1 }
 0x627   : > { %1948 = vrot.lane.b32.xlu0 %v14857_v52, %s16461_s12 }
 0x635   : > { %v1919_v2 = vpop.f32.mrb[8].mxu0 }
 0x636   : > { %v1924_v3 = vmul.f32 0.35355338, %v1919_v2  ;;  %v12724_v4 = vpop.f32.mrb[9].mxu0 }
 0x637   : > { %v2444_v4 = vld [vmem:[%s16423_s9 + $0x8] sm:$0xff] }
 0x638   : > { %v1928_v5 = vsel %vm1260_vm9, %v1924_v3, -inf }
 0x639   : > { %1929 = vmax.xlane.f32.xlu1 %v1928_v5 }
 0x69e   : > { %v1927_v6 = vpop.xlane.xlu0 %1926 }
 0x69f   : > { %v1931_v8 = vsub.f32 %v1923_v63, %v1927_v6 }
 0x6a1   : > { %v1933_v9 = vmul.f32 1.442695, %v1931_v8 }
 0x6a2   : > { %v14889_v14 = vpop.permute.xlu0 %1948 }
 0x6a3   : > { %13821 = vpow2.f32 %v1933_v9  ;;  %v1952_v16 = vmul.f32 %v14889_v14, %v14839_v31  ;;  %v1951_v28 = vmul.f32 %v14889_v14, %v14826_v18 }
 0x6a5   : > { %2031 = vrot.lane.b32.xlu0 %v1952_v16, %s16461_s12 }
 0x6ad   : > { %v13822_v17 = vpop.eup %13821 }
 0x6ae   : > { %v1937_v19 = vsel %vm1260_vm9, %v13822_v17, 0.0 }
 0x6af   : > { %1938 = vadd.xlane.f32.xlu1 %v1937_v19  ;;  %v2445_v19 = vld [vmem:[%s16423_s9 + $0x10] sm:$0xff] }
 0x6c6   : > { %v1930_v21 = vpop.xlane.xlu1 %1929 }
 0x6c7   : > { %v1932_v22 = vsub.f32 %v1924_v3, %v1930_v21  ;;  %v2443_v3 = vld [vmem:[%s16423_s9] sm:$0xff]  ;;  %v2446_v21 = vld [vmem:[%s16423_s9 + $0x18] sm:$0xff] }
 0x6c8   : > { %v13442_v6 = vpack.c.bf16 %v2444_v4, %v2443_v3 }
 0x6c9   : > { %v1935_v23 = vmul.f32 1.442695, %v1932_v22  ;;  %v13446_v22 = vpack.c.bf16 %v2446_v21, %v2445_v19 }
 0x6cb   : > { %13823 = vpow2.f32 %v1935_v23 }
 0x6d5   : > { %v13824_v24 = vpop.eup %13823 }
 0x6d6   : > { %v1940_v25 = vsel %vm1260_vm9, %v13824_v24, 0.0 }
 0x6d7   : > { %1941 = vadd.xlane.f32.xlu1 %v1940_v25 }
 0x6e8   : > { %1954 = vrot.lane.b32.xlu1 %v1951_v28, %s16461_s12 }
 0x717   : > { %v2032_v30 = vpop.permute.xlu0 %2031 }
 0x718   : > { %12731 = vmatpush3.msra.mxu0 %v2032_v30  ;;  %v14959_v30 = vsub.s32 3, %v14708_v10 }
 0x719   : > { %12740 = vmatprep.subr.mxu0 %v14284_v13 }
 0x73c   : > { %v1939_v32 = vpop.xlane.xlu1 %1938 }
 0x73d   : > { %13825 = vrcp.f32 %v1939_v32  ;;  %v2450_v32 = vrot.slane %v14713_v11, %v14959_v30 }
 0x747   : > { %v13826_v40 = vpop.eup %13825 }
 0x748   : > { %v1945_v43 = vmul.f32 %v13826_v40, %v13822_v17 }
 0x764   : > { %v1942_v34 = vpop.xlane.xlu1 %1941 }
 0x765   : > { %13827 = vrcp.f32 %v1942_v34 }
 0x768   : > { %v1955_v41 = vpop.permute.xlu1 %1954 }
 0x769   : > { %12726 = vmatpush3.msra.mxu1 %v1955_v41 }
 0x76a   : > { %12728 = vmatmul.mubr.msk.f32.vlgmr.msra.gmra.mrb[6].mxu1 %vm1260_vm9, %v1945_v43  ;;  %12735 = vmatprep.subr.mxu1 %v14284_v13 }
 0x76b   : > { %12737 = vmatprep.mubr.msk.f32.mxu1 %vm14286_vm4, %v14284_v13 }
 0x76f   : > { %v13828_v44 = vpop.eup %13827 }
 0x770   : > { %12736 = vmatpush3.xpose.msk.msra.mxu1 %vm992_vm3, %v14769_v38  ;;  %v1946_v45 = vmul.f32 %v13828_v44, %v13824_v24 }
 0x771   : > { %12745 = vmatprep.subr.mxu1 %v14284_v13 }
 0x772   : > { %12733 = vmatmul.mubr.msk.f32.vlgmr.msra.gmra.mrb[6].mxu0 %vm1260_vm9, %v1946_v45 }
 0x773   : > { %12741 = vmatpush3.xpose.msk.msra.mxu0 %vm992_vm3, %v14784_v42  ;;  %12738 = vmatmul.mubr.msk.f32.vlgmr.msra.gmra.mrb[10].mxu1 %vm992_vm3, %v2109_v33 }
 0x774   : > { %12742 = vmatprep.mubr.msk.f32.mxu0 %vm14286_vm4, %v14284_v13  ;;  %12750 = vmatprep.subr.mxu0 %v14284_v13 }
 0x775   : > { %12747 = vmatprep.mubr.msk.f32.mxu1 %vm14286_vm4, %v14284_v13 }
 0x776   : > { %12743 = vmatmul.mubr.msk.f32.vlgmr.msra.gmra.mrb[10].mxu0 %vm992_vm3, %v2110_v46 }
 0x777   : > { %12752 = vmatprep.mubr.msk.f32.mxu0 %vm14286_vm4, %v14284_v13 }
 0x846   : > { %v2180_v35 = vpop.f32.mrb[10].mxu1 }
 0x847   : > { %v2257_v38 = vmul.f32 0.35355338, %v2180_v35  ;;  %v12739_v42 = vpop.f32.mrb[11].mxu1 }
 0x849   : > { %v2253_v47 = vpop.f32.mrb[10].mxu0  ;;  %v2259_v48 = vsel %vm1260_vm9, %v2257_v38, -inf }
 0x84a   : > { %v2258_v39 = vmul.f32 0.35355338, %v2253_v47  ;;  %2260 = vmax.xlane.f32.xlu0 %v2259_v48  ;;  %v12744_v49 = vpop.f32.mrb[11].mxu0 }
 0x84c   : > { %v2262_v50 = vsel %vm1260_vm9, %v2258_v39, -inf }
 0x84d   : > { %2263 = vmax.xlane.f32.xlu1 %v2262_v50 }
 0x860   : > { %2282 = vrot.lane.b32.xlu0 %v14907_v29, %s16461_s12 }
 0x8d7   : > { %v2261_v51 = vpop.xlane.xlu0 %2260 }
 0x8d8   : > { %v2265_v53 = vsub.f32 %v2257_v38, %v2261_v51 }
 0x8da   : > { %v2267_v54 = vmul.f32 1.442695, %v2265_v53  ;;  %v2264_v55 = vpop.xlane.xlu1 %2263  ;;  %v2574_v53 = vld [vmem:[%s16508_s6 + $0x8] sm:$0xff] }
 0x8db   : > { %v2266_v56 = vsub.f32 %v2258_v39, %v2264_v55  ;;  %v14932_v57 = vpop.permute.xlu0 %2282  ;;  %v2575_v55 = vld [vmem:[%s16508_s6 + $0x10] sm:$0xff] }
 0x8dc   : > { %13829 = vpow2.f32 %v2267_v54  ;;  %v2286_v58 = vmul.f32 %v14932_v57, %v14839_v31  ;;  %v2285_v1 = vmul.f32 %v14932_v57, %v14826_v18 }
 0x8dd   : > { %v2269_v59 = vmul.f32 1.442695, %v2266_v56  ;;  %v2576_v56 = vld [vmem:[%s16508_s6 + $0x18] sm:$0xff] }
 0x8de   : > { %2365 = vrot.lane.b32.xlu0 %v2286_v58, %s16461_s12  ;;  %v13454_v58 = vpack.c.bf16 %v2576_v56, %v2575_v55 }
 0x8df   : > { %13831 = vpow2.f32 %v2269_v59  ;;  %v2667_v59 = vld [vmem:[%s16509_s27] sm:$0xff] }
 0x8e6   : > { %v13830_v60 = vpop.eup %13829 }
 0x8e7   : > { %v2271_v62 = vsel %vm1260_vm9, %v13830_v60, 0.0 }
 0x8e8   : > { %2272 = vadd.xlane.f32.xlu1 %v2271_v62  ;;  %v2669_v62 = vld [vmem:[%s16509_s27 + $0x10] sm:$0xff] }
 0x8e9   : > { %v13832_v63 = vpop.eup %13831 }
 0x8ea   : > { %v2274_v0 = vsel %vm1260_vm9, %v13832_v63, 0.0 }
 0x8ec   : > { %2275 = vadd.xlane.f32.xlu1 %v2274_v0  ;;  %v2670_v0 = vld [vmem:[%s16509_s27 + $0x18] sm:$0xff] }
 0x8fd   : > { %2288 = vrot.lane.b32.xlu1 %v2285_v1, %s16461_s12  ;;  %v13462_v1 = vpack.c.bf16 %v2670_v0, %v2669_v62 }
 0x950   : > { %v2366_v2 = vpop.permute.xlu0 %2365 }
 0x951   : > { %12751 = vmatpush3.msra.mxu0 %v2366_v2  ;;  %v2671_v2 = vld [vmem:[%s16509_s27 + $0x20] sm:$0xff] }
 0x975   : > { %v2273_v31 = vpop.xlane.xlu1 %2272 }
 0x976   : > { %13833 = vrcp.f32 %v2273_v31  ;;  %v2672_v31 = vld [vmem:[%s16509_s27 + $0x28] sm:$0xff] }
 0x977   : > { %v13466_v3 = vpack.c.bf16 %v2672_v31, %v2671_v2 }
 0x979   : > { %v2276_v5 = vpop.xlane.xlu1 %2275 }
 0x97a   : > { %13835 = vrcp.f32 %v2276_v5 }
 0x97d   : > { %v2289_v8 = vpop.permute.xlu1 %2288 }
 0x97e   : > { %12746 = vmatpush3.msra.mxu1 %v2289_v8 }
 0x97f   : > { %13443 = vmatprep.subr.bf16.mxu1 %v13442_v6 }
 0x980   : > { %v13834_v18 = vpop.eup %13833 }
 0x981   : > { %v2279_v9 = vmul.f32 %v13834_v18, %v13830_v60  ;;  %v2668_v60 = vld [vmem:[%s16509_s27 + $0x8] sm:$0xff] }
 0x983   : > { %12748 = vmatmul.mubr.msk.f32.vlgmr.msra.gmra.mrb[6].mxu1 %vm1260_vm9, %v2279_v9 }
 0x984   : > { %v13836_v16 = vpop.eup %13835  ;;  %13445 = vmatpush3.bf16.msra.mxu1 %v13442_v6 }
 0x985   : > { %v2280_v17 = vmul.f32 %v13836_v16, %v13832_v63  ;;  %13447 = vmatprep.subr.bf16.mxu1 %v13446_v22  ;;  %v13458_v63 = vpack.c.bf16 %v2668_v60, %v2667_v59  ;;  %v15000_v16 = vsub.s32 4, %v14708_v10 }
 0x987   : > { %12753 = vmatmul.mubr.msk.f32.vlgmr.msra.gmra.mrb[6].mxu0 %vm1260_vm9, %v2280_v17  ;;  %v15003_v17 = vsub.s32 5, %v14708_v10  ;;  %v2564_v19 = vrot.slane %v14713_v11, %v15000_v16 }
 0x988   : > { %13449 = vmatpush3.bf16.msra.mxu1 %v13446_v22 }
 0x989   : > { %13459 = vmatprep.subr.bf16.mxu1 %v13458_v63 }
 0xa56   : > { %v2360_v23 = vpop.f32.mrb[6].mxu1 }
 0xa57   : > { %v12749_v24 = vpop.f32.mrb[7].mxu1  ;;  %12763 = vmatprep.mubr.msk.f32.mxu1 %vm992_vm3, %v2360_v23  ;;  %v2570_v23 = vrot.slane %v14713_v11, %v15003_v17 }
 0xa5a   : > { %v2437_v25 = vpop.f32.mrb[6].mxu0 }
 0xa5b   : > { %v12754_v28 = vpop.f32.mrb[7].mxu0  ;;  %12764 = vmatmul.mubr.msk.f32.vlgmr.msra.gmra.mrb[12].mxu1 %vm992_vm3, %v2437_v25 }
 0xa5c   : > { %13461 = vmatpush3.bf16.msra.mxu1 %v13458_v63 }
 0xa5d   : > { %13463 = vmatprep.subr.bf16.mxu1 %v13462_v1 }
 0xa60   : > { %13465 = vmatpush3.bf16.msra.mxu1 %v13462_v1 }
 0xa61   : > { %13467 = vmatprep.subr.bf16.mxu1 %v13466_v3 }
 0xa64   : > { %13469 = vmatpush3.bf16.msra.mxu1 %v13466_v3  ;;  %v12102_v3 = vld [vmem:[%s16505_s8 + $0x20] sm:$0xff] }
 0xb2e   : > { %v12765_v34 = vpop.f32.mrb[12].mxu1 }
 0xb2f   : > { %v2529_v40 = vadd.f32 %v12765_v34, %v2450_v32  ;;  %v2523_v41 = vpop.f32.mrb[13].mxu1 }
 0xb30   : > { %v2524_v43 = vadd.f32 %v2523_v41, %v2450_v32  ;;  %v2673_v41 = vld [vmem:[%s16509_s27 + $0x30] sm:$0xff] }
 0xb31   : > { %v2533_v44 = vadd.f32 %v2529_v40, %v14735_v27 }
 0xb32   : > { %v2532_v45 = vadd.f32 %v2524_v43, %v14733_v26  ;;  %v2573_v26 = vld [vmem:[%s16508_s6] sm:$0xff]  ;;  %v2674_v43 = vld [vmem:[%s16509_s27 + $0x38] sm:$0xff] }
 0xb33   : > { %v2537_v33 = vsel %vm992_vm3, %v2533_v44, 0.0  ;;  %v13450_v54 = vpack.c.bf16 %v2574_v53, %v2573_v26 }
 0xb34   : > { %2538 = vadd.xlane.f32.xlu1 %v2537_v33  ;;  %v2534_v46 = vsel %vm992_vm3, %v2532_v45, 0.0 }
 0xb35   : > { %2535 = vadd.xlane.f32.xlu0 %v2534_v46  ;;  %13451 = vmatprep.subr.bf16.mxu0 %v13450_v54 }
 0xb36   : > { %13453 = vmatpush3.bf16.msra.mxu0 %v13450_v54 }
 0xb37   : > { %13455 = vmatprep.subr.bf16.mxu0 %v13454_v58 }
 0xb3a   : > { %13457 = vmatpush3.bf16.msra.mxu0 %v13454_v58 }
 0xbc1   : > { %v2539_v35 = vpop.xlane.xlu1 %2538 }
 0xbc2   : > { %v2542_v38 = vmul.f32 0.03125, %v2539_v35  ;;  %v2536_v42 = vpop.xlane.xlu0 %2535 }
 0xbc3   : > { %v2541_v47 = vmul.f32 0.03125, %v2536_v42 }
 0xbc4   : > { %v2544_v48 = vsub.f32 %v2533_v44, %v2542_v38  ;;  %v13470_v44 = vpack.c.bf16 %v2674_v43, %v2673_v41  ;;  %v12099_v43 = vld [vmem:[%s16427_s13 + $0x8] ss:$0 sm:$0xff] }
 0xbc5   : > { %v2543_v39 = vsub.f32 %v2532_v45, %v2541_v47  ;;  %v12094_v45 = vld [vmem:[#allocation7] ss:$0 sm:$0xff] }
 0xbc6   : > { %v2546_v51 = vmul.f32 %v2544_v48, %v2544_v48  ;;  %13471 = vmatprep.subr.bf16.mxu1 %v13470_v44 }
 0xbc7   : > { %v2545_v49 = vmul.f32 %v2543_v39, %v2543_v39  ;;  %13473 = vmatpush3.bf16.msra.mxu1 %v13470_v44 }
 0xbc8   : > { %v2550_v27 = vsel %vm992_vm3, %v2546_v51, 0.0  ;;  %12817 = vmatprep.subr.mxu1 %v14284_v13 }
 0xbc9   : > { %v2547_v50 = vsel %vm992_vm3, %v2545_v49, 0.0 }
 0xbca   : > { %2548 = vadd.xlane.f32.xlu0 %v2547_v50 }
 0xbce   : > { %2551 = vadd.xlane.f32.xlu0 %v2550_v27 }
 0xc57   : > { %v2549_v4 = vpop.xlane.xlu0 %2548 }
 0xc58   : > { %v2553_v5 = vmul.f32 0.03125, %v2549_v4  ;;  %v12103_v4 = vld [vmem:[%s16505_s8 + $0x28] sm:$0xff] }
 0xc5a   : > { %v2555_v6 = vadd.f32 1e-05, %v2553_v5  ;;  %v12104_v5 = vld [vmem:[%s16505_s8 + $0x30] sm:$0xff] }
 0xc5b   : > { %v2552_v8 = vpop.xlane.xlu0 %2551 }
 0xc5c   : > { %13837 = vrsqrt.f32 %v2555_v6  ;;  %v2554_v18 = vmul.f32 0.03125, %v2552_v8  ;;  %v13474_v6 = vpack.c.bf16 %v12103_v4, %v12102_v3  ;;  %v12105_v8 = vld [vmem:[%s16505_s8 + $0x38] sm:$0xff]  ;;  %s16527_s8 = sshll.u32 %s16534_s20, 2 }
 0xc5e   : > { %v2556_v9 = vadd.f32 1e-05, %v2554_v18  ;;  %v13478_v18 = vpack.c.bf16 %v12105_v8, %v12104_v5  ;;  %13475 = vmatprep.subr.bf16.mxu0 %v13474_v6 }
 0xc60   : > { %13839 = vrsqrt.f32 %v2556_v9  ;;  %v15047_v9 = vld [vmem:[%s16427_s13 + $0x10] sm:$0xff] }
 0xc66   : > { %v13838_v21 = vpop.eup %13837 }
 0xc67   : > { %v2559_v22 = vmul.f32 %v13838_v21, %v2543_v39 }
 0xc69   : > { %v2565_v24 = vmul.f32 %v2564_v19, %v2559_v22 }
 0xc6a   : > { %v13840_v25 = vpop.eup %13839 }
 0xc6b   : > { %v2560_v28 = vmul.f32 %v13840_v25, %v2544_v48  ;;  %v2571_v32 = vadd.f32 %v2570_v23, %v2565_v24  ;;  %v15023_v48 = vsub.s32 6, %v14708_v10 }
 0xc6d   : > { %v2566_v34 = vmul.f32 %v2564_v19, %v2560_v28  ;;  %12774 = vmatprep.mubr.msk.f32.mxu0 %vm992_vm3, %v2571_v32  ;;  %v2678_v39 = vrot.slane %v14713_v11, %v15023_v48  ;;  %v2899_v19 = vrot.slane %v15047_v9, %v14716_v12 }
 0xc6f   : > { %v2572_v40 = vadd.f32 %v2570_v23, %v2566_v34 }
 0xc71   : > { %12775 = vmatmul.mubr.msk.f32.vlgmr.msra.gmra.mrb[12].mxu0 %vm992_vm3, %v2572_v40 }
 0xc72   : > { %13477 = vmatpush3.bf16.msra.mxu0 %v13474_v6 }
 0xc73   : > { %13479 = vmatprep.subr.bf16.mxu0 %v13478_v18 }
 0xc76   : > { %13481 = vmatpush3.bf16.msra.mxu0 %v13478_v18 }
 0xc77   : > { %12807 = vmatprep.subr.mxu0 %v14284_v13 }
 0xd44   : > { %v12776_v33 = vpop.f32.mrb[12].mxu0 }
 0xd45   : > { %v2662_v46 = vadd.f32 %v12776_v33, %v12094_v45  ;;  %v2656_v35 = vpop.f32.mrb[13].mxu0 }
 0xd46   : > { %v2657_v38 = vadd.f32 %v12094_v45, %v2656_v35 }
 0xd47   : > { %v2666_v47 = vmax.f32 %v2662_v46, 0.0 }
 0xd48   : > { %v2665_v42 = vmax.f32 %v2657_v38, 0.0 }
 0xd4a   : > { %12793 = vmatprep.mubr.msk.f32.mxu1 %vm2679_vm2, %v2665_v42 }
 0xd4b   : > { %12794 = vmatmul.mubr.msk.f32.vlgmr.msra.gmra.mrb[14].mxu1 %vm2679_vm2, %v2666_v47 }
 0xd4c   : > { %12819 = vmatprep.mubr.msk.f32.mxu1 %vm14286_vm4, %v14284_v13 }
 0xe1e   : > { %v12795_v49 = vpop.f32.mrb[14].mxu1 }
 0xe1f   : > { %v2752_v50 = vpop.f32.mrb[15].mxu1  ;;  %v2758_v51 = vadd.f32 %v12795_v49, %v2678_v39 }
 0xe20   : > { %v2753_v27 = vadd.f32 %v2752_v50, %v2678_v39  ;;  %v2893_v50 = vrot.slane %v15047_v9, %v14724_v15 }
 0xe21   : > { %v2762_v54 = vadd.f32 %v2758_v51, %v2572_v40 }
 0xe22   : > { %v2761_v26 = vadd.f32 %v2753_v27, %v2571_v32  ;;  %v15053_v32 = vsub.s32 7, %v14708_v10 }
 0xe23   : > { %v2766_v55 = vsel %vm992_vm3, %v2762_v54, 0.0 }
 0xe24   : > { %v2763_v53 = vsel %vm992_vm3, %v2761_v26, 0.0  ;;  %v2792_v34 = vrot.slane %v14713_v11, %v15053_v32 }
 0xe25   : > { %2764 = vadd.xlane.f32.xlu0 %v2763_v53 }
 0xe29   : > { %2767 = vadd.xlane.f32.xlu0 %v2766_v55 }
 0xeb2   : > { %v2765_v56 = vpop.xlane.xlu0 %2764 }
 0xeb3   : > { %v2769_v58 = vmul.f32 0.03125, %v2765_v56 }
 0xeb5   : > { %v2771_v59 = vsub.f32 %v2761_v26, %v2769_v58 }
 0xeb6   : > { %v2768_v60 = vpop.xlane.xlu0 %2767 }
 0xeb7   : > { %v2770_v62 = vmul.f32 0.03125, %v2768_v60  ;;  %v2773_v63 = vmul.f32 %v2771_v59, %v2771_v59 }
 0xeb9   : > { %v2772_v0 = vsub.f32 %v2762_v54, %v2770_v62  ;;  %v2775_v1 = vsel %vm992_vm3, %v2773_v63, 0.0 }
 0xeba   : > { %2776 = vadd.xlane.f32.xlu1 %v2775_v1 }
 0xebb   : > { %v2774_v2 = vmul.f32 %v2772_v0, %v2772_v0 }
 0xebd   : > { %v2778_v31 = vsel %vm992_vm3, %v2774_v2, 0.0 }
 0xebe   : > { %2779 = vadd.xlane.f32.xlu0 %v2778_v31 }
 0xecb   : > { %2901 = vrot.lane.b32.xlu1 %v2899_v19, %s16465_s29 }
 0xf47   : > { %v2777_v21 = vpop.xlane.xlu1 %2776 }
 0xf48   : > { %v2781_v22 = vmul.f32 0.03125, %v2777_v21 }
 0xf4a   : > { %v2783_v23 = vadd.f32 1e-05, %v2781_v22  ;;  %v2909_v22 = vrot.slane %v15047_v9, %v14817_v61 }
 0xf4b   : > { %v2780_v24 = vpop.xlane.xlu0 %2779  ;;  %v2902_v11 = vpop.permute.xlu1 %2901 }
 0xf4c   : > { %13841 = vrsqrt.f32 %v2783_v23  ;;  %v2782_v25 = vmul.f32 0.03125, %v2780_v24 }
 0xf4e   : > { %v2784_v28 = vadd.f32 1e-05, %v2782_v25 }
 0xf50   : > { %13843 = vrsqrt.f32 %v2784_v28 }
 0xf56   : > { %v13842_v40 = vpop.eup %13841 }
 0xf57   : > { %v2787_v41 = vmul.f32 %v13842_v40, %v2771_v59 }
 0xf59   : > { %v2793_v44 = vmul.f32 %v2792_v34, %v2787_v41 }
 0xf5a   : > { %v13844_v45 = vpop.eup %13843 }
 0xf5b   : > { %v2788_v33 = vmul.f32 %v13844_v45, %v2772_v0  ;;  %v15060_v46 = vadd.f32 %v12099_v43, %v2793_v44 }
 0xf5d   : > { %v2794_v35 = vmul.f32 %v2792_v34, %v2788_v33  ;;  %12804 = vmatprep.mubr.msk.f32.mxu0 %vm992_vm3, %v15060_v46 }
 0xf5f   : > { %v15064_v38 = vadd.f32 %v12099_v43, %v2794_v35 }
 0xf61   : > { %12805 = vmatmul.mubr.msk.f32.vlgmr.msra.gmra.mrb[14].mxu0 %vm992_vm3, %v15064_v38 }
 0xf62   : > { %12809 = vmatprep.mubr.msk.f32.mxu0 %vm14286_vm4, %v14284_v13 }
0x1034   : > { %v15070_v42 = vpop.f32.mrb[14].mxu0 }
0x1035   : > { %v2905_v47 = vadd.f32 %v15070_v42, %v2902_v11  ;;  %v15073_v39 = vpop.f32.mrb[15].mxu0  ;;  %v15090_v26 = vadd.f32 %v15070_v42, %v2893_v50 }
0x1036   : > { %v2904_v49 = vadd.f32 %v2902_v11, %v15073_v39  ;;  %v15081_v51 = vadd.f32 %v2893_v50, %v15073_v39 }
0x1037   : > { %2997 = vrot.lane.b32.xlu1 %v2905_v47, %s16463_s1  ;;  %v2917_v56 = vmul.f32 %v14764_v36, %v15090_v26  ;;  %v3101_v58 = vmul.f32 %v14767_v37, %v15090_v26 }
0x1038   : > { %2919 = vrot.lane.b32.xlu0 %v2904_v49, %s16463_s1  ;;  %v2916_v53 = vmul.f32 %v14764_v36, %v15081_v51  ;;  %v3100_v54 = vmul.f32 %v14767_v37, %v15081_v51 }
0x10a9   : > { %v15098_v55 = vpop.permute.xlu1 %2997 }
0x10aa   : > { %v15083_v27 = vpop.permute.xlu0 %2919 }
0x10ab   : > { %12808 = vmatpush3.xpose.msk.msra.mxu0 %vm992_vm3, %v15083_v27  ;;  %12818 = vmatpush3.xpose.msk.msra.mxu1 %vm992_vm3, %v15083_v27 }
0x10ac   : > { %12812 = vmatprep.subr.mxu0 %v14284_v13  ;;  %12827 = vmatprep.subr.mxu1 %v14284_v13 }
0x10ae   : > { %12810 = vmatmul.mubr.msk.f32.vlgmr.msra.gmra.mrb[16].mxu0 %vm992_vm3, %v2916_v53  ;;  %12820 = vmatmul.mubr.msk.f32.vlgmr.msra.gmra.mrb[16].mxu1 %vm992_vm3, %v3100_v54 }
0x10af   : > { %12813 = vmatpush3.xpose.msk.msra.mxu0 %vm992_vm3, %v15098_v55  ;;  %12814 = vmatprep.mubr.msk.f32.mxu0 %vm14286_vm4, %v14284_v13 }
0x10b0   : > { %12822 = vmatprep.subr.mxu0 %v14284_v13  ;;  %12829 = vmatprep.mubr.msk.f32.mxu1 %vm14286_vm4, %v14284_v13 }
0x10b2   : > { %12815 = vmatmul.mubr.msk.f32.vlgmr.msra.gmra.mrb[18].mxu0 %vm992_vm3, %v2917_v56 }
0x10b3   : > { %12823 = vmatpush3.xpose.msk.msra.mxu0 %vm992_vm3, %v15098_v55  ;;  %12824 = vmatprep.mubr.msk.f32.mxu0 %vm14286_vm4, %v14284_v13 }
0x10b4   : > { %12832 = vmatprep.subr.mxu0 %v14284_v13 }
0x10b6   : > { %12825 = vmatmul.mubr.msk.f32.vlgmr.msra.gmra.mrb[20].mxu0 %vm992_vm3, %v3101_v58 }
0x10b7   : > { %12834 = vmatprep.mubr.msk.f32.mxu0 %vm14286_vm4, %v14284_v13 }
0x1181   : > { %v2992_v59 = vpop.f32.mrb[16].mxu0  ;;  %v3171_v60 = vpop.f32.mrb[16].mxu1 }
0x1182   : > { %v3248_v62 = vmul.f32 0.35355338, %v3171_v60  ;;  %v12811_v63 = vpop.f32.mrb[17].mxu0  ;;  %v12821_v0 = vpop.f32.mrb[17].mxu1  ;;  %v3074_v18 = vmul.f32 0.35355338, %v2992_v59 }
0x1184   : > { %v3250_v1 = vsel %vm1260_vm9, %v3248_v62, -inf  ;;  %v3076_v21 = vsel %vm1260_vm9, %v3074_v18, -inf }
0x1185   : > { %3251 = vmax.xlane.f32.xlu1 %v3250_v1  ;;  %v3070_v2 = vpop.f32.mrb[18].mxu0 }
0x1186   : > { %v3075_v31 = vmul.f32 0.35355338, %v3070_v2  ;;  %v12816_v3 = vpop.f32.mrb[19].mxu0 }
0x1188   : > { %v3079_v4 = vsel %vm1260_vm9, %v3075_v31, -inf }
0x1189   : > { %3080 = vmax.xlane.f32.xlu1 %v3079_v4  ;;  %v3244_v5 = vpop.f32.mrb[20].mxu0 }
0x118a   : > { %v3249_v6 = vmul.f32 0.35355338, %v3244_v5  ;;  %v12826_v8 = vpop.f32.mrb[21].mxu0 }
0x118c   : > { %v3253_v19 = vsel %vm1260_vm9, %v3249_v6, -inf }
0x118d   : > { %3254 = vmax.xlane.f32.xlu0 %v3253_v19 }
0x1191   : > { %3077 = vmax.xlane.f32.xlu0 %v3076_v21 }
0x11a7   : > { %2911 = vrot.lane.b32.xlu0 %v2909_v22, %s16461_s12 }
0x1212   : > { %v3252_v23 = vpop.xlane.xlu1 %3251 }
0x1213   : > { %v3256_v24 = vsub.f32 %v3248_v62, %v3252_v23 }
0x1215   : > { %v3258_v25 = vmul.f32 1.442695, %v3256_v24 }
0x1216   : > { %v3081_v28 = vpop.xlane.xlu1 %3080 }
0x1217   : > { %13845 = vpow2.f32 %v3258_v25  ;;  %v3083_v40 = vsub.f32 %v3075_v31, %v3081_v28  ;;  %v3582_v25 = vmul.f32 %v14857_v52, %v15081_v51 }
0x1219   : > { %v3086_v45 = vmul.f32 1.442695, %v3083_v40  ;;  %v3583_v40 = vmul.f32 %v14857_v52, %v15090_v26 }
0x121a   : > { %v3255_v34 = vpop.xlane.xlu0 %3254 }
0x121b   : > { %v3257_v33 = vsub.f32 %v3249_v6, %v3255_v34 }
0x121d   : > { %v3260_v50 = vmul.f32 1.442695, %v3257_v33 }
0x121e   : > { %v3078_v41 = vpop.xlane.xlu0 %3077 }
0x121f   : > { %v3082_v43 = vsub.f32 %v3074_v18, %v3078_v41 }
0x1221   : > { %v13846_v44 = vpop.eup %13845  ;;  %v3084_v35 = vmul.f32 1.442695, %v3082_v43 }
0x1222   : > { %v2912_v11 = vpop.permute.xlu0 %2911  ;;  %v3262_v47 = vsel %vm1260_vm9, %v13846_v44, 0.0 }
0x1223   : > { %13847 = vpow2.f32 %v3084_v35  ;;  %v15131_v49 = vadd.f32 %v15070_v42, %v2912_v11  ;;  %3263 = vadd.xlane.f32.xlu1 %v3262_v47  ;;  %v15134_v53 = vadd.f32 %v2912_v11, %v15073_v39 }
0x1224   : > { %13849 = vpow2.f32 %v3086_v45 }
0x1225   : > { %v3273_v54 = vmul.f32 %v15131_v49, %v14822_v7  ;;  %13851 = vpow2.f32 %v3260_v50  ;;  %v3098_v56 = vmul.f32 %v15134_v53, %v14830_v20  ;;  %v3099_v42 = vmul.f32 %v15131_v49, %v14830_v20 }
0x1226   : > { %v3272_v0 = vmul.f32 %v15134_v53, %v14822_v7  ;;  %v3754_v50 = vmul.f32 %v15134_v53, %v14889_v14 }
0x1227   : > { %3352 = vrot.lane.b32.xlu0 %v3273_v54, %s16461_s12 }
0x122b   : > { %3429 = vrot.lane.b32.xlu0 %v3098_v56, %s16461_s12 }
0x122d   : > { %v13848_v58 = vpop.eup %13847 }
0x122e   : > { %v3088_v59 = vsel %vm1260_vm9, %v13848_v58, 0.0  ;;  %v13850_v60 = vpop.eup %13849 }
0x122f   : > { %3089 = vadd.xlane.f32.xlu1 %v3088_v59  ;;  %3506 = vrot.lane.b32.xlu0 %v3099_v42, %s16461_s12  ;;  %v3091_v39 = vsel %vm1260_vm9, %v13850_v60, 0.0  ;;  %v13852_v62 = vpop.eup %13851 }
0x1230   : > { %v3265_v63 = vsel %vm1260_vm9, %v13852_v62, 0.0 }
0x1233   : > { %3092 = vadd.xlane.f32.xlu1 %v3091_v39 }
0x1237   : > { %3266 = vadd.xlane.f32.xlu1 %v3265_v63 }
0x1248   : > { %3275 = vrot.lane.b32.xlu1 %v3272_v0, %s16461_s12 }
0x1299   : > { %v3353_v1 = vpop.permute.xlu0 %3352 }
0x129a   : > { %12833 = vmatpush3.msra.mxu0 %v3353_v1 }
0x129b   : > { %12842 = vmatprep.subr.mxu0 %v14284_v13 }
0x129d   : > { %v3430_v18 = vpop.permute.xlu0 %3429 }
0x12a1   : > { %v3507_v24 = vpop.permute.xlu0 %3506 }
0x12b0   : > { %v3264_v2 = vpop.xlane.xlu1 %3263 }
0x12b1   : > { %13853 = vrcp.f32 %v3264_v2  ;;  %v3755_v2 = vmul.f32 %v15131_v49, %v14889_v14 }
0x12bb   : > { %v13854_v5 = vpop.eup %13853 }
0x12bc   : > { %v3090_v31 = vpop.xlane.xlu1 %3089  ;;  %v3270_v8 = vmul.f32 %v13854_v5, %v13846_v44 }
0x12bd   : > { %13855 = vrcp.f32 %v3090_v31 }
0x12c0   : > { %v3093_v3 = vpop.xlane.xlu1 %3092 }
0x12c4   : > { %v3267_v4 = vpop.xlane.xlu1 %3266 }
0x12c5   : > { %13857 = vrcp.f32 %v3267_v4 }
0x12c6   : > { %13859 = vrcp.f32 %v3093_v3 }
0x12c7   : > { %v13856_v19 = vpop.eup %13855 }
0x12c8   : > { %v3276_v6 = vpop.permute.xlu1 %3275  ;;  %v3096_v23 = vmul.f32 %v13856_v19, %v13848_v58 }
0x12c9   : > { %12828 = vmatpush3.msra.mxu1 %v3276_v6 }
0x12ca   : > { %12830 = vmatmul.mubr.msk.f32.vlgmr.msra.gmra.mrb[18].mxu1 %vm1260_vm9, %v3270_v8  ;;  %12837 = vmatprep.subr.mxu1 %v14284_v13  ;;  %v3912_v8 = vmul.f32 %v14907_v29, %v15081_v51  ;;  %v3913_v51 = vmul.f32 %v14907_v29, %v15090_v26 }
0x12cb   : > { %12838 = vmatpush3.msra.mxu1 %v3430_v18  ;;  %12839 = vmatprep.mubr.msk.f32.mxu1 %vm14286_vm4, %v14284_v13 }
0x12cc   : > { %12847 = vmatprep.subr.mxu1 %v14284_v13 }
0x12cf   : > { %v13858_v21 = vpop.eup %13857 }
0x12d0   : > { %v3271_v22 = vmul.f32 %v13858_v21, %v13852_v62  ;;  %v13860_v28 = vpop.eup %13859 }
0x12d1   : > { %v3097_v34 = vmul.f32 %v13860_v28, %v13850_v60 }
0x12d2   : > { %12835 = vmatmul.mubr.msk.f32.vlgmr.msra.gmra.mrb[22].mxu0 %vm1260_vm9, %v3271_v22  ;;  %12840 = vmatmul.mubr.msk.f32.vlgmr.msra.gmra.mrb[18].mxu1 %vm1260_vm9, %v3096_v23 }
0x12d3   : > { %12843 = vmatpush3.msra.mxu0 %v3507_v24  ;;  %12848 = vmatpush3.xpose.msk.msra.mxu1 %vm992_vm3, %v15083_v27 }
0x12d4   : > { %12849 = vmatprep.mubr.msk.f32.mxu1 %vm14286_vm4, %v14284_v13  ;;  %12844 = vmatprep.mubr.msk.f32.mxu0 %vm14286_vm4, %v14284_v13 }
0x12d5   : > { %12852 = vmatprep.subr.mxu0 %v14284_v13  ;;  %12857 = vmatprep.subr.mxu1 %v14284_v13 }
0x12d6   : > { %12850 = vmatmul.mubr.msk.f32.vlgmr.msra.gmra.mrb[20].mxu1 %vm992_vm3, %v3582_v25 }
0x12d7   : > { %12859 = vmatprep.mubr.msk.f32.mxu1 %vm14286_vm4, %v14284_v13 }
0x12da   : > { %12845 = vmatmul.mubr.msk.f32.vlgmr.msra.gmra.mrb[22].mxu0 %vm1260_vm9, %v3097_v34 }
0x12db   : > { %12853 = vmatpush3.xpose.msk.msra.mxu0 %vm992_vm3, %v15098_v55  ;;  %12854 = vmatprep.mubr.msk.f32.mxu0 %vm14286_vm4, %v14284_v13 }
0x12dc   : > { %12862 = vmatprep.subr.mxu0 %v14284_v13 }
0x12de   : > { %12855 = vmatmul.mubr.msk.f32.vlgmr.msra.gmra.mrb[24].mxu0 %vm992_vm3, %v3583_v40 }
0x12df   : > { %12864 = vmatprep.mubr.msk.f32.mxu0 %vm14286_vm4, %v14284_v13 }
0x13a9   : > { %v3653_v41 = vpop.f32.mrb[20].mxu1 }
0x13aa   : > { %v3730_v43 = vmul.f32 0.35355338, %v3653_v41  ;;  %v12851_v44 = vpop.f32.mrb[21].mxu1 }
0x13ac   : > { %v3732_v45 = vsel %vm1260_vm9, %v3730_v43, -inf }
0x13ad   : > { %3733 = vmax.xlane.f32.xlu0 %v3732_v45 }
0x13b1   : > { %v3726_v33 = vpop.f32.mrb[24].mxu0 }
0x13b2   : > { %v3731_v35 = vmul.f32 0.35355338, %v3726_v33  ;;  %v12856_v11 = vpop.f32.mrb[25].mxu0 }
0x13b4   : > { %v3735_v47 = vsel %vm1260_vm9, %v3731_v35, -inf }
0x13b5   : > { %3736 = vmax.xlane.f32.xlu1 %v3735_v47  ;;  %v4084_v47 = vmul.f32 %v15134_v53, %v14932_v57 }
0x13c6   : > { %3757 = vrot.lane.b32.xlu1 %v3754_v50, %s16461_s12  ;;  %v4085_v50 = vmul.f32 %v15131_v49, %v14932_v57  ;;  %v12132_v49 = vld [vmem:[%s16423_s9 + $0x20] sm:$0xff] }
0x143a   : > { %v3734_v54 = vpop.xlane.xlu0 %3733 }
0x143b   : > { %v3738_v56 = vsub.f32 %v3730_v43, %v3734_v54 }
0x143d   : > { %v3740_v58 = vmul.f32 1.442695, %v3738_v56 }
0x143f   : > { %13861 = vpow2.f32 %v3740_v58 }
0x1442   : > { %v3737_v42 = vpop.xlane.xlu1 %3736 }
0x1443   : > { %v3739_v59 = vsub.f32 %v3731_v35, %v3737_v42 }
0x1445   : > { %v3742_v60 = vmul.f32 1.442695, %v3739_v59 }
0x1446   : > { %v3758_v39 = vpop.permute.xlu1 %3757 }
0x1447   : > { %13863 = vpow2.f32 %v3742_v60  ;;  %12858 = vmatpush3.msra.mxu1 %v3758_v39 }
0x1448   : > { %12867 = vmatprep.subr.mxu1 %v14284_v13 }
0x1449   : > { %v13862_v62 = vpop.eup %13861 }
0x144a   : > { %v3744_v63 = vsel %vm1260_vm9, %v13862_v62, 0.0 }
0x144b   : > { %3745 = vadd.xlane.f32.xlu0 %v3744_v63 }
0x1451   : > { %v13864_v0 = vpop.eup %13863 }
0x1452   : > { %v3747_v1 = vsel %vm1260_vm9, %v13864_v0, 0.0 }
0x1453   : > { %3748 = vadd.xlane.f32.xlu0 %v3747_v1  ;;  %v12135_v1 = vld [vmem:[%s16423_s9 + $0x38] sm:$0xff] }
0x1469   : > { %3834 = vrot.lane.b32.xlu0 %v3755_v2, %s16461_s12 }
0x14d8   : > { %v3746_v31 = vpop.xlane.xlu0 %3745 }
0x14d9   : > { %13865 = vrcp.f32 %v3746_v31 }
0x14e0   : > { %v3749_v3 = vpop.xlane.xlu0 %3748 }
0x14e1   : > { %13867 = vrcp.f32 %v3749_v3 }
0x14e3   : > { %v13866_v4 = vpop.eup %13865 }
0x14e4   : > { %v3835_v5 = vpop.permute.xlu0 %3834  ;;  %v3752_v6 = vmul.f32 %v13866_v4, %v13862_v62  ;;  %v12133_v62 = vld [vmem:[%s16423_s9 + $0x28] sm:$0xff] }
0x14e5   : > { %12863 = vmatpush3.msra.mxu0 %v3835_v5  ;;  %v13482_v63 = vpack.c.bf16 %v12133_v62, %v12132_v49 }
0x14e6   : > { %12860 = vmatmul.mubr.msk.f32.vlgmr.msra.gmra.mrb[18].mxu1 %vm1260_vm9, %v3752_v6  ;;  %12872 = vmatprep.subr.mxu0 %v14284_v13  ;;  %v4250_v6 = vrot.slane %v15047_v9, %v14959_v30 }
0x14e7   : > { %12868 = vmatpush3.xpose.msk.msra.mxu1 %vm992_vm3, %v15083_v27  ;;  %12869 = vmatprep.mubr.msk.f32.mxu1 %vm14286_vm4, %v14284_v13 }
0x14e8   : > { %12877 = vmatprep.subr.mxu1 %v14284_v13 }
0x14ea   : > { %12870 = vmatmul.mubr.msk.f32.vlgmr.msra.gmra.mrb[22].mxu1 %vm992_vm3, %v3912_v8 }
0x14eb   : > { %v13868_v18 = vpop.eup %13867  ;;  %12879 = vmatprep.mubr.msk.f32.mxu1 %vm14286_vm4, %v14284_v13 }
0x14ec   : > { %v3753_v19 = vmul.f32 %v13868_v18, %v13864_v0  ;;  %v12134_v0 = vld [vmem:[%s16423_s9 + $0x30] sm:$0xff] }
0x14ed   : > { %v13486_v2 = vpack.c.bf16 %v12135_v1, %v12134_v0 }
0x14ee   : > { %12865 = vmatmul.mubr.msk.f32.vlgmr.msra.gmra.mrb[22].mxu0 %vm1260_vm9, %v3753_v19 }
0x14ef   : > { %12873 = vmatpush3.xpose.msk.msra.mxu0 %vm992_vm3, %v15098_v55  ;;  %12874 = vmatprep.mubr.msk.f32.mxu0 %vm14286_vm4, %v14284_v13 }
0x14f0   : > { %12882 = vmatprep.subr.mxu0 %v14284_v13 }
0x14f2   : > { %12875 = vmatmul.mubr.msk.f32.vlgmr.msra.gmra.mrb[26].mxu0 %vm992_vm3, %v3913_v51 }
0x14f3   : > { %12884 = vmatprep.mubr.msk.f32.mxu0 %vm14286_vm4, %v14284_v13 }
0x15bd   : > { %v3983_v27 = vpop.f32.mrb[22].mxu1 }
0x15be   : > { %v4060_v21 = vmul.f32 0.35355338, %v3983_v27  ;;  %v12871_v22 = vpop.f32.mrb[23].mxu1 }
0x15c0   : > { %v4062_v23 = vsel %vm1260_vm9, %v4060_v21, -inf }
0x15c1   : > { %4063 = vmax.xlane.f32.xlu1 %v4062_v23 }
0x15c5   : > { %v4056_v55 = vpop.f32.mrb[26].mxu0 }
0x15c6   : > { %v4061_v24 = vmul.f32 0.35355338, %v4056_v55  ;;  %v12876_v25 = vpop.f32.mrb[27].mxu0 }
0x15c8   : > { %v4065_v28 = vsel %vm1260_vm9, %v4061_v24, -inf }
0x15c9   : > { %4066 = vmax.xlane.f32.xlu0 %v4065_v28 }
0x164e   : > { %v4064_v26 = vpop.xlane.xlu1 %4063 }
0x164f   : > { %v4068_v34 = vsub.f32 %v4060_v21, %v4064_v26 }
0x1651   : > { %v4070_v40 = vmul.f32 1.442695, %v4068_v34 }
0x1653   : > { %13869 = vpow2.f32 %v4070_v40 }
0x1656   : > { %v4067_v41 = vpop.xlane.xlu0 %4066 }
0x1657   : > { %v4069_v43 = vsub.f32 %v4061_v24, %v4067_v41 }
0x1659   : > { %v4072_v44 = vmul.f32 1.442695, %v4069_v43 }
0x165b   : > { %13871 = vpow2.f32 %v4072_v44  ;;  %v12139_v44 = vld [vmem:[%s16508_s6 + $0x28] sm:$0xff] }
0x165d   : > { %v13870_v45 = vpop.eup %13869 }
0x165e   : > { %v4074_v33 = vsel %vm1260_vm9, %v13870_v45, 0.0 }
0x165f   : > { %4075 = vadd.xlane.f32.xlu1 %v4074_v33  ;;  %v12140_v33 = vld [vmem:[%s16508_s6 + $0x30] sm:$0xff] }
0x1665   : > { %v13872_v35 = vpop.eup %13871 }
0x1666   : > { %v4077_v11 = vsel %vm1260_vm9, %v13872_v35, 0.0 }
0x1667   : > { %4078 = vadd.xlane.f32.xlu0 %v4077_v11 }
0x1670   : > { %4087 = vrot.lane.b32.xlu1 %v4084_v47, %s16461_s12  ;;  %v12145_v47 = vld [vmem:[%s16509_s27 + $0x40] sm:$0xff] }
0x167d   : > { %4164 = vrot.lane.b32.xlu0 %v4085_v50, %s16461_s12  ;;  %v12146_v50 = vld [vmem:[%s16509_s27 + $0x48] sm:$0xff] }
0x16ec   : > { %v4076_v54 = vpop.xlane.xlu1 %4075 }
0x16ed   : > { %13873 = vrcp.f32 %v4076_v54  ;;  %v12147_v54 = vld [vmem:[%s16509_s27 + $0x50] sm:$0xff] }
0x16f0   : > { %v4088_v56 = vpop.permute.xlu1 %4087 }
0x16f1   : > { %12878 = vmatpush3.msra.mxu1 %v4088_v56  ;;  %v13498_v56 = vpack.c.bf16 %v12146_v50, %v12145_v47 }
0x16f2   : > { %13483 = vmatprep.subr.bf16.mxu1 %v13482_v63 }
0x16f4   : > { %v4079_v58 = vpop.xlane.xlu0 %4078 }
0x16f5   : > { %13875 = vrcp.f32 %v4079_v58  ;;  %v12148_v58 = vld [vmem:[%s16509_s27 + $0x58] sm:$0xff] }
0x16f7   : > { %v13874_v42 = vpop.eup %13873 }
0x16f8   : > { %v4165_v59 = vpop.permute.xlu0 %4164  ;;  %v4082_v60 = vmul.f32 %v13874_v42, %v13870_v45  ;;  %v13502_v42 = vpack.c.bf16 %v12148_v58, %v12147_v54 }
0x16f9   : > { %12883 = vmatpush3.msra.mxu0 %v4165_v59  ;;  %v12149_v59 = vld [vmem:[%s16509_s27 + $0x60] sm:$0xff] }
0x16fa   : > { %12880 = vmatmul.mubr.msk.f32.vlgmr.msra.gmra.mrb[18].mxu1 %vm1260_vm9, %v4082_v60  ;;  %v12150_v60 = vld [vmem:[%s16509_s27 + $0x68] sm:$0xff] }
0x16fb   : > { %13485 = vmatpush3.bf16.msra.mxu1 %v13482_v63 }
0x16fc   : > { %13487 = vmatprep.subr.bf16.mxu1 %v13486_v2 }
0x16ff   : > { %v13876_v53 = vpop.eup %13875  ;;  %13489 = vmatpush3.bf16.msra.mxu1 %v13486_v2  ;;  %v4363_v2 = vrot.slane %v15047_v9, %v15000_v16 }
0x1700   : > { %v4083_v39 = vmul.f32 %v13876_v53, %v13872_v35  ;;  %v12141_v35 = vld [vmem:[%s16508_s6 + $0x38] sm:$0xff]  ;;  %13499 = vmatprep.subr.bf16.mxu1 %v13498_v56  ;;  %v13506_v53 = vpack.c.bf16 %v12150_v60, %v12149_v59  ;;  %v12158_v59 = vld [vmem:[%s16514_s17] ss:$0 sm:$0xff]  ;;  %v12159_v60 = vld [vmem:[%s16515_s23 + $0x1] ss:$0 sm:$0xff] }
0x1701   : > { %v13494_v11 = vpack.c.bf16 %v12141_v35, %v12140_v33  ;;  %v14025_v35 = vld [vmem:[%s16507_s22] sm:$0xff] }
0x1702   : > { %12885 = vmatmul.mubr.msk.f32.vlgmr.msra.gmra.mrb[22].mxu0 %vm1260_vm9, %v4083_v39 }
0x17cd   : > { %v4159_v31 = vpop.f32.mrb[18].mxu1 }
0x17ce   : > { %v12881_v3 = vpop.f32.mrb[19].mxu1  ;;  %12895 = vmatprep.mubr.msk.f32.mxu1 %vm992_vm3, %v4159_v31 }
0x17d5   : > { %v4236_v4 = vpop.f32.mrb[22].mxu0 }
0x17d6   : > { %v12886_v5 = vpop.f32.mrb[23].mxu0  ;;  %12896 = vmatmul.mubr.msk.f32.vlgmr.msra.gmra.mrb[24].mxu1 %vm992_vm3, %v4236_v4 }
0x17d7   : > { %13501 = vmatpush3.bf16.msra.mxu1 %v13498_v56 }
0x17d8   : > { %13503 = vmatprep.subr.bf16.mxu1 %v13502_v42 }
0x17db   : > { %13505 = vmatpush3.bf16.msra.mxu1 %v13502_v42 }
0x17dc   : > { %13507 = vmatprep.subr.bf16.mxu1 %v13506_v53 }
0x17df   : > { %13509 = vmatpush3.bf16.msra.mxu1 %v13506_v53 }
0x18a9   : > { %v12897_v8 = vpop.f32.mrb[24].mxu1 }
0x18aa   : > { %v4329_v18 = vadd.f32 %v12897_v8, %v4250_v6  ;;  %v4323_v19 = vpop.f32.mrb[25].mxu1 }
0x18ab   : > { %v4324_v51 = vadd.f32 %v4323_v19, %v4250_v6  ;;  %v4369_v6 = vrot.slane %v15047_v9, %v15003_v17 }
0x18ac   : > { %v4333_v27 = vadd.f32 %v4329_v18, %v15064_v38 }
0x18ad   : > { %v4332_v21 = vadd.f32 %v4324_v51, %v15060_v46  ;;  %v12138_v46 = vld [vmem:[%s16508_s6 + $0x20] sm:$0xff]  ;;  %s16528_s6 = sld [smem:[#allocation35_spill]] }
0x18ae   : > { %v4337_v22 = vsel %vm992_vm3, %v4333_v27, 0.0  ;;  %v13490_v45 = vpack.c.bf16 %v12139_v44, %v12138_v46  ;;  %v12142_v46 = vld [vmem:[#allocation7 + $0x1] ss:$0 sm:$0xff] }
0x18af   : > { %4338 = vadd.xlane.f32.xlu0 %v4337_v22  ;;  %v4334_v23 = vsel %vm992_vm3, %v4332_v21, 0.0  ;;  %v12151_v22 = vld [vmem:[%s16509_s27 + $0x70] sm:$0xff] }
0x18b0   : > { %4335 = vadd.xlane.f32.xlu1 %v4334_v23  ;;  %13491 = vmatprep.subr.bf16.mxu0 %v13490_v45  ;;  %v12152_v23 = vld [vmem:[%s16509_s27 + $0x78] sm:$0xff] }
0x18b1   : > { %13493 = vmatpush3.bf16.msra.mxu0 %v13490_v45 }
0x18b2   : > { %13495 = vmatprep.subr.bf16.mxu0 %v13494_v11 }
0x18b5   : > { %13497 = vmatpush3.bf16.msra.mxu0 %v13494_v11  ;;  %v4608_v11 = vrot.slane %v14025_v35, %v14716_v12 }
0x18b6   : > { %12928 = vmatprep.subr.mxu0 %v14284_v13 }
0x193c   : > { %v4339_v55 = vpop.xlane.xlu0 %4338 }
0x193d   : > { %v4341_v24 = vmul.f32 0.03125, %v4339_v55  ;;  %v4336_v25 = vpop.xlane.xlu1 %4335  ;;  %v13510_v55 = vpack.c.bf16 %v12152_v23, %v12151_v22 }
0x193e   : > { %v4340_v28 = vmul.f32 0.03125, %v4336_v25  ;;  %v4711_v25 = vld [vmem:[%s16511_s10 + $0x8] sm:$0xff] }
0x193f   : > { %v4343_v26 = vsub.f32 %v4333_v27, %v4341_v24  ;;  %v4604_v27 = vld [vmem:[#allocation6] sm:$0x3]  ;;  %13511 = vmatprep.subr.bf16.mxu1 %v13510_v55  ;;  %v4710_v24 = vld [vmem:[%s16510_s4] sm:$0xff]  ;;  %s16517_s4 = sld [smem:[#allocation32_spill]] }
0x1940   : > { %v4342_v34 = vsub.f32 %v4332_v21, %v4340_v28  ;;  %v13804_v21 = vld [vmem:[%s14690_s14] sm:$0xff]   ;;  %13513 = vmatpush3.bf16.msra.mxu1 %v13510_v55  ;;  %v13515_v28 = vpack.c.bf16 %v4711_v25, %v4710_v24 }
0x1941   : > { %v4345_v40 = vmul.f32 %v4343_v26, %v4343_v26  ;;  %12949 = vmatprep.subr.mxu1 %v14284_v13 }
0x1942   : > { %v4344_v41 = vmul.f32 %v4342_v34, %v4342_v34 }
0x1943   : > { %v4349_v43 = vsel %vm992_vm3, %v4345_v40, 0.0  ;;  %v4713_v40 = vld [vmem:[%s16511_s10 + $0x18] sm:$0xff] }
0x1944   : > { %4350 = vadd.xlane.f32.xlu0 %v4349_v43  ;;  %v4346_v38 = vsel %vm992_vm3, %v4344_v41, 0.0  ;;  %v15323_v43 = vld [vmem:[%s16512_s25] sm:$0xff]  ;;  %s16522_s25 = sld [smem:[#allocation33_spill]] }
0x1945   : > { %4347 = vadd.xlane.f32.xlu1 %v4346_v38  ;;  %v4800_v38 = vrot.slane %v15323_v43, %v14716_v12  ;;  %s16518_s0 = smov %s16517_s4 }
0x194a   : > { %s16523_s17 = smov %s16522_s25 }
0x1956   : > { %4802 = vrot.lane.b32.xlu1 %v4800_v38, %s16465_s29 }
0x19d1   : > { %v4351_v39 = vpop.xlane.xlu0 %4350 }
0x19d2   : > { %v4353_v49 = vmul.f32 0.03125, %v4351_v39  ;;  %v4348_v62 = vpop.xlane.xlu1 %4347 }
0x19d3   : > { %v4352_v63 = vmul.f32 0.03125, %v4348_v62 }
0x19d4   : > { %v4355_v0 = vadd.f32 1e-05, %v4353_v49 }
0x19d5   : > { %v4354_v1 = vadd.f32 1e-05, %v4352_v63  ;;  %v15352_v63 = vrot.slane %v15047_v9, %v15023_v48  ;;  %v4792_v9 = vrot.slane %v15323_v43, %v14724_v15 }
0x19d6   : > { %13877 = vrsqrt.f32 %v4355_v0 }
0x19d7   : > { %13879 = vrsqrt.f32 %v4354_v1 }
0x19e0   : > { %v13878_v31 = vpop.eup %13877 }
0x19e1   : > { %v13880_v3 = vpop.eup %13879  ;;  %v4359_v4 = vmul.f32 %v13878_v31, %v4343_v26  ;;  %v14289_v26 = vmov 0.0|0.0   ;;  %v4803_v31 = vpop.permute.xlu1 %4802 }
0x19e2   : > { %v4358_v5 = vmul.f32 %v13880_v3, %v4342_v34  ;;  %v4712_v34 = vld [vmem:[%s16511_s10 + $0x10] sm:$0xff] }
0x19e3   : > { %v4365_v8 = vmul.f32 %v4363_v2, %v4359_v4  ;;  %v13518_v41 = vpack.c.bf16 %v4713_v40, %v4712_v34 }
0x19e4   : > { %v4364_v18 = vmul.f32 %v4363_v2, %v4358_v5 }
0x19e5   : > { %v15288_v51 = vadd.f32 %v4369_v6, %v4365_v8 }
0x19e6   : > { %v15286_v19 = vadd.f32 %v4369_v6, %v4364_v18 }
0x19e8   : > { %12906 = vmatprep.mubr.msk.f32.mxu0 %vm992_vm3, %v15286_v19 }
0x19e9   : > { %12907 = vmatmul.mubr.msk.f32.vlgmr.msra.gmra.mrb[28].mxu0 %vm992_vm3, %v15288_v51 }
0x19ea   : > { %12929 = vmatpush3.msk.msra.mxu0 %vm4615_vm5, %v4604_v27  ;;  %12930 = vmatprep.mubr.msk.f32.mxu0 %vm14286_vm4, %v14284_v13 }
0x19eb   : > { %13514 = vmatprep.subr.bf16.mxu0 %v14289_v26 }
0x19ed   : > { %12931 = vmatmul.mubr.msk.f32.vlgmr.msra.gmra.mrb[30].mxu0 %vm4612_vm6, %v13804_v21 }
0x19ee   : > { %12941 = vmatprep.mubr.msk.f32.mxu0 %vm14286_vm4, %v14284_v13  ;;  %13516 = vmatpush3.bf16.msra.mxu0 %v13515_v28 }
0x19ef   : > { %13517 = vmatprep.subr.bf16.mxu0 %v14289_v26 }
0x19f2   : > { %13519 = vmatpush3.bf16.msra.mxu0 %v13518_v41 }
0x19f3   : > { %12944 = vmatprep.subr.mxu0 %v14284_v13 }
0x1abc   : > { %v12908_v44 = vpop.f32.mrb[28].mxu0 }
0x1abd   : > { %v4463_v45 = vadd.f32 %v12908_v44, %v12142_v46  ;;  %v4457_v33 = vpop.f32.mrb[29].mxu0 }
0x1abe   : > { %v4458_v47 = vadd.f32 %v12142_v46, %v4457_v33 }
0x1abf   : > { %v4467_v56 = vmax.f32 %v4463_v45, 0.0 }
0x1ac0   : > { %v4466_v50 = vmax.f32 %v4458_v47, 0.0  ;;  %v4685_v54 = vpop.f32.mrb[30].mxu0 }
0x1ac1   : > { %v4686_v58 = vadd.f32 %v4685_v54, %v4608_v11  ;;  %v12932_v42 = vpop.f32.mrb[31].mxu0 }
0x1ac2   : > { %12925 = vmatprep.mubr.msk.f32.mxu1 %vm2679_vm2, %v4466_v50 }
0x1ac3   : > { %v4690_v53 = vcombine.high %v4686_v58, %v4686_v58  ;;  %12926 = vmatmul.mubr.msk.f32.vlgmr.msra.gmra.mrb[26].mxu1 %vm2679_vm2, %v4467_v56  ;;  %v15341_v39 = vadd.f32 %v12158_v59, %v4686_v58  ;;  %v4811_v58 = vrot.slane %v15323_v43, %v14817_v61 }
0x1ac4   : > { %12951 = vmatprep.mubr.msk.f32.mxu1 %vm14286_vm4, %v14284_v13 }
0x1ac5   : > { %v15343_v49 = vadd.f32 %v12159_v60, %v4690_v53 }
0x1ac7   : > { %v4716_v62 = vcombine.low %v15341_v39, %v15343_v49 }
0x1ac9   : > { %12942 = vmatmul.mubr.msk.f32.vlgmr.msra.gmra.mrb[32].mxu0 %vm992_vm3, %v4716_v62 }
0x1aca   : > { %12946 = vmatprep.mubr.msk.f32.mxu0 %vm14286_vm4, %v14284_v13 }
0x1b96   : > { %v12927_v0 = vpop.f32.mrb[26].mxu1 }
0x1b97   : > { %v15355_v1 = vadd.f32 %v12927_v0, %v15352_v63  ;;  %v15357_v2 = vpop.f32.mrb[27].mxu1 }
0x1b9c   : > { %v15359_v3 = vpop.f32.mrb[32].mxu0 }
0x1b9d   : > { %v4805_v4 = vadd.f32 %v4803_v31, %v15359_v3  ;;  %v12943_v5 = vpop.f32.mrb[33].mxu0  ;;  %v15367_v8 = vadd.f32 %v4792_v9, %v15359_v3 }
0x1b9f   : > { %4822 = vrot.lane.b32.xlu0 %v4805_v4, %s16463_s1  ;;  %v4807_v6 = vcombine.high %v4805_v4, %v4805_v4  ;;  %v15371_v18 = vcombine.high %v15367_v8, %v15367_v8  ;;  %v4820_v22 = vmul.f32 %v14764_v36, %v15367_v8  ;;  %v5003_v55 = vmul.f32 %v14767_v37, %v15367_v8 }
0x1ba1   : > { %4899 = vrot.lane.b32.xlu1 %v4807_v6, %s16463_s1  ;;  %v4821_v23 = vmul.f32 %v14764_v36, %v15371_v18  ;;  %v5004_v24 = vmul.f32 %v14767_v37, %v15371_v18  ;;  %s16519_s1 = sld [smem:[#allocation31_spill]] }
0x1c11   : > { %v15373_v27 = vpop.permute.xlu0 %4822 }
0x1c12   : > { %12945 = vmatpush3.xpose.msk.msra.mxu0 %vm992_vm3, %v15373_v27 }
0x1c13   : > { %v15377_v21 = vpop.permute.xlu1 %4899  ;;  %12954 = vmatprep.subr.mxu0 %v14284_v13 }
0x1c14   : > { %12950 = vmatpush3.xpose.msk.msra.mxu1 %vm992_vm3, %v15377_v21 }
0x1c15   : > { %12947 = vmatmul.mubr.msk.f32.vlgmr.msra.gmra.mrb[34].mxu0 %vm992_vm3, %v4820_v22  ;;  %12959 = vmatprep.subr.mxu1 %v14284_v13 }
0x1c16   : > { %12955 = vmatpush3.xpose.msk.msra.mxu0 %vm992_vm3, %v15373_v27  ;;  %12956 = vmatprep.mubr.msk.f32.mxu0 %vm14286_vm4, %v14284_v13 }
0x1c17   : > { %12952 = vmatmul.mubr.msk.f32.vlgmr.msra.gmra.mrb[28].mxu1 %vm992_vm3, %v4821_v23  ;;  %12964 = vmatprep.subr.mxu0 %v14284_v13 }
0x1c18   : > { %12960 = vmatpush3.xpose.msk.msra.mxu1 %vm992_vm3, %v15377_v21  ;;  %12961 = vmatprep.mubr.msk.f32.mxu1 %vm14286_vm4, %v14284_v13 }
0x1c19   : > { %12957 = vmatmul.mubr.msk.f32.vlgmr.msra.gmra.mrb[36].mxu0 %vm992_vm3, %v5003_v55  ;;  %12969 = vmatprep.subr.mxu1 %v14284_v13 }
0x1c1a   : > { %12966 = vmatprep.mubr.msk.f32.mxu0 %vm14286_vm4, %v14284_v13 }
0x1c1b   : > { %12962 = vmatmul.mubr.msk.f32.vlgmr.msra.gmra.mrb[30].mxu1 %vm992_vm3, %v5004_v24 }
0x1c1c   : > { %12971 = vmatprep.mubr.msk.f32.mxu1 %vm14286_vm4, %v14284_v13 }
0x1ce8   : > { %v4895_v25 = vpop.f32.mrb[34].mxu0 }
0x1ce9   : > { %v12948_v28 = vpop.f32.mrb[35].mxu0  ;;  %v4976_v47 = vmul.f32 0.35355338, %v4895_v25 }
0x1cea   : > { %v4972_v34 = vpop.f32.mrb[28].mxu1 }
0x1ceb   : > { %v12953_v40 = vpop.f32.mrb[29].mxu1  ;;  %v4977_v45 = vmul.f32 0.35355338, %v4972_v34  ;;  %v4979_v56 = vsel %vm4978_vm7, %v4976_v47, -inf }
0x1cec   : > { %v5074_v41 = vpop.f32.mrb[36].mxu0 }
0x1ced   : > { %v5151_v38 = vmul.f32 0.35355338, %v5074_v41  ;;  %v12958_v46 = vpop.f32.mrb[37].mxu0  ;;  %v4982_v54 = vsel %vm4978_vm7, %v4977_v45, -inf }
0x1cee   : > { %v5147_v44 = vpop.f32.mrb[30].mxu1 }
0x1cef   : > { %v5152_v33 = vmul.f32 0.35355338, %v5147_v44  ;;  %v12963_v35 = vpop.f32.mrb[31].mxu1  ;;  %v5153_v11 = vsel %vm4978_vm7, %v5151_v38, -inf }
0x1cf0   : > { %5154 = vmax.xlane.f32.xlu1 %v5153_v11 }
0x1cf1   : > { %v5156_v50 = vsel %vm4978_vm7, %v5152_v33, -inf }
0x1cf2   : > { %5157 = vmax.xlane.f32.xlu0 %v5156_v50 }
0x1cf4   : > { %4983 = vmax.xlane.f32.xlu1 %v4982_v54 }
0x1cf6   : > { %4980 = vmax.xlane.f32.xlu0 %v4979_v56 }
0x1d0c   : > { %4813 = vrot.lane.b32.xlu0 %v4811_v58, %s16461_s12 }
0x1d7d   : > { %v5155_v42 = vpop.xlane.xlu1 %5154 }
0x1d7e   : > { %v5159_v31 = vsub.f32 %v5151_v38, %v5155_v42 }
0x1d7f   : > { %v5158_v59 = vpop.xlane.xlu0 %5157 }
0x1d80   : > { %v5161_v22 = vmul.f32 1.442695, %v5159_v31  ;;  %v5160_v23 = vsub.f32 %v5152_v33, %v5158_v59 }
0x1d81   : > { %v4984_v60 = vpop.xlane.xlu1 %4983 }
0x1d82   : > { %v4986_v53 = vsub.f32 %v4977_v45, %v4984_v60  ;;  %v5163_v25 = vmul.f32 1.442695, %v5160_v23  ;;  %v5490_v23 = vmul.f32 %v14857_v52, %v15371_v18 }
0x1d83   : > { %v4981_v62 = vpop.xlane.xlu0 %4980 }
0x1d84   : > { %v4985_v0 = vsub.f32 %v4976_v47, %v4981_v62  ;;  %v4989_v4 = vmul.f32 1.442695, %v4986_v53 }
0x1d86   : > { %v4987_v5 = vmul.f32 1.442695, %v4985_v0 }
0x1d87   : > { %v4814_v6 = vpop.permute.xlu0 %4813 }
0x1d88   : > { %13881 = vpow2.f32 %v4987_v5  ;;  %v15417_v9 = vadd.f32 %v4814_v6, %v15359_v3 }
0x1d89   : > { %13883 = vpow2.f32 %v4989_v4 }
0x1d8a   : > { %v15421_v55 = vcombine.high %v15417_v9, %v15417_v9  ;;  %13885 = vpow2.f32 %v5161_v22  ;;  %v5001_v28 = vmul.f32 %v15417_v9, %v14830_v20  ;;  %v5175_v35 = vmul.f32 %v15417_v9, %v14822_v7 }
0x1d8b   : > { %13887 = vpow2.f32 %v5163_v25  ;;  %v5489_v22 = vmul.f32 %v14857_v52, %v15367_v8 }
0x1d8c   : > { %v5176_v24 = vmul.f32 %v15421_v55, %v14822_v7  ;;  %v5002_v41 = vmul.f32 %v15421_v55, %v14830_v20 }
0x1d8e   : > { %5256 = vrot.lane.b32.xlu0 %v5176_v24, %s16461_s12 }
0x1d92   : > { %v13882_v34 = vpop.eup %13881  ;;  %5334 = vrot.lane.b32.xlu0 %v5001_v28, %s16461_s12 }
0x1d93   : > { %v4991_v3 = vsel %vm4978_vm7, %v13882_v34, 0.0  ;;  %v13884_v40 = vpop.eup %13883 }
0x1d94   : > { %4992 = vadd.xlane.f32.xlu1 %v4991_v3  ;;  %v4994_v38 = vsel %vm4978_vm7, %v13884_v40, 0.0  ;;  %v13886_v46 = vpop.eup %13885 }
0x1d95   : > { %v5165_v44 = vsel %vm4978_vm7, %v13886_v46, 0.0  ;;  %v13888_v45 = vpop.eup %13887 }
0x1d96   : > { %5412 = vrot.lane.b32.xlu0 %v5002_v41, %s16461_s12  ;;  %v5168_v33 = vsel %vm4978_vm7, %v13888_v45, 0.0 }
0x1d98   : > { %4995 = vadd.xlane.f32.xlu1 %v4994_v38 }
0x1d9c   : > { %5166 = vadd.xlane.f32.xlu1 %v5165_v44 }
0x1da0   : > { %5169 = vadd.xlane.f32.xlu1 %v5168_v33 }
0x1db1   : > { %5178 = vrot.lane.b32.xlu1 %v5175_v35, %s16461_s12 }
0x1e00   : > { %v5257_v11 = vpop.permute.xlu0 %5256 }
0x1e01   : > { %12970 = vmatpush3.msk.msra.mxu1 %vm898_vm0, %v5257_v11 }
0x1e02   : > { %12979 = vmatprep.subr.mxu1 %v14284_v13 }
0x1e04   : > { %v5335_v59 = vpop.permute.xlu0 %5334 }
0x1e08   : > { %v5413_v31 = vpop.permute.xlu0 %5412 }
0x1e21   : > { %v4993_v47 = vpop.xlane.xlu1 %4992 }
0x1e25   : > { %v4996_v50 = vpop.xlane.xlu1 %4995 }
0x1e29   : > { %v5167_v54 = vpop.xlane.xlu1 %5166 }
0x1e2a   : > { %13889 = vrcp.f32 %v5167_v54 }
0x1e2d   : > { %v5170_v56 = vpop.xlane.xlu1 %5169 }
0x1e2e   : > { %13891 = vrcp.f32 %v5170_v56 }
0x1e2f   : > { %13893 = vrcp.f32 %v4993_v47 }
0x1e30   : > { %13895 = vrcp.f32 %v4996_v50 }
0x1e31   : > { %v5179_v58 = vpop.permute.xlu1 %5178 }
0x1e32   : > { %12965 = vmatpush3.msk.msra.mxu0 %vm898_vm0, %v5179_v58 }
0x1e33   : > { %12974 = vmatprep.subr.mxu0 %v14284_v13 }
0x1e34   : > { %v13890_v42 = vpop.eup %13889 }
0x1e35   : > { %v5173_v60 = vmul.f32 %v13890_v42, %v13886_v46  ;;  %v5661_v46 = vmul.f32 %v15417_v9, %v14889_v14 }
0x1e37   : > { %12967 = vmatmul.mubr.msk.f32.vlgmr.msra.gmra.mrb[38].mxu0 %vm891_vm1, %v5173_v60 }
0x1e38   : > { %v13892_v53 = vpop.eup %13891  ;;  %12975 = vmatpush3.msk.msra.mxu0 %vm898_vm0, %v5335_v59  ;;  %12976 = vmatprep.mubr.msk.f32.mxu0 %vm14286_vm4, %v14284_v13  ;;  %v5662_v59 = vmul.f32 %v15421_v55, %v14889_v14 }
0x1e39   : > { %v5174_v62 = vmul.f32 %v13892_v53, %v13888_v45  ;;  %12984 = vmatprep.subr.mxu0 %v14284_v13  ;;  %v13894_v0 = vpop.eup %13893 }
0x1e3a   : > { %v4999_v4 = vmul.f32 %v13894_v0, %v13882_v34  ;;  %v13896_v5 = vpop.eup %13895 }
0x1e3b   : > { %12972 = vmatmul.mubr.msk.f32.vlgmr.msra.gmra.mrb[32].mxu1 %vm891_vm1, %v5174_v62  ;;  %v5000_v6 = vmul.f32 %v13896_v5, %v13884_v40 }
0x1e3c   : > { %12980 = vmatpush3.msk.msra.mxu1 %vm898_vm0, %v5413_v31  ;;  %12981 = vmatprep.mubr.msk.f32.mxu1 %vm14286_vm4, %v14284_v13 }
0x1e3d   : > { %12989 = vmatprep.subr.mxu1 %v14284_v13 }
0x1e3f   : > { %12977 = vmatmul.mubr.msk.f32.vlgmr.msra.gmra.mrb[38].mxu0 %vm891_vm1, %v4999_v4 }
0x1e40   : > { %12985 = vmatpush3.xpose.msk.msra.mxu0 %vm992_vm3, %v15373_v27  ;;  %12986 = vmatprep.mubr.msk.f32.mxu0 %vm14286_vm4, %v14284_v13 }
0x1e41   : > { %12994 = vmatprep.subr.mxu0 %v14284_v13 }
0x1e43   : > { %12982 = vmatmul.mubr.msk.f32.vlgmr.msra.gmra.mrb[32].mxu1 %vm891_vm1, %v5000_v6  ;;  %12987 = vmatmul.mubr.msk.f32.vlgmr.msra.gmra.mrb[40].mxu0 %vm992_vm3, %v5489_v22  ;;  %v5821_v6 = vmul.f32 %v14907_v29, %v15367_v8 }
0x1e44   : > { %12990 = vmatpush3.xpose.msk.msra.mxu1 %vm992_vm3, %v15377_v21  ;;  %12991 = vmatprep.mubr.msk.f32.mxu1 %vm14286_vm4, %v14284_v13 }
0x1e45   : > { %12999 = vmatprep.subr.mxu1 %v14284_v13  ;;  %12996 = vmatprep.mubr.msk.f32.mxu0 %vm14286_vm4, %v14284_v13 }
0x1e47   : > { %12992 = vmatmul.mubr.msk.f32.vlgmr.msra.gmra.mrb[34].mxu1 %vm992_vm3, %v5490_v23 }
0x1e48   : > { %13001 = vmatprep.mubr.msk.f32.mxu1 %vm14286_vm4, %v14284_v13 }
0x1f16   : > { %v5560_v24 = vpop.f32.mrb[40].mxu0 }
0x1f17   : > { %v5637_v25 = vmul.f32 0.35355338, %v5560_v24  ;;  %v12988_v28 = vpop.f32.mrb[41].mxu0 }
0x1f19   : > { %v5639_v34 = vsel %vm4978_vm7, %v5637_v25, -inf }
0x1f1a   : > { %5640 = vmax.xlane.f32.xlu0 %v5639_v34  ;;  %v5633_v3 = vpop.f32.mrb[34].mxu1 }
0x1f1b   : > { %v5638_v40 = vmul.f32 0.35355338, %v5633_v3  ;;  %v12993_v41 = vpop.f32.mrb[35].mxu1 }
0x1f1d   : > { %v5642_v38 = vsel %vm4978_vm7, %v5638_v40, -inf }
0x1f1e   : > { %5643 = vmax.xlane.f32.xlu1 %v5642_v38 }
0x1f2f   : > { %5664 = vrot.lane.b32.xlu1 %v5661_v46, %s16461_s12 }
0x1fa7   : > { %v5641_v44 = vpop.xlane.xlu0 %5640 }
0x1fa8   : > { %v5645_v45 = vsub.f32 %v5637_v25, %v5641_v44 }
0x1faa   : > { %v5647_v33 = vmul.f32 1.442695, %v5645_v45 }
0x1fab   : > { %v5644_v35 = vpop.xlane.xlu1 %5643 }
0x1fac   : > { %13897 = vpow2.f32 %v5647_v33  ;;  %v5646_v11 = vsub.f32 %v5638_v40, %v5644_v35 }
0x1fae   : > { %v5649_v47 = vmul.f32 1.442695, %v5646_v11  ;;  %v5993_v11 = vmul.f32 %v15417_v9, %v14932_v57 }
0x1faf   : > { %v5665_v50 = vpop.permute.xlu1 %5664 }
0x1fb0   : > { %13899 = vpow2.f32 %v5649_v47  ;;  %12995 = vmatpush3.msk.msra.mxu0 %vm898_vm0, %v5665_v50  ;;  %v5994_v47 = vmul.f32 %v15421_v55, %v14932_v57  ;;  %v4554_v50 = vadd.f32 %v15357_v2, %v15352_v63 }
0x1fb1   : > { %13004 = vmatprep.subr.mxu0 %v14284_v13 }
0x1fb6   : > { %v13898_v54 = vpop.eup %13897 }
0x1fb7   : > { %v5651_v56 = vsel %vm4978_vm7, %v13898_v54, 0.0 }
0x1fb8   : > { %5652 = vadd.xlane.f32.xlu0 %v5651_v56 }
0x1fba   : > { %v13900_v58 = vpop.eup %13899 }
0x1fbb   : > { %v5654_v42 = vsel %vm4978_vm7, %v13900_v58, 0.0 }
0x1fbc   : > { %5655 = vadd.xlane.f32.xlu0 %v5654_v42 }
0x1fd2   : > { %5742 = vrot.lane.b32.xlu0 %v5662_v59, %s16461_s12 }
0x2045   : > { %v5653_v60 = vpop.xlane.xlu0 %5652 }
0x2046   : > { %13901 = vrcp.f32 %v5653_v60  ;;  %v6153_v60 = vld [vmem:[%s16516_s2] sm:$0xff] }
0x2049   : > { %v5656_v53 = vpop.xlane.xlu0 %5655 }
0x204a   : > { %13903 = vrcp.f32 %v5656_v53  ;;  %v6154_v53 = vld [vmem:[%s16516_s2 + $0x8] sm:$0xff] }
0x204d   : > { %v5743_v62 = vpop.permute.xlu0 %5742 }
0x204e   : > { %13000 = vmatpush3.msk.msra.mxu1 %vm898_vm0, %v5743_v62  ;;  %v13521_v62 = vpack.c.bf16 %v6154_v53, %v6153_v60 }
0x204f   : > { %13009 = vmatprep.subr.mxu1 %v14284_v13 }
0x2050   : > { %v13902_v0 = vpop.eup %13901 }
0x2051   : > { %v5659_v31 = vmul.f32 %v13902_v0, %v13898_v54  ;;  %v4562_v54 = vadd.f32 %v4554_v50, %v15286_v19  ;;  %v6155_v0 = vld [vmem:[%s16516_s2 + $0x10] sm:$0xff] }
0x2053   : > { %12997 = vmatmul.mubr.msk.f32.vlgmr.msra.gmra.mrb[38].mxu0 %vm891_vm1, %v5659_v31  ;;  %v4564_v56 = vsel %vm992_vm3, %v4562_v54, 0.0  ;;  %v6156_v31 = vld [vmem:[%s16516_s2 + $0x18] sm:$0xff] }
0x2054   : > { %v13904_v4 = vpop.eup %13903  ;;  %13005 = vmatpush3.xpose.msk.msra.mxu0 %vm992_vm3, %v15373_v27  ;;  %13006 = vmatprep.mubr.msk.f32.mxu0 %vm14286_vm4, %v14284_v13  ;;  %v5822_v27 = vmul.f32 %v14907_v29, %v15371_v18 }
0x2055   : > { %v5660_v5 = vmul.f32 %v13904_v4, %v13900_v58  ;;  %13014 = vmatprep.subr.mxu0 %v14284_v13  ;;  %v13524_v4 = vpack.c.bf16 %v6156_v31, %v6155_v0 }
0x2057   : > { %13002 = vmatmul.mubr.msk.f32.vlgmr.msra.gmra.mrb[32].mxu1 %vm891_vm1, %v5660_v5  ;;  %13007 = vmatmul.mubr.msk.f32.vlgmr.msra.gmra.mrb[42].mxu0 %vm992_vm3, %v5821_v6 }
0x2058   : > { %13010 = vmatpush3.xpose.msk.msra.mxu1 %vm992_vm3, %v15377_v21  ;;  %13011 = vmatprep.mubr.msk.f32.mxu1 %vm14286_vm4, %v14284_v13 }
0x2059   : > { %13019 = vmatprep.subr.mxu1 %v14284_v13  ;;  %13016 = vmatprep.mubr.msk.f32.mxu0 %vm14286_vm4, %v14284_v13 }
0x205b   : > { %13012 = vmatmul.mubr.msk.f32.vlgmr.msra.gmra.mrb[36].mxu1 %vm992_vm3, %v5822_v27 }
0x205c   : > { %13021 = vmatprep.mubr.msk.f32.mxu1 %vm14286_vm4, %v14284_v13 }
0x212a   : > { %v5892_v8 = vpop.f32.mrb[42].mxu0 }
0x212b   : > { %v5969_v22 = vmul.f32 0.35355338, %v5892_v8  ;;  %v13008_v23 = vpop.f32.mrb[43].mxu0 }
0x212c   : > { %v6160_v23 = vrot.slane %v15323_v43, %v14959_v30 }
0x212d   : > { %v5971_v21 = vsel %vm4978_vm7, %v5969_v22, -inf }
0x212e   : > { %5972 = vmax.xlane.f32.xlu1 %v5971_v21  ;;  %v5965_v24 = vpop.f32.mrb[36].mxu1 }
0x212f   : > { %v5970_v25 = vmul.f32 0.35355338, %v5965_v24  ;;  %v13013_v28 = vpop.f32.mrb[37].mxu1 }
0x2131   : > { %v5974_v18 = vsel %vm4978_vm7, %v5970_v25, -inf }
0x2132   : > { %5975 = vmax.xlane.f32.xlu0 %v5974_v18 }
0x21bb   : > { %v5973_v34 = vpop.xlane.xlu1 %5972 }
0x21bc   : > { %v5977_v3 = vsub.f32 %v5969_v22, %v5973_v34 }
0x21be   : > { %v5979_v40 = vmul.f32 1.442695, %v5977_v3 }
0x21bf   : > { %v5976_v41 = vpop.xlane.xlu0 %5975 }
0x21c0   : > { %13905 = vpow2.f32 %v5979_v40  ;;  %v5978_v38 = vsub.f32 %v5970_v25, %v5976_v41 }
0x21c2   : > { %v5981_v46 = vmul.f32 1.442695, %v5978_v38  ;;  %v4563_v38 = vadd.f32 %v15355_v1, %v15288_v51 }
0x21c4   : > { %13907 = vpow2.f32 %v5981_v46 }
0x21ca   : > { %v13906_v44 = vpop.eup %13905 }
0x21cb   : > { %v5983_v45 = vsel %vm4978_vm7, %v13906_v44, 0.0 }
0x21cc   : > { %5984 = vadd.xlane.f32.xlu1 %v5983_v45  ;;  %v4567_v45 = vsel %vm992_vm3, %v4563_v38, 0.0 }
0x21ce   : > { %v13908_v33 = vpop.eup %13907 }
0x21cf   : > { %v5986_v35 = vsel %vm4978_vm7, %v13908_v33, 0.0 }
0x21d0   : > { %5987 = vadd.xlane.f32.xlu0 %v5986_v35 }
0x21dd   : > { %5996 = vrot.lane.b32.xlu1 %v5993_v11, %s16461_s12  ;;  %v14290_v11 = vmov 839922192  }
0x21e6   : > { %6074 = vrot.lane.b32.xlu0 %v5994_v47, %s16461_s12  ;;  %v6251_v47 = vunpack.c.l.s4 %v14290_v11  ;;  %s16525_s12 = sld [smem:[#allocation23_spill]] }
0x2205   : > { %4565 = vadd.xlane.f32.xlu0 %v4564_v56 }
0x2259   : > { %v5985_v58 = vpop.xlane.xlu1 %5984 }
0x225a   : > { %13909 = vrcp.f32 %v5985_v58 }
0x225d   : > { %v5997_v42 = vpop.permute.xlu1 %5996  ;;  %v5988_v59 = vpop.xlane.xlu0 %5987 }
0x225e   : > { %13911 = vrcp.f32 %v5988_v59  ;;  %13015 = vmatpush3.msk.msra.mxu0 %vm898_vm0, %v5997_v42 }
0x225f   : > { %13520 = vmatprep.subr.bf16.mxu0 %v14289_v26 }
0x2261   : > { %v6075_v9 = vpop.permute.xlu0 %6074 }
0x2262   : > { %13020 = vmatpush3.msk.msra.mxu1 %vm898_vm0, %v6075_v9 }
0x2263   : > { %13526 = vmatprep.subr.bf16.mxu1 %v14289_v26 }
0x2264   : > { %v13910_v63 = vpop.eup %13909 }
0x2265   : > { %v5991_v2 = vmul.f32 %v13910_v63, %v13906_v44 }
0x2267   : > { %13017 = vmatmul.mubr.msk.f32.vlgmr.msra.gmra.mrb[38].mxu0 %vm891_vm1, %v5991_v2 }
0x2268   : > { %v13912_v19 = vpop.eup %13911  ;;  %13032 = vmatprep.mubr.msk.f32.mxu0 %vm14286_vm4, %v14284_v13  ;;  %13522 = vmatpush3.bf16.msra.mxu0 %v13521_v62 }
0x2269   : > { %v5992_v55 = vmul.f32 %v13912_v19, %v13908_v33  ;;  %13523 = vmatprep.subr.bf16.mxu0 %v14289_v26 }
0x226b   : > { %13022 = vmatmul.mubr.msk.f32.vlgmr.msra.gmra.mrb[32].mxu1 %vm891_vm1, %v5992_v55 }
0x226c   : > { %13043 = vmatprep.mubr.msk.f32.mxu1 %vm14286_vm4, %v14284_v13  ;;  %13525 = vmatpush3.bf16.msra.mxu0 %v13524_v4 }
0x2292   : > { %v4566_v28 = vpop.xlane.xlu0 %4565 }
0x2293   : > { %v4570_v34 = vmul.f32 0.03125, %v4566_v28  ;;  %v6403_v28 = vld [vmem:[%s16517_s4] sm:$0xff]  ;;  %s16526_s4 = sld [smem:[#allocation24_spill]] }
0x2295   : > { %v4572_v46 = vsub.f32 %v4562_v54, %v4570_v34 }
0x2297   : > { %v4574_v33 = vmul.f32 %v4572_v46, %v4572_v46 }
0x2299   : > { %v4576_v35 = vsel %vm992_vm3, %v4574_v33, 0.0  ;;  %v6320_v33 = vld [vmem:[%s16519_s1 + $0x18] sm:$0xff] }
0x233a   : > { %v6069_v5 = vpop.f32.mrb[38].mxu0 }
0x233b   : > { %v13018_v6 = vpop.f32.mrb[39].mxu0 }
0x233e   : > { %v6147_v27 = vpop.f32.mrb[32].mxu1 }
0x233f   : > { %v6163_v8 = vcombine.low %v6069_v5, %v6147_v27  ;;  %v13023_v22 = vpop.f32.mrb[33].mxu1  ;;  %v14026_v27 = vld [vmem:[%s16427_s13 + $0x10] sm:$0xff] }
0x2341   : > { %13033 = vmatmul.mubr.msk.f32.vlgmr.msra.gmra.mrb[44].mxu0 %vm992_vm3, %v6163_v8  ;;  %v4593_v8 = vrot.slane %v14026_v27, %v15053_v32 }
0x2414   : > { %v6232_v21 = vpop.f32.mrb[44].mxu0 }
0x2415   : > { %v6233_v24 = vadd.f32 %v6232_v21, %v6160_v23  ;;  %v13034_v25 = vpop.f32.mrb[45].mxu0  ;;  %v12155_v21 = vld [vmem:[%s16427_s13 + $0x18] ss:$0 sm:$0xff] }
0x2417   : > { %v6237_v18 = vcombine.high %v6233_v24, %v6233_v24  ;;  %v6239_v3 = vadd.f32 %v6233_v24, %v15341_v39  ;;  %v14291_v39 = vmov 1985246804  }
0x2418   : > { %v6258_v50 = vunpack.c.l.s4 %v14291_v39 }
0x2419   : > { %v6240_v40 = vadd.f32 %v6237_v18, %v15343_v49  ;;  %v6252_v49 = vunpack.c.0.s8 %v6251_v47  ;;  %v6404_v18 = vld [vmem:[%s16518_s0 + $0x8] sm:$0xff] }
0x241a   : > { %v6259_v56 = vunpack.c.0.s8 %v6258_v50  ;;  %v13532_v34 = vpack.c.bf16 %v6404_v18, %v6403_v28 }
0x241b   : > { %v6243_v41 = vcombine.low %v6239_v3, %v6240_v40  ;;  %v15559_v58 = vsub.s32 %v6252_v49, %v14708_v10 }
0x241c   : > { %v15562_v51 = vsub.s32 %v6259_v56, %v14708_v10  ;;  %13533 = vmatprep.subr.bf16.mxu0 %v13532_v34 }
0x241d   : > { %v6245_v44 = vsel %vm992_vm3, %v6243_v41, 0.0  ;;  %13535 = vmatpush3.bf16.msra.mxu0 %v13532_v34 }
0x241e   : > { %6246 = vadd.xlane.f32.xlu1 %v6245_v44  ;;  %v6319_v44 = vld [vmem:[%s16519_s1 + $0x10] sm:$0xff] }
0x2422   : > { %4568 = vadd.xlane.f32.xlu1 %v4567_v45 }
0x2426   : > { %4577 = vadd.xlane.f32.xlu1 %v4576_v35  ;;  %v13530_v35 = vpack.c.bf16 %v6320_v33, %v6319_v44 }
0x24ab   : > { %v6247_v1 = vpop.xlane.xlu1 %6246 }
0x24ac   : > { %v6248_v54 = vmul.f32 0.03125, %v6247_v1  ;;  %v6302_v1 = vrot.slane %v15323_v43, %v15000_v16 }
0x24ae   : > { %v6256_v42 = vrot.slane %v6248_v54, %v15559_v58  ;;  %v6263_v59 = vrot.slane %v6248_v54, %v15562_v51  ;;  %v6311_v54 = vrot.slane %v15323_v43, %v15003_v17 }
0x24af   : > { %v4569_v9 = vpop.xlane.xlu1 %4568 }
0x24b0   : > { %v6266_v63 = vsub.f32 %v6239_v3, %v6256_v42  ;;  %v6267_v2 = vsub.f32 %v6240_v40, %v6263_v59  ;;  %v4571_v19 = vmul.f32 0.03125, %v4569_v9  ;;  %v6317_v3 = vld [vmem:[%s16519_s1] sm:$0xff]  ;;  %v6318_v40 = vld [vmem:[%s16519_s1 + $0x8] sm:$0xff] }
0x24b1   : > { %v13527_v41 = vpack.c.bf16 %v6318_v40, %v6317_v3 }
0x24b2   : > { %v4573_v55 = vsub.f32 %v4563_v38, %v4571_v19  ;;  %v6268_v60 = vmul.f32 %v6266_v63, %v6266_v63  ;;  %v6269_v53 = vmul.f32 %v6267_v2, %v6267_v2  ;;  %v6405_v38 = vld [vmem:[%s16518_s0 + $0x10] sm:$0xff]  ;;  %v6304_v19 = vcombine.high %v6302_v1, %v6302_v1 }
0x24b3   : > { %v4578_v62 = vpop.xlane.xlu1 %4577  ;;  %13528 = vmatpush3.bf16.msra.mxu1 %v13527_v41 }
0x24b4   : > { %v4582_v0 = vmul.f32 0.03125, %v4578_v62  ;;  %v6272_v31 = vcombine.low %v6268_v60, %v6269_v53  ;;  %v4575_v5 = vmul.f32 %v4573_v55, %v4573_v55  ;;  %13529 = vmatprep.subr.bf16.mxu1 %v14289_v26  ;;  %v6313_v62 = vcombine.high %v6311_v54, %v6311_v54 }
0x24b6   : > { %v4584_v4 = vadd.f32 1e-05, %v4582_v0  ;;  %v6274_v10 = vsel %vm992_vm3, %v6272_v31, 0.0  ;;  %v4579_v6 = vsel %vm992_vm3, %v4575_v5, 0.0 }
0x24b7   : > { %6275 = vadd.xlane.f32.xlu0 %v6274_v10  ;;  %13531 = vmatpush3.bf16.msra.mxu1 %v13530_v35 }
0x24b8   : > { %13913 = vrsqrt.f32 %v4584_v4  ;;  %13057 = vmatprep.subr.mxu1 %v14284_v13 }
0x24bb   : > { %4580 = vadd.xlane.f32.xlu0 %v4579_v6 }
0x24c2   : > { %v13914_v22 = vpop.eup %13913 }
0x24c3   : > { %v4588_v23 = vmul.f32 %v13914_v22, %v4572_v46  ;;  %v6406_v46 = vld [vmem:[%s16518_s0 + $0x18] sm:$0xff] }
0x24c4   : > { %v13536_v45 = vpack.c.bf16 %v6406_v46, %v6405_v38 }
0x24c5   : > { %v4594_v24 = vmul.f32 %v4593_v8, %v4588_v23 }
0x24c6   : > { %13537 = vmatprep.subr.bf16.mxu0 %v13536_v45 }
0x24c7   : > { %v15575_v25 = vadd.f32 %v12155_v21, %v4594_v24  ;;  %13539 = vmatpush3.bf16.msra.mxu0 %v13536_v45 }
0x24c8   : > { %13067 = vmatprep.subr.mxu0 %v14284_v13 }
0x24c9   : > { %13054 = vmatprep.mubr.msk.f32.mxu0 %vm992_vm3, %v15575_v25 }
0x2544   : > { %v6276_v11 = vpop.xlane.xlu0 %6275 }
0x2545   : > { %v6277_v47 = vmul.f32 0.03125, %v6276_v11 }
0x2547   : > { %v6278_v39 = vadd.f32 1e-05, %v6277_v47 }
0x2548   : > { %v4581_v50 = vpop.xlane.xlu0 %4580 }
0x2549   : > { %13915 = vrsqrt.f32 %v6278_v39  ;;  %v4583_v49 = vmul.f32 0.03125, %v4581_v50 }
0x254b   : > { %v4585_v56 = vadd.f32 1e-05, %v4583_v49 }
0x254d   : > { %13917 = vrsqrt.f32 %v4585_v56 }
0x2553   : > { %v13916_v42 = vpop.eup %13915 }
0x2554   : > { %v6287_v59 = vrot.slane %v13916_v42, %v15559_v58  ;;  %v6294_v9 = vrot.slane %v13916_v42, %v15562_v51 }
0x2556   : > { %v6297_v60 = vmul.f32 %v6287_v59, %v6266_v63  ;;  %v6298_v53 = vmul.f32 %v6294_v9, %v6267_v2  ;;  %v6324_v63 = vrot.slane %v15323_v43, %v15023_v48  ;;  %v6491_v2 = vrot.slane %v15323_v43, %v15053_v32 }
0x2557   : > { %v13918_v0 = vpop.eup %13917 }
0x2558   : > { %v4589_v31 = vmul.f32 %v13918_v0, %v4573_v55  ;;  %v6306_v4 = vmul.f32 %v6302_v1, %v6297_v60  ;;  %v6307_v10 = vmul.f32 %v6304_v19, %v6298_v53  ;;  %v15680_v19 = vld [vmem:[%s16513_s3 + $0x8] sm:$0x7f] }
0x2559   : > { %v6497_v60 = vrot.slane %v15680_v19, %v14724_v15 }
0x255a   : > { %v15612_v5 = vadd.f32 %v6311_v54, %v6306_v4  ;;  %v15614_v6 = vadd.f32 %v6313_v62, %v6307_v10  ;;  %v4595_v27 = vmul.f32 %v4593_v8, %v4589_v31 }
0x255c   : > { %v6327_v22 = vcombine.low %v15612_v5, %v15614_v6  ;;  %v15618_v23 = vadd.f32 %v12155_v21, %v4595_v27 }
0x255e   : > { %13044 = vmatmul.mubr.msk.f32.vlgmr.msra.gmra.mrb[38].mxu1 %vm992_vm3, %v6327_v22  ;;  %13055 = vmatmul.mubr.msk.f32.vlgmr.msra.gmra.mrb[46].mxu0 %vm992_vm3, %v15618_v23 }
0x255f   : > { %13059 = vmatprep.mubr.msk.f32.mxu1 %vm14286_vm4, %v14284_v13  ;;  %13069 = vmatprep.mubr.msk.f32.mxu0 %vm14286_vm4, %v14284_v13 }
0x2631   : > { %v6396_v55 = vpop.f32.mrb[38].mxu1  ;;  %v13056_v8 = vpop.f32.mrb[46].mxu0 }
0x2632   : > { %v15631_v21 = vadd.f32 %v6396_v55, %v6324_v63  ;;  %v13045_v24 = vpop.f32.mrb[39].mxu1  ;;  %v6479_v28 = vpop.f32.mrb[47].mxu0  ;;  %v15649_v40 = vadd.f32 %v13056_v8, %v6491_v2 }
0x2633   : > { %v15633_v18 = vadd.f32 %v6491_v2, %v6479_v28 }
0x2634   : > { %v15641_v34 = vcombine.high %v15631_v21, %v15631_v21  ;;  %v6504_v43 = vmul.f32 %v14764_v36, %v15631_v21  ;;  %v6688_v3 = vmul.f32 %v14767_v37, %v15631_v21 }
0x2635   : > { %13058 = vmatpush3.xpose.msk.msra.mxu1 %vm992_vm3, %v15633_v18  ;;  %13068 = vmatpush3.xpose.msk.msra.mxu0 %vm992_vm3, %v15633_v18 }
0x2636   : > { %13062 = vmatprep.subr.mxu1 %v14284_v13  ;;  %13077 = vmatprep.subr.mxu0 %v14284_v13  ;;  %v6505_v41 = vmul.f32 %v14764_v36, %v15641_v34  ;;  %v6689_v38 = vmul.f32 %v14767_v37, %v15641_v34 }
0x2638   : > { %13060 = vmatmul.mubr.msk.f32.vlgmr.msra.gmra.mrb[40].mxu1 %vm992_vm3, %v6504_v43  ;;  %13070 = vmatmul.mubr.msk.f32.vlgmr.msra.gmra.mrb[48].mxu0 %vm992_vm3, %v6688_v3 }
0x2639   : > { %13063 = vmatpush3.xpose.msk.msra.mxu1 %vm992_vm3, %v15649_v40  ;;  %13064 = vmatprep.mubr.msk.f32.mxu1 %vm14286_vm4, %v14284_v13 }
0x263a   : > { %13072 = vmatprep.subr.mxu1 %v14284_v13  ;;  %13079 = vmatprep.mubr.msk.f32.mxu0 %vm14286_vm4, %v14284_v13 }
0x263c   : > { %13065 = vmatmul.mubr.msk.f32.vlgmr.msra.gmra.mrb[42].mxu1 %vm992_vm3, %v6505_v41 }
0x263d   : > { %13073 = vmatpush3.xpose.msk.msra.mxu1 %vm992_vm3, %v15649_v40  ;;  %13074 = vmatprep.mubr.msk.f32.mxu1 %vm14286_vm4, %v14284_v13 }
0x263e   : > { %13082 = vmatprep.subr.mxu1 %v14284_v13 }
0x2640   : > { %13075 = vmatmul.mubr.msk.f32.vlgmr.msra.gmra.mrb[44].mxu1 %vm992_vm3, %v6689_v38 }
0x2641   : > { %13084 = vmatprep.mubr.msk.f32.mxu1 %vm14286_vm4, %v14284_v13 }
0x270b   : > { %v6578_v46 = vpop.f32.mrb[40].mxu1  ;;  %v6759_v44 = vpop.f32.mrb[48].mxu0 }
0x270c   : > { %v6836_v45 = vmul.f32 0.35355338, %v6759_v44  ;;  %v13061_v33 = vpop.f32.mrb[41].mxu1  ;;  %v13071_v35 = vpop.f32.mrb[49].mxu0  ;;  %v6658_v11 = vmul.f32 0.35355338, %v6578_v46 }
0x270e   : > { %v6838_v47 = vsel %vm6660_vm8, %v6836_v45, -inf  ;;  %v6661_v49 = vsel %vm6660_vm8, %v6658_v11, -inf }
0x270f   : > { %6839 = vmax.xlane.f32.xlu1 %v6838_v47  ;;  %v6654_v39 = vpop.f32.mrb[42].mxu1 }
0x2710   : > { %v13066_v50 = vpop.f32.mrb[43].mxu1  ;;  %v6659_v42 = vmul.f32 0.35355338, %v6654_v39 }
0x2712   : > { %v6664_v9 = vsel %vm6660_vm8, %v6659_v42, -inf }
0x2713   : > { %6662 = vmax.xlane.f32.xlu1 %v6661_v49  ;;  %v6832_v56 = vpop.f32.mrb[44].mxu1 }
0x2714   : > { %v6837_v1 = vmul.f32 0.35355338, %v6832_v56  ;;  %v13076_v54 = vpop.f32.mrb[45].mxu1 }
0x2716   : > { %v6841_v59 = vsel %vm6660_vm8, %v6837_v1, -inf }
0x2717   : > { %6842 = vmax.xlane.f32.xlu0 %v6841_v59 }
0x271b   : > { %6665 = vmax.xlane.f32.xlu0 %v6664_v9 }
0x2724   : > { %6499 = vrot.lane.b32.xlu1 %v6497_v60, %s16520_s5 }
0x2728   : > { %6683 = vrot.lane.b32.xlu1 %v14764_v36, %s16520_s5 }
0x2731   : > { %6860 = vrot.lane.b32.xlu0 %v14767_v37, %s16520_s5 }
0x279c   : > { %v6840_v53 = vpop.xlane.xlu1 %6839 }
0x279d   : > { %v6844_v3 = vsub.f32 %v6836_v45, %v6840_v53 }
0x27a0   : > { %v6663_v62 = vpop.xlane.xlu1 %6662 }
0x27a1   : > { %v6667_v55 = vsub.f32 %v6658_v11, %v6663_v62 }
0x27a3   : > { %v6669_v24 = vmul.f32 1.442695, %v6667_v55 }
0x27a4   : > { %v6843_v0 = vpop.xlane.xlu0 %6842  ;;  %v6500_v31 = vpop.permute.xlu1 %6499 }
0x27a5   : > { %v15689_v10 = vadd.f32 %v6500_v31, %v6479_v28  ;;  %v15691_v27 = vadd.f32 %v13056_v8, %v6500_v31  ;;  %v6845_v43 = vsub.f32 %v6837_v1, %v6843_v0  ;;  %13919 = vpow2.f32 %v6669_v24 }
0x27a6   : > { %v6846_v8 = vmul.f32 1.442695, %v6844_v3  ;;  %v7174_v3 = vmul.f32 %v14857_v52, %v15641_v34 }
0x27a7   : > { %v6848_v28 = vmul.f32 1.442695, %v6845_v43 }
0x27a8   : > { %v6666_v4 = vpop.xlane.xlu0 %6665  ;;  %v15705_v50 = vpop.permute.xlu1 %6683 }
0x27a9   : > { %v6668_v41 = vsub.f32 %v6659_v42, %v6666_v4  ;;  %13921 = vpow2.f32 %v6848_v28  ;;  %v6686_v49 = vmul.f32 %v15705_v50, %v15689_v10  ;;  %v6687_v56 = vmul.f32 %v15705_v50, %v15691_v27 }
0x27aa   : > { %13923 = vpow2.f32 %v6846_v8  ;;  %v7173_v28 = vmul.f32 %v14857_v52, %v15631_v21 }
0x27ab   : > { %v6671_v38 = vmul.f32 1.442695, %v6668_v41 }
0x27ac   : > { %v15693_v22 = vpop.permute.xlu0 %6860 }
0x27ad   : > { %v6863_v63 = vmul.f32 %v15693_v22, %v15689_v10  ;;  %v6864_v2 = vmul.f32 %v15693_v22, %v15691_v27  ;;  %13925 = vpow2.f32 %v6671_v38 }
0x27af   : > { %6943 = vrot.lane.b32.xlu1 %v6864_v2, %s16521_s7  ;;  %6866 = vrot.lane.b32.xlu0 %v6863_v63, %s16521_s7  ;;  %v13920_v46 = vpop.eup %13919 }
0x27b0   : > { %v6673_v44 = vsel %vm6660_vm8, %v13920_v46, 0.0 }
0x27b3   : > { %v13922_v33 = vpop.eup %13921 }
0x27b4   : > { %v13924_v35 = vpop.eup %13923  ;;  %v6853_v47 = vsel %vm6660_vm8, %v13922_v33, 0.0 }
0x27b5   : > { %v6850_v11 = vsel %vm6660_vm8, %v13924_v35, 0.0 }
0x27b7   : > { %v13926_v45 = vpop.eup %13925 }
0x27b8   : > { %v6676_v39 = vsel %vm6660_vm8, %v13926_v45, 0.0 }
0x27ce   : > { %6674 = vadd.xlane.f32.xlu0 %v6673_v44 }
0x27d2   : > { %6854 = vadd.xlane.f32.xlu0 %v6853_v47 }
0x27d3   : > { %6851 = vadd.xlane.f32.xlu1 %v6850_v11 }
0x27d7   : > { %6677 = vadd.xlane.f32.xlu1 %v6676_v39 }
0x27e8   : > { %7020 = vrot.lane.b32.xlu1 %v6686_v49, %s16521_s7  ;;  %7097 = vrot.lane.b32.xlu0 %v6687_v56, %s16521_s7 }
0x2821   : > { %v6944_v1 = vpop.permute.xlu1 %6943  ;;  %v6867_v54 = vpop.permute.xlu0 %6866 }
0x2822   : > { %13078 = vmatpush3.msra.mxu0 %v6867_v54  ;;  %13083 = vmatpush3.msra.mxu1 %v6944_v1 }
0x2823   : > { %13092 = vmatprep.subr.mxu1 %v14284_v13  ;;  %13087 = vmatprep.subr.mxu0 %v14284_v13 }
0x285b   : > { %v6675_v42 = vpop.xlane.xlu0 %6674 }
0x285f   : > { %v6855_v59 = vpop.xlane.xlu0 %6854 }
0x2860   : > { %13927 = vrcp.f32 %v6855_v59  ;;  %v6852_v9 = vpop.xlane.xlu1 %6851 }
0x2861   : > { %13929 = vrcp.f32 %v6852_v9 }
0x2863   : > { %v7098_v4 = vpop.permute.xlu0 %7097 }
0x2864   : > { %v6678_v60 = vpop.xlane.xlu1 %6677 }
0x2865   : > { %13931 = vrcp.f32 %v6678_v60 }
0x2866   : > { %13933 = vrcp.f32 %v6675_v42 }
0x2868   : > { %v7021_v63 = vpop.permute.xlu1 %7020 }
0x286a   : > { %v13928_v53 = vpop.eup %13927 }
0x286b   : > { %v13930_v62 = vpop.eup %13929  ;;  %v6859_v0 = vmul.f32 %v13928_v53, %v13922_v33 }
0x286c   : > { %v6858_v31 = vmul.f32 %v13930_v62, %v13924_v35 }
0x286d   : > { %13085 = vmatmul.mubr.msk.f32.vlgmr.msra.gmra.mrb[46].mxu1 %vm1260_vm9, %v6859_v0 }
0x286e   : > { %13093 = vmatpush3.msra.mxu1 %v7098_v4  ;;  %13080 = vmatmul.mubr.msk.f32.vlgmr.msra.gmra.mrb[50].mxu0 %vm1260_vm9, %v6858_v31 }
0x286f   : > { %13088 = vmatpush3.msra.mxu0 %v7021_v63  ;;  %13094 = vmatprep.mubr.msk.f32.mxu1 %vm14286_vm4, %v14284_v13  ;;  %v13932_v2 = vpop.eup %13931 }
0x2870   : > { %13102 = vmatprep.subr.mxu1 %v14284_v13  ;;  %13089 = vmatprep.mubr.msk.f32.mxu0 %vm14286_vm4, %v14284_v13  ;;  %v13934_v55 = vpop.eup %13933  ;;  %v6682_v24 = vmul.f32 %v13932_v2, %v13926_v45 }
0x2871   : > { %13097 = vmatprep.subr.mxu0 %v14284_v13  ;;  %v6681_v43 = vmul.f32 %v13934_v55, %v13920_v46 }
0x2875   : > { %13095 = vmatmul.mubr.msk.f32.vlgmr.msra.gmra.mrb[46].mxu1 %vm1260_vm9, %v6682_v24 }
0x2876   : > { %13103 = vmatpush3.xpose.msk.msra.mxu1 %vm992_vm3, %v15649_v40  ;;  %13090 = vmatmul.mubr.msk.f32.vlgmr.msra.gmra.mrb[50].mxu0 %vm1260_vm9, %v6681_v43 }
0x2877   : > { %13098 = vmatpush3.xpose.msk.msra.mxu0 %vm992_vm3, %v15633_v18  ;;  %13104 = vmatprep.mubr.msk.f32.mxu1 %vm14286_vm4, %v14284_v13 }
0x2878   : > { %13099 = vmatprep.mubr.msk.f32.mxu0 %vm14286_vm4, %v14284_v13  ;;  %13112 = vmatprep.subr.mxu1 %v14284_v13 }
0x2879   : > { %13105 = vmatmul.mubr.msk.f32.vlgmr.msra.gmra.mrb[48].mxu1 %vm992_vm3, %v7174_v3  ;;  %13107 = vmatprep.subr.mxu0 %v14284_v13  ;;  %v7506_v3 = vmul.f32 %v14907_v29, %v15631_v21 }
0x287a   : > { %13100 = vmatmul.mubr.msk.f32.vlgmr.msra.gmra.mrb[52].mxu0 %vm992_vm3, %v7173_v28  ;;  %13114 = vmatprep.mubr.msk.f32.mxu1 %vm14286_vm4, %v14284_v13  ;;  %v7507_v28 = vmul.f32 %v14907_v29, %v15641_v34 }
0x287b   : > { %13109 = vmatprep.mubr.msk.f32.mxu0 %vm14286_vm4, %v14284_v13 }
0x294c   : > { %v7317_v8 = vpop.f32.mrb[48].mxu1 }
0x294d   : > { %v7322_v41 = vmul.f32 0.35355338, %v7317_v8  ;;  %v7244_v38 = vpop.f32.mrb[52].mxu0  ;;  %v13106_v46 = vpop.f32.mrb[49].mxu1 }
0x294e   : > { %v7321_v44 = vmul.f32 0.35355338, %v7244_v38  ;;  %v13101_v33 = vpop.f32.mrb[53].mxu0 }
0x294f   : > { %v7326_v35 = vsel %vm6660_vm8, %v7322_v41, -inf }
0x2950   : > { %7327 = vmax.xlane.f32.xlu0 %v7326_v35  ;;  %v7323_v47 = vsel %vm6660_vm8, %v7321_v44, -inf }
0x2951   : > { %7324 = vmax.xlane.f32.xlu1 %v7323_v47 }
0x2966   : > { %7345 = vrot.lane.b32.xlu0 %v14857_v52, %s16520_s5 }
0x29dd   : > { %v7328_v11 = vpop.xlane.xlu0 %7327 }
0x29de   : > { %v7330_v45 = vsub.f32 %v7322_v41, %v7328_v11  ;;  %v7325_v39 = vpop.xlane.xlu1 %7324 }
0x29df   : > { %v7329_v49 = vsub.f32 %v7321_v44, %v7325_v39 }
0x29e0   : > { %v7333_v56 = vmul.f32 1.442695, %v7330_v45 }
0x29e1   : > { %v7331_v1 = vmul.f32 1.442695, %v7329_v49  ;;  %v15749_v54 = vpop.permute.xlu0 %7345 }
0x29e2   : > { %v7349_v42 = vmul.f32 %v15749_v54, %v15691_v27  ;;  %v7348_v62 = vmul.f32 %v15749_v54, %v15689_v10 }
0x29e3   : > { %13935 = vpow2.f32 %v7331_v1 }
0x29e4   : > { %7428 = vrot.lane.b32.xlu0 %v7349_v42, %s16521_s7  ;;  %13937 = vpow2.f32 %v7333_v56 }
0x29ed   : > { %v13936_v59 = vpop.eup %13935 }
0x29ee   : > { %v7335_v9 = vsel %vm6660_vm8, %v13936_v59, 0.0  ;;  %v13938_v60 = vpop.eup %13937 }
0x29ef   : > { %7336 = vadd.xlane.f32.xlu1 %v7335_v9  ;;  %v7338_v53 = vsel %vm6660_vm8, %v13938_v60, 0.0 }
0x29f3   : > { %7339 = vadd.xlane.f32.xlu1 %v7338_v53 }
0x2a04   : > { %7351 = vrot.lane.b32.xlu1 %v7348_v62, %s16521_s7 }
0x2a56   : > { %v7429_v0 = vpop.permute.xlu0 %7428 }
0x2a57   : > { %13113 = vmatpush3.msra.mxu1 %v7429_v0 }
0x2a58   : > { %13122 = vmatprep.subr.mxu1 %v14284_v13 }
0x2a7c   : > { %v7337_v31 = vpop.xlane.xlu1 %7336 }
0x2a7d   : > { %13939 = vrcp.f32 %v7337_v31 }
0x2a80   : > { %v7340_v4 = vpop.xlane.xlu1 %7339 }
0x2a81   : > { %13941 = vrcp.f32 %v7340_v4 }
0x2a84   : > { %v7352_v63 = vpop.permute.xlu1 %7351 }
0x2a85   : > { %13108 = vmatpush3.msra.mxu0 %v7352_v63  ;;  %v7839_v63 = vld [vmem:[#allocation9] sm:$0xff] }
0x2a86   : > { %13117 = vmatprep.subr.mxu0 %v14284_v13 }
0x2a87   : > { %v13940_v2 = vpop.eup %13939 }
0x2a88   : > { %v7343_v55 = vmul.f32 %v13940_v2, %v13936_v59  ;;  %v7840_v2 = vld [vmem:[#allocation9 + $0x8] sm:$0xff] }
0x2a8a   : > { %13110 = vmatmul.mubr.msk.f32.vlgmr.msra.gmra.mrb[50].mxu0 %vm1260_vm9, %v7343_v55  ;;  %v13541_v55 = vpack.c.bf16 %v7840_v2, %v7839_v63  ;;  %v8091_v63 = vld [vmem:[%s16523_s17 + $0x8] sm:$0xff]  ;;  %v8092_v2 = vld [vmem:[%s16523_s17 + $0x10] sm:$0xff] }
0x2a8b   : > { %v13942_v24 = vpop.eup %13941  ;;  %13119 = vmatprep.mubr.msk.f32.mxu0 %vm14286_vm4, %v14284_v13 }
0x2a8c   : > { %v7344_v43 = vmul.f32 %v13942_v24, %v13938_v60  ;;  %13118 = vmatpush3.xpose.msk.msra.mxu0 %vm992_vm3, %v15633_v18  ;;  %v7841_v24 = vld [vmem:[#allocation9 + $0x10] sm:$0xff] }
0x2a8d   : > { %13127 = vmatprep.subr.mxu0 %v14284_v13 }
0x2a8e   : > { %13115 = vmatmul.mubr.msk.f32.vlgmr.msra.gmra.mrb[46].mxu1 %vm1260_vm9, %v7344_v43  ;;  %v7842_v43 = vld [vmem:[#allocation9 + $0x18] sm:$0xff] }
0x2a8f   : > { %13123 = vmatpush3.xpose.msk.msra.mxu1 %vm992_vm3, %v15649_v40  ;;  %13120 = vmatmul.mubr.msk.f32.vlgmr.msra.gmra.mrb[54].mxu0 %vm992_vm3, %v7506_v3  ;;  %v13544_v3 = vpack.c.bf16 %v7842_v43, %v7841_v24  ;;  %v8093_v24 = vld [vmem:[%s16523_s17 + $0x18] sm:$0xff] }
0x2a90   : > { %13124 = vmatprep.mubr.msk.f32.mxu1 %vm14286_vm4, %v14284_v13  ;;  %13132 = vmatprep.subr.mxu1 %v14284_v13  ;;  %v13556_v43 = vpack.c.bf16 %v8093_v24, %v8092_v2 }
0x2a91   : > { %13129 = vmatprep.mubr.msk.f32.mxu0 %vm14286_vm4, %v14284_v13 }
0x2a92   : > { %13125 = vmatmul.mubr.msk.f32.vlgmr.msra.gmra.mrb[50].mxu1 %vm992_vm3, %v7507_v28 }
0x2a93   : > { %13134 = vmatprep.mubr.msk.f32.mxu1 %vm14286_vm4, %v14284_v13 }
0x2b62   : > { %v7577_v21 = vpop.f32.mrb[54].mxu0 }
0x2b63   : > { %v7654_v18 = vmul.f32 0.35355338, %v7577_v21  ;;  %v13121_v40 = vpop.f32.mrb[55].mxu0 }
0x2b65   : > { %v7650_v8 = vpop.f32.mrb[50].mxu1  ;;  %v7656_v41 = vsel %vm6660_vm8, %v7654_v18, -inf }
0x2b66   : > { %v7655_v38 = vmul.f32 0.35355338, %v7650_v8  ;;  %7657 = vmax.xlane.f32.xlu0 %v7656_v41  ;;  %v13126_v46 = vpop.f32.mrb[51].mxu1  ;;  %v7846_v41 = vrot.slane %v15680_v19, %v14716_v12 }
0x2b68   : > { %v7659_v34 = vsel %vm6660_vm8, %v7655_v38, -inf }
0x2b69   : > { %7660 = vmax.xlane.f32.xlu1 %v7659_v34 }
0x2b7c   : > { %7678 = vrot.lane.b32.xlu0 %v14907_v29, %s16520_s5 }
0x2bf3   : > { %v7658_v44 = vpop.xlane.xlu0 %7657 }
0x2bf4   : > { %v7662_v33 = vsub.f32 %v7654_v18, %v7658_v44 }
0x2bf6   : > { %v7664_v35 = vmul.f32 1.442695, %v7662_v33  ;;  %v7661_v47 = vpop.xlane.xlu1 %7660 }
0x2bf7   : > { %v7663_v11 = vsub.f32 %v7655_v38, %v7661_v47  ;;  %v15787_v45 = vpop.permute.xlu0 %7678 }
0x2bf8   : > { %13943 = vpow2.f32 %v7664_v35  ;;  %v7682_v39 = vmul.f32 %v15787_v45, %v15691_v27  ;;  %v7681_v9 = vmul.f32 %v15787_v45, %v15689_v10 }
0x2bf9   : > { %v7666_v49 = vmul.f32 1.442695, %v7663_v11 }
0x2bfa   : > { %7761 = vrot.lane.b32.xlu0 %v7682_v39, %s16521_s7 }
0x2bfb   : > { %13945 = vpow2.f32 %v7666_v49 }
0x2c02   : > { %v13944_v56 = vpop.eup %13943 }
0x2c03   : > { %v7668_v1 = vsel %vm6660_vm8, %v13944_v56, 0.0 }
0x2c04   : > { %7669 = vadd.xlane.f32.xlu1 %v7668_v1 }
0x2c05   : > { %v13946_v42 = vpop.eup %13945 }
0x2c06   : > { %v7671_v59 = vsel %vm6660_vm8, %v13946_v42, 0.0 }
0x2c08   : > { %7672 = vadd.xlane.f32.xlu1 %v7671_v59 }
0x2c19   : > { %7684 = vrot.lane.b32.xlu1 %v7681_v9, %s16521_s7 }
0x2c6c   : > { %v7762_v60 = vpop.permute.xlu0 %7761 }
0x2c6d   : > { %13133 = vmatpush3.msra.mxu1 %v7762_v60 }
0x2c6e   : > { %13546 = vmatprep.subr.bf16.mxu1 %v14289_v26 }
0x2c91   : > { %v7670_v27 = vpop.xlane.xlu1 %7669 }
0x2c92   : > { %13947 = vrcp.f32 %v7670_v27 }
0x2c95   : > { %v7673_v53 = vpop.xlane.xlu1 %7672 }
0x2c96   : > { %13949 = vrcp.f32 %v7673_v53 }
0x2c99   : > { %v7685_v62 = vpop.permute.xlu1 %7684 }
0x2c9a   : > { %13128 = vmatpush3.msra.mxu0 %v7685_v62  ;;  %v8005_v62 = vld [vmem:[#allocation10 + $0x10] sm:$0xff] }
0x2c9b   : > { %13540 = vmatprep.subr.bf16.mxu0 %v14289_v26 }
0x2c9c   : > { %v13948_v0 = vpop.eup %13947 }
0x2c9d   : > { %v7676_v31 = vmul.f32 %v13948_v0, %v13944_v56 }
0x2c9f   : > { %13130 = vmatmul.mubr.msk.f32.vlgmr.msra.gmra.mrb[50].mxu0 %vm1260_vm9, %v7676_v31  ;;  %v8006_v31 = vld [vmem:[#allocation10 + $0x18] sm:$0xff] }
0x2ca0   : > { %v13950_v4 = vpop.eup %13949  ;;  %13145 = vmatprep.mubr.msk.f32.mxu0 %vm14286_vm4, %v14284_v13  ;;  %13542 = vmatpush3.bf16.msra.mxu0 %v13541_v55 }
0x2ca1   : > { %v7677_v10 = vmul.f32 %v13950_v4, %v13946_v42  ;;  %13543 = vmatprep.subr.bf16.mxu0 %v14289_v26  ;;  %v13550_v4 = vpack.c.bf16 %v8006_v31, %v8005_v62 }
0x2ca3   : > { %13135 = vmatmul.mubr.msk.f32.vlgmr.msra.gmra.mrb[46].mxu1 %vm1260_vm9, %v7677_v10  ;;  %v8090_v10 = vld [vmem:[%s16522_s25] sm:$0xff] }
0x2ca4   : > { %13156 = vmatprep.mubr.msk.f32.mxu1 %vm14286_vm4, %v14284_v13  ;;  %13545 = vmatpush3.bf16.msra.mxu0 %v13544_v3  ;;  %v13553_v55 = vpack.c.bf16 %v8091_v63, %v8090_v10  ;;  %v8094_v3 = vld [vmem:[%s16523_s17 + $0x20] sm:$0xff] }
0x2ca5   : > { %13552 = vmatprep.subr.bf16.mxu0 %v14289_v26 }
0x2d72   : > { %v7756_v28 = vpop.f32.mrb[50].mxu0 }
0x2d73   : > { %v13131_v21 = vpop.f32.mrb[51].mxu0 }
0x2d76   : > { %v7833_v18 = vpop.f32.mrb[46].mxu1 }
0x2d77   : > { %v7849_v40 = vcombine.low %v7756_v28, %v7833_v18  ;;  %v13136_v8 = vpop.f32.mrb[47].mxu1  ;;  %v8095_v28 = vld [vmem:[%s16523_s17 + $0x28] sm:$0xff] }
0x2d78   : > { %v13559_v21 = vpack.c.bf16 %v8095_v28, %v8094_v3 }
0x2d79   : > { %13146 = vmatmul.mubr.msk.f32.vlgmr.msra.gmra.mrb[56].mxu0 %vm992_vm3, %v7849_v40 }
0x2d7a   : > { %13175 = vmatprep.mubr.msk.f32.mxu0 %vm14286_vm4, %v14284_v13  ;;  %13554 = vmatpush3.bf16.msra.mxu0 %v13553_v55 }
0x2d7b   : > { %13555 = vmatprep.subr.bf16.mxu0 %v14289_v26 }
0x2d7e   : > { %13557 = vmatpush3.bf16.msra.mxu0 %v13556_v43 }
0x2d7f   : > { %13558 = vmatprep.subr.bf16.mxu0 %v14289_v26 }
0x2d82   : > { %13560 = vmatpush3.bf16.msra.mxu0 %v13559_v21 }
0x2d83   : > { %13561 = vmatprep.subr.bf16.mxu0 %v14289_v26 }
0x2e4c   : > { %v7918_v38 = vpop.f32.mrb[56].mxu0 }
0x2e4d   : > { %v7919_v46 = vadd.f32 %v7918_v38, %v7846_v41  ;;  %v13147_v34 = vpop.f32.mrb[57].mxu0  ;;  %v7988_v41 = vrot.slane %v15680_v19, %v14817_v61  ;;  %v7997_v38 = vrot.slane %v15680_v19, %v14959_v30 }
0x2e4f   : > { %v7923_v44 = vcombine.high %v7919_v46, %v7919_v46  ;;  %v7925_v33 = vadd.f32 %v7919_v46, %v15612_v5  ;;  %v8003_v5 = vld [vmem:[#allocation10] sm:$0xff] }
0x2e51   : > { %v7926_v35 = vadd.f32 %v7923_v44, %v15614_v6  ;;  %v8004_v6 = vld [vmem:[#allocation10 + $0x8] sm:$0xff] }
0x2e52   : > { %v13547_v0 = vpack.c.bf16 %v8004_v6, %v8003_v5 }
0x2e53   : > { %v7929_v47 = vcombine.low %v7925_v33, %v7926_v35 }
0x2e54   : > { %13548 = vmatpush3.bf16.msra.mxu1 %v13547_v0  ;;  %v8101_v0 = vrot.slane %v15680_v19, %v15000_v16 }
0x2e55   : > { %v7931_v11 = vsel %vm992_vm3, %v7929_v47, 0.0  ;;  %13549 = vmatprep.subr.bf16.mxu1 %v14289_v26 }
0x2e56   : > { %7932 = vadd.xlane.f32.xlu0 %v7931_v11  ;;  %v7999_v11 = vcombine.high %v7997_v38, %v7997_v38 }
0x2e58   : > { %13551 = vmatpush3.bf16.msra.mxu1 %v13550_v4 }
0x2e59   : > { %13564 = vmatprep.subr.bf16.mxu1 %v14289_v26 }
0x2ee3   : > { %v7933_v39 = vpop.xlane.xlu0 %7932 }
0x2ee4   : > { %v7934_v49 = vmul.f32 0.03125, %v7933_v39 }
0x2ee6   : > { %v7942_v56 = vrot.slane %v7934_v49, %v15559_v58  ;;  %v7949_v1 = vrot.slane %v7934_v49, %v15562_v51 }
0x2ee8   : > { %v7952_v42 = vsub.f32 %v7925_v33, %v7942_v56  ;;  %v7953_v59 = vsub.f32 %v7926_v35, %v7949_v1  ;;  %v7990_v33 = vcombine.high %v7988_v41, %v7988_v41 }
0x2eea   : > { %v7954_v9 = vmul.f32 %v7952_v42, %v7952_v42  ;;  %v7955_v60 = vmul.f32 %v7953_v59, %v7953_v59 }
0x2eec   : > { %v7958_v27 = vcombine.low %v7954_v9, %v7955_v60  ;;  %v8096_v60 = vld [vmem:[%s16523_s17 + $0x30] sm:$0xff] }
0x2eee   : > { %v7960_v53 = vsel %vm992_vm3, %v7958_v27, 0.0  ;;  %v12222_v27 = vld [vmem:[#allocation12] ss:$0 sm:$0xff] }
0x2eef   : > { %7961 = vadd.xlane.f32.xlu1 %v7960_v53 }
0x2f7c   : > { %v7962_v18 = vpop.xlane.xlu1 %7961 }
0x2f7d   : > { %v7963_v40 = vmul.f32 0.03125, %v7962_v18 }
0x2f7f   : > { %v7964_v8 = vadd.f32 1e-05, %v7963_v40 }
0x2f81   : > { %13951 = vrsqrt.f32 %v7964_v8 }
0x2f8b   : > { %v13952_v46 = vpop.eup %13951 }
0x2f8c   : > { %v7973_v34 = vrot.slane %v13952_v46, %v15559_v58  ;;  %v7980_v44 = vrot.slane %v13952_v46, %v15562_v51 }
0x2f8e   : > { %v7983_v35 = vmul.f32 %v7973_v34, %v7952_v42  ;;  %v7984_v47 = vmul.f32 %v7980_v44, %v7953_v59  ;;  %v8097_v42 = vld [vmem:[%s16523_s17 + $0x38] sm:$0xff]  ;;  %v12227_v44 = vld [vmem:[%s16511_s10 + $0x20] sm:$0xff] }
0x2f8f   : > { %v13562_v59 = vpack.c.bf16 %v8097_v42, %v8096_v60  ;;  %v8241_v42 = vrot.slane %v15680_v19, %v15003_v17 }
0x2f90   : > { %v7992_v39 = vmul.f32 %v7988_v41, %v7983_v35  ;;  %v7993_v49 = vmul.f32 %v7990_v33, %v7984_v47  ;;  %v12228_v33 = vld [vmem:[%s16511_s10 + $0x28] sm:$0xff]  ;;  %v12229_v35 = vld [vmem:[%s16511_s10 + $0x30] sm:$0xff] }
0x2f91   : > { %13563 = vmatpush3.bf16.msra.mxu0 %v13562_v59  ;;  %v13565_v47 = vpack.c.bf16 %v12228_v33, %v12227_v44  ;;  %v8250_v59 = vrot.slane %v15680_v19, %v15023_v48 }
0x2f92   : > { %v8001_v56 = vadd.f32 %v7997_v38, %v7992_v39  ;;  %v8002_v1 = vadd.f32 %v7999_v11, %v7993_v49  ;;  %13199 = vmatprep.subr.mxu0 %v14284_v13  ;;  %v12230_v11 = vld [vmem:[%s16511_s10 + $0x38] sm:$0xff]  ;;  %v15882_v49 = vld [vmem:[%s16513_s3 + $0x10] sm:$0xff] }
0x2f93   : > { %v13568_v39 = vpack.c.bf16 %v12230_v11, %v12229_v35 }
0x2f94   : > { %v8016_v9 = vcombine.low %v8001_v56, %v8002_v1 }
0x2f96   : > { %13157 = vmatmul.mubr.msk.f32.vlgmr.msra.gmra.mrb[52].mxu1 %vm992_vm3, %v8016_v9 }
0x2f97   : > { %13186 = vmatprep.mubr.msk.f32.mxu1 %vm14286_vm4, %v14284_v13  ;;  %13566 = vmatpush3.bf16.msra.mxu1 %v13565_v47 }
0x2f98   : > { %13567 = vmatprep.subr.bf16.mxu1 %v14289_v26 }
0x2f9b   : > { %13569 = vmatpush3.bf16.msra.mxu1 %v13568_v39 }
0x2f9c   : > { %13189 = vmatprep.subr.mxu1 %v14284_v13 }
0x3069   : > { %v8085_v53 = vpop.f32.mrb[52].mxu1 }
0x306a   : > { %v8086_v5 = vadd.f32 %v12222_v27, %v8085_v53  ;;  %v13158_v6 = vpop.f32.mrb[53].mxu1 }
0x306b   : > { %v8243_v6 = vcombine.high %v8241_v42, %v8241_v42 }
0x306c   : > { %v8089_v62 = vmax.f32 %v8086_v5, 0.0 }
0x306e   : > { %13176 = vmatmul.mubr.msk.f32.vlgmr.msra.gmra.mrb[58].mxu0 %vm2679_vm2, %v8089_v62 }
0x306f   : > { %13201 = vmatprep.mubr.msk.f32.mxu0 %vm14286_vm4, %v14284_v13 }
0x3141   : > { %v8171_v31 = vpop.f32.mrb[58].mxu0 }
0x3142   : > { %v8172_v4 = vadd.f32 %v8171_v31, %v8101_v0  ;;  %v13177_v10 = vpop.f32.mrb[59].mxu0  ;;  %v8252_v31 = vcombine.high %v8250_v59, %v8250_v59 }
0x3144   : > { %v8176_v63 = vcombine.high %v8172_v4, %v8172_v4  ;;  %v8178_v2 = vadd.f32 %v8172_v4, %v8001_v56  ;;  %v8350_v56 = vrot.slane %v15882_v49, %v14716_v12 }
0x3146   : > { %v8179_v55 = vadd.f32 %v8176_v63, %v8002_v1 }
0x3148   : > { %v8182_v24 = vcombine.low %v8178_v2, %v8179_v55 }
0x314a   : > { %v8184_v43 = vsel %vm992_vm3, %v8182_v24, 0.0 }
0x314b   : > { %8185 = vadd.xlane.f32.xlu0 %v8184_v43 }
0x31d8   : > { %v8186_v3 = vpop.xlane.xlu0 %8185 }
0x31d9   : > { %v8187_v28 = vmul.f32 0.03125, %v8186_v3 }
0x31db   : > { %v8195_v21 = vrot.slane %v8187_v28, %v15559_v58  ;;  %v8202_v18 = vrot.slane %v8187_v28, %v15562_v51 }
0x31dd   : > { %v8205_v40 = vsub.f32 %v8178_v2, %v8195_v21  ;;  %v8206_v8 = vsub.f32 %v8179_v55, %v8202_v18  ;;  %v8342_v21 = vrot.slane %v15882_v49, %v14724_v15 }
0x31df   : > { %v8207_v41 = vmul.f32 %v8205_v40, %v8205_v40  ;;  %v8208_v38 = vmul.f32 %v8206_v8, %v8206_v8 }
0x31e1   : > { %v8211_v46 = vcombine.low %v8207_v41, %v8208_v38 }
0x31e3   : > { %v8213_v34 = vsel %vm992_vm3, %v8211_v46, 0.0 }
0x31e4   : > { %8214 = vadd.xlane.f32.xlu0 %v8213_v34 }
0x31fa   : > { %8352 = vrot.lane.b32.xlu0 %v8350_v56, %s16520_s5 }
0x3271   : > { %v8215_v1 = vpop.xlane.xlu0 %8214 }
0x3272   : > { %v8216_v9 = vmul.f32 0.03125, %v8215_v1 }
0x3274   : > { %v8217_v60 = vadd.f32 1e-05, %v8216_v9 }
0x3275   : > { %v8353_v19 = vpop.permute.xlu0 %8352 }
0x3276   : > { %13953 = vrsqrt.f32 %v8217_v60 }
0x3280   : > { %v13954_v27 = vpop.eup %13953 }
0x3281   : > { %v8226_v53 = vrot.slane %v13954_v27, %v15559_v58  ;;  %v8233_v5 = vrot.slane %v13954_v27, %v15562_v51 }
0x3283   : > { %v8236_v62 = vmul.f32 %v8226_v53, %v8205_v40  ;;  %v8237_v0 = vmul.f32 %v8233_v5, %v8206_v8 }
0x3285   : > { %v8245_v4 = vmul.f32 %v8241_v42, %v8236_v62  ;;  %v8246_v10 = vmul.f32 %v8243_v6, %v8237_v0  ;;  %v8361_v0 = vrot.slane %v15882_v49, %v14817_v61 }
0x3287   : > { %v15894_v63 = vadd.f32 %v8250_v59, %v8245_v4  ;;  %v15896_v2 = vadd.f32 %v8252_v31, %v8246_v10 }
0x3289   : > { %v8266_v55 = vcombine.low %v15894_v63, %v15896_v2 }
0x328b   : > { %13187 = vmatmul.mubr.msk.f32.vlgmr.msra.gmra.mrb[54].mxu1 %vm992_vm3, %v8266_v55 }
0x328c   : > { %13191 = vmatprep.mubr.msk.f32.mxu1 %vm14286_vm4, %v14284_v13 }
0x335e   : > { %v15903_v24 = vpop.f32.mrb[54].mxu1 }
0x335f   : > { %v8355_v43 = vadd.f32 %v8353_v19, %v15903_v24  ;;  %v13188_v3 = vpop.f32.mrb[55].mxu1  ;;  %v15911_v18 = vadd.f32 %v8342_v21, %v15903_v24 }
0x3361   : > { %8372 = vrot.lane.b32.xlu1 %v8355_v43, %s16521_s7  ;;  %v8357_v28 = vcombine.high %v8355_v43, %v8355_v43  ;;  %v15921_v8 = vcombine.high %v15911_v18, %v15911_v18  ;;  %v8370_v41 = vmul.f32 %v14764_v36, %v15911_v18  ;;  %v8552_v38 = vmul.f32 %v14767_v37, %v15911_v18 }
0x3363   : > { %v8371_v34 = vmul.f32 %v14764_v36, %v15921_v8  ;;  %v8553_v44 = vmul.f32 %v14767_v37, %v15921_v8 }
0x3365   : > { %8449 = vrot.lane.b32.xlu1 %v8357_v28, %s16521_s7 }
0x33d3   : > { %v15913_v40 = vpop.permute.xlu1 %8372 }
0x33d4   : > { %13190 = vmatpush3.xpose.msk.msra.mxu1 %vm992_vm3, %v15913_v40  ;;  %13200 = vmatpush3.xpose.msk.msra.mxu0 %vm992_vm3, %v15913_v40 }
0x33d5   : > { %13194 = vmatprep.subr.mxu1 %v14284_v13  ;;  %13209 = vmatprep.subr.mxu0 %v14284_v13 }
0x33d7   : > { %v15929_v46 = vpop.permute.xlu1 %8449  ;;  %13192 = vmatmul.mubr.msk.f32.vlgmr.msra.gmra.mrb[56].mxu1 %vm992_vm3, %v8370_v41  ;;  %13202 = vmatmul.mubr.msk.f32.vlgmr.msra.gmra.mrb[60].mxu0 %vm992_vm3, %v8552_v38 }
0x33d8   : > { %13195 = vmatpush3.xpose.msk.msra.mxu1 %vm992_vm3, %v15929_v46  ;;  %13196 = vmatprep.mubr.msk.f32.mxu1 %vm14286_vm4, %v14284_v13 }
0x33d9   : > { %13204 = vmatprep.subr.mxu1 %v14284_v13  ;;  %13211 = vmatprep.mubr.msk.f32.mxu0 %vm14286_vm4, %v14284_v13 }
0x33db   : > { %13197 = vmatmul.mubr.msk.f32.vlgmr.msra.gmra.mrb[58].mxu1 %vm992_vm3, %v8371_v34 }
0x33dc   : > { %13205 = vmatpush3.xpose.msk.msra.mxu1 %vm992_vm3, %v15929_v46  ;;  %13206 = vmatprep.mubr.msk.f32.mxu1 %vm14286_vm4, %v14284_v13 }
0x33dd   : > { %13214 = vmatprep.subr.mxu1 %v14284_v13 }
0x33df   : > { %13207 = vmatmul.mubr.msk.f32.vlgmr.msra.gmra.mrb[60].mxu1 %vm992_vm3, %v8553_v44 }
0x33e0   : > { %13216 = vmatprep.mubr.msk.f32.mxu1 %vm14286_vm4, %v14284_v13 }
0x34aa   : > { %v8445_v33 = vpop.f32.mrb[56].mxu1  ;;  %v8623_v35 = vpop.f32.mrb[60].mxu0 }
0x34ab   : > { %v8700_v47 = vmul.f32 0.35355338, %v8623_v35  ;;  %v13193_v11 = vpop.f32.mrb[57].mxu1  ;;  %v13203_v39 = vpop.f32.mrb[61].mxu0  ;;  %v8526_v56 = vmul.f32 0.35355338, %v8445_v33 }
0x34ad   : > { %v8702_v1 = vsel %vm4978_vm7, %v8700_v47, -inf  ;;  %v8528_v59 = vsel %vm4978_vm7, %v8526_v56, -inf }
0x34ae   : > { %8703 = vmax.xlane.f32.xlu0 %v8702_v1  ;;  %v8522_v9 = vpop.f32.mrb[58].mxu1 }
0x34af   : > { %v13198_v60 = vpop.f32.mrb[59].mxu1  ;;  %v8527_v42 = vmul.f32 0.35355338, %v8522_v9 }
0x34b1   : > { %v8531_v6 = vsel %vm4978_vm7, %v8527_v42, -inf }
0x34b2   : > { %8529 = vmax.xlane.f32.xlu0 %v8528_v59  ;;  %v8696_v27 = vpop.f32.mrb[60].mxu1 }
0x34b3   : > { %v8701_v53 = vmul.f32 0.35355338, %v8696_v27  ;;  %v13208_v5 = vpop.f32.mrb[61].mxu1 }
0x34b5   : > { %v8705_v62 = vsel %vm4978_vm7, %v8701_v53, -inf }
0x34b6   : > { %8532 = vmax.xlane.f32.xlu0 %v8531_v6  ;;  %8706 = vmax.xlane.f32.xlu1 %v8705_v62 }
0x34c7   : > { %8363 = vrot.lane.b32.xlu1 %v8361_v0, %s16524_s11 }
0x353b   : > { %v8704_v31 = vpop.xlane.xlu0 %8703 }
0x353c   : > { %v8708_v4 = vsub.f32 %v8700_v47, %v8704_v31 }
0x353e   : > { %v8710_v10 = vmul.f32 1.442695, %v8708_v4 }
0x353f   : > { %v8530_v55 = vpop.xlane.xlu0 %8529 }
0x3540   : > { %13955 = vpow2.f32 %v8710_v10  ;;  %v8534_v19 = vsub.f32 %v8526_v56, %v8530_v55 }
0x3542   : > { %v8536_v43 = vmul.f32 1.442695, %v8534_v19 }
0x3543   : > { %v8533_v3 = vpop.xlane.xlu0 %8532  ;;  %v8707_v28 = vpop.xlane.xlu1 %8706 }
0x3544   : > { %13957 = vpow2.f32 %v8536_v43  ;;  %v8535_v21 = vsub.f32 %v8527_v42, %v8533_v3  ;;  %v8709_v41 = vsub.f32 %v8701_v53, %v8707_v28  ;;  %v9038_v28 = vmul.f32 %v14857_v52, %v15911_v18 }
0x3546   : > { %v8538_v38 = vmul.f32 1.442695, %v8535_v21  ;;  %v8712_v34 = vmul.f32 1.442695, %v8709_v41 }
0x3547   : > { %v8364_v44 = vpop.permute.xlu1 %8363 }
0x3548   : > { %13959 = vpow2.f32 %v8538_v38  ;;  %v15961_v33 = vadd.f32 %v8364_v44, %v15903_v24 }
0x3549   : > { %13961 = vpow2.f32 %v8712_v34  ;;  %v9039_v34 = vmul.f32 %v14857_v52, %v15921_v8 }
0x354a   : > { %v13956_v35 = vpop.eup %13955  ;;  %v8724_v47 = vmul.f32 %v15961_v33, %v14822_v7  ;;  %v15969_v56 = vcombine.high %v15961_v33, %v15961_v33  ;;  %v8550_v1 = vmul.f32 %v15961_v33, %v14830_v20 }
0x354b   : > { %v8714_v11 = vsel %vm4978_vm7, %v13956_v35, 0.0 }
0x354c   : > { %8715 = vadd.xlane.f32.xlu0 %v8714_v11  ;;  %8727 = vrot.lane.b32.xlu1 %v8724_v47, %s16524_s11  ;;  %v8551_v60 = vmul.f32 %v15969_v56, %v14830_v20  ;;  %v8725_v53 = vmul.f32 %v15969_v56, %v14822_v7 }
0x354e   : > { %v13958_v39 = vpop.eup %13957 }
0x354f   : > { %v8540_v24 = vsel %vm4978_vm7, %v13958_v39, 0.0 }
0x3550   : > { %8541 = vadd.xlane.f32.xlu0 %v8540_v24  ;;  %8883 = vrot.lane.b32.xlu1 %v8550_v1, %s16524_s11 }
0x3552   : > { %v13960_v9 = vpop.eup %13959 }
0x3553   : > { %v8543_v42 = vsel %vm4978_vm7, %v13960_v9, 0.0  ;;  %v13962_v59 = vpop.eup %13961 }
0x3554   : > { %8544 = vadd.xlane.f32.xlu0 %v8543_v42  ;;  %8961 = vrot.lane.b32.xlu1 %v8551_v60, %s16524_s11  ;;  %v8717_v27 = vsel %vm4978_vm7, %v13962_v59, 0.0  ;;  %v9210_v60 = vmul.f32 %v15961_v33, %v14889_v14 }
0x3558   : > { %8718 = vadd.xlane.f32.xlu0 %v8717_v27 }
0x356e   : > { %8805 = vrot.lane.b32.xlu0 %v8725_v53, %s16524_s11 }
0x35be   : > { %v8728_v5 = vpop.permute.xlu1 %8727 }
0x35bf   : > { %13210 = vmatpush3.msk.msra.mxu0 %vm898_vm0, %v8728_v5 }
0x35c0   : > { %13219 = vmatprep.subr.mxu0 %v14284_v13 }
0x35c2   : > { %v8884_v10 = vpop.permute.xlu1 %8883 }
0x35c6   : > { %v8962_v21 = vpop.permute.xlu1 %8961 }
0x35d9   : > { %v8716_v20 = vpop.xlane.xlu0 %8715 }
0x35da   : > { %13963 = vrcp.f32 %v8716_v20 }
0x35dd   : > { %v8542_v6 = vpop.xlane.xlu0 %8541 }
0x35de   : > { %13965 = vrcp.f32 %v8542_v6 }
0x35e1   : > { %v8545_v62 = vpop.xlane.xlu0 %8544 }
0x35e4   : > { %v13964_v0 = vpop.eup %13963 }
0x35e5   : > { %v8722_v31 = vmul.f32 %v13964_v0, %v13956_v35  ;;  %v8719_v4 = vpop.xlane.xlu0 %8718 }
0x35e6   : > { %13967 = vrcp.f32 %v8719_v4 }
0x35e7   : > { %13212 = vmatmul.mubr.msk.f32.vlgmr.msra.gmra.mrb[62].mxu0 %vm891_vm1, %v8722_v31  ;;  %13969 = vrcp.f32 %v8545_v62 }
0x35e8   : > { %13220 = vmatpush3.msk.msra.mxu0 %vm898_vm0, %v8884_v10  ;;  %13221 = vmatprep.mubr.msk.f32.mxu0 %vm14286_vm4, %v14284_v13  ;;  %v13966_v55 = vpop.eup %13965  ;;  %v9211_v10 = vmul.f32 %v15969_v56, %v14889_v14  ;;  %v9370_v14 = vmul.f32 %v14907_v29, %v15911_v18  ;;  %v9371_v18 = vmul.f32 %v14907_v29, %v15921_v8 }
0x35e9   : > { %v8806_v7 = vpop.permute.xlu0 %8805  ;;  %13229 = vmatprep.subr.mxu0 %v14284_v13  ;;  %v8548_v19 = vmul.f32 %v13966_v55, %v13958_v39 }
0x35ea   : > { %13215 = vmatpush3.msk.msra.mxu1 %vm898_vm0, %v8806_v7 }
0x35eb   : > { %13224 = vmatprep.subr.mxu1 %v14284_v13 }
0x35ef   : > { %13222 = vmatmul.mubr.msk.f32.vlgmr.msra.gmra.mrb[62].mxu0 %vm891_vm1, %v8548_v19 }
0x35f0   : > { %v13968_v43 = vpop.eup %13967  ;;  %13230 = vmatpush3.xpose.msk.msra.mxu0 %vm992_vm3, %v15913_v40  ;;  %13231 = vmatprep.mubr.msk.f32.mxu0 %vm14286_vm4, %v14284_v13 }
0x35f1   : > { %v8723_v3 = vmul.f32 %v13968_v43, %v13962_v59  ;;  %13239 = vmatprep.subr.mxu0 %v14284_v13  ;;  %v13970_v41 = vpop.eup %13969 }
0x35f2   : > { %v8549_v38 = vmul.f32 %v13970_v41, %v13960_v9 }
0x35f3   : > { %13217 = vmatmul.mubr.msk.f32.vlgmr.msra.gmra.mrb[62].mxu1 %vm891_vm1, %v8723_v3  ;;  %13232 = vmatmul.mubr.msk.f32.vlgmr.msra.gmra.mrb[64].mxu0 %vm992_vm3, %v9038_v28 }
0x35f4   : > { %13225 = vmatpush3.msk.msra.mxu1 %vm898_vm0, %v8962_v21  ;;  %13226 = vmatprep.mubr.msk.f32.mxu1 %vm14286_vm4, %v14284_v13 }
0x35f5   : > { %13234 = vmatprep.subr.mxu1 %v14284_v13  ;;  %13241 = vmatprep.mubr.msk.f32.mxu0 %vm14286_vm4, %v14284_v13 }
0x35fb   : > { %13227 = vmatmul.mubr.msk.f32.vlgmr.msra.gmra.mrb[62].mxu1 %vm891_vm1, %v8549_v38 }
0x35fc   : > { %13235 = vmatpush3.xpose.msk.msra.mxu1 %vm992_vm3, %v15929_v46  ;;  %13236 = vmatprep.mubr.msk.f32.mxu1 %vm14286_vm4, %v14284_v13 }
0x35fd   : > { %13244 = vmatprep.subr.mxu1 %v14284_v13 }
0x35ff   : > { %13237 = vmatmul.mubr.msk.f32.vlgmr.msra.gmra.mrb[64].mxu1 %vm992_vm3, %v9039_v34 }
0x3600   : > { %13246 = vmatprep.mubr.msk.f32.mxu1 %vm14286_vm4, %v14284_v13 }
0x36c6   : > { %v9109_v44 = vpop.f32.mrb[64].mxu0 }
0x36c7   : > { %v9186_v35 = vmul.f32 0.35355338, %v9109_v44  ;;  %v13233_v47 = vpop.f32.mrb[65].mxu0 }
0x36c9   : > { %v9188_v11 = vsel %vm4978_vm7, %v9186_v35, -inf }
0x36ca   : > { %9189 = vmax.xlane.f32.xlu1 %v9188_v11 }
0x36d2   : > { %v9182_v39 = vpop.f32.mrb[64].mxu1 }
0x36d3   : > { %v9187_v1 = vmul.f32 0.35355338, %v9182_v39  ;;  %v13238_v24 = vpop.f32.mrb[65].mxu1 }
0x36d5   : > { %v9191_v9 = vsel %vm4978_vm7, %v9187_v1, -inf }
0x36d6   : > { %9192 = vmax.xlane.f32.xlu0 %v9191_v9 }
0x36ec   : > { %9213 = vrot.lane.b32.xlu0 %v9210_v60, %s16524_s11 }
0x3757   : > { %v9190_v42 = vpop.xlane.xlu1 %9189 }
0x3758   : > { %v9194_v59 = vsub.f32 %v9186_v35, %v9190_v42 }
0x375a   : > { %v9196_v27 = vmul.f32 1.442695, %v9194_v59 }
0x375c   : > { %13971 = vpow2.f32 %v9196_v27 }
0x3763   : > { %v9193_v53 = vpop.xlane.xlu0 %9192 }
0x3764   : > { %v9195_v5 = vsub.f32 %v9187_v1, %v9193_v53  ;;  %v9542_v53 = vmul.f32 %v15961_v33, %v14932_v57 }
0x3766   : > { %v13972_v20 = vpop.eup %13971  ;;  %v9198_v6 = vmul.f32 1.442695, %v9195_v5  ;;  %v9543_v5 = vmul.f32 %v15969_v56, %v14932_v57 }
0x3767   : > { %v9214_v62 = vpop.permute.xlu0 %9213  ;;  %v9200_v0 = vsel %vm4978_vm7, %v13972_v20, 0.0 }
0x3768   : > { %13973 = vpow2.f32 %v9198_v6  ;;  %9201 = vadd.xlane.f32.xlu1 %v9200_v0  ;;  %13240 = vmatpush3.msk.msra.mxu0 %vm898_vm0, %v9214_v62 }
0x3769   : > { %13249 = vmatprep.subr.mxu0 %v14284_v13 }
0x3772   : > { %v13974_v31 = vpop.eup %13973 }
0x3773   : > { %v9203_v4 = vsel %vm4978_vm7, %v13974_v31, 0.0 }
0x3774   : > { %9204 = vadd.xlane.f32.xlu1 %v9203_v4  ;;  %v12264_v4 = vld [vmem:[%s16516_s2 + $0x20] sm:$0xff] }
0x3785   : > { %9291 = vrot.lane.b32.xlu1 %v9211_v10, %s16524_s11  ;;  %v12265_v10 = vld [vmem:[%s16516_s2 + $0x28] sm:$0xff] }
0x37f5   : > { %v9202_v7 = vpop.xlane.xlu1 %9201 }
0x37f6   : > { %13975 = vrcp.f32 %v9202_v7  ;;  %v12266_v7 = vld [vmem:[%s16516_s2 + $0x30] sm:$0xff] }
0x3800   : > { %v13976_v55 = vpop.eup %13975 }
0x3801   : > { %v9208_v19 = vmul.f32 %v13976_v55, %v13972_v20  ;;  %v9205_v43 = vpop.xlane.xlu1 %9204  ;;  %v13571_v55 = vpack.c.bf16 %v12265_v10, %v12264_v4  ;;  %v12271_v4 = vld [vmem:[%s16519_s1 + $0x30] sm:$0xff]  ;;  %v12272_v10 = vld [vmem:[%s16519_s1 + $0x38] sm:$0xff] }
0x3802   : > { %13977 = vrcp.f32 %v9205_v43 }
0x3803   : > { %13242 = vmatmul.mubr.msk.f32.vlgmr.msra.gmra.mrb[62].mxu0 %vm891_vm1, %v9208_v19  ;;  %v12267_v19 = vld [vmem:[%s16516_s2 + $0x38] sm:$0xff] }
0x3804   : > { %13250 = vmatpush3.xpose.msk.msra.mxu0 %vm992_vm3, %v15913_v40  ;;  %13251 = vmatprep.mubr.msk.f32.mxu0 %vm14286_vm4, %v14284_v13  ;;  %v13574_v43 = vpack.c.bf16 %v12267_v19, %v12266_v7  ;;  %v13580_v7 = vpack.c.bf16 %v12272_v10, %v12271_v4 }
0x3805   : > { %v9292_v3 = vpop.permute.xlu1 %9291  ;;  %13259 = vmatprep.subr.mxu0 %v14284_v13 }
0x3806   : > { %13245 = vmatpush3.msk.msra.mxu1 %vm898_vm0, %v9292_v3  ;;  %v12274_v3 = vld [vmem:[%s16518_s0 + $0x20] sm:$0xff] }
0x3807   : > { %13252 = vmatmul.mubr.msk.f32.vlgmr.msra.gmra.mrb[66].mxu0 %vm992_vm3, %v9370_v14  ;;  %13254 = vmatprep.subr.mxu1 %v14284_v13  ;;  %v12275_v14 = vld [vmem:[%s16518_s0 + $0x28] sm:$0xff] }
0x3808   : > { %13261 = vmatprep.mubr.msk.f32.mxu0 %vm14286_vm4, %v14284_v13 }
0x380c   : > { %v13978_v28 = vpop.eup %13977 }
0x380d   : > { %v9209_v40 = vmul.f32 %v13978_v28, %v13974_v31  ;;  %v13582_v28 = vpack.c.bf16 %v12275_v14, %v12274_v3  ;;  %v9852_v3 = vrot.slane %v15882_v49, %v15000_v16  ;;  %v9861_v14 = vrot.slane %v15882_v49, %v15003_v17 }
0x380f   : > { %13247 = vmatmul.mubr.msk.f32.vlgmr.msra.gmra.mrb[62].mxu1 %vm891_vm1, %v9209_v40 }
0x3810   : > { %13255 = vmatpush3.xpose.msk.msra.mxu1 %vm992_vm3, %v15929_v46  ;;  %13256 = vmatprep.mubr.msk.f32.mxu1 %vm14286_vm4, %v14284_v13 }
0x3811   : > { %13264 = vmatprep.subr.mxu1 %v14284_v13 }
0x3813   : > { %13257 = vmatmul.mubr.msk.f32.vlgmr.msra.gmra.mrb[66].mxu1 %vm992_vm3, %v9371_v18 }
0x3814   : > { %13266 = vmatprep.mubr.msk.f32.mxu1 %vm14286_vm4, %v14284_v13 }
0x38da   : > { %v9441_v21 = vpop.f32.mrb[66].mxu0 }
0x38db   : > { %v9518_v41 = vmul.f32 0.35355338, %v9441_v21  ;;  %v13253_v38 = vpop.f32.mrb[67].mxu0  ;;  %v12276_v21 = vld [vmem:[%s16518_s0 + $0x30] sm:$0xff] }
0x38dd   : > { %v9520_v34 = vsel %vm4978_vm7, %v9518_v41, -inf }
0x38de   : > { %9521 = vmax.xlane.f32.xlu1 %v9520_v34 }
0x38e6   : > { %v9514_v46 = vpop.f32.mrb[66].mxu1 }
0x38e7   : > { %v9519_v44 = vmul.f32 0.35355338, %v9514_v46  ;;  %v13258_v35 = vpop.f32.mrb[67].mxu1 }
0x38e8   : > { %v9710_v35 = vrot.slane %v15882_v49, %v14959_v30 }
0x38e9   : > { %v9523_v47 = vsel %vm4978_vm7, %v9519_v44, -inf }
0x38ea   : > { %9524 = vmax.xlane.f32.xlu0 %v9523_v47 }
0x396b   : > { %v9522_v8 = vpop.xlane.xlu1 %9521 }
0x396c   : > { %v9526_v11 = vsub.f32 %v9518_v41, %v9522_v8  ;;  %v12277_v41 = vld [vmem:[%s16518_s0 + $0x38] sm:$0xff] }
0x396e   : > { %v9528_v39 = vmul.f32 1.442695, %v9526_v11 }
0x3970   : > { %13979 = vpow2.f32 %v9528_v39 }
0x3977   : > { %v9525_v1 = vpop.xlane.xlu0 %9524 }
0x3978   : > { %v9527_v24 = vsub.f32 %v9519_v44, %v9525_v1  ;;  %v13586_v44 = vpack.c.bf16 %v12277_v41, %v12276_v21  ;;  %v9854_v21 = vcombine.high %v9852_v3, %v9852_v3 }
0x397a   : > { %v13980_v9 = vpop.eup %13979  ;;  %v9530_v60 = vmul.f32 1.442695, %v9527_v24  ;;  %v10037_v24 = vrot.slane %v15882_v49, %v15053_v32 }
0x397b   : > { %v9532_v42 = vsel %vm4978_vm7, %v13980_v9, 0.0 }
0x397c   : > { %13981 = vpow2.f32 %v9530_v60  ;;  %9533 = vadd.xlane.f32.xlu0 %v9532_v42 }
0x3986   : > { %v13982_v59 = vpop.eup %13981 }
0x3987   : > { %v9535_v27 = vsel %vm4978_vm7, %v13982_v59, 0.0 }
0x3988   : > { %9536 = vadd.xlane.f32.xlu1 %v9535_v27 }
0x3992   : > { %9545 = vrot.lane.b32.xlu0 %v9542_v53, %s16524_s11 }
0x3999   : > { %9623 = vrot.lane.b32.xlu1 %v9543_v5, %s16524_s11 }
0x3a09   : > { %v9534_v20 = vpop.xlane.xlu0 %9533 }
0x3a0a   : > { %13983 = vrcp.f32 %v9534_v20 }
0x3a0d   : > { %v9546_v6 = vpop.permute.xlu0 %9545 }
0x3a0e   : > { %13260 = vmatpush3.msk.msra.mxu0 %vm898_vm0, %v9546_v6 }
0x3a0f   : > { %13570 = vmatprep.subr.bf16.mxu0 %v14289_v26 }
0x3a14   : > { %v13984_v62 = vpop.eup %13983 }
0x3a15   : > { %v9540_v0 = vmul.f32 %v13984_v62, %v13980_v9  ;;  %v9537_v31 = vpop.xlane.xlu1 %9536 }
0x3a16   : > { %13985 = vrcp.f32 %v9537_v31 }
0x3a17   : > { %13262 = vmatmul.mubr.msk.f32.vlgmr.msra.gmra.mrb[62].mxu0 %vm891_vm1, %v9540_v0 }
0x3a18   : > { %13277 = vmatprep.mubr.msk.f32.mxu0 %vm14286_vm4, %v14284_v13  ;;  %13572 = vmatpush3.bf16.msra.mxu0 %v13571_v55 }
0x3a19   : > { %v9624_v33 = vpop.permute.xlu1 %9623  ;;  %13573 = vmatprep.subr.bf16.mxu0 %v14289_v26 }
0x3a1a   : > { %13265 = vmatpush3.msk.msra.mxu1 %vm898_vm0, %v9624_v33  ;;  %v12269_v33 = vld [vmem:[%s16519_s1 + $0x20] sm:$0xff] }
0x3a1b   : > { %13576 = vmatprep.subr.bf16.mxu1 %v14289_v26 }
0x3a1c   : > { %13575 = vmatpush3.bf16.msra.mxu0 %v13574_v43 }
0x3a1d   : > { %13583 = vmatprep.subr.bf16.mxu0 %v13582_v28 }
0x3a20   : > { %v13986_v57 = vpop.eup %13985 }
0x3a21   : > { %v9541_v56 = vmul.f32 %v13986_v57, %v13982_v59  ;;  %v12270_v57 = vld [vmem:[%s16519_s1 + $0x28] sm:$0xff] }
0x3a23   : > { %13267 = vmatmul.mubr.msk.f32.vlgmr.msra.gmra.mrb[62].mxu1 %vm891_vm1, %v9541_v56  ;;  %v13577_v56 = vpack.c.bf16 %v12270_v57, %v12269_v33 }
0x3a24   : > { %13288 = vmatprep.mubr.msk.f32.mxu1 %vm14286_vm4, %v14284_v13 }
0x3a25   : > { %13578 = vmatpush3.bf16.msra.mxu1 %v13577_v56 }
0x3a26   : > { %13579 = vmatprep.subr.bf16.mxu1 %v14289_v26 }
0x3a29   : > { %13581 = vmatpush3.bf16.msra.mxu1 %v13580_v7  ;;  %v16204_v7 = vld [vmem:[%s16513_s3 + $0x18] sm:$0x7f] }
0x3a2a   : > { %13302 = vmatprep.subr.mxu1 %v14284_v13 }
0x3aea   : > { %v9618_v40 = vpop.f32.mrb[62].mxu0 }
0x3aeb   : > { %v13263_v18 = vpop.f32.mrb[63].mxu0 }
0x3af6   : > { %v9696_v38 = vpop.f32.mrb[62].mxu1 }
0x3af7   : > { %v9713_v34 = vcombine.low %v9618_v40, %v9696_v38  ;;  %v13268_v46 = vpop.f32.mrb[63].mxu1 }
0x3af9   : > { %13278 = vmatmul.mubr.msk.f32.vlgmr.msra.gmra.mrb[68].mxu0 %vm992_vm3, %v9713_v34  ;;  %v9863_v34 = vcombine.high %v9861_v14, %v9861_v14 }
0x3afa   : > { %13585 = vmatpush3.bf16.msra.mxu0 %v13582_v28  ;;  %13299 = vmatprep.mubr.msk.f32.mxu0 %vm992_vm3, %v15575_v25 }
0x3afb   : > { %13587 = vmatprep.subr.bf16.mxu0 %v13586_v44 }
0x3afe   : > { %13589 = vmatpush3.bf16.msra.mxu0 %v13586_v44 }
0x3aff   : > { %13312 = vmatprep.subr.mxu0 %v14284_v13 }
0x3b01   : > { %13300 = vmatmul.mubr.msk.f32.vlgmr.msra.gmra.mrb[70].mxu0 %vm992_vm3, %v15618_v23 }
0x3b02   : > { %13314 = vmatprep.mubr.msk.f32.mxu0 %vm14286_vm4, %v14284_v13 }
0x3bcc   : > { %v9782_v47 = vpop.f32.mrb[68].mxu0 }
0x3bcd   : > { %v9783_v8 = vadd.f32 %v9782_v47, %v9710_v35  ;;  %v13279_v11 = vpop.f32.mrb[69].mxu0 }
0x3bce   : > { %v9875_v11 = vrot.slane %v15882_v49, %v15023_v48 }
0x3bcf   : > { %v9787_v39 = vcombine.high %v9783_v8, %v9783_v8  ;;  %v9789_v1 = vadd.f32 %v9783_v8, %v15894_v63 }
0x3bd1   : > { %v9790_v25 = vadd.f32 %v9787_v39, %v15896_v2 }
0x3bd3   : > { %v9793_v9 = vcombine.low %v9789_v1, %v9790_v25 }
0x3bd4   : > { %v16114_v60 = vpop.f32.mrb[70].mxu0 }
0x3bd5   : > { %v16117_v23 = vadd.f32 %v16114_v60, %v10037_v24  ;;  %v16119_v42 = vpop.f32.mrb[71].mxu0  ;;  %v9795_v59 = vsel %vm992_vm3, %v9793_v9, 0.0 }
0x3bd6   : > { %v16123_v27 = vadd.f32 %v10037_v24, %v16119_v42  ;;  %9796 = vadd.xlane.f32.xlu1 %v9795_v59 }
0x3bd8   : > { %13313 = vmatpush3.xpose.msk.msra.mxu0 %vm992_vm3, %v16123_v27 }
0x3bd9   : > { %13322 = vmatprep.subr.mxu0 %v14284_v13 }
0x3c63   : > { %v9797_v32 = vpop.xlane.xlu1 %9796 }
0x3c64   : > { %v9798_v63 = vmul.f32 0.03125, %v9797_v32 }
0x3c66   : > { %v9806_v2 = vrot.slane %v9798_v63, %v15559_v58  ;;  %v9813_v53 = vrot.slane %v9798_v63, %v15562_v51 }
0x3c68   : > { %v9816_v5 = vsub.f32 %v9789_v1, %v9806_v2  ;;  %v9817_v20 = vsub.f32 %v9790_v25, %v9813_v53 }
0x3c6a   : > { %v9818_v6 = vmul.f32 %v9816_v5, %v9816_v5  ;;  %v9819_v62 = vmul.f32 %v9817_v20, %v9817_v20 }
0x3c6c   : > { %v9822_v0 = vcombine.low %v9818_v6, %v9819_v62 }
0x3c6e   : > { %v9824_v31 = vsel %vm992_vm3, %v9822_v0, 0.0 }
0x3c6f   : > { %9825 = vadd.xlane.f32.xlu0 %v9824_v31 }
0x3cfc   : > { %v9826_v55 = vpop.xlane.xlu0 %9825 }
0x3cfd   : > { %v9827_v19 = vmul.f32 0.03125, %v9826_v55  ;;  %v10043_v55 = vrot.slane %v16204_v7, %v14724_v15 }
0x3cff   : > { %v9828_v43 = vadd.f32 1e-05, %v9827_v19 }
0x3d01   : > { %13987 = vrsqrt.f32 %v9828_v43 }
0x3d0b   : > { %v13988_v28 = vpop.eup %13987 }
0x3d0c   : > { %v9837_v40 = vrot.slane %v13988_v28, %v15559_v58  ;;  %v9844_v18 = vrot.slane %v13988_v28, %v15562_v51 }
0x3d0e   : > { %v9847_v41 = vmul.f32 %v9837_v40, %v9816_v5  ;;  %v9848_v38 = vmul.f32 %v9844_v18, %v9817_v20 }
0x3d10   : > { %v9856_v46 = vmul.f32 %v9852_v3, %v9847_v41  ;;  %v9857_v44 = vmul.f32 %v9854_v21, %v9848_v38 }
0x3d12   : > { %v16151_v35 = vadd.f32 %v9861_v14, %v9856_v46  ;;  %v16153_v47 = vadd.f32 %v9863_v34, %v9857_v44 }
0x3d14   : > { %v9878_v8 = vcombine.low %v16151_v35, %v16153_v47 }
0x3d16   : > { %13289 = vmatmul.mubr.msk.f32.vlgmr.msra.gmra.mrb[68].mxu1 %vm992_vm3, %v9878_v8 }
0x3d17   : > { %13303 = vmatpush3.xpose.msk.msra.mxu1 %vm992_vm3, %v16123_v27  ;;  %13304 = vmatprep.mubr.msk.f32.mxu1 %vm14286_vm4, %v14284_v13 }
0x3d18   : > { %13307 = vmatprep.subr.mxu1 %v14284_v13 }
0x3de9   : > { %v9947_v39 = vpop.f32.mrb[68].mxu1 }
0x3dea   : > { %v16165_v1 = vadd.f32 %v9947_v39, %v9875_v11  ;;  %v13290_v25 = vpop.f32.mrb[69].mxu1 }
0x3dec   : > { %v16169_v24 = vcombine.high %v16165_v1, %v16165_v1  ;;  %v10050_v9 = vmul.f32 %v14764_v36, %v16165_v1  ;;  %v10230_v59 = vmul.f32 %v14767_v37, %v16165_v1 }
0x3dee   : > { %13305 = vmatmul.mubr.msk.f32.vlgmr.msra.gmra.mrb[70].mxu1 %vm992_vm3, %v10050_v9  ;;  %13315 = vmatmul.mubr.msk.f32.vlgmr.msra.gmra.mrb[72].mxu0 %vm992_vm3, %v10230_v59  ;;  %v10051_v49 = vmul.f32 %v14764_v36, %v16169_v24  ;;  %v10231_v32 = vmul.f32 %v14767_v37, %v16169_v24 }
0x3def   : > { %13308 = vmatpush3.xpose.msk.msra.mxu1 %vm992_vm3, %v16117_v23  ;;  %13309 = vmatprep.mubr.msk.f32.mxu1 %vm14286_vm4, %v14284_v13 }
0x3df0   : > { %13317 = vmatprep.subr.mxu1 %v14284_v13  ;;  %13324 = vmatprep.mubr.msk.f32.mxu0 %vm14286_vm4, %v14284_v13 }
0x3df2   : > { %13310 = vmatmul.mubr.msk.f32.vlgmr.msra.gmra.mrb[72].mxu1 %vm992_vm3, %v10051_v49 }
0x3df3   : > { %13318 = vmatpush3.xpose.msk.msra.mxu1 %vm992_vm3, %v16117_v23  ;;  %13319 = vmatprep.mubr.msk.f32.mxu1 %vm14286_vm4, %v14284_v13 }
0x3df4   : > { %13327 = vmatprep.subr.mxu1 %v14284_v13 }
0x3df6   : > { %13320 = vmatmul.mubr.msk.f32.vlgmr.msra.gmra.mrb[74].mxu1 %vm992_vm3, %v10231_v32 }
0x3df7   : > { %13329 = vmatprep.mubr.msk.f32.mxu1 %vm14286_vm4, %v14284_v13 }
0x3ec1   : > { %v10124_v36 = vpop.f32.mrb[70].mxu1  ;;  %v10301_v63 = vpop.f32.mrb[72].mxu0 }
0x3ec2   : > { %v10378_v2 = vmul.f32 0.35355338, %v10301_v63  ;;  %v13306_v53 = vpop.f32.mrb[71].mxu1  ;;  %v13316_v5 = vpop.f32.mrb[73].mxu0  ;;  %v10204_v20 = vmul.f32 0.35355338, %v10124_v36 }
0x3ec4   : > { %v10380_v6 = vsel %vm6660_vm8, %v10378_v2, -inf  ;;  %v10206_v37 = vsel %vm6660_vm8, %v10204_v20, -inf }
0x3ec5   : > { %10381 = vmax.xlane.f32.xlu0 %v10380_v6  ;;  %v10200_v62 = vpop.f32.mrb[72].mxu1 }
0x3ec6   : > { %v13311_v0 = vpop.f32.mrb[73].mxu1  ;;  %v10205_v56 = vmul.f32 0.35355338, %v10200_v62 }
0x3ec8   : > { %v10209_v10 = vsel %vm6660_vm8, %v10205_v56, -inf }
0x3ec9   : > { %10207 = vmax.xlane.f32.xlu0 %v10206_v37  ;;  %v10374_v31 = vpop.f32.mrb[74].mxu1 }
0x3eca   : > { %v10379_v33 = vmul.f32 0.35355338, %v10374_v31  ;;  %v13321_v57 = vpop.f32.mrb[75].mxu1 }
0x3ecc   : > { %v10383_v4 = vsel %vm6660_vm8, %v10379_v33, -inf }
0x3ecd   : > { %10384 = vmax.xlane.f32.xlu1 %v10383_v4 }
0x3ed1   : > { %10210 = vmax.xlane.f32.xlu1 %v10209_v10  ;;  %v10712_v10 = vmul.f32 %v14857_v52, %v16165_v1 }
0x3edf   : > { %10045 = vrot.lane.b32.xlu0 %v10043_v55, %s16520_s5  ;;  %s858_s5 = scalar_lea.vmem %s16528_s6, %s16527_s8 }
0x3f52   : > { %v10382_v19 = vpop.xlane.xlu0 %10381 }
0x3f53   : > { %v10386_v43 = vsub.f32 %v10378_v2, %v10382_v19 }
0x3f55   : > { %v10388_v3 = vmul.f32 1.442695, %v10386_v43  ;;  %v10713_v43 = vmul.f32 %v14857_v52, %v16169_v24 }
0x3f56   : > { %v10208_v14 = vpop.xlane.xlu0 %10207 }
0x3f57   : > { %13989 = vpow2.f32 %v10388_v3  ;;  %v10212_v28 = vsub.f32 %v10204_v20, %v10208_v14 }
0x3f59   : > { %v10214_v40 = vmul.f32 1.442695, %v10212_v28 }
0x3f5a   : > { %v10046_v18 = vpop.permute.xlu0 %10045  ;;  %v10385_v21 = vpop.xlane.xlu1 %10384 }
0x3f5b   : > { %13991 = vpow2.f32 %v10214_v40  ;;  %v16210_v41 = vadd.f32 %v16114_v60, %v10046_v18  ;;  %v16213_v38 = vadd.f32 %v10046_v18, %v16119_v42  ;;  %v10387_v34 = vsub.f32 %v10379_v33, %v10385_v21 }
0x3f5d   : > { %v10403_v15 = vmul.f32 %v16210_v41, %v15693_v22  ;;  %v10390_v11 = vmul.f32 1.442695, %v10387_v34  ;;  %v10228_v25 = vmul.f32 %v16213_v38, %v15705_v50  ;;  %v10229_v9 = vmul.f32 %v16210_v41, %v15705_v50 }
0x3f5e   : > { %v10211_v46 = vpop.xlane.xlu1 %10210  ;;  %v10402_v2 = vmul.f32 %v16213_v38, %v15693_v22  ;;  %v10884_v52 = vmul.f32 %v16213_v38, %v15749_v54 }
0x3f5f   : > { %v10213_v44 = vsub.f32 %v10205_v56, %v10211_v46  ;;  %10482 = vrot.lane.b32.xlu0 %v10403_v15, %s16521_s7 }
0x3f61   : > { %v13990_v8 = vpop.eup %13989  ;;  %v10216_v39 = vmul.f32 1.442695, %v10213_v44 }
0x3f62   : > { %v10392_v60 = vsel %vm6660_vm8, %v13990_v8, 0.0 }
0x3f63   : > { %13993 = vpow2.f32 %v10216_v39  ;;  %10559 = vrot.lane.b32.xlu0 %v10228_v25, %s16521_s7  ;;  %10393 = vadd.xlane.f32.xlu1 %v10392_v60 }
0x3f64   : > { %13995 = vpow2.f32 %v10390_v11 }
0x3f65   : > { %v13992_v42 = vpop.eup %13991 }
0x3f66   : > { %v10218_v59 = vsel %vm6660_vm8, %v13992_v42, 0.0 }
0x3f67   : > { %10636 = vrot.lane.b32.xlu0 %v10229_v9, %s16521_s7  ;;  %10219 = vadd.xlane.f32.xlu1 %v10218_v59 }
0x3f6d   : > { %v13994_v49 = vpop.eup %13993 }
0x3f6e   : > { %v10221_v32 = vsel %vm6660_vm8, %v13994_v49, 0.0  ;;  %v13996_v36 = vpop.eup %13995 }
0x3f6f   : > { %10222 = vadd.xlane.f32.xlu1 %v10221_v32  ;;  %v10395_v63 = vsel %vm6660_vm8, %v13996_v36, 0.0  ;;  %v10885_v32 = vmul.f32 %v16210_v41, %v15749_v54  ;;  %v11042_v54 = vmul.f32 %v14907_v29, %v16165_v1 }
0x3f73   : > { %10396 = vadd.xlane.f32.xlu1 %v10395_v63 }
0x3f84   : > { %10405 = vrot.lane.b32.xlu1 %v10402_v2, %s16521_s7 }
0x3fd1   : > { %v10483_v53 = vpop.permute.xlu0 %10482 }
0x3fd2   : > { %13328 = vmatpush3.msra.mxu1 %v10483_v53 }
0x3fd3   : > { %13337 = vmatprep.subr.mxu1 %v14284_v13 }
0x3fd5   : > { %v10560_v31 = vpop.permute.xlu0 %10559 }
0x3fd9   : > { %v10637_v4 = vpop.permute.xlu0 %10636 }
0x3ff0   : > { %v10394_v50 = vpop.xlane.xlu1 %10393 }
0x3ff1   : > { %13997 = vrcp.f32 %v10394_v50 }
0x3ff4   : > { %v10220_v5 = vpop.xlane.xlu1 %10219 }
0x3ff5   : > { %13999 = vrcp.f32 %v10220_v5 }
0x3ffb   : > { %v13998_v62 = vpop.eup %13997 }
0x3ffc   : > { %v10223_v20 = vpop.xlane.xlu1 %10222  ;;  %v10400_v0 = vmul.f32 %v13998_v62, %v13990_v8 }
0x3fff   : > { %v14000_v22 = vpop.eup %13999 }
0x4000   : > { %v10397_v6 = vpop.xlane.xlu1 %10396  ;;  %v10226_v57 = vmul.f32 %v14000_v22, %v13992_v42 }
0x4001   : > { %14001 = vrcp.f32 %v10397_v6 }
0x4002   : > { %14003 = vrcp.f32 %v10223_v20 }
0x4004   : > { %v10406_v37 = vpop.permute.xlu1 %10405 }
0x4005   : > { %13323 = vmatpush3.msra.mxu0 %v10406_v37 }
0x4006   : > { %13325 = vmatmul.mubr.msk.f32.vlgmr.msra.gmra.mrb[74].mxu0 %vm1260_vm9, %v10400_v0  ;;  %13332 = vmatprep.subr.mxu0 %v14284_v13 }
0x4007   : > { %13333 = vmatpush3.msra.mxu0 %v10560_v31  ;;  %13334 = vmatprep.mubr.msk.f32.mxu0 %vm14286_vm4, %v14284_v13 }
0x4008   : > { %13342 = vmatprep.subr.mxu0 %v14284_v13 }
0x400b   : > { %v14002_v33 = vpop.eup %14001 }
0x400c   : > { %v10401_v56 = vmul.f32 %v14002_v33, %v13996_v36  ;;  %v14004_v55 = vpop.eup %14003 }
0x400d   : > { %v10227_v19 = vmul.f32 %v14004_v55, %v13994_v49 }
0x400e   : > { %13330 = vmatmul.mubr.msk.f32.vlgmr.msra.gmra.mrb[76].mxu1 %vm1260_vm9, %v10401_v56  ;;  %13335 = vmatmul.mubr.msk.f32.vlgmr.msra.gmra.mrb[74].mxu0 %vm1260_vm9, %v10226_v57 }
0x400f   : > { %13338 = vmatpush3.msra.mxu1 %v10637_v4  ;;  %13343 = vmatpush3.xpose.msk.msra.mxu0 %vm992_vm3, %v16123_v27 }
0x4010   : > { %13344 = vmatprep.mubr.msk.f32.mxu0 %vm14286_vm4, %v14284_v13  ;;  %13339 = vmatprep.mubr.msk.f32.mxu1 %vm14286_vm4, %v14284_v13 }
0x4011   : > { %13347 = vmatprep.subr.mxu1 %v14284_v13  ;;  %13352 = vmatprep.subr.mxu0 %v14284_v13 }
0x4012   : > { %13345 = vmatmul.mubr.msk.f32.vlgmr.msra.gmra.mrb[76].mxu0 %vm992_vm3, %v10712_v10 }
0x4013   : > { %13354 = vmatprep.mubr.msk.f32.mxu0 %vm14286_vm4, %v14284_v13 }
0x4016   : > { %13340 = vmatmul.mubr.msk.f32.vlgmr.msra.gmra.mrb[76].mxu1 %vm1260_vm9, %v10227_v19 }
0x4017   : > { %13348 = vmatpush3.xpose.msk.msra.mxu1 %vm992_vm3, %v16117_v23  ;;  %13349 = vmatprep.mubr.msk.f32.mxu1 %vm14286_vm4, %v14284_v13 }
0x4018   : > { %13357 = vmatprep.subr.mxu1 %v14284_v13 }
0x401a   : > { %13350 = vmatmul.mubr.msk.f32.vlgmr.msra.gmra.mrb[78].mxu1 %vm992_vm3, %v10713_v43 }
0x401b   : > { %13359 = vmatprep.mubr.msk.f32.mxu1 %vm14286_vm4, %v14284_v13 }
0x40e5   : > { %v10783_v3 = vpop.f32.mrb[76].mxu0 }
0x40e6   : > { %v10860_v14 = vmul.f32 0.35355338, %v10783_v3  ;;  %v13346_v28 = vpop.f32.mrb[77].mxu0  ;;  %v11214_v3 = vmul.f32 %v16213_v38, %v15787_v45  ;;  %v11373_v38 = vld [vmem:[#allocation9 + $0x20] sm:$0xff] }
0x40e8   : > { %v10862_v40 = vsel %vm6660_vm8, %v10860_v14, -inf }
0x40e9   : > { %10863 = vmax.xlane.f32.xlu0 %v10862_v40 }
0x40ed   : > { %v10856_v18 = vpop.f32.mrb[78].mxu1 }
0x40ee   : > { %v10861_v21 = vmul.f32 0.35355338, %v10856_v18  ;;  %v13351_v34 = vpop.f32.mrb[79].mxu1 }
0x40f0   : > { %v10865_v15 = vsel %vm6660_vm8, %v10861_v21, -inf }
0x40f1   : > { %10866 = vmax.xlane.f32.xlu1 %v10865_v15 }
0x4102   : > { %10887 = vrot.lane.b32.xlu1 %v10884_v52, %s16521_s7  ;;  %v11374_v52 = vld [vmem:[#allocation9 + $0x28] sm:$0xff] }
0x4176   : > { %v10864_v46 = vpop.xlane.xlu0 %10863 }
0x4177   : > { %v10868_v44 = vsub.f32 %v10860_v14, %v10864_v46  ;;  %v11215_v14 = vmul.f32 %v16210_v41, %v15787_v45  ;;  %v13591_v46 = vpack.c.bf16 %v11374_v52, %v11373_v38 }
0x4179   : > { %v10870_v8 = vmul.f32 1.442695, %v10868_v44  ;;  %v11375_v44 = vld [vmem:[#allocation9 + $0x30] sm:$0xff] }
0x417b   : > { %14005 = vpow2.f32 %v10870_v8  ;;  %v11376_v8 = vld [vmem:[#allocation9 + $0x38] sm:$0xff] }
0x417e   : > { %v10867_v11 = vpop.xlane.xlu1 %10866 }
0x417f   : > { %v10869_v39 = vsub.f32 %v10861_v21, %v10867_v11  ;;  %v13594_v11 = vpack.c.bf16 %v11376_v8, %v11375_v44 }
0x4181   : > { %v10872_v25 = vmul.f32 1.442695, %v10869_v39 }
0x4182   : > { %v10888_v60 = vpop.permute.xlu1 %10887 }
0x4183   : > { %14007 = vpow2.f32 %v10872_v25  ;;  %13353 = vmatpush3.msra.mxu0 %v10888_v60 }
0x4184   : > { %13362 = vmatprep.subr.mxu0 %v14284_v13 }
0x4185   : > { %v14006_v42 = vpop.eup %14005 }
0x4186   : > { %v10874_v9 = vsel %vm6660_vm8, %v14006_v42, 0.0 }
0x4187   : > { %10875 = vadd.xlane.f32.xlu0 %v10874_v9 }
0x418d   : > { %v14008_v59 = vpop.eup %14007 }
0x418e   : > { %v10877_v49 = vsel %vm6660_vm8, %v14008_v59, 0.0 }
0x418f   : > { %10878 = vadd.xlane.f32.xlu0 %v10877_v49 }
0x41a5   : > { %10964 = vrot.lane.b32.xlu0 %v10885_v32, %s16521_s7 }
0x4214   : > { %v10876_v36 = vpop.xlane.xlu0 %10875 }
0x4215   : > { %14009 = vrcp.f32 %v10876_v36 }
0x421c   : > { %v10879_v63 = vpop.xlane.xlu0 %10878 }
0x421d   : > { %14011 = vrcp.f32 %v10879_v63 }
0x421f   : > { %v14010_v2 = vpop.eup %14009 }
0x4220   : > { %v10882_v53 = vmul.f32 %v14010_v2, %v14006_v42  ;;  %v10965_v50 = vpop.permute.xlu0 %10964 }
0x4221   : > { %13358 = vmatpush3.msra.mxu1 %v10965_v50 }
0x4222   : > { %13355 = vmatmul.mubr.msk.f32.vlgmr.msra.gmra.mrb[74].mxu0 %vm1260_vm9, %v10882_v53  ;;  %13367 = vmatprep.subr.mxu1 %v14284_v13 }
0x4223   : > { %13363 = vmatpush3.xpose.msk.msra.mxu0 %vm992_vm3, %v16123_v27  ;;  %13364 = vmatprep.mubr.msk.f32.mxu0 %vm14286_vm4, %v14284_v13  ;;  %v11043_v27 = vmul.f32 %v14907_v29, %v16169_v24 }
0x4224   : > { %13372 = vmatprep.subr.mxu0 %v14284_v13 }
0x4226   : > { %13365 = vmatmul.mubr.msk.f32.vlgmr.msra.gmra.mrb[78].mxu0 %vm992_vm3, %v11042_v54 }
0x4227   : > { %v14012_v5 = vpop.eup %14011  ;;  %13374 = vmatprep.mubr.msk.f32.mxu0 %vm14286_vm4, %v14284_v13 }
0x4228   : > { %v10883_v20 = vmul.f32 %v14012_v5, %v14008_v59  ;;  %v11380_v59 = vrot.slane %v16204_v7, %v14716_v12 }
0x422a   : > { %13360 = vmatmul.mubr.msk.f32.vlgmr.msra.gmra.mrb[76].mxu1 %vm1260_vm9, %v10883_v20 }
0x422b   : > { %13368 = vmatpush3.xpose.msk.msra.mxu1 %vm992_vm3, %v16117_v23  ;;  %13369 = vmatprep.mubr.msk.f32.mxu1 %vm14286_vm4, %v14284_v13 }
0x422c   : > { %13377 = vmatprep.subr.mxu1 %v14284_v13 }
0x422e   : > { %13370 = vmatmul.mubr.msk.f32.vlgmr.msra.gmra.mrb[80].mxu1 %vm992_vm3, %v11043_v27 }
0x422f   : > { %13379 = vmatprep.mubr.msk.f32.mxu1 %vm14286_vm4, %v14284_v13 }
0x42f9   : > { %v11113_v1 = vpop.f32.mrb[78].mxu0 }
0x42fa   : > { %v11190_v6 = vmul.f32 0.35355338, %v11113_v1  ;;  %v13366_v62 = vpop.f32.mrb[79].mxu0 }
0x42fc   : > { %v11192_v0 = vsel %vm6660_vm8, %v11190_v6, -inf }
0x42fd   : > { %11193 = vmax.xlane.f32.xlu1 %v11192_v0 }
0x4301   : > { %v11186_v23 = vpop.f32.mrb[80].mxu1 }
0x4302   : > { %v11191_v37 = vmul.f32 0.35355338, %v11186_v23  ;;  %v13371_v31 = vpop.f32.mrb[81].mxu1 }
0x4303   : > { %v11540_v31 = vld [vmem:[#allocation10 + $0x30] sm:$0xff] }
0x4304   : > { %v11195_v22 = vsel %vm6660_vm8, %v11191_v37, -inf }
0x4305   : > { %11196 = vmax.xlane.f32.xlu0 %v11195_v22 }
0x438a   : > { %v11194_v29 = vpop.xlane.xlu1 %11193 }
0x438b   : > { %v11198_v24 = vsub.f32 %v11190_v6, %v11194_v29  ;;  %v11541_v29 = vld [vmem:[#allocation10 + $0x38] sm:$0xff] }
0x438d   : > { %v11200_v33 = vmul.f32 1.442695, %v11198_v24  ;;  %v13600_v24 = vpack.c.bf16 %v11541_v29, %v11540_v31  ;;  %v11794_v31 = vld [vmem:[%s16525_s12 + $0x8] sm:$0xff]  ;;  %v11795_v29 = vld [vmem:[%s16525_s12 + $0x10] sm:$0xff] }
0x438f   : > { %14013 = vpow2.f32 %v11200_v33  ;;  %v12307_v33 = vld [vmem:[%s16523_s17 + $0x40] sm:$0xff] }
0x4392   : > { %v11197_v57 = vpop.xlane.xlu0 %11196 }
0x4393   : > { %v11199_v56 = vsub.f32 %v11191_v37, %v11197_v57  ;;  %v12308_v57 = vld [vmem:[%s16523_s17 + $0x48] sm:$0xff] }
0x4395   : > { %v11202_v4 = vmul.f32 1.442695, %v11199_v56  ;;  %v12309_v56 = vld [vmem:[%s16523_s17 + $0x50] sm:$0xff] }
0x4397   : > { %14015 = vpow2.f32 %v11202_v4  ;;  %v13603_v4 = vpack.c.bf16 %v12308_v57, %v12307_v33 }
0x4399   : > { %v14014_v10 = vpop.eup %14013 }
0x439a   : > { %v11204_v55 = vsel %vm6660_vm8, %v14014_v10, 0.0 }
0x439b   : > { %11205 = vadd.xlane.f32.xlu1 %v11204_v55 }
0x43a1   : > { %v14016_v19 = vpop.eup %14015 }
0x43a2   : > { %v11207_v43 = vsel %vm6660_vm8, %v14016_v19, 0.0 }
0x43a3   : > { %11208 = vadd.xlane.f32.xlu0 %v11207_v43  ;;  %v12312_v43 = vld [vmem:[%s16523_s17 + $0x68] sm:$0xff] }
0x43ac   : > { %11217 = vrot.lane.b32.xlu1 %v11214_v3, %s16521_s7 }
0x43b9   : > { %11294 = vrot.lane.b32.xlu0 %v11215_v14, %s16521_s7 }
0x4428   : > { %v11206_v28 = vpop.xlane.xlu1 %11205 }
0x4429   : > { %14017 = vrcp.f32 %v11206_v28 }
0x442c   : > { %v11218_v40 = vpop.permute.xlu1 %11217 }
0x442d   : > { %13373 = vmatpush3.msra.mxu0 %v11218_v40 }
0x442e   : > { %13590 = vmatprep.subr.bf16.mxu0 %v14289_v26 }
0x4430   : > { %v11209_v18 = vpop.xlane.xlu0 %11208 }
0x4431   : > { %14019 = vrcp.f32 %v11209_v18  ;;  %v11522_v18 = vrot.slane %v16204_v7, %v14817_v61  ;;  %v12313_v61 = vld [vmem:[%s16523_s17 + $0x70] sm:$0xff] }
0x4433   : > { %v14018_v21 = vpop.eup %14017 }
0x4434   : > { %v11212_v34 = vmul.f32 %v14018_v21, %v14014_v10  ;;  %v11295_v15 = vpop.permute.xlu0 %11294  ;;  %v12310_v10 = vld [vmem:[%s16523_s17 + $0x58] sm:$0xff]  ;;  %v11531_v21 = vrot.slane %v16204_v7, %v14959_v30 }
0x4435   : > { %13378 = vmatpush3.msra.mxu1 %v11295_v15  ;;  %v13606_v55 = vpack.c.bf16 %v12310_v10, %v12309_v56  ;;  %v12314_v30 = vld [vmem:[%s16523_s17 + $0x78] sm:$0xff]  ;;  %v11778_v10 = vrot.slane %v16204_v7, %v15003_v17  ;;  %v12316_v17 = vld [vmem:[%s16526_s4] ss:$0 sm:$0xff] }
0x4436   : > { %13375 = vmatmul.mubr.msk.f32.vlgmr.msra.gmra.mrb[74].mxu0 %vm1260_vm9, %v11212_v34  ;;  %13596 = vmatprep.subr.bf16.mxu1 %v14289_v26 }
0x4437   : > { %13390 = vmatprep.mubr.msk.f32.mxu0 %vm14286_vm4, %v14284_v13  ;;  %13592 = vmatpush3.bf16.msra.mxu0 %v13591_v46  ;;  %v11533_v46 = vcombine.high %v11531_v21, %v11531_v21 }
0x4438   : > { %13593 = vmatprep.subr.bf16.mxu0 %v14289_v26 }
0x443b   : > { %v14020_v45 = vpop.eup %14019  ;;  %13595 = vmatpush3.bf16.msra.mxu0 %v13594_v11 }
0x443c   : > { %v11213_v41 = vmul.f32 %v14020_v45, %v14016_v19  ;;  %13602 = vmatprep.subr.bf16.mxu0 %v14289_v26  ;;  %v12311_v19 = vld [vmem:[%s16523_s17 + $0x60] sm:$0xff] }
0x443d   : > { %v13609_v3 = vpack.c.bf16 %v12312_v43, %v12311_v19  ;;  %v11780_v43 = vcombine.high %v11778_v10, %v11778_v10 }
0x443e   : > { %13380 = vmatmul.mubr.msk.f32.vlgmr.msra.gmra.mrb[76].mxu1 %vm1260_vm9, %v11213_v41  ;;  %v11524_v41 = vcombine.high %v11522_v18, %v11522_v18 }
0x443f   : > { %13401 = vmatprep.mubr.msk.f32.mxu1 %vm14286_vm4, %v14284_v13 }
0x4509   : > { %v11289_v39 = vpop.f32.mrb[74].mxu0 }
0x450a   : > { %v13376_v25 = vpop.f32.mrb[75].mxu0 }
0x4511   : > { %v11366_v60 = vpop.f32.mrb[76].mxu1 }
0x4512   : > { %v11383_v42 = vcombine.low %v11289_v39, %v11366_v60  ;;  %v13381_v9 = vpop.f32.mrb[77].mxu1  ;;  %v13612_v60 = vpack.c.bf16 %v12314_v30, %v12313_v61 }
0x4514   : > { %13391 = vmatmul.mubr.msk.f32.vlgmr.msra.gmra.mrb[80].mxu0 %vm992_vm3, %v11383_v42  ;;  %v12305_v42 = vld [vmem:[#allocation12 + $0x1] ss:$0 sm:$0xff] }
0x4515   : > { %13420 = vmatprep.mubr.msk.f32.mxu0 %vm14286_vm4, %v14284_v13  ;;  %13604 = vmatpush3.bf16.msra.mxu0 %v13603_v4 }
0x4516   : > { %13605 = vmatprep.subr.bf16.mxu0 %v14289_v26 }
0x4519   : > { %13607 = vmatpush3.bf16.msra.mxu0 %v13606_v55  ;;  %v11787_v55 = vrot.slane %v16204_v7, %v15023_v48 }
0x451a   : > { %13608 = vmatprep.subr.bf16.mxu0 %v14289_v26 }
0x451d   : > { %13610 = vmatpush3.bf16.msra.mxu0 %v13609_v3 }
0x451e   : > { %13611 = vmatprep.subr.bf16.mxu0 %v14289_v26 }
0x4521   : > { %13613 = vmatpush3.bf16.msra.mxu0 %v13612_v60 }
0x45e7   : > { %v11452_v49 = vpop.f32.mrb[80].mxu0 }
0x45e8   : > { %v11453_v32 = vadd.f32 %v11452_v49, %v11380_v59  ;;  %v13392_v36 = vpop.f32.mrb[81].mxu0 }
0x45ea   : > { %v11457_v63 = vcombine.high %v11453_v32, %v11453_v32  ;;  %v11459_v2 = vadd.f32 %v11453_v32, %v16151_v35  ;;  %v11538_v35 = vld [vmem:[#allocation10 + $0x20] sm:$0xff] }
0x45ec   : > { %v11460_v53 = vadd.f32 %v11457_v63, %v16153_v47  ;;  %v11539_v47 = vld [vmem:[#allocation10 + $0x28] sm:$0xff] }
0x45ed   : > { %v13597_v22 = vpack.c.bf16 %v11539_v47, %v11538_v35  ;;  %v11793_v47 = vld [vmem:[%s16525_s12] sm:$0xff] }
0x45ee   : > { %v11463_v50 = vcombine.low %v11459_v2, %v11460_v53 }
0x45ef   : > { %13598 = vmatpush3.bf16.msra.mxu1 %v13597_v22  ;;  %v13615_v22 = vpack.c.bf16 %v11794_v31, %v11793_v47 }
0x45f0   : > { %v11465_v54 = vsel %vm992_vm3, %v11463_v50, 0.0  ;;  %13599 = vmatprep.subr.bf16.mxu1 %v14289_v26 }
0x45f1   : > { %11466 = vadd.xlane.f32.xlu1 %v11465_v54 }
0x45f3   : > { %13601 = vmatpush3.bf16.msra.mxu1 %v13600_v24  ;;  %v11796_v24 = vld [vmem:[%s16525_s12 + $0x18] sm:$0xff] }
0x45f4   : > { %13614 = vmatprep.subr.bf16.mxu1 %v14289_v26  ;;  %v13618_v33 = vpack.c.bf16 %v11796_v24, %v11795_v29 }
0x467e   : > { %v11467_v5 = vpop.xlane.xlu1 %11466 }
0x467f   : > { %v11468_v20 = vmul.f32 0.03125, %v11467_v5 }
0x4681   : > { %v11476_v27 = vrot.slane %v11468_v20, %v15559_v58  ;;  %v11483_v1 = vrot.slane %v11468_v20, %v15562_v51 }
0x4683   : > { %v11486_v6 = vsub.f32 %v11459_v2, %v11476_v27  ;;  %v11487_v12 = vsub.f32 %v11460_v53, %v11483_v1 }
0x4685   : > { %v11488_v62 = vmul.f32 %v11486_v6, %v11486_v6  ;;  %v11489_v0 = vmul.f32 %v11487_v12, %v11487_v12 }
0x4687   : > { %v11492_v23 = vcombine.low %v11488_v62, %v11489_v0 }
0x4689   : > { %v11494_v37 = vsel %vm992_vm3, %v11492_v23, 0.0 }
0x468a   : > { %11495 = vadd.xlane.f32.xlu0 %v11494_v37 }
0x4717   : > { %v11496_v14 = vpop.xlane.xlu0 %11495 }
0x4718   : > { %v11497_v28 = vmul.f32 0.03125, %v11496_v14 }
0x471a   : > { %v11498_v40 = vadd.f32 1e-05, %v11497_v28 }
0x471c   : > { %14021 = vrsqrt.f32 %v11498_v40  ;;  %v11789_v40 = vcombine.high %v11787_v55, %v11787_v55 }
0x4726   : > { %v14022_v34 = vpop.eup %14021 }
0x4727   : > { %v11507_v15 = vrot.slane %v14022_v34, %v15559_v58  ;;  %v11514_v45 = vrot.slane %v14022_v34, %v15562_v51 }
0x4729   : > { %v11517_v38 = vmul.f32 %v11507_v15, %v11486_v6  ;;  %v11518_v52 = vmul.f32 %v11514_v45, %v11487_v12 }
0x472b   : > { %v11526_v44 = vmul.f32 %v11522_v18, %v11517_v38  ;;  %v11527_v8 = vmul.f32 %v11524_v41, %v11518_v52 }
0x472d   : > { %v11535_v11 = vadd.f32 %v11531_v21, %v11526_v44  ;;  %v11536_v39 = vadd.f32 %v11533_v46, %v11527_v8 }
0x472f   : > { %v11552_v25 = vcombine.low %v11535_v11, %v11536_v39 }
0x4731   : > { %13402 = vmatmul.mubr.msk.f32.vlgmr.msra.gmra.mrb[82].mxu1 %vm992_vm3, %v11552_v25 }
0x4732   : > { %13431 = vmatprep.mubr.msk.f32.mxu1 %vm14286_vm4, %v14284_v13  ;;  %v11638_v13 = vrot.slane %v16204_v7, %v15000_v16  ;;  %13616 = vmatpush3.bf16.msra.mxu1 %v13615_v22 }
0x4733   : > { %13617 = vmatprep.subr.bf16.mxu1 %v14289_v26 }
0x4736   : > { %13619 = vmatpush3.bf16.msra.mxu1 %v13618_v33 }
0x4804   : > { %v11621_v9 = vpop.f32.mrb[82].mxu1 }
0x4805   : > { %v11622_v59 = vadd.f32 %v12305_v42, %v11621_v9  ;;  %v13403_v49 = vpop.f32.mrb[83].mxu1 }
0x4807   : > { %v11625_v32 = vmax.f32 %v11622_v59, 0.0 }
0x4809   : > { %13421 = vmatmul.mubr.msk.f32.vlgmr.msra.gmra.mrb[82].mxu0 %vm2679_vm2, %v11625_v32 }
0x48dc   : > { %v11708_v36 = vpop.f32.mrb[82].mxu0 }
0x48dd   : > { %v11709_v63 = vadd.f32 %v11708_v36, %v11638_v13  ;;  %v13422_v2 = vpop.f32.mrb[83].mxu0 }
0x48df   : > { %v11713_v53 = vcombine.high %v11709_v63, %v11709_v63  ;;  %v11715_v50 = vadd.f32 %v11709_v63, %v11535_v11 }
0x48e1   : > { %v11716_v54 = vadd.f32 %v11713_v53, %v11536_v39 }
0x48e3   : > { %v11719_v5 = vcombine.low %v11715_v50, %v11716_v54 }
0x48e5   : > { %v11721_v20 = vsel %vm992_vm3, %v11719_v5, 0.0 }
0x48e6   : > { %11722 = vadd.xlane.f32.xlu1 %v11721_v20 }
0x4973   : > { %v11723_v27 = vpop.xlane.xlu1 %11722 }
0x4974   : > { %v11724_v1 = vmul.f32 0.03125, %v11723_v27 }
0x4976   : > { %v11732_v6 = vrot.slane %v11724_v1, %v15559_v58  ;;  %v11739_v12 = vrot.slane %v11724_v1, %v15562_v51 }
0x4978   : > { %v11742_v62 = vsub.f32 %v11715_v50, %v11732_v6  ;;  %v11743_v0 = vsub.f32 %v11716_v54, %v11739_v12 }
0x497a   : > { %v11744_v23 = vmul.f32 %v11742_v62, %v11742_v62  ;;  %v11745_v16 = vmul.f32 %v11743_v0, %v11743_v0 }
0x497c   : > { %v11748_v37 = vcombine.low %v11744_v23, %v11745_v16 }
0x497e   : > { %v11750_v35 = vsel %vm992_vm3, %v11748_v37, 0.0 }
0x497f   : > { %11751 = vadd.xlane.f32.xlu0 %v11750_v35 }
0x4a0c   : > { %v11752_v57 = vpop.xlane.xlu0 %11751 }
0x4a0d   : > { %v11753_v56 = vmul.f32 0.03125, %v11752_v57 }
0x4a0f   : > { %v11754_v4 = vadd.f32 1e-05, %v11753_v56 }
0x4a11   : > { %14023 = vrsqrt.f32 %v11754_v4 }
0x4a1b   : > { %v14024_v19 = vpop.eup %14023 }
0x4a1c   : > { %v11763_v3 = vrot.slane %v14024_v19, %v15559_v58  ;;  %v11770_v14 = vrot.slane %v14024_v19, %v15562_v51 }
0x4a1e   : > { %v11773_v28 = vmul.f32 %v11763_v3, %v11742_v62  ;;  %v11774_v26 = vmul.f32 %v11770_v14, %v11743_v0 }
0x4a20   : > { %v11782_v18 = vmul.f32 %v11778_v10, %v11773_v28  ;;  %v11783_v21 = vmul.f32 %v11780_v43, %v11774_v26 }
0x4a22   : > { %v11791_v34 = vadd.f32 %v11787_v55, %v11782_v18  ;;  %v11792_v15 = vadd.f32 %v11789_v40, %v11783_v21 }
0x4a24   : > { %v11806_v45 = vcombine.low %v11791_v34, %v11792_v15 }
0x4a26   : > { %13432 = vmatmul.mubr.msk.f32.vlgmr.msra.gmra.mrb[84].mxu1 %vm992_vm3, %v11806_v45 }
0x4af9   : > { %v11875_v48 = vpop.f32.mrb[84].mxu1 }
0x4afa   : > { %v11876_v58 = vadd.f32 %v12316_v17, %v11875_v48  ;;  %v13433_v51 = vpop.f32.mrb[85].mxu1 }
0x4afc   : > { %v11880_v7 = vcombine.high %v11876_v58, %v11876_v58  ;;  %11882 = vst [vmem:[%s858_s5] sm:$0xf] %v11876_v58 }
0x4afe   : > { %11883 = vst [vmem:[%s858_s5 + $0x4] sm:$0xf] %v11880_v7 }
0x4aff PF: > { %p36_p5 = scmp.ge.s32.totalorder %s14590_s28, 4   ;;  %s16529_s4 = smov %s14263_s30 }
0x4b00   : > { %s16530_s30 = smov %s14267_s24  ;;  %s16531_s24 = smov %s14602_s16 }
0x4b01   : > { %s16532_s25 = smov %s14590_s28  ;;  %38 = sbr.rel (!%p36_p5) target bundleno = 26 (0x1a), region = 197 }
0x4b08   :  { %11906 = vsyncpa [#allocation3], 1 }
0x4b09   :  { %11908 = vsyncpa [#allocation3 + $0x1], 1 }
0x4b0a   :  { %11909 = vsyncpa [#allocation5], 1 }
0x4b0b   :  { %11910 = vsyncpa [#allocation8], 1 }
0x4b0c   :  { %11911 = vsyncpa [#allocation11], 1 }

</bundles_post_ra>
